<compile_context>
chip_gen: v5e
topology: v5e:2x2
jax: 0.10.0
libtpu: 0.0.40
codegen_flags: <defaults>
</compile_context>

<pallas_src>
import jax
import jax.numpy as jnp
from jax.experimental import pallas as pl
from jax.experimental.pallas import tpu as pltpu

CO_PAD = 128          # lane-dense conv output channels
FC_HID_PAD = 1024     # 1000 -> 1024
FC_OUT_PAD = 128      # 10 -> 128


# -----------------------------------------------------------------------------
# Pallas kernels
# -----------------------------------------------------------------------------
def conv_relu_pool_kernel(p_ref, w_ref, b_ref, o_ref):
    """Fused conv (im2col matmul, 4 pool quadrants merged) + maxpool + bias + ReLU.

    p_ref: (1, 4*P, F)   bf16  quadrant-major im2col patches (row = q*P + p)
    w_ref: (F, 128)      bf16  conv weight matrix, Co zero-padded to 128
    b_ref: (1, 128)      f32   conv bias, zero-padded to 128
    o_ref: (1, P, 128)   bf16  pooled output (row p = h2*(W/2) + w2), lane-dense
    """
    P = o_ref.shape[1]
    # One large-M MXU matmul (M = 4P) instead of four small ones.
    z = jnp.dot(p_ref[0], w_ref[...], preferred_element_type=jnp.float32)   # (4P, 128)
    # 2x2 max-pool = elementwise max over the 4 contiguous quadrant row groups.
    m = jnp.maximum(jnp.maximum(z[0 * P:1 * P], z[1 * P:2 * P]),
                    jnp.maximum(z[2 * P:3 * P], z[3 * P:4 * P]))
    # Bias + ReLU once after the max (both commute with max).  Pad channels stay 0.
    o_ref[0] = jnp.maximum(m + b_ref[...], 0.0).astype(o_ref.dtype)


def fc_fused_kernel(x_ref, w1_ref, b1_ref, w2_ref, b2_ref, o_ref, acc_ref):
    """Fused fc1(+ReLU) -> fc2 -> Softmax.

    Grid runs over w1 column tiles; each step computes h_tile = relu(x@w1_tile+b1_tile)
    and accumulates its fc2 contribution h_tile @ w2_rows into an f32 scratch.
    The last step adds b2, masks the padded logit lanes and applies softmax.
    """
    j = pl.program_id(0)

    @pl.when(j == 0)
    def _():
        acc_ref[...] = jnp.zeros_like(acc_ref)

    h = jnp.dot(x_ref[...], w1_ref[...], preferred_element_type=jnp.float32) + b1_ref[...]
    h = jnp.maximum(h, 0.0).astype(jnp.bfloat16)                     # (N, tile) bf16
    acc_ref[...] += jnp.dot(h, w2_ref[...], preferred_element_type=jnp.float32)

    @pl.when(j == pl.num_programs(0) - 1)
    def _():
        logits = acc_ref[...] + b2_ref[...]                          # (N, 128) f32
        col = jax.lax.broadcasted_iota(jnp.int32, logits.shape, 1)
        logits = jnp.where(col < 10, logits, -jnp.inf)               # mask pad lanes
        m = jnp.max(logits, axis=-1, keepdims=True)
        e = jnp.exp(logits - m)
        o_ref[...] = (e / jnp.sum(e, axis=-1, keepdims=True)).astype(o_ref.dtype)


# -----------------------------------------------------------------------------
# Glue: quadrant-major im2col (plain JAX, runs in bf16 so HBM traffic is halved)
# -----------------------------------------------------------------------------
def _im2col_pooled_qmajor(x_nhwc, K=5, pad=2):
    """x (N,H,W,Ci) bf16 -> patches (N, 4*P, Ci*K*K) bf16, rows ordered q*P + p."""
    N, H, W, Ci = x_nhwc.shape
    F = Ci * K * K
    xp = jnp.pad(x_nhwc, ((0, 0), (pad, pad), (pad, pad), (0, 0)))
    cols = [xp[:, kh:kh + H, kw:kw + W, :] for kh in range(K) for kw in range(K)]
    pat = jnp.stack(cols, axis=-1)                       # (N, H, W, Ci, K*K)
    pat = pat.reshape(N, H, W, F)                        # feature = ci*K*K + kh*K + kw
    pat = pat.reshape(N, H // 2, 2, W // 2, 2, F)
    pat = pat.transpose(0, 2, 4, 1, 3, 5)                # (N, dh, dw, H/2, W/2, F)
    return pat.reshape(N, 4 * (H // 2) * (W // 2), F)    # row = (dh*2+dw)*P + h2*(W/2)+w2


def conv_relu_pool(x_nhwc, w_mat, b_mat, K=5):
    N, H, W, Ci = x_nhwc.shape
    Co = w_mat.shape[1]                                  # 128 (padded)
    P = (H // 2) * (W // 2)
    F = Ci * K * K
    # TODO(synk): im2col still built in XLA glue; in-kernel build needs strided
    # sublane gathers and was left out for lowering robustness.
    patches = _im2col_pooled_qmajor(x_nhwc.astype(jnp.bfloat16), K)  # (N, 4P, F) bf16
    return pl.pallas_call(
        conv_relu_pool_kernel,
        out_shape=jax.ShapeDtypeStruct((N, P, Co), jnp.bfloat16),
        grid=(N,),
        in_specs=[
            pl.BlockSpec((1, 4 * P, F), lambda n: (n, 0, 0)),
            pl.BlockSpec((F, Co), lambda n: (0, 0)),
            pl.BlockSpec((1, Co), lambda n: (0, 0)),
        ],
        out_specs=pl.BlockSpec((1, P, Co), lambda n: (n, 0, 0)),
        compiler_params=pltpu.CompilerParams(
            dimension_semantics=("parallel",),
            vmem_limit_bytes=16 * 1024 * 1024),
    )(patches, w_mat, b_mat)


def fc_fused(x_bf16, w1, b1, w2, b2, *, tile=512):
    """Fused fc1+ReLU+fc2+Softmax. x (N,3136) bf16, w1 (3136,1024) bf16,
    b1 (1,1024) f32, w2 (1024,128) bf16, b2 (1,128) f32 -> (N,128) f32 probs."""
    N, Din = x_bf16.shape
    Dout = w1.shape[1]
    Co = w2.shape[1]
    assert Dout % tile == 0
    return pl.pallas_call(
        fc_fused_kernel,
        out_shape=jax.ShapeDtypeStruct((N, Co), jnp.float32),
        grid=(Dout // tile,),
        in_specs=[
            pl.BlockSpec((N, Din), lambda j: (0, 0)),
            pl.BlockSpec((Din, tile), lambda j: (0, j)),
            pl.BlockSpec((1, tile), lambda j: (0, j)),
            pl.BlockSpec((tile, Co), lambda j: (j, 0)),
            pl.BlockSpec((1, Co), lambda j: (0, 0)),
        ],
        out_specs=pl.BlockSpec((N, Co), lambda j: (0, 0)),
        scratch_shapes=[pltpu.VMEM((N, Co), jnp.float32)],
        compiler_params=pltpu.CompilerParams(
            dimension_semantics=("arbitrary",),     # logits accumulate across tiles
            vmem_limit_bytes=16 * 1024 * 1024),
    )(x_bf16, w1, b1, w2, b2)


# -----------------------------------------------------------------------------
# Parameter preparation (one-time, OUTSIDE the jitted forward): transposes,
# bf16 casts, channel/feature padding and the fc1 input-order permutation.
# -----------------------------------------------------------------------------
def prepare_params(p):
    def conv_mat(w_oikk):  # (Co,Ci,K,K) -> (Ci*K*K, 128) bf16, Co zero-padded
        Co = w_oikk.shape[0]
        m = jnp.transpose(w_oikk, (1, 2, 3, 0)).reshape(-1, Co)
        return jnp.pad(m, ((0, 0), (0, CO_PAD - Co))).astype(jnp.bfloat16)

    def conv_bias(b):      # (Co,) -> (1, 128) f32, zero-padded
        return jnp.pad(b, (0, CO_PAD - b.shape[0])).reshape(1, CO_PAD).astype(jnp.float32)

    # fc1: permute input dim from PyTorch (c,h,w) flatten order to (h,w,c) order
    # (matches the conv2 kernel's (P=h*7+w, c) output layout), transpose, pad, bf16.
    w1 = p["w_fc1"]                                                   # (1000, 3136)
    w1 = w1.reshape(1000, 64, 7, 7).transpose(0, 2, 3, 1).reshape(1000, 3136)
    w1 = jnp.pad(jnp.transpose(w1), ((0, 0), (0, FC_HID_PAD - 1000))).astype(jnp.bfloat16)
    b1 = jnp.pad(p["b_fc1"], (0, FC_HID_PAD - 1000)).reshape(1, FC_HID_PAD).astype(jnp.float32)

    # fc2: (10, 1000) -> (1024, 128) bf16, zero pad on both dims (lane-dense logits).
    w2 = jnp.transpose(p["w_fc2"])                                    # (1000, 10)
    w2 = jnp.pad(w2, ((0, FC_HID_PAD - 1000), (0, FC_OUT_PAD - 10))).astype(jnp.bfloat16)
    b2 = jnp.pad(p["b_fc2"], (0, FC_OUT_PAD - 10)).reshape(1, FC_OUT_PAD).astype(jnp.float32)

    return {
        "w_conv1": conv_mat(p["w_conv1"]), "b_conv1": conv_bias(p["b_conv1"]),
        "w_conv2": conv_mat(p["w_conv2"]), "b_conv2": conv_bias(p["b_conv2"]),
        "w_fc1": w1, "b_fc1": b1, "w_fc2": w2, "b_fc2": b2,
    }


# -----------------------------------------------------------------------------
# Net forward (matches the PyTorch module semantics at inference)
# -----------------------------------------------------------------------------
def net_forward(x_nchw, prep):
    N = x_nchw.shape[0]
    x = jnp.transpose(x_nchw, (0, 2, 3, 1))                               # NCHW -> NHWC
    y1 = conv_relu_pool(x, prep["w_conv1"], prep["b_conv1"])              # (N, 196, 128) bf16
    y1 = y1.reshape(N, 14, 14, CO_PAD)[..., :32]                          # drop pad channels
    y2 = conv_relu_pool(y1, prep["w_conv2"], prep["b_conv2"])             # (N, 49, 128) bf16
    flat = y2[:, :, :64].reshape(N, 49 * 64)                              # (h,w,c) flatten, bf16
    probs = fc_fused(flat, prep["w_fc1"], prep["b_fc1"],
                     prep["w_fc2"], prep["b_fc2"])                        # (N, 128) f32
    return probs[:, :10]


def init_params(key):
    ks = jax.random.split(key, 8)
    def w(k, shape, fan_in):
        return (jax.random.normal(k, shape, jnp.float32) / jnp.sqrt(fan_in)).astype(jnp.float32)
    return {
        "w_conv1": w(ks[0], (32, 1, 5, 5), 1 * 5 * 5),
        "b_conv1": w(ks[1], (32,), 1 * 5 * 5),
        "w_conv2": w(ks[2], (64, 32, 5, 5), 32 * 5 * 5),
        "b_conv2": w(ks[3], (64,), 32 * 5 * 5),
        "w_fc1":   w(ks[4], (1000, 3136), 3136),   # PyTorch Linear layout (out, in)
        "b_fc1":   w(ks[5], (1000,), 3136),
        "w_fc2":   w(ks[6], (10, 1000), 1000),
        "b_fc2":   w(ks[7], (10,), 1000),
    }


if __name__ == "__main__":
    key = jax.random.PRNGKey(0)
    k_x, k_p = jax.random.split(key)
    # MNIST-shaped input (fc1's 3136 = 64*7*7 fixes spatial to 28x28, Ci=1).
    x = jax.random.normal(k_x, (2, 1, 28, 28), jnp.float32)
    params = init_params(k_p)
    prep = prepare_params(params)           # one-time layout/dtype/padding prep, outside jit
    prep = jax.block_until_ready(prep)

    out = jax.jit(net_forward)(x, prep)
    out = jax.block_until_ready(out)

    assert out.shape == (2, 10)
    row_sums = jnp.sum(out, axis=1)
    assert bool(jnp.all(jnp.abs(row_sums - 1.0) < 1e-3)), "softmax rows must sum to 1"
    print("KERNEL_OK")
</pallas_src>

<mosaic_0001>
module attributes {stable_mosaic.version = 11 : i64} {
  func.func @conv_relu_pool_kernel(%arg0: i32, %arg1: memref<1x784x25xbf16, #tpu.memory_space<vmem>>, %arg2: memref<25x128xbf16, #tpu.memory_space<vmem>>, %arg3: memref<1x128xf32, #tpu.memory_space<vmem>>, %arg4: memref<1x196x128xbf16, #tpu.memory_space<vmem>>) attributes {dimension_semantics = [#tpu.dimension_semantics<parallel>], iteration_bounds = array<i64: 2>, scalar_prefetch = 0 : i64, scratch_operands = 0 : i64, tpu.core_type = #tpu.core_type<tc>, window_params = [{transform_indices = @transform_0, window_bounds = array<i64: 1, 784, 25>}, {pipeline_mode = #tpu.pipeline_mode<synchronous>, transform_indices = @transform_1, window_bounds = array<i64: 25, 128>}, {pipeline_mode = #tpu.pipeline_mode<synchronous>, transform_indices = @transform_2, window_bounds = array<i64: 1, 128>}, {transform_indices = @transform_3, window_bounds = array<i64: 1, 196, 128>}]} {
    %c0 = arith.constant 0 : index
    %c0_0 = arith.constant 0 : index
    %c0_1 = arith.constant 0 : index
    %0 = vector.load %arg1[%c0, %c0_0, %c0_1] : memref<1x784x25xbf16, #tpu.memory_space<vmem>>, vector<1x784x25xbf16>
    %1 = vector.shape_cast %0 : vector<1x784x25xbf16> to vector<784x25xbf16>
    %c0_2 = arith.constant 0 : index
    %c0_3 = arith.constant 0 : index
    %2 = vector.load %arg2[%c0_2, %c0_3] : memref<25x128xbf16, #tpu.memory_space<vmem>>, vector<25x128xbf16>
    %cst = arith.constant dense<0.000000e+00> : vector<784x128xf32>
    %3 = tpu.matmul %1, %2, %cst {dimension_numbers = #tpu.dot_dimension_numbers<[1], [0], [0], [1], [0, 0, 1, 1], [], []>} : vector<784x25xbf16>, vector<25x128xbf16>, vector<784x128xf32> -> vector<784x128xf32>
    %4 = vector.extract_strided_slice %3 {offsets = [0, 0], sizes = [196, 128], strides = [1, 1]} : vector<784x128xf32> to vector<196x128xf32>
    %5 = vector.extract_strided_slice %3 {offsets = [196, 0], sizes = [196, 128], strides = [1, 1]} : vector<784x128xf32> to vector<196x128xf32>
    %6 = arith.maximumf %4, %5 : vector<196x128xf32>
    %7 = vector.extract_strided_slice %3 {offsets = [392, 0], sizes = [196, 128], strides = [1, 1]} : vector<784x128xf32> to vector<196x128xf32>
    %8 = vector.extract_strided_slice %3 {offsets = [588, 0], sizes = [196, 128], strides = [1, 1]} : vector<784x128xf32> to vector<196x128xf32>
    %9 = arith.maximumf %7, %8 : vector<196x128xf32>
    %10 = arith.maximumf %6, %9 : vector<196x128xf32>
    %c0_4 = arith.constant 0 : index
    %c0_5 = arith.constant 0 : index
    %11 = vector.load %arg3[%c0_4, %c0_5] : memref<1x128xf32, #tpu.memory_space<vmem>>, vector<1x128xf32>
    %12 = vector.broadcast %11 : vector<1x128xf32> to vector<196x128xf32>
    %13 = arith.addf %10, %12 : vector<196x128xf32>
    %cst_6 = arith.constant 0.000000e+00 : f32
    %14 = vector.broadcast %cst_6 : f32 to vector<196x128xf32>
    %15 = arith.maximumf %13, %14 : vector<196x128xf32>
    %16 = arith.truncf %15 : vector<196x128xf32> to vector<196x128xbf16>
    %c0_7 = arith.constant 0 : index
    %c0_8 = arith.constant 0 : index
    %c0_9 = arith.constant 0 : index
    %17 = vector.load %arg4[%c0_7, %c0_8, %c0_9] : memref<1x196x128xbf16, #tpu.memory_space<vmem>>, vector<1x196x128xbf16>
    %18 = vector.shape_cast %17 : vector<1x196x128xbf16> to vector<196x128xbf16>
    %19 = vector.shape_cast %16 : vector<196x128xbf16> to vector<1x196x128xbf16>
    tpu.vector_store %arg4[%c0_7, %c0_8, %c0_9], %19 {strides = array<i32>} : memref<1x196x128xbf16, #tpu.memory_space<vmem>>, vector<1x196x128xbf16>,
    return
  }
  func.func @transform_0(%arg0: i32) -> (i32, i32, i32) {
    %c0_i32 = arith.constant 0 : i32
    %c0_i32_0 = arith.constant 0 : i32
    %c0_i32_1 = arith.constant 0 : i32
    return %arg0, %c0_i32, %c0_i32_0 : i32, i32, i32
  }
  func.func @transform_1(%arg0: i32) -> (i32, i32) {
    %c0_i32 = arith.constant 0 : i32
    %c0_i32_0 = arith.constant 0 : i32
    %c0_i32_1 = arith.constant 0 : i32
    return %c0_i32, %c0_i32_0 : i32, i32
  }
  func.func @transform_2(%arg0: i32) -> (i32, i32) {
    %c0_i32 = arith.constant 0 : i32
    %c0_i32_0 = arith.constant 0 : i32
    %c0_i32_1 = arith.constant 0 : i32
    return %c0_i32, %c0_i32_0 : i32, i32
  }
  func.func @transform_3(%arg0: i32) -> (i32, i32, i32) {
    %c0_i32 = arith.constant 0 : i32
    %c0_i32_0 = arith.constant 0 : i32
    %c0_i32_1 = arith.constant 0 : i32
    return %arg0, %c0_i32, %c0_i32_0 : i32, i32, i32
  }
}

module attributes {stable_mosaic.version = 11 : i64} {
  func.func @conv_relu_pool_kernel(%arg0: i32, %arg1: memref<1x196x800xbf16, #tpu.memory_space<vmem>>, %arg2: memref<800x128xbf16, #tpu.memory_space<vmem>>, %arg3: memref<1x128xf32, #tpu.memory_space<vmem>>, %arg4: memref<1x49x128xbf16, #tpu.memory_space<vmem>>) attributes {dimension_semantics = [#tpu.dimension_semantics<parallel>], iteration_bounds = array<i64: 2>, scalar_prefetch = 0 : i64, scratch_operands = 0 : i64, tpu.core_type = #tpu.core_type<tc>, window_params = [{transform_indices = @transform_0, window_bounds = array<i64: 1, 196, 800>}, {pipeline_mode = #tpu.pipeline_mode<synchronous>, transform_indices = @transform_1, window_bounds = array<i64: 800, 128>}, {pipeline_mode = #tpu.pipeline_mode<synchronous>, transform_indices = @transform_2, window_bounds = array<i64: 1, 128>}, {transform_indices = @transform_3, window_bounds = array<i64: 1, 49, 128>}]} {
    %c0 = arith.constant 0 : index
    %c0_0 = arith.constant 0 : index
    %c0_1 = arith.constant 0 : index
    %0 = vector.load %arg1[%c0, %c0_0, %c0_1] : memref<1x196x800xbf16, #tpu.memory_space<vmem>>, vector<1x196x800xbf16>
    %1 = vector.shape_cast %0 : vector<1x196x800xbf16> to vector<196x800xbf16>
    %c0_2 = arith.constant 0 : index
    %c0_3 = arith.constant 0 : index
    %2 = vector.load %arg2[%c0_2, %c0_3] : memref<800x128xbf16, #tpu.memory_space<vmem>>, vector<800x128xbf16>
    %cst = arith.constant dense<0.000000e+00> : vector<196x128xf32>
    %3 = tpu.matmul %1, %2, %cst {dimension_numbers = #tpu.dot_dimension_numbers<[1], [0], [0], [1], [0, 0, 1, 1], [], []>} : vector<196x800xbf16>, vector<800x128xbf16>, vector<196x128xf32> -> vector<196x128xf32>
    %4 = vector.extract_strided_slice %3 {offsets = [0, 0], sizes = [49, 128], strides = [1, 1]} : vector<196x128xf32> to vector<49x128xf32>
    %5 = vector.extract_strided_slice %3 {offsets = [49, 0], sizes = [49, 128], strides = [1, 1]} : vector<196x128xf32> to vector<49x128xf32>
    %6 = arith.maximumf %4, %5 : vector<49x128xf32>
    %7 = vector.extract_strided_slice %3 {offsets = [98, 0], sizes = [49, 128], strides = [1, 1]} : vector<196x128xf32> to vector<49x128xf32>
    %8 = vector.extract_strided_slice %3 {offsets = [147, 0], sizes = [49, 128], strides = [1, 1]} : vector<196x128xf32> to vector<49x128xf32>
    %9 = arith.maximumf %7, %8 : vector<49x128xf32>
    %10 = arith.maximumf %6, %9 : vector<49x128xf32>
    %c0_4 = arith.constant 0 : index
    %c0_5 = arith.constant 0 : index
    %11 = vector.load %arg3[%c0_4, %c0_5] : memref<1x128xf32, #tpu.memory_space<vmem>>, vector<1x128xf32>
    %12 = vector.broadcast %11 : vector<1x128xf32> to vector<49x128xf32>
    %13 = arith.addf %10, %12 : vector<49x128xf32>
    %cst_6 = arith.constant 0.000000e+00 : f32
    %14 = vector.broadcast %cst_6 : f32 to vector<49x128xf32>
    %15 = arith.maximumf %13, %14 : vector<49x128xf32>
    %16 = arith.truncf %15 : vector<49x128xf32> to vector<49x128xbf16>
    %c0_7 = arith.constant 0 : index
    %c0_8 = arith.constant 0 : index
    %c0_9 = arith.constant 0 : index
    %17 = vector.load %arg4[%c0_7, %c0_8, %c0_9] : memref<1x49x128xbf16, #tpu.memory_space<vmem>>, vector<1x49x128xbf16>
    %18 = vector.shape_cast %17 : vector<1x49x128xbf16> to vector<49x128xbf16>
    %19 = vector.shape_cast %16 : vector<49x128xbf16> to vector<1x49x128xbf16>
    tpu.vector_store %arg4[%c0_7, %c0_8, %c0_9], %19 {strides = array<i32>} : memref<1x49x128xbf16, #tpu.memory_space<vmem>>, vector<1x49x128xbf16>,
    return
  }
  func.func @transform_0(%arg0: i32) -> (i32, i32, i32) {
    %c0_i32 = arith.constant 0 : i32
    %c0_i32_0 = arith.constant 0 : i32
    %c0_i32_1 = arith.constant 0 : i32
    return %arg0, %c0_i32, %c0_i32_0 : i32, i32, i32
  }
  func.func @transform_1(%arg0: i32) -> (i32, i32) {
    %c0_i32 = arith.constant 0 : i32
    %c0_i32_0 = arith.constant 0 : i32
    %c0_i32_1 = arith.constant 0 : i32
    return %c0_i32, %c0_i32_0 : i32, i32
  }
  func.func @transform_2(%arg0: i32) -> (i32, i32) {
    %c0_i32 = arith.constant 0 : i32
    %c0_i32_0 = arith.constant 0 : i32
    %c0_i32_1 = arith.constant 0 : i32
    return %c0_i32, %c0_i32_0 : i32, i32
  }
  func.func @transform_3(%arg0: i32) -> (i32, i32, i32) {
    %c0_i32 = arith.constant 0 : i32
    %c0_i32_0 = arith.constant 0 : i32
    %c0_i32_1 = arith.constant 0 : i32
    return %arg0, %c0_i32, %c0_i32_0 : i32, i32, i32
  }
}

module attributes {stable_mosaic.version = 11 : i64} {
  func.func @fc_fused_kernel(%arg0: i32, %arg1: memref<2x3136xbf16, #tpu.memory_space<vmem>>, %arg2: memref<3136x512xbf16, #tpu.memory_space<vmem>>, %arg3: memref<1x512xf32, #tpu.memory_space<vmem>>, %arg4: memref<512x128xbf16, #tpu.memory_space<vmem>>, %arg5: memref<1x128xf32, #tpu.memory_space<vmem>>, %arg6: memref<2x128xf32, #tpu.memory_space<vmem>>, %arg7: memref<2x128xf32, #tpu.memory_space<vmem>>) attributes {dimension_semantics = [#tpu.dimension_semantics<arbitrary>], iteration_bounds = array<i64: 2>, scalar_prefetch = 0 : i64, scratch_operands = 1 : i64, tpu.core_type = #tpu.core_type<tc>, window_params = [{pipeline_mode = #tpu.pipeline_mode<synchronous>, transform_indices = @transform_0, window_bounds = array<i64: 2, 3136>}, {transform_indices = @transform_1, window_bounds = array<i64: 3136, 512>}, {transform_indices = @transform_2, window_bounds = array<i64: 1, 512>}, {transform_indices = @transform_3, window_bounds = array<i64: 512, 128>}, {pipeline_mode = #tpu.pipeline_mode<synchronous>, transform_indices = @transform_4, window_bounds = array<i64: 1, 128>}, {pipeline_mode = #tpu.pipeline_mode<synchronous>, transform_indices = @transform_5, window_bounds = array<i64: 2, 128>}]} {
    %c0_i32 = arith.constant 0 : i32
    %0 = arith.cmpi eq, %arg0, %c0_i32 : i32
    %1 = arith.extui %0 : i1 to i32
    %c0_i32_0 = arith.constant 0 : i32
    %2 = arith.cmpi ne, %1, %c0_i32_0 : i32
    scf.if %2 {
      %cst_15 = arith.constant 0.000000e+00 : f32
      %20 = vector.broadcast %cst_15 : f32 to vector<2x128xf32>
      %c0_16 = arith.constant 0 : index
      %c0_17 = arith.constant 0 : index
      %21 = vector.load %arg7[%c0_16, %c0_17] : memref<2x128xf32, #tpu.memory_space<vmem>>, vector<2x128xf32>
      tpu.vector_store %arg7[%c0_16, %c0_17], %20 {strides = array<i32>} : memref<2x128xf32, #tpu.memory_space<vmem>>, vector<2x128xf32>,
    } else {
    }
    %c0 = arith.constant 0 : index
    %c0_1 = arith.constant 0 : index
    %3 = vector.load %arg1[%c0, %c0_1] : memref<2x3136xbf16, #tpu.memory_space<vmem>>, vector<2x3136xbf16>
    %c0_2 = arith.constant 0 : index
    %c0_3 = arith.constant 0 : index
    %4 = vector.load %arg2[%c0_2, %c0_3] : memref<3136x512xbf16, #tpu.memory_space<vmem>>, vector<3136x512xbf16>
    %cst = arith.constant dense<0.000000e+00> : vector<2x512xf32>
    %5 = tpu.matmul %3, %4, %cst {dimension_numbers = #tpu.dot_dimension_numbers<[1], [0], [0], [1], [0, 0, 1, 1], [], []>} : vector<2x3136xbf16>, vector<3136x512xbf16>, vector<2x512xf32> -> vector<2x512xf32>
    %c0_4 = arith.constant 0 : index
    %c0_5 = arith.constant 0 : index
    %6 = vector.load %arg3[%c0_4, %c0_5] : memref<1x512xf32, #tpu.memory_space<vmem>>, vector<1x512xf32>
    %7 = vector.broadcast %6 : vector<1x512xf32> to vector<2x512xf32>
    %8 = arith.addf %5, %7 : vector<2x512xf32>
    %cst_6 = arith.constant 0.000000e+00 : f32
    %9 = vector.broadcast %cst_6 : f32 to vector<2x512xf32>
    %10 = arith.maximumf %8, %9 : vector<2x512xf32>
    %11 = arith.truncf %10 : vector<2x512xf32> to vector<2x512xbf16>
    %c0_7 = arith.constant 0 : index
    %c0_8 = arith.constant 0 : index
    %12 = vector.load %arg7[%c0_7, %c0_8] : memref<2x128xf32, #tpu.memory_space<vmem>>, vector<2x128xf32>
    %c0_9 = arith.constant 0 : index
    %c0_10 = arith.constant 0 : index
    %13 = vector.load %arg4[%c0_9, %c0_10] : memref<512x128xbf16, #tpu.memory_space<vmem>>, vector<512x128xbf16>
    %cst_11 = arith.constant dense<0.000000e+00> : vector<2x128xf32>
    %14 = tpu.matmul %11, %13, %cst_11 {dimension_numbers = #tpu.dot_dimension_numbers<[1], [0], [0], [1], [0, 0, 1, 1], [], []>} : vector<2x512xbf16>, vector<512x128xbf16>, vector<2x128xf32> -> vector<2x128xf32>
    %15 = arith.addf %12, %14 : vector<2x128xf32>
    %c0_12 = arith.constant 0 : index
    %c0_13 = arith.constant 0 : index
    %16 = vector.load %arg7[%c0_12, %c0_13] : memref<2x128xf32, #tpu.memory_space<vmem>>, vector<2x128xf32>
    tpu.vector_store %arg7[%c0_12, %c0_13], %15 {strides = array<i32>} : memref<2x128xf32, #tpu.memory_space<vmem>>, vector<2x128xf32>,
    %c1_i32 = arith.constant 1 : i32
    %17 = arith.cmpi eq, %arg0, %c1_i32 : i32
    %18 = arith.extui %17 : i1 to i32
    %c0_i32_14 = arith.constant 0 : i32
    %19 = arith.cmpi ne, %18, %c0_i32_14 : i32
    scf.if %19 {
      %c0_15 = arith.constant 0 : index
      %c0_16 = arith.constant 0 : index
      %20 = vector.load %arg7[%c0_15, %c0_16] : memref<2x128xf32, #tpu.memory_space<vmem>>, vector<2x128xf32>
      %c0_17 = arith.constant 0 : index
      %c0_18 = arith.constant 0 : index
      %21 = vector.load %arg5[%c0_17, %c0_18] : memref<1x128xf32, #tpu.memory_space<vmem>>, vector<1x128xf32>
      %22 = vector.broadcast %21 : vector<1x128xf32> to vector<2x128xf32>
      %23 = arith.addf %20, %22 : vector<2x128xf32>
      %24 = tpu.iota {dimensions = array<i32: 1>} : vector<2x128xi32>
      %c10_i32 = arith.constant 10 : i32
      %25 = vector.broadcast %c10_i32 : i32 to vector<2x128xi32>
      %26 = arith.cmpi slt, %24, %25 : vector<2x128xi32>
      %cst_19 = arith.constant 0xFF800000 : f32
      %27 = vector.broadcast %cst_19 : f32 to vector<2x128xf32>
      %28 = arith.select %26, %23, %27 : vector<2x128xi1>, vector<2x128xf32>
      %cst_20 = arith.constant dense<0xFF800000> : vector<2xf32>
      %29 = vector.multi_reduction <maximumf>, %28, %cst_20 [1] : vector<2x128xf32> to vector<2xf32>
      %30 = vector.shape_cast %29 : vector<2xf32> to vector<2x1xf32>
      %31 = vector.broadcast %30 : vector<2x1xf32> to vector<2x128xf32>
      %32 = arith.subf %28, %31 : vector<2x128xf32>
      %33 = math.exp %32 : vector<2x128xf32>
      %cst_21 = arith.constant dense<0.000000e+00> : vector<2xf32>
      %34 = vector.multi_reduction <add>, %33, %cst_21 [1] : vector<2x128xf32> to vector<2xf32>
      %35 = vector.shape_cast %34 : vector<2xf32> to vector<2x1xf32>
      %36 = vector.broadcast %35 : vector<2x1xf32> to vector<2x128xf32>
      %37 = arith.divf %33, %36 : vector<2x128xf32>
      %c0_22 = arith.constant 0 : index
      %c0_23 = arith.constant 0 : index
      %38 = vector.load %arg6[%c0_22, %c0_23] : memref<2x128xf32, #tpu.memory_space<vmem>>, vector<2x128xf32>
      tpu.vector_store %arg6[%c0_22, %c0_23], %37 {strides = array<i32>} : memref<2x128xf32, #tpu.memory_space<vmem>>, vector<2x128xf32>,
    } else {
    }
    return
  }
  func.func @transform_0(%arg0: i32) -> (i32, i32) {
    %c0_i32 = arith.constant 0 : i32
    %c0_i32_0 = arith.constant 0 : i32
    %c0_i32_1 = arith.constant 0 : i32
    return %c0_i32, %c0_i32_0 : i32, i32
  }
  func.func @transform_1(%arg0: i32) -> (i32, i32) {
    %c0_i32 = arith.constant 0 : i32
    %c0_i32_0 = arith.constant 0 : i32
    return %c0_i32, %arg0 : i32, i32
  }
  func.func @transform_2(%arg0: i32) -> (i32, i32) {
    %c0_i32 = arith.constant 0 : i32
    %c0_i32_0 = arith.constant 0 : i32
    return %c0_i32, %arg0 : i32, i32
  }
  func.func @transform_3(%arg0: i32) -> (i32, i32) {
    %c0_i32 = arith.constant 0 : i32
    %c0_i32_0 = arith.constant 0 : i32
    return %arg0, %c0_i32 : i32, i32
  }
  func.func @transform_4(%arg0: i32) -> (i32, i32) {
    %c0_i32 = arith.constant 0 : i32
    %c0_i32_0 = arith.constant 0 : i32
    %c0_i32_1 = arith.constant 0 : i32
    return %c0_i32, %c0_i32_0 : i32, i32
  }
  func.func @transform_5(%arg0: i32) -> (i32, i32) {
    %c0_i32 = arith.constant 0 : i32
    %c0_i32_0 = arith.constant 0 : i32
    %c0_i32_1 = arith.constant 0 : i32
    return %c0_i32, %c0_i32_0 : i32, i32
  }
}

</mosaic_0001>

<bundles_post_ra>
// kernel: net_forward.3
= control target key start
LH: loop header
LB: loop body
LE: loop exit
PB: predicated region body
PF: predicated region fallthrough
CT: control target
= control target key end

     0   :  { %s1802_s12 = smov 0   ;;  %s2076_s0 = inlined_call_operand.vmem [shape: bf16[2,784,25], index: 0, kind: input, shape index: {}]   ;;  %s2077_s1 = inlined_call_operand.vmem [shape: bf16[25,128], index: 1, kind: input, shape index: {}]   ;;  %s2078_s2 = inlined_call_operand.vmem [shape: f32[1,128], index: 2, kind: input, shape index: {}]   ;;  %s2079_s3 = inlined_call_operand.vmem [shape: bf16[2,196,128], index: 3, kind: output, shape index: {}]  }
   0x1 LB: > { %s1371_s13 = sadd.s32 4294967295, %s1779_s12   ;;  %p1375_p0 = scmp.ge.s32.totalorder %s1779_s12, 1  ;;  %s1779_s12 = sphi %s1802_s12, %s13_s12  }
   0x2   : > { %p137_p1 = scmp.lt.s32.totalorder %s1779_s12, 3 }
   0x4   : > { %p138_p2 = pnand %p1375_p0, %p137_p1 }
   0x5   : > { %p161_p3 = scmp.lt.s32.totalorder (!%p138_p2), %s1371_s13, 1 }
   0x6   : > { %141 = sbr.rel (%p138_p2) target bundleno = 371 (0x173), region = 32 }
   0xb   : > { %v1580_v0 = vld [vmem:[%s2077_s1 + $0x8] sm:$0xf]  ;;  %v1683_v1 = vld [vmem:[%s2077_s1 + $0x8] sm:$0x10]  ;;  %vm678_vm0 = vcmask 1043456   ;;  %vm679_vm1 = vcmask 1044480  }
   0xc   : > { %v1581_v2 = vor.u32 %v1683_v1, %v1580_v0  ;;  %v1781_v3 = vmov 65535   ;;  %s2081_s13 = smov (!%p161_p3, %s1371_s13), 1  ;;  %v1682_v7 = vld [vmem:[%s2077_s1] sm:$0xff]  ;;  %vm530_vm2 = vcmask 203776  }
   0xd   : > { %v680_v4 = vsel %vm678_vm0, 4294967295, %v1781_v3  ;;  %s1761_s18 = smul.u32 392, %s2081_s13 }
   0xe   : > { %v681_v5 = vsel %vm679_vm1, %v680_v4, 0  ;;  %s1762_s26 = smul.u32 100, %s2081_s13 }
   0xf   : > { %v683_v6 = vand.u32 %v1581_v2, %v681_v5  ;;  %s1826_s23 = scalar_lea.vmem %s2076_s0, %s1761_s18 }
  0x10   : > { %v1645_v8 = vld [vmem:[%s1826_s23 + $0x60] sm:$0xff]  ;;  %v1658_v9 = vld [vmem:[%s1826_s23 + $0xc8] sm:$0xff]  ;;  %v1671_v10 = vld [vmem:[%s1826_s23 + $0x130] sm:$0xff]  ;;  %s1976_s29 = scalar_lea.vmem %s2079_s3, %s1762_s26 }
  0x11   : > { %1755 = vmatpush.bf16.msra.mxu1 %v683_v6  ;;  %1756 = vmatpush.bf16.msra.mxu2 %v683_v6  ;;  %v1633_v11 = vld [vmem:[%s1826_s23] sm:$0xff]  ;;  %v1646_v12 = vld [vmem:[%s1826_s23 + $0x68] sm:$0xff]  ;;  %v1659_v13 = vld [vmem:[%s1826_s23 + $0xd0] sm:$0xff] }
  0x12   : > { %1757 = vmatpush.bf16.msra.mxu3 %v683_v6  ;;  %691 = vmatpush.bf16.msra.mxu0 %v683_v6  ;;  %v1672_v14 = vld [vmem:[%s1826_s23 + $0x138] sm:$0xff]  ;;  %v1634_v15 = vld [vmem:[%s1826_s23 + $0x8] sm:$0xff]  ;;  %v1647_v16 = vld [vmem:[%s1826_s23 + $0x70] sm:$0xff] }
  0x13   : > { %v1660_v17 = vld [vmem:[%s1826_s23 + $0xd8] sm:$0xff]  ;;  %v1673_v18 = vld [vmem:[%s1826_s23 + $0x140] sm:$0xff]  ;;  %v1635_v19 = vld [vmem:[%s1826_s23 + $0x10] sm:$0xff] }
  0x14   : > { %v1648_v20 = vld [vmem:[%s1826_s23 + $0x78] sm:$0xff]  ;;  %v1661_v21 = vld [vmem:[%s1826_s23 + $0xe0] sm:$0xff]  ;;  %v1674_v22 = vld [vmem:[%s1826_s23 + $0x148] sm:$0xff] }
  0x15   : > { %1758 = vmatpush.bf16.msra.mxu1 %v1682_v7  ;;  %1759 = vmatpush.bf16.msra.mxu2 %v1682_v7  ;;  %v1636_v23 = vld [vmem:[%s1826_s23 + $0x18] sm:$0xff]  ;;  %v1649_v24 = vld [vmem:[%s1826_s23 + $0x80] sm:$0xff]  ;;  %v1662_v25 = vld [vmem:[%s1826_s23 + $0xe8] sm:$0xff] }
  0x16   : > { %1760 = vmatpush.bf16.msra.mxu3 %v1682_v7  ;;  %692 = vmatpush.bf16.msra.mxu0 %v1682_v7  ;;  %v1675_v26 = vld [vmem:[%s1826_s23 + $0x150] sm:$0xff]  ;;  %v1637_v27 = vld [vmem:[%s1826_s23 + $0x20] sm:$0xff]  ;;  %v1650_v28 = vld [vmem:[%s1826_s23 + $0x88] sm:$0xff] }
  0x17   : > { %v1663_v29 = vld [vmem:[%s1826_s23 + $0xf0] sm:$0xff]  ;;  %v1676_v30 = vld [vmem:[%s1826_s23 + $0x158] sm:$0xff]  ;;  %v1638_v31 = vld [vmem:[%s1826_s23 + $0x28] sm:$0xff] }
  0x18   : > { %1594 = vmatmul.msk.bf16.vlgmr.msra.gmra.mxu1 %vm530_vm2, %v1645_v8  ;;  %1607 = vmatmul.msk.bf16.vlgmr.msra.gmra.mxu2 %vm530_vm2, %v1658_v9  ;;  %v1651_v32 = vld [vmem:[%s1826_s23 + $0x90] sm:$0xff]  ;;  %v1664_v33 = vld [vmem:[%s1826_s23 + $0xf8] sm:$0xff]  ;;  %v1677_v34 = vld [vmem:[%s1826_s23 + $0x160] sm:$0xff] }
  0x19   : > { %1620 = vmatmul.msk.bf16.vlgmr.msra.gmra.mxu3 %vm530_vm2, %v1671_v10  ;;  %1582 = vmatmul.msk.bf16.vlgmr.msra.gmra.mxu0 %vm530_vm2, %v1633_v11  ;;  %v1639_v35 = vld [vmem:[%s1826_s23 + $0x30] sm:$0xff]  ;;  %v1652_v36 = vld [vmem:[%s1826_s23 + $0x98] sm:$0xff]  ;;  %v1665_v37 = vld [vmem:[%s1826_s23 + $0x100] sm:$0xff] }
  0x1a   : > { %v1678_v38 = vld [vmem:[%s1826_s23 + $0x168] sm:$0xff]  ;;  %v1640_v39 = vld [vmem:[%s1826_s23 + $0x38] sm:$0xff]  ;;  %v1653_v40 = vld [vmem:[%s1826_s23 + $0xa0] sm:$0xff] }
  0x1b   : > { %v1666_v41 = vld [vmem:[%s1826_s23 + $0x108] sm:$0xff]  ;;  %v1679_v43 = vld [vmem:[%s1826_s23 + $0x170] sm:$0xff]  ;;  %v1641_v44 = vld [vmem:[%s1826_s23 + $0x40] sm:$0xff] }
  0x1c   : > { %v1654_v56 = vld [vmem:[%s1826_s23 + $0xa8] sm:$0xff]  ;;  %v1667_v57 = vld [vmem:[%s1826_s23 + $0x110] sm:$0xff]  ;;  %v1680_v61 = vld [vmem:[%s1826_s23 + $0x178] sm:$0xff] }
  0x1d   : > { %v1642_v62 = vld [vmem:[%s1826_s23 + $0x48] sm:$0xff] }
  0x28   : > { %1595 = vmatmul.msk.bf16.gmra.mxu1 %vm530_vm2, %v1646_v12  ;;  %1608 = vmatmul.msk.bf16.gmra.mxu2 %vm530_vm2, %v1659_v13  ;;  %v1655_v13 = vld [vmem:[%s1826_s23 + $0xb0] sm:$0xff] }
  0x29   : > { %1621 = vmatmul.msk.bf16.gmra.mxu3 %vm530_vm2, %v1672_v14  ;;  %1583 = vmatmul.msk.bf16.gmra.mxu0 %vm530_vm2, %v1634_v15  ;;  %v1668_v14 = vld [vmem:[%s1826_s23 + $0x118] sm:$0xff] }
  0x38   : > { %1596 = vmatmul.msk.bf16.gmra.mxu1 %vm530_vm2, %v1647_v16  ;;  %1609 = vmatmul.msk.bf16.gmra.mxu2 %vm530_vm2, %v1660_v17  ;;  %v1681_v17 = vld [vmem:[%s1826_s23 + $0x180] sm:$0xff] }
  0x39   : > { %1622 = vmatmul.msk.bf16.gmra.mxu3 %vm530_vm2, %v1673_v18  ;;  %1584 = vmatmul.msk.bf16.gmra.mxu0 %vm530_vm2, %v1635_v19  ;;  %v1643_v18 = vld [vmem:[%s1826_s23 + $0x50] sm:$0xff] }
  0x48   : > { %1597 = vmatmul.msk.bf16.gmra.mxu1 %vm530_vm2, %v1648_v20  ;;  %1610 = vmatmul.msk.bf16.gmra.mxu2 %vm530_vm2, %v1661_v21 }
  0x49   : > { %1623 = vmatmul.msk.bf16.gmra.mxu3 %vm530_vm2, %v1674_v22  ;;  %1585 = vmatmul.msk.bf16.gmra.mxu0 %vm530_vm2, %v1636_v23 }
  0x58   : > { %1598 = vmatmul.msk.bf16.gmra.mxu1 %vm530_vm2, %v1649_v24  ;;  %1611 = vmatmul.msk.bf16.gmra.mxu2 %vm530_vm2, %v1662_v25 }
  0x59   : > { %1624 = vmatmul.msk.bf16.gmra.mxu3 %vm530_vm2, %v1675_v26  ;;  %1586 = vmatmul.msk.bf16.gmra.mxu0 %vm530_vm2, %v1637_v27 }
  0x68   : > { %1599 = vmatmul.msk.bf16.gmra.mxu1 %vm530_vm2, %v1650_v28  ;;  %1612 = vmatmul.msk.bf16.gmra.mxu2 %vm530_vm2, %v1663_v29 }
  0x69   : > { %1625 = vmatmul.msk.bf16.gmra.mxu3 %vm530_vm2, %v1676_v30  ;;  %1587 = vmatmul.msk.bf16.gmra.mxu0 %vm530_vm2, %v1638_v31 }
  0x78   : > { %1600 = vmatmul.msk.bf16.gmra.mxu1 %vm530_vm2, %v1651_v32  ;;  %1613 = vmatmul.msk.bf16.gmra.mxu2 %vm530_vm2, %v1664_v33 }
  0x79   : > { %1626 = vmatmul.msk.bf16.gmra.mxu3 %vm530_vm2, %v1677_v34  ;;  %1588 = vmatmul.msk.bf16.gmra.mxu0 %vm530_vm2, %v1639_v35  ;;  %v1656_v35 = vld [vmem:[%s1826_s23 + $0xb8] sm:$0xff] }
  0x88   : > { %1601 = vmatmul.msk.bf16.gmra.mxu1 %vm530_vm2, %v1652_v36  ;;  %1614 = vmatmul.msk.bf16.gmra.mxu2 %vm530_vm2, %v1665_v37  ;;  %v1669_v36 = vld [vmem:[%s1826_s23 + $0x120] sm:$0xff] }
  0x89   : > { %1627 = vmatmul.msk.bf16.gmra.mxu3 %vm530_vm2, %v1678_v38  ;;  %1589 = vmatmul.msk.bf16.gmra.mxu0 %vm530_vm2, %v1640_v39 }
  0x95   : > { %v1894_v42 = vpop.f32.mrf.mxu1 }
  0x96   : > { %v1898_v45 = vpop.f32.mrf.mxu0  ;;  %v964_v47 = vrot.slane %v1894_v42, 4 }
  0x98   : > { %1602 = vmatmul.msk.bf16.gmra.mxu1 %vm530_vm2, %v1653_v40  ;;  %1615 = vmatmul.msk.bf16.gmra.mxu2 %vm530_vm2, %v1666_v41  ;;  %v1644_v40 = vld [vmem:[%s1826_s23 + $0x58] sm:$0xff] }
  0x99   : > { %1628 = vmatmul.msk.bf16.gmra.mxu3 %vm530_vm2, %v1679_v43  ;;  %1590 = vmatmul.msk.bf16.gmra.mxu0 %vm530_vm2, %v1641_v44 }
  0x9b   : > { %v1904_v46 = vpop.f32.mrf.mxu2 }
  0x9c   : > { %v1907_v48 = vpop.f32.mrf.mxu3 }
  0x9d   : > { %v756_v49 = vpop.f32.mrf.mxu1  ;;  %v1093_v54 = vrot.slane %v1907_v48, 4 }
  0x9e   : > { %v965_v50 = vrot.slane %v756_v49, 4  ;;  %v1909_v51 = vpop.f32.mrf.mxu0 }
  0xa0   : > { %v1912_v52 = vsel %vm678_vm0, %v964_v47, %v965_v50 }
  0xa1   : > { %v1038_v53 = vmax.f32 %v1898_v45, %v1912_v52 }
  0xa3   : > { %v1917_v55 = vpop.f32.mrf.mxu2 }
  0xa4   : > { %v886_v58 = vpop.f32.mrf.mxu3 }
  0xa5   : > { %v759_v59 = vpop.f32.mrf.mxu1  ;;  %v1095_v60 = vrot.slane %v886_v58, 4 }
  0xa6   : > { %v967_v63 = vrot.slane %v759_v59, 4  ;;  %v1923_v0 = vpop.f32.mrf.mxu0 }
  0xa7   : > { %v1096_v1 = vsel %vm678_vm0, %v1093_v54, %v1095_v60 }
  0xa8   : > { %v1929_v2 = vsel %vm678_vm0, %v965_v50, %v967_v63  ;;  %1603 = vmatmul.msk.bf16.gmra.mxu1 %vm530_vm2, %v1654_v56  ;;  %1616 = vmatmul.msk.bf16.gmra.mxu2 %vm530_vm2, %v1667_v57  ;;  %v1967_v50 = vld [vmem:[%s2078_s2] ss:$0 sm:$0xff] }
  0xa9   : > { %v1039_v3 = vmax.f32 %v1909_v51, %v1929_v2  ;;  %1629 = vmatmul.msk.bf16.gmra.mxu3 %vm530_vm2, %v1680_v61  ;;  %1591 = vmatmul.msk.bf16.gmra.mxu0 %vm530_vm2, %v1642_v62 }
  0xab   : > { %v824_v4 = vpop.f32.mrf.mxu2 }
  0xac   : > { %v1165_v5 = vmax.f32 %v824_v4, %v1096_v1  ;;  %v889_v6 = vpop.f32.mrf.mxu3 }
  0xad   : > { %v761_v7 = vpop.f32.mrf.mxu1  ;;  %v1097_v27 = vrot.slane %v889_v6, 4 }
  0xae   : > { %v969_v8 = vrot.slane %v761_v7, 4  ;;  %v701_v9 = vpop.f32.mrf.mxu0 }
  0xaf   : > { %v1098_v31 = vsel %vm678_vm0, %v1095_v60, %v1097_v27 }
  0xb0   : > { %v1938_v10 = vsel %vm678_vm0, %v967_v63, %v969_v8 }
  0xb1   : > { %v1040_v11 = vmax.f32 %v1923_v0, %v1938_v10 }
  0xb3   : > { %v826_v12 = vpop.f32.mrf.mxu2 }
  0xb4   : > { %v891_v15 = vpop.f32.mrf.mxu3  ;;  %v1166_v38 = vmax.f32 %v826_v12, %v1098_v31 }
  0xb5   : > { %v764_v16 = vpop.f32.mrf.mxu1  ;;  %v1099_v32 = vrot.slane %v891_v15, 4 }
  0xb6   : > { %v971_v19 = vrot.slane %v764_v16, 4  ;;  %v704_v20 = vpop.f32.mrf.mxu0  ;;  %v1657_v16 = vld [vmem:[%s1826_s23 + $0xc0] sm:$0xff] }
  0xb7   : > { %v1100_v41 = vsel %vm678_vm0, %v1097_v27, %v1099_v32 }
  0xb8   : > { %v972_v21 = vsel %vm678_vm0, %v969_v8, %v971_v19  ;;  %1604 = vmatmul.msk.bf16.gmra.mxu1 %vm530_vm2, %v1655_v13  ;;  %1617 = vmatmul.msk.bf16.gmra.mxu2 %vm530_vm2, %v1668_v14 }
  0xb9   : > { %v1041_v22 = vmax.f32 %v701_v9, %v972_v21  ;;  %1630 = vmatmul.msk.bf16.gmra.mxu3 %vm530_vm2, %v1681_v17  ;;  %1592 = vmatmul.msk.bf16.gmra.mxu0 %vm530_vm2, %v1643_v18  ;;  %v1670_v17 = vld [vmem:[%s1826_s23 + $0x128] sm:$0xff] }
  0xbb   : > { %v1951_v23 = vmax.f32 %v1041_v22, %v1165_v5  ;;  %v829_v24 = vpop.f32.mrf.mxu2 }
  0xbc   : > { %v894_v25 = vpop.f32.mrf.mxu3  ;;  %v1167_v56 = vmax.f32 %v829_v24, %v1100_v41 }
  0xbd   : > { %v766_v26 = vpop.f32.mrf.mxu1  ;;  %v1101_v1 = vrot.slane %v894_v25, 4 }
  0xbe   : > { %v973_v28 = vrot.slane %v766_v26, 4  ;;  %v706_v29 = vpop.f32.mrf.mxu0 }
  0xbf   : > { %v1102_v12 = vsel %vm678_vm0, %v1099_v32, %v1101_v1 }
  0xc0   : > { %v974_v30 = vsel %vm678_vm0, %v971_v19, %v973_v28 }
  0xc1   : > { %v1042_v33 = vmax.f32 %v704_v20, %v974_v30 }
  0xc3   : > { %v831_v34 = vpop.f32.mrf.mxu2  ;;  %v1191_v47 = vmax.f32 %v1042_v33, %v1166_v38 }
  0xc4   : > { %v1957_v37 = vpop.f32.mrf.mxu3  ;;  %v1168_v19 = vmax.f32 %v831_v34, %v1102_v12 }
  0xc5   : > { %v769_v39 = vpop.f32.mrf.mxu1  ;;  %v1220_v58 = vadd.f32 %v1967_v50, %v1191_v47  ;;  %v1103_v13 = vrot.slane %v1957_v37, 4 }
  0xc6   : > { %v975_v43 = vrot.slane %v769_v39, 4  ;;  %v709_v44 = vpop.f32.mrf.mxu0 }
  0xc7   : > { %v1245_v6 = vmax.f32 %v1220_v58, 0.0  ;;  %v1104_v21 = vsel %vm678_vm0, %v1101_v1, %v1103_v13 }
  0xc8   : > { %v976_v49 = vsel %vm678_vm0, %v973_v28, %v975_v43  ;;  %1605 = vmatmul.msk.bf16.gmra.mxu1 %vm530_vm2, %v1656_v35  ;;  %1618 = vmatmul.msk.bf16.gmra.mxu2 %vm530_vm2, %v1669_v36 }
  0xc9   : > { %v1043_v57 = vmax.f32 %v706_v29, %v976_v49  ;;  %1593 = vmatmul.msk.bf16.gmra.mxu0 %vm530_vm2, %v1644_v40 }
  0xcb   : > { %v1192_v59 = vmax.f32 %v1043_v57, %v1167_v56  ;;  %v834_v60 = vpop.f32.mrf.mxu2 }
  0xcc   : > { %v899_v61 = vpop.f32.mrf.mxu3  ;;  %v1169_v27 = vmax.f32 %v834_v60, %v1104_v21 }
  0xcd   : > { %v1221_v62 = vadd.f32 %v1967_v50, %v1192_v59  ;;  %v771_v63 = vpop.f32.mrf.mxu1  ;;  %v1105_v35 = vrot.slane %v899_v61, 4 }
  0xce   : > { %v977_v4 = vrot.slane %v771_v63, 4  ;;  %v711_v5 = vpop.f32.mrf.mxu0 }
  0xcf   : > { %v1246_v7 = vmax.f32 %v1221_v62, 0.0 }
  0xd0   : > { %v978_v8 = vsel %vm678_vm0, %v975_v43, %v977_v4  ;;  %v1106_v43 = vsel %vm678_vm0, %v1103_v13, %v1105_v35 }
  0xd1   : > { %v1697_v9 = vpack.c.bf16 %v1246_v7, %v1245_v6  ;;  %v1044_v14 = vmax.f32 %v709_v44, %v978_v8 }
  0xd3   : > { %1745 = vst [vmem:[%s1976_s29 + $0x10] sm:$0xff] %v1697_v9   ;;  %v836_v15 = vpop.f32.mrf.mxu2  ;;  %v1193_v25 = vmax.f32 %v1044_v14, %v1168_v19 }
  0xd4   : > { %v901_v18 = vpop.f32.mrf.mxu3  ;;  %v1170_v57 = vmax.f32 %v836_v15, %v1106_v43 }
  0xd5   : > { %v774_v20 = vpop.f32.mrf.mxu1  ;;  %v1222_v29 = vadd.f32 %v1967_v50, %v1193_v25  ;;  %v1107_v44 = vrot.slane %v901_v18, 4 }
  0xd6   : > { %v979_v22 = vrot.slane %v774_v20, 4  ;;  %v714_v24 = vpop.f32.mrf.mxu0 }
  0xd7   : > { %v1247_v38 = vmax.f32 %v1222_v29, 0.0  ;;  %v1108_v59 = vsel %vm678_vm0, %v1105_v35, %v1107_v44 }
  0xd8   : > { %v980_v26 = vsel %vm678_vm0, %v977_v4, %v979_v22  ;;  %1606 = vmatmul.msk.bf16.gmra.mxu1 %vm530_vm2, %v1657_v16  ;;  %1619 = vmatmul.msk.bf16.gmra.mxu2 %vm530_vm2, %v1670_v17 }
  0xd9   : > { %v1045_v28 = vmax.f32 %v711_v5, %v980_v26 }
  0xdb   : > { %v1194_v30 = vmax.f32 %v1045_v28, %v1169_v27  ;;  %v839_v31 = vpop.f32.mrf.mxu2 }
  0xdc   : > { %v904_v32 = vpop.f32.mrf.mxu3  ;;  %v1171_v1 = vmax.f32 %v839_v31, %v1108_v59 }
  0xdd   : > { %v1223_v33 = vadd.f32 %v1967_v50, %v1194_v30  ;;  %v776_v34 = vpop.f32.mrf.mxu1  ;;  %v1109_v13 = vrot.slane %v904_v32, 4 }
  0xde   : > { %v981_v36 = vrot.slane %v776_v34, 4  ;;  %v716_v37 = vpop.f32.mrf.mxu0 }
  0xdf   : > { %v1248_v39 = vmax.f32 %v1223_v33, 0.0  ;;  %v1110_v20 = vsel %vm678_vm0, %v1107_v44, %v1109_v13 }
  0xe0   : > { %v982_v40 = vsel %vm678_vm0, %v979_v22, %v981_v36 }
  0xe1   : > { %v1702_v41 = vpack.c.bf16 %v1248_v39, %v1247_v38  ;;  %v1046_v47 = vmax.f32 %v714_v24, %v982_v40 }
  0xe3   : > { %1746 = vst [vmem:[%s1976_s29 + $0x18] sm:$0xff] %v1702_v41   ;;  %v841_v49 = vpop.f32.mrf.mxu2  ;;  %v1195_v62 = vmax.f32 %v1046_v47, %v1170_v57 }
  0xe4   : > { %v906_v56 = vpop.f32.mrf.mxu3  ;;  %v1172_v26 = vmax.f32 %v841_v49, %v1110_v20 }
  0xe5   : > { %v779_v58 = vpop.f32.mrf.mxu1  ;;  %v1224_v5 = vadd.f32 %v1967_v50, %v1195_v62  ;;  %v1111_v21 = vrot.slane %v906_v56, 4 }
  0xe6   : > { %v983_v60 = vrot.slane %v779_v58, 4  ;;  %v719_v61 = vpop.f32.mrf.mxu0 }
  0xe7   : > { %v1249_v16 = vmax.f32 %v1224_v5, 0.0  ;;  %v1112_v28 = vsel %vm678_vm0, %v1109_v13, %v1111_v21 }
  0xe8   : > { %v984_v63 = vsel %vm678_vm0, %v981_v36, %v983_v60 }
  0xe9   : > { %v1047_v4 = vmax.f32 %v716_v37, %v984_v63 }
  0xeb   : > { %v1196_v6 = vmax.f32 %v1047_v4, %v1171_v1  ;;  %v844_v7 = vpop.f32.mrf.mxu2 }
  0xec   : > { %v909_v8 = vpop.f32.mrf.mxu3  ;;  %v1173_v33 = vmax.f32 %v844_v7, %v1112_v28 }
  0xed   : > { %v1225_v9 = vadd.f32 %v1967_v50, %v1196_v6  ;;  %v781_v12 = vpop.f32.mrf.mxu1  ;;  %v1113_v41 = vrot.slane %v909_v8, 4 }
  0xee   : > { %v985_v14 = vrot.slane %v781_v12, 4  ;;  %v721_v15 = vpop.f32.mrf.mxu0 }
  0xef   : > { %v1250_v17 = vmax.f32 %v1225_v9, 0.0  ;;  %v1114_v58 = vsel %vm678_vm0, %v1111_v21, %v1113_v41 }
  0xf0   : > { %v986_v18 = vsel %vm678_vm0, %v983_v60, %v985_v14 }
  0xf1   : > { %v1707_v19 = vpack.c.bf16 %v1250_v17, %v1249_v16  ;;  %v1048_v22 = vmax.f32 %v719_v61, %v986_v18 }
  0xf3   : > { %1747 = vst [vmem:[%s1976_s29 + $0x20] sm:$0xff] %v1707_v19   ;;  %v846_v24 = vpop.f32.mrf.mxu2  ;;  %v1197_v31 = vmax.f32 %v1048_v22, %v1172_v26 }
  0xf4   : > { %v911_v25 = vpop.f32.mrf.mxu3  ;;  %v1174_v63 = vmax.f32 %v846_v24, %v1114_v58 }
  0xf5   : > { %v784_v27 = vpop.f32.mrf.mxu1  ;;  %v1226_v35 = vadd.f32 %v1967_v50, %v1197_v31  ;;  %v1115_v59 = vrot.slane %v911_v25, 4 }
  0xf6   : > { %v987_v29 = vrot.slane %v784_v27, 4  ;;  %v724_v30 = vpop.f32.mrf.mxu0 }
  0xf7   : > { %v1251_v47 = vmax.f32 %v1226_v35, 0.0  ;;  %v1116_v4 = vsel %vm678_vm0, %v1113_v41, %v1115_v59 }
  0xf8   : > { %v988_v32 = vsel %vm678_vm0, %v985_v14, %v987_v29 }
  0xf9   : > { %v1049_v34 = vmax.f32 %v721_v15, %v988_v32 }
  0xfb   : > { %v1198_v36 = vmax.f32 %v1049_v34, %v1173_v33  ;;  %v849_v37 = vpop.f32.mrf.mxu2 }
  0xfc   : > { %v914_v38 = vpop.f32.mrf.mxu3  ;;  %v1175_v9 = vmax.f32 %v849_v37, %v1116_v4 }
  0xfd   : > { %v1227_v39 = vadd.f32 %v1967_v50, %v1198_v36  ;;  %v786_v40 = vpop.f32.mrf.mxu1  ;;  %v1117_v19 = vrot.slane %v914_v38, 4 }
  0xfe   : > { %v989_v43 = vrot.slane %v786_v40, 4  ;;  %v726_v44 = vpop.f32.mrf.mxu0 }
  0xff   : > { %v1252_v49 = vmax.f32 %v1227_v39, 0.0  ;;  %v1118_v27 = vsel %vm678_vm0, %v1115_v59, %v1117_v19 }
 0x100   : > { %v990_v56 = vsel %vm678_vm0, %v987_v29, %v989_v43 }
 0x101   : > { %v1712_v57 = vpack.c.bf16 %v1252_v49, %v1251_v47  ;;  %v1050_v60 = vmax.f32 %v724_v30, %v990_v56 }
 0x103   : > { %1748 = vst [vmem:[%s1976_s29 + $0x28] sm:$0xff] %v1712_v57   ;;  %v851_v61 = vpop.f32.mrf.mxu2  ;;  %v1199_v7 = vmax.f32 %v1050_v60, %v1174_v63 }
 0x104   : > { %v916_v62 = vpop.f32.mrf.mxu3  ;;  %v1176_v32 = vmax.f32 %v851_v61, %v1118_v27 }
 0x105   : > { %v789_v1 = vpop.f32.mrf.mxu1  ;;  %v1228_v13 = vadd.f32 %v1967_v50, %v1199_v7  ;;  %v1119_v28 = vrot.slane %v916_v62, 4 }
 0x106   : > { %v991_v5 = vrot.slane %v789_v1, 4  ;;  %v729_v6 = vpop.f32.mrf.mxu0 }
 0x107   : > { %v1253_v22 = vmax.f32 %v1228_v13, 0.0  ;;  %v1120_v34 = vsel %vm678_vm0, %v1117_v19, %v1119_v28 }
 0x108   : > { %v992_v8 = vsel %vm678_vm0, %v989_v43, %v991_v5 }
 0x109   : > { %v1051_v12 = vmax.f32 %v726_v44, %v992_v8 }
 0x10b   : > { %v1200_v14 = vmax.f32 %v1051_v12, %v1175_v9  ;;  %v854_v15 = vpop.f32.mrf.mxu2 }
 0x10c   : > { %v919_v16 = vpop.f32.mrf.mxu3  ;;  %v1177_v39 = vmax.f32 %v854_v15, %v1120_v34 }
 0x10d   : > { %v1229_v17 = vadd.f32 %v1967_v50, %v1200_v14  ;;  %v791_v18 = vpop.f32.mrf.mxu1  ;;  %v1121_v57 = vrot.slane %v919_v16, 4 }
 0x10e   : > { %v993_v20 = vrot.slane %v791_v18, 4  ;;  %v731_v21 = vpop.f32.mrf.mxu0 }
 0x10f   : > { %v1254_v24 = vmax.f32 %v1229_v17, 0.0  ;;  %v1122_v1 = vsel %vm678_vm0, %v1119_v28, %v1121_v57 }
 0x110   : > { %v994_v25 = vsel %vm678_vm0, %v991_v5, %v993_v20 }
 0x111   : > { %v1717_v26 = vpack.c.bf16 %v1254_v24, %v1253_v22  ;;  %v1052_v29 = vmax.f32 %v729_v6, %v994_v25 }
 0x113   : > { %1749 = vst [vmem:[%s1976_s29 + $0x30] sm:$0xff] %v1717_v26   ;;  %v856_v30 = vpop.f32.mrf.mxu2  ;;  %v1201_v37 = vmax.f32 %v1052_v29, %v1176_v32 }
 0x114   : > { %v921_v31 = vpop.f32.mrf.mxu3  ;;  %v1178_v7 = vmax.f32 %v856_v30, %v1122_v1 }
 0x115   : > { %v794_v33 = vpop.f32.mrf.mxu1  ;;  %v1230_v41 = vadd.f32 %v1967_v50, %v1201_v37  ;;  %v1123_v4 = vrot.slane %v921_v31, 4 }
 0x116   : > { %v995_v35 = vrot.slane %v794_v33, 4  ;;  %v734_v36 = vpop.f32.mrf.mxu0 }
 0x117   : > { %v1255_v60 = vmax.f32 %v1230_v41, 0.0  ;;  %v1124_v9 = vsel %vm678_vm0, %v1121_v57, %v1123_v4 }
 0x118   : > { %v996_v38 = vsel %vm678_vm0, %v993_v20, %v995_v35 }
 0x119   : > { %v1053_v40 = vmax.f32 %v731_v21, %v996_v38 }
 0x11b   : > { %v1202_v43 = vmax.f32 %v1053_v40, %v1177_v39  ;;  %v859_v44 = vpop.f32.mrf.mxu2 }
 0x11c   : > { %v924_v56 = vpop.f32.mrf.mxu3  ;;  %v1179_v17 = vmax.f32 %v859_v44, %v1124_v9 }
 0x11d   : > { %v1231_v47 = vadd.f32 %v1967_v50, %v1202_v43  ;;  %v796_v49 = vpop.f32.mrf.mxu1  ;;  %v1125_v25 = vrot.slane %v924_v56, 4 }
 0x11e   : > { %v997_v58 = vrot.slane %v796_v49, 4  ;;  %v736_v59 = vpop.f32.mrf.mxu0 }
 0x11f   : > { %v1256_v61 = vmax.f32 %v1231_v47, 0.0  ;;  %v1126_v33 = vsel %vm678_vm0, %v1123_v4, %v1125_v25 }
 0x120   : > { %v998_v62 = vsel %vm678_vm0, %v995_v35, %v997_v58 }
 0x121   : > { %v1722_v63 = vpack.c.bf16 %v1256_v61, %v1255_v60  ;;  %v1054_v5 = vmax.f32 %v734_v36, %v998_v62 }
 0x123   : > { %1750 = vst [vmem:[%s1976_s29 + $0x38] sm:$0xff] %v1722_v63   ;;  %v861_v6 = vpop.f32.mrf.mxu2  ;;  %v1203_v14 = vmax.f32 %v1054_v5, %v1178_v7 }
 0x124   : > { %v926_v15 = vpop.f32.mrf.mxu3  ;;  %v1180_v37 = vmax.f32 %v861_v6, %v1126_v33 }
 0x125   : > { %v799_v8 = vpop.f32.mrf.mxu1  ;;  %v1232_v19 = vadd.f32 %v1967_v50, %v1203_v14  ;;  %v1127_v34 = vrot.slane %v926_v15, 4 }
 0x126   : > { %v999_v12 = vrot.slane %v799_v8, 4  ;;  %v739_v13 = vpop.f32.mrf.mxu0 }
 0x127   : > { %v1257_v28 = vmax.f32 %v1232_v19, 0.0  ;;  %v1128_v39 = vsel %vm678_vm0, %v1125_v25, %v1127_v34 }
 0x128   : > { %v1000_v16 = vsel %vm678_vm0, %v997_v58, %v999_v12 }
 0x129   : > { %v1055_v18 = vmax.f32 %v736_v59, %v1000_v16 }
 0x12b   : > { %v1204_v20 = vmax.f32 %v1055_v18, %v1179_v17  ;;  %v864_v21 = vpop.f32.mrf.mxu2 }
 0x12c   : > { %v929_v32 = vpop.f32.mrf.mxu3  ;;  %v1181_v47 = vmax.f32 %v864_v21, %v1128_v39 }
 0x12d   : > { %v1233_v22 = vadd.f32 %v1967_v50, %v1204_v20  ;;  %v801_v24 = vpop.f32.mrf.mxu1  ;;  %v1129_v62 = vrot.slane %v929_v32, 4 }
 0x12e   : > { %v1001_v26 = vrot.slane %v801_v24, 4  ;;  %v741_v27 = vpop.f32.mrf.mxu0 }
 0x12f   : > { %v1258_v29 = vmax.f32 %v1233_v22, 0.0  ;;  %v1130_v7 = vsel %vm678_vm0, %v1127_v34, %v1129_v62 }
 0x130   : > { %v1002_v30 = vsel %vm678_vm0, %v999_v12, %v1001_v26 }
 0x131   : > { %v1727_v31 = vpack.c.bf16 %v1258_v29, %v1257_v28  ;;  %v1056_v35 = vmax.f32 %v739_v13, %v1002_v30 }
 0x133   : > { %1751 = vst [vmem:[%s1976_s29 + $0x40] sm:$0xff] %v1727_v31   ;;  %v866_v36 = vpop.f32.mrf.mxu2  ;;  %v1205_v41 = vmax.f32 %v1056_v35, %v1180_v37 }
 0x134   : > { %v931_v58 = vpop.f32.mrf.mxu3  ;;  %v1182_v14 = vmax.f32 %v866_v36, %v1130_v7 }
 0x135   : > { %v804_v38 = vpop.f32.mrf.mxu1  ;;  %v1234_v56 = vadd.f32 %v1967_v50, %v1205_v41  ;;  %v1131_v8 = vrot.slane %v931_v58, 4 }
 0x136   : > { %v1003_v40 = vrot.slane %v804_v38, 4  ;;  %v744_v44 = vpop.f32.mrf.mxu0 }
 0x137   : > { %v1259_v1 = vmax.f32 %v1234_v56, 0.0  ;;  %v1132_v17 = vsel %vm678_vm0, %v1129_v62, %v1131_v8 }
 0x138   : > { %v1004_v43 = vsel %vm678_vm0, %v1001_v26, %v1003_v40 }
 0x139   : > { %v1057_v49 = vmax.f32 %v741_v27, %v1004_v43 }
 0x13b   : > { %v1206_v57 = vmax.f32 %v1057_v49, %v1181_v47  ;;  %v869_v59 = vpop.f32.mrf.mxu2 }
 0x13c   : > { %v934_v15 = vpop.f32.mrf.mxu3  ;;  %v1183_v21 = vmax.f32 %v869_v59, %v1132_v17 }
 0x13d   : > { %v1235_v60 = vadd.f32 %v1967_v50, %v1206_v57  ;;  %v806_v61 = vpop.f32.mrf.mxu1  ;;  %v1133_v30 = vrot.slane %v934_v15, 4 }
 0x13e   : > { %v1005_v63 = vrot.slane %v806_v61, 4  ;;  %v746_v9 = vpop.f32.mrf.mxu0 }
 0x13f   : > { %v1260_v4 = vmax.f32 %v1235_v60, 0.0  ;;  %v1134_v37 = vsel %vm678_vm0, %v1131_v8, %v1133_v30 }
 0x140   : > { %v1006_v5 = vsel %vm678_vm0, %v1003_v40, %v1005_v63 }
 0x141   : > { %v1732_v6 = vpack.c.bf16 %v1260_v4, %v1259_v1  ;;  %v1058_v12 = vmax.f32 %v744_v44, %v1006_v5 }
 0x143   : > { %1752 = vst [vmem:[%s1976_s29 + $0x48] sm:$0xff] %v1732_v6   ;;  %v871_v13 = vpop.f32.mrf.mxu2  ;;  %v1207_v19 = vmax.f32 %v1058_v12, %v1182_v14 }
 0x144   : > { %v936_v34 = vpop.f32.mrf.mxu3  ;;  %v1184_v41 = vmax.f32 %v871_v13, %v1134_v37 }
 0x145   : > { %v809_v16 = vpop.f32.mrf.mxu1  ;;  %v1236_v24 = vadd.f32 %v1967_v50, %v1207_v19  ;;  %v1135_v38 = vrot.slane %v936_v34, 4 }
 0x146   : > { %v1007_v18 = vrot.slane %v809_v16, 4  ;;  %v749_v27 = vpop.f32.mrf.mxu0 }
 0x147   : > { %v1261_v32 = vmax.f32 %v1236_v24, 0.0  ;;  %v1136_v44 = vsel %vm678_vm0, %v1133_v30, %v1135_v38 }
 0x148   : > { %v1008_v20 = vsel %vm678_vm0, %v1005_v63, %v1007_v18 }
 0x149   : > { %v1059_v22 = vmax.f32 %v746_v9, %v1008_v20 }
 0x14b   : > { %v1208_v25 = vmax.f32 %v1059_v22, %v1183_v21  ;;  %v874_v26 = vpop.f32.mrf.mxu2 }
 0x14c   : > { %v1185_v60 = vmax.f32 %v874_v26, %v1136_v44  ;;  %v1219_v26 = vadd.f32 %v1967_v50, %v1951_v23 }
 0x14d   : > { %v1237_v28 = vadd.f32 %v1967_v50, %v1208_v25  ;;  %v811_v29 = vpop.f32.mrf.mxu1 }
 0x14e   : > { %v1009_v31 = vrot.slane %v811_v29, 4  ;;  %v751_v49 = vpop.f32.mrf.mxu0 }
 0x14f   : > { %v1262_v33 = vmax.f32 %v1237_v28, 0.0 }
 0x150   : > { %v1010_v35 = vsel %vm678_vm0, %v1007_v18, %v1009_v31 }
 0x151   : > { %v1737_v36 = vpack.c.bf16 %v1262_v33, %v1261_v32  ;;  %v1060_v39 = vmax.f32 %v749_v27, %v1010_v35 }
 0x153   : > { %1753 = vst [vmem:[%s1976_s29 + $0x50] sm:$0xff] %v1737_v36   ;;  %v876_v40 = vpop.f32.mrf.mxu2  ;;  %v1209_v56 = vmax.f32 %v1060_v39, %v1184_v41 }
 0x154   : > { %v1186_v57 = vmax.f32 %v876_v40, %v1135_v38  ;;  %v1088_v5 = vrot.slane %v876_v40, 4 }
 0x155   : > { %v814_v43 = vpop.f32.mrf.mxu1  ;;  %v1238_v63 = vadd.f32 %v1967_v50, %v1209_v56 }
 0x156   : > { %v1011_v47 = vrot.slane %v814_v43, 4 }
 0x157   : > { %v1263_v13 = vmax.f32 %v1238_v63, 0.0 }
 0x158   : > { %v1062_v58 = vmax.f32 %v1894_v42, %v1011_v47  ;;  %v1012_v59 = vsel %vm678_vm0, %v1009_v31, %v1011_v47 }
 0x159   : > { %v1061_v61 = vmax.f32 %v751_v49, %v1012_v59 }
 0x15a   : > { %v1211_v62 = vmax.f32 %v1062_v58, %v1186_v57 }
 0x15b   : > { %v1210_v1 = vmax.f32 %v1061_v61, %v1185_v60  ;;  %v879_v4 = vpop.f32.mrf.mxu2 }
 0x15c   : > { %v1240_v6 = vadd.f32 %v1967_v50, %v1211_v62  ;;  %v1089_v7 = vrot.slane %v879_v4, 4 }
 0x15d   : > { %v1239_v8 = vadd.f32 %v1967_v50, %v1210_v1  ;;  %v816_v12 = vpop.f32.mrf.mxu1 }
 0x15e   : > { %v1265_v9 = vmax.f32 %v1240_v6, 0.0  ;;  %v1090_v42 = vsel %vm678_vm0, %v1088_v5, %v1089_v7 }
 0x15f   : > { %v1264_v14 = vmax.f32 %v1239_v8, 0.0  ;;  %v1162_v17 = vmax.f32 %v816_v12, %v1090_v42 }
 0x160   : > { %v1290_v15 = vpack.c.bf16 %v1265_v9, %v1265_v9 }
 0x161   : > { %v1742_v16 = vpack.c.bf16 %v1264_v14, %v1263_v13  ;;  %v1187_v20 = vmax.f32 %v1038_v53, %v1162_v17 }
 0x162   : > { %1315 = vst [vmem:[%s1976_s29 + $0x60] sm:$0x3] %v1290_v15 }
 0x163   : > { %1754 = vst [vmem:[%s1976_s29 + $0x58] sm:$0xff] %v1742_v16   ;;  %v881_v18 = vpop.f32.mrf.mxu2  ;;  %v1216_v27 = vadd.f32 %v1967_v50, %v1187_v20 }
 0x164   : > { %v1091_v19 = vrot.slane %v881_v18, 4 }
 0x166   : > { %v1092_v21 = vsel %vm678_vm0, %v1089_v7, %v1091_v19  ;;  %v1094_v22 = vsel %vm678_vm0, %v1091_v19, %v1093_v54  ;;  %v1241_v54 = vmax.f32 %v1216_v27, 0.0 }
 0x167   : > { %v1163_v24 = vmax.f32 %v1904_v46, %v1092_v21  ;;  %v1164_v25 = vmax.f32 %v1917_v55, %v1094_v22  ;;  %v1244_v46 = vmax.f32 %v1219_v26, 0.0 }
 0x169   : > { %v1188_v45 = vmax.f32 %v1039_v3, %v1163_v24  ;;  %v1189_v48 = vmax.f32 %v1040_v11, %v1164_v25 }
 0x16b   : > { %v1217_v52 = vadd.f32 %v1967_v50, %v1188_v45  ;;  %v1218_v53 = vadd.f32 %v1967_v50, %v1189_v48 }
 0x16d   : > { %v1242_v55 = vmax.f32 %v1217_v52, 0.0  ;;  %v1243_v28 = vmax.f32 %v1218_v53, 0.0 }
 0x16f   : > { %v1687_v29 = vpack.c.bf16 %v1242_v55, %v1241_v54  ;;  %v1692_v23 = vpack.c.bf16 %v1244_v46, %v1243_v28 }
 0x171   : > { %1688 = vst [vmem:[%s1976_s29] sm:$0xff] %v1687_v29  }
 0x172   : > { %1744 = vst [vmem:[%s1976_s29 + $0x8] sm:$0xff] %v1692_v23  }
 0x173 PF: > { %s13_s12 = sadd.s32 1, %s1779_s12  }
 0x174   : > { %p10_p4 = scmp.ge.s32.totalorder %s13_s12, 4  }
 0x176   :  { %12 = sbr.rel (!%p10_p4) target bundleno = 1 (0x1), region = 62 }

// kernel: net_forward.4
= control target key start
LH: loop header
LB: loop body
LE: loop exit
PB: predicated region body
PF: predicated region fallthrough
CT: control target
= control target key end

     0   :  { %s2635_s12 = smov 0   ;;  %s3316_s0 = inlined_call_operand.vmem [shape: bf16[2,196,800], index: 0, kind: input, shape index: {}]   ;;  %s3317_s1 = inlined_call_operand.vmem [shape: bf16[800,128], index: 1, kind: input, shape index: {}]   ;;  %s3318_s2 = inlined_call_operand.vmem [shape: f32[1,128], index: 2, kind: input, shape index: {}]   ;;  %s3319_s3 = inlined_call_operand.vmem [shape: bf16[2,49,128], index: 3, kind: output, shape index: {}]  }
   0x1 LB: > { %s1863_s13 = sadd.s32 4294967295, %s2613_s12   ;;  %p1867_p0 = scmp.ge.s32.totalorder %s2613_s12, 1  ;;  %s2613_s12 = sphi %s2635_s12, %s13_s12  }
   0x2   : > { %p137_p1 = scmp.lt.s32.totalorder %s2613_s12, 3 }
   0x4   : > { %p138_p2 = pnand %p1867_p0, %p137_p1 }
   0x5   : > { %p161_p3 = scmp.lt.s32.totalorder (!%p138_p2), %s1863_s13, 1 }
   0x6   : > { %141 = sbr.rel (%p138_p2) target bundleno = 548 (0x224), region = 32 }
   0xb   : > { %v2512_v0 = vld [vmem:[%s3317_s1 + $0x38] sm:$0xff]  ;;  %v2511_v3 = vld [vmem:[%s3317_s1 + $0x30] sm:$0xff]  ;;  %v2510_v6 = vld [vmem:[%s3317_s1 + $0x28] sm:$0xff]  ;;  %s3321_s13 = smov (!%p161_p3, %s1863_s13), 1  ;;  %vm1116_vm0 = vcmask 261120   ;;  %vm1674_vm1 = vcmask 1046528  }
   0xc   : > { %v2649_v1 = vld [vmem:[%s3317_s1 + $0x78] sm:$0xff]  ;;  %1156 = vmatpush.bf16.msra.mxu0 %v2512_v0  ;;  %2572 = vmatpush.bf16.msra.mxu3 %v2512_v0  ;;  %v2664_v4 = vld [vmem:[%s3317_s1 + $0x70] sm:$0xff]  ;;  %v2679_v7 = vld [vmem:[%s3317_s1 + $0x68] sm:$0xff]  ;;  %s2596_s21 = smul.u32 700, %s3321_s13  ;;  %vm1743_vm2 = vcmask 1045504   ;;  %vm1802_vm3 = vcmask 1040384  }
   0xd   : > { %v2654_v2 = vld [vmem:[%s3317_s1 + $0xb8] sm:$0xff]  ;;  %1229 = vmatpush.bf16.msra.mxu1 %v2649_v1  ;;  %v2669_v5 = vld [vmem:[%s3317_s1 + $0xb0] sm:$0xff]  ;;  %v2684_v8 = vld [vmem:[%s3317_s1 + $0xa8] sm:$0xff]  ;;  %vm1803_vm4 = vsmask.f32 256 }
   0xe   : > { %1302 = vmatpush.bf16.msra.mxu2 %v2654_v2  ;;  %v2509_v9 = vld [vmem:[%s3317_s1 + $0x20] sm:$0xff]  ;;  %v2508_v12 = vld [vmem:[%s3317_s1 + $0x18] sm:$0xff]  ;;  %v2507_v15 = vld [vmem:[%s3317_s1 + $0x10] sm:$0xff]  ;;  %s2744_s30 = scalar_lea.vmem %s3316_s0, %s2596_s21  ;;  %s2597_s21 = smul.u32 28, %s3321_s13 }
   0xf   : > { %v2696_v10 = vld [vmem:[%s3317_s1 + $0x60] sm:$0xff]  ;;  %v2715_v13 = vld [vmem:[%s3317_s1 + $0x58] sm:$0xff]  ;;  %v2731_v16 = vld [vmem:[%s3317_s1 + $0x50] sm:$0xff] }
  0x10   : > { %1157 = vmatpush.bf16.msra.mxu0 %v2511_v3  ;;  %2573 = vmatpush.bf16.msra.mxu3 %v2511_v3  ;;  %v2701_v11 = vld [vmem:[%s3317_s1 + $0xa0] sm:$0xff]  ;;  %v2720_v14 = vld [vmem:[%s3317_s1 + $0x98] sm:$0xff]  ;;  %v2736_v17 = vld [vmem:[%s3317_s1 + $0x90] sm:$0xff]  ;;  %s3274_s24 = scalar_lea.vmem %s3319_s3, %s2597_s21 }
  0x11   : > { %1230 = vmatpush.bf16.msra.mxu1 %v2664_v4  ;;  %v2506_v18 = vld [vmem:[%s3317_s1 + $0x8] sm:$0xff]  ;;  %v2505_v21 = vld [vmem:[%s3317_s1] sm:$0xff]  ;;  %v2424_v25 = vld [vmem:[%s2744_s30 + $0x18] sm:$0xf0] }
  0x12   : > { %1303 = vmatpush.bf16.msra.mxu2 %v2669_v5  ;;  %v2751_v19 = vld [vmem:[%s3317_s1 + $0x48] sm:$0xff]  ;;  %v2764_v22 = vld [vmem:[%s3317_s1 + $0x40] sm:$0xff]  ;;  %v2152_v26 = vld [vmem:[%s2744_s30 + $0x230] sm:$0xf] }
  0x13   : > { %v2756_v20 = vld [vmem:[%s3317_s1 + $0x88] sm:$0xff]  ;;  %v2769_v23 = vld [vmem:[%s3317_s1 + $0x80] sm:$0xff]  ;;  %v2544_v33 = vld [vmem:[%s3317_s1 + $0x138] sm:$0xff] }
  0x14   : > { %1158 = vmatpush.bf16.msra.mxu0 %v2510_v6  ;;  %2574 = vmatpush.bf16.msra.mxu3 %v2510_v6  ;;  %v1872_v24 = vld [vmem:[%s2744_s30] sm:$0xf]  ;;  %v2494_v27 = vld [vmem:[%s2744_s30 + $0x248] sm:$0xf0]  ;;  %v2421_v28 = vld [vmem:[%s2744_s30 + $0x4] sm:$0xf] }
  0x15   : > { %1231 = vmatpush.bf16.msra.mxu1 %v2679_v7  ;;  %v1874_v29 = vld [vmem:[%s2744_s30 + $0x1c] sm:$0xf0]  ;;  %v1880_v30 = vld [vmem:[%s2744_s30 + $0x8] sm:$0xf]  ;;  %v2425_v31 = vld [vmem:[%s2744_s30 + $0x20] sm:$0xf0]  ;;  %v1873_v34 = vor.u32 %v2424_v25, %v1872_v24  ;;  %v2153_v35 = vor.u32 %v2494_v27, %v2152_v26 }
  0x16   : > { %1304 = vmatpush.bf16.msra.mxu2 %v2684_v8  ;;  %v2554_v32 = vld [vmem:[%s3317_s1 + $0x188] sm:$0xff]  ;;  %v1877_v36 = vor.u32 %v2421_v28, %v1874_v29  ;;  %v1881_v37 = vor.u32 %v2425_v31, %v1880_v30  ;;  %v2552_v38 = vld [vmem:[%s3317_s1 + $0x178] sm:$0xff]  ;;  %v2543_v39 = vld [vmem:[%s3317_s1 + $0x130] sm:$0xff] }
  0x17   : > { %v2551_v40 = vld [vmem:[%s3317_s1 + $0x170] sm:$0xff]  ;;  %v2542_v41 = vld [vmem:[%s3317_s1 + $0x128] sm:$0xff]  ;;  %v1900_v43 = vld [vmem:[%s2744_s30 + $0x38] sm:$0xf] }
  0x18   : > { %1159 = vmatpush.bf16.msra.mxu0 %v2509_v9  ;;  %2575 = vmatpush.bf16.msra.mxu3 %v2509_v9  ;;  %v2550_v42 = vld [vmem:[%s3317_s1 + $0x168] sm:$0xff]  ;;  %v2431_v44 = vld [vmem:[%s2744_s30 + $0x50] sm:$0xf0]  ;;  %v2501_v46 = vld [vmem:[%s2744_s30 + $0x280] sm:$0xf0] }
  0x19   : > { %1232 = vmatpush.bf16.msra.mxu1 %v2696_v10  ;;  %v2180_v45 = vld [vmem:[%s2744_s30 + $0x268] sm:$0xf]  ;;  %v2428_v47 = vld [vmem:[%s2744_s30 + $0x3c] sm:$0xf]  ;;  %v1902_v48 = vld [vmem:[%s2744_s30 + $0x54] sm:$0xf0]  ;;  %v1901_v51 = vor.u32 %v2431_v44, %v1900_v43 }
  0x1a   : > { %1305 = vmatpush.bf16.msra.mxu2 %v2701_v11  ;;  %v1908_v49 = vld [vmem:[%s2744_s30 + $0x40] sm:$0xf]  ;;  %v2432_v50 = vld [vmem:[%s2744_s30 + $0x58] sm:$0xf0]  ;;  %v2181_v52 = vor.u32 %v2501_v46, %v2180_v45  ;;  %v1905_v53 = vor.u32 %v2428_v47, %v1902_v48  ;;  %v1928_v58 = vld [vmem:[%s2744_s30 + $0x70] sm:$0xf] }
  0x1b   : > { %v1909_v54 = vor.u32 %v2432_v50, %v1908_v49  ;;  %v2541_v55 = vld [vmem:[%s3317_s1 + $0x120] sm:$0xff]  ;;  %v2438_v59 = vld [vmem:[%s2744_s30 + $0x88] sm:$0xf0]  ;;  %v2435_v60 = vld [vmem:[%s2744_s30 + $0x74] sm:$0xf] }
  0x1c   : > { %1160 = vmatpush.bf16.msra.mxu0 %v2508_v12  ;;  %2576 = vmatpush.bf16.msra.mxu3 %v2508_v12  ;;  %v2821_v56 = vld [vmem:[%s2744_s30 + $0x2a0] sm:$0x33]  ;;  %v1930_v61 = vld [vmem:[%s2744_s30 + $0x8c] sm:$0xf0]  ;;  %v1936_v62 = vld [vmem:[%s2744_s30 + $0x78] sm:$0xf]  ;;  %v1929_v0 = vor.u32 %v2438_v59, %v1928_v58 }
  0x1d   : > { %1233 = vmatpush.bf16.msra.mxu1 %v2715_v13  ;;  %v640_v57 = vunpack.c.l.b16 %v2821_v56  ;;  %v2439_v63 = vld [vmem:[%s2744_s30 + $0x90] sm:$0xf0]  ;;  %v1933_v3 = vor.u32 %v2435_v60, %v1930_v61  ;;  %v2549_v6 = vld [vmem:[%s3317_s1 + $0x160] sm:$0xff]  ;;  %v2452_v24 = vld [vmem:[%s2744_s30 + $0xf8] sm:$0xf0] }
  0x1e   : > { %1306 = vmatpush.bf16.msra.mxu2 %v2720_v14  ;;  %v2445_v9 = vld [vmem:[%s2744_s30 + $0xc0] sm:$0xf0]  ;;  %v2491_v12 = vld [vmem:[%s2744_s30 + $0x234] sm:$0xf]  ;;  %v2498_v26 = vld [vmem:[%s2744_s30 + $0x26c] sm:$0xf] }
  0x1f   : > { %v2449_v25 = vld [vmem:[%s2744_s30 + $0xe4] sm:$0xf]  ;;  %v2182_v27 = vld [vmem:[%s2744_s30 + $0x284] sm:$0xf0]  ;;  %v1986_v28 = vld [vmem:[%s2744_s30 + $0xfc] sm:$0xf0] }
  0x20   : > { %1161 = vmatpush.bf16.msra.mxu0 %v2507_v15  ;;  %2577 = vmatpush.bf16.msra.mxu3 %v2507_v15  ;;  %v1964_v15 = vld [vmem:[%s2744_s30 + $0xb0] sm:$0xf]  ;;  %v1992_v29 = vld [vmem:[%s2744_s30 + $0xe8] sm:$0xf]  ;;  %v2453_v30 = vld [vmem:[%s2744_s30 + $0x100] sm:$0xf0] }
  0x21   : > { %1234 = vmatpush.bf16.msra.mxu1 %v2731_v16  ;;  %v2535_v46 = vld [vmem:[%s3317_s1 + $0xf0] sm:$0xff]  ;;  %v2538_v47 = vld [vmem:[%s3317_s1 + $0x108] sm:$0xff]  ;;  %v2533_v50 = vld [vmem:[%s3317_s1 + $0xe0] sm:$0xff] }
  0x22   : > { %1307 = vmatpush.bf16.msra.mxu2 %v2736_v17  ;;  %v2546_v48 = vld [vmem:[%s3317_s1 + $0x148] sm:$0xff]  ;;  %v2467_v58 = vld [vmem:[%s2744_s30 + $0x170] sm:$0xf0]  ;;  %vm1804_vm5 = vmand %vm1802_vm3, %vm1803_vm4 }
  0x23   : > { %v2534_v49 = vld [vmem:[%s3317_s1 + $0xe8] sm:$0xff] }
  0x24   : > { %1162 = vmatpush.bf16.msra.mxu0 %v2506_v18  ;;  %2578 = vmatpush.bf16.msra.mxu3 %v2506_v18 }
  0x25   : > { %1235 = vmatpush.bf16.msra.mxu1 %v2751_v19 }
  0x26   : > { %1308 = vmatpush.bf16.msra.mxu2 %v2756_v20 }
  0x28   : > { %1163 = vmatpush.bf16.msra.mxu0 %v2505_v21  ;;  %2579 = vmatpush.bf16.msra.mxu3 %v2505_v21 }
  0x29   : > { %1236 = vmatpush.bf16.msra.mxu1 %v2764_v22 }
  0x2a   : > { %1309 = vmatpush.bf16.msra.mxu2 %v2769_v23 }
  0x2b   : > { %1164 = vmatmul.bf16.vlgmr.msra.gmra.mxu0 %v1873_v34  ;;  %1214 = vmatmul.bf16.vlgmr.msra.gmra.mxu3 %v2153_v35  ;;  %v2547_v34 = vld [vmem:[%s3317_s1 + $0x150] sm:$0xff]  ;;  %v641_v35 = vunpack.c.h.b16 %v2821_v56 }
  0x2c   : > { %1448 = vmatpush.bf16.msrb.mxu0 %v2544_v33  ;;  %1237 = vmatmul.bf16.vlgmr.msra.gmra.mxu1 %v1877_v36  ;;  %v1989_v33 = vor.u32 %v2449_v25, %v1986_v28  ;;  %v2012_v36 = vld [vmem:[%s2744_s30 + $0x118] sm:$0xf]  ;;  %v2042_v56 = vld [vmem:[%s2744_s30 + $0x16c] sm:$0xf0]  ;;  %v2098_v25 = vld [vmem:[%s2744_s30 + $0x1dc] sm:$0xf0] }
  0x2d   : > { %1310 = vmatmul.bf16.vlgmr.msra.gmra.mxu2 %v1881_v37  ;;  %1521 = vmatpush.bf16.msrb.mxu1 %v2552_v38  ;;  %v2459_v37 = vld [vmem:[%s2744_s30 + $0x130] sm:$0xf0]  ;;  %v2456_v38 = vld [vmem:[%s2744_s30 + $0x11c] sm:$0xf]  ;;  %v732_v43 = vpack.c.b16 %v641_v35, %v641_v35 }
  0x2e   : > { %1600 = vmatpush.bf16.msrb.mxu2 %v2554_v32  ;;  %2580 = vmatpush.bf16.msrb.mxu3 %v2649_v1  ;;  %v731_v1 = vpack.c.b16 %v640_v57, %v640_v57  ;;  %v2185_v32 = vor.u32 %v2498_v26, %v2182_v27  ;;  %v2048_v57 = vld [vmem:[%s2744_s30 + $0x158] sm:$0xf]  ;;  %v2104_v26 = vld [vmem:[%s2744_s30 + $0x1c8] sm:$0xf]  ;;  %v2481_v27 = vld [vmem:[%s2744_s30 + $0x1e0] sm:$0xf0] }
  0x30   : > { %1449 = vmatpush.bf16.msrb.mxu0 %v2543_v39  ;;  %v2014_v39 = vld [vmem:[%s2744_s30 + $0x134] sm:$0xf0] }
  0x31   : > { %1522 = vmatpush.bf16.msrb.mxu1 %v2551_v40  ;;  %v2020_v40 = vld [vmem:[%s2744_s30 + $0x120] sm:$0xf]  ;;  %v2017_v44 = vor.u32 %v2456_v38, %v2014_v39  ;;  %v2124_v38 = vld [vmem:[%s2744_s30 + $0x1f8] sm:$0xf]  ;;  %v2487_v39 = vld [vmem:[%s2744_s30 + $0x210] sm:$0xf0] }
  0x32   : > { %2581 = vmatpush.bf16.msrb.mxu3 %v2664_v4  ;;  %v1937_v4 = vor.u32 %v2439_v63, %v1936_v62  ;;  %v2049_v62 = vor.u32 %v2467_v58, %v2048_v57  ;;  %v2532_v63 = vld [vmem:[%s3317_s1 + $0xd8] sm:$0xff] }
  0x34   : > { %1450 = vmatpush.bf16.msrb.mxu0 %v2542_v41  ;;  %v2460_v41 = vld [vmem:[%s2744_s30 + $0x138] sm:$0xf0] }
  0x35   : > { %1523 = vmatpush.bf16.msrb.mxu1 %v2550_v42  ;;  %v2013_v42 = vor.u32 %v2459_v37, %v2012_v36  ;;  %v2021_v45 = vor.u32 %v2460_v41, %v2020_v40  ;;  %v2484_v40 = vld [vmem:[%s2744_s30 + $0x1fc] sm:$0xf]  ;;  %v2422_v41 = vld [vmem:[%s2744_s30 + $0xc] sm:$0xf] }
  0x36   : > { %2582 = vmatpush.bf16.msrb.mxu3 %v2679_v7  ;;  %v1956_v7 = vld [vmem:[%s2744_s30 + $0xa8] sm:$0xf] }
  0x37   : > { %v1957_v18 = vor.u32 %v2445_v9, %v1956_v7  ;;  %v2188_v7 = vld [vmem:[%s2744_s30 + $0x270] sm:$0xf]  ;;  %v2502_v9 = vld [vmem:[%s2744_s30 + $0x288] sm:$0xf0] }
  0x38   : > { %1451 = vmatpush.bf16.msrb.mxu0 %v2541_v55  ;;  %v2495_v55 = vld [vmem:[%s2744_s30 + $0x250] sm:$0xf0] }
  0x39   : > { %1524 = vmatpush.bf16.msrb.mxu1 %v2549_v6  ;;  %v2470_v6 = vld [vmem:[%s2744_s30 + $0x18c] sm:$0xf] }
  0x3a   : > { %2583 = vmatpush.bf16.msrb.mxu3 %v2696_v10  ;;  %v2442_v10 = vld [vmem:[%s2744_s30 + $0xac] sm:$0xf] }
  0x3b   : > { %1169 = vmatmul.bf16.gmra.mxu0 %v1901_v51  ;;  %1219 = vmatmul.bf16.gmra.mxu3 %v2181_v52  ;;  %v2040_v51 = vld [vmem:[%s2744_s30 + $0x150] sm:$0xf]  ;;  %v2466_v52 = vld [vmem:[%s2744_s30 + $0x168] sm:$0xf0] }
  0x3c   : > { %1242 = vmatmul.bf16.gmra.mxu1 %v1905_v53  ;;  %v2463_v53 = vld [vmem:[%s2744_s30 + $0x154] sm:$0xf]  ;;  %v2041_v59 = vor.u32 %v2466_v52, %v2040_v51 }
  0x3d   : > { %1315 = vmatmul.bf16.gmra.mxu2 %v1909_v54  ;;  %v2160_v54 = vld [vmem:[%s2744_s30 + $0x238] sm:$0xf]  ;;  %v2045_v61 = vor.u32 %v2463_v53, %v2042_v56 }
  0x3e   : > { %2584 = vmatpush.bf16.msrb.mxu3 %v2715_v13  ;;  %v2154_v13 = vld [vmem:[%s2744_s30 + $0x24c] sm:$0xf0]  ;;  %v2161_v60 = vor.u32 %v2495_v55, %v2160_v54 }
  0x42   : > { %2585 = vmatpush.bf16.msrb.mxu3 %v2731_v16  ;;  %v2446_v16 = vld [vmem:[%s2744_s30 + $0xc8] sm:$0xf0] }
  0x46   : > { %2586 = vmatpush.bf16.msrb.mxu3 %v2751_v19  ;;  %v2157_v19 = vor.u32 %v2491_v12, %v2154_v13  ;;  %v2076_v12 = vld [vmem:[%s2744_s30 + $0x190] sm:$0xf]  ;;  %v2474_v13 = vld [vmem:[%s2744_s30 + $0x1a8] sm:$0xf0] }
  0x4a   : > { %2587 = vmatpush.bf16.msrb.mxu3 %v2764_v22  ;;  %v1965_v22 = vor.u32 %v2446_v16, %v1964_v15  ;;  %v2189_v15 = vor.u32 %v2502_v9, %v2188_v7  ;;  %v2529_v16 = vld [vmem:[%s3317_s1 + $0xc0] sm:$0xff]  ;;  %v2427_v7 = vld [vmem:[%s2744_s30 + $0x30] sm:$0xf0] }
  0x4b   : > { %1174 = vmatmul.bf16.gmra.mxu0 %v1929_v0  ;;  %1224 = vmatmul.bf16.gmra.mxu3 %v731_v1  ;;  %v2531_v0 = vld [vmem:[%s3317_s1 + $0xd0] sm:$0xff]  ;;  %v2530_v1 = vld [vmem:[%s3317_s1 + $0xc8] sm:$0xff] }
  0x4c   : > { %1247 = vmatmul.bf16.gmra.mxu1 %v1933_v3  ;;  %v2068_v3 = vld [vmem:[%s2744_s30 + $0x188] sm:$0xf] }
  0x4d   : > { %1320 = vmatmul.bf16.gmra.mxu2 %v1937_v4  ;;  %v2473_v4 = vld [vmem:[%s2744_s30 + $0x1a0] sm:$0xf0] }
  0x4e   : > { %2588 = vmatpush.bf16.msra.mxu3 %v2654_v2  ;;  %v1958_v2 = vld [vmem:[%s2744_s30 + $0xc4] sm:$0xf0] }
  0x4f   : > { %v1961_v21 = vor.u32 %v2442_v10, %v1958_v2  ;;  %v2070_v10 = vld [vmem:[%s2744_s30 + $0x1a4] sm:$0xf0]  ;;  %v2069_v2 = vor.u32 %v2473_v4, %v2068_v3  ;;  %v2423_v3 = vld [vmem:[%s2744_s30 + $0x14] sm:$0xf]  ;;  %v1890_v4 = vld [vmem:[%s2744_s30 + $0x2c] sm:$0xf0] }
  0x52   : > { %2589 = vmatpush.bf16.msra.mxu3 %v2669_v5  ;;  %v2553_v5 = vld [vmem:[%s3317_s1 + $0x180] sm:$0xff] }
  0x53   : > { %1601 = vmatpush.bf16.msrb.mxu2 %v2553_v5  ;;  %v2935_v5 = vld [vmem:[%s2744_s30 + $0x2a8] sm:$0x33] }
  0x56   : > { %2590 = vmatpush.bf16.msra.mxu3 %v2684_v8  ;;  %v2540_v8 = vld [vmem:[%s3317_s1 + $0x118] sm:$0xff] }
  0x57   : > { %1452 = vmatpush.bf16.msrb.mxu0 %v2540_v8  ;;  %v642_v8 = vunpack.c.l.b16 %v2935_v5 }
  0x5a   : > { %2591 = vmatpush.bf16.msra.mxu3 %v2701_v11  ;;  %v2548_v11 = vld [vmem:[%s3317_s1 + $0x158] sm:$0xff] }
  0x5b   : > { %1179 = vmatmul.bf16.gmra.mxu0 %v1957_v18  ;;  %1287 = vmatmul.bf16.vlgmr.msrb.gmra.mxu3 %v2157_v19  ;;  %v2073_v18 = vor.u32 %v2470_v6, %v2070_v10  ;;  %v2077_v19 = vor.u32 %v2474_v13, %v2076_v12  ;;  %v1896_v6 = vld [vmem:[%s2744_s30 + $0x18] sm:$0xf] }
  0x5c   : > { %1252 = vmatmul.bf16.gmra.mxu1 %v1961_v21  ;;  %v2537_v21 = vld [vmem:[%s3317_s1 + $0x100] sm:$0xff] }
  0x5d   : > { %1325 = vmatmul.bf16.gmra.mxu2 %v1965_v22  ;;  %1525 = vmatpush.bf16.msrb.mxu1 %v2548_v11  ;;  %v2545_v22 = vld [vmem:[%s3317_s1 + $0x140] sm:$0xff] }
  0x5e   : > { %2592 = vmatpush.bf16.msra.mxu3 %v2720_v14  ;;  %v1984_v14 = vld [vmem:[%s2744_s30 + $0xe0] sm:$0xf] }
  0x5f   : > { %v1985_v31 = vor.u32 %v2452_v24, %v1984_v14  ;;  %v2096_v11 = vld [vmem:[%s2744_s30 + $0x1c0] sm:$0xf]  ;;  %v2480_v14 = vld [vmem:[%s2744_s30 + $0x1d8] sm:$0xf0]  ;;  %v2477_v24 = vld [vmem:[%s2744_s30 + $0x1c4] sm:$0xf] }
  0x60   : > { %v2097_v28 = vor.u32 %v2480_v14, %v2096_v11 }
  0x61   : > { %1526 = vmatpush.bf16.msrb.mxu1 %v2547_v34 }
  0x62   : > { %2593 = vmatpush.bf16.msra.mxu3 %v2736_v17  ;;  %v1993_v17 = vor.u32 %v2453_v30, %v1992_v29  ;;  %v733_v29 = vpack.c.b16 %v642_v8, %v642_v8 }
  0x65   : > { %1527 = vmatpush.bf16.msrb.mxu1 %v2546_v48  ;;  %v2125_v48 = vor.u32 %v2487_v39, %v2124_v38 }
  0x66   : > { %2594 = vmatpush.bf16.msra.mxu3 %v2756_v20  ;;  %v2539_v20 = vld [vmem:[%s3317_s1 + $0x110] sm:$0xff] }
  0x67   : > { %1453 = vmatpush.bf16.msrb.mxu0 %v2539_v20 }
  0x69   : > { %1528 = vmatpush.bf16.msrb.mxu1 %v2545_v22 }
  0x6a   : > { %2595 = vmatpush.bf16.msra.mxu3 %v2769_v23  ;;  %v2536_v23 = vld [vmem:[%s3317_s1 + $0xf8] sm:$0xff] }
  0x6b   : > { %1184 = vmatmul.bf16.gmra.mxu0 %v1985_v31  ;;  %1292 = vmatmul.bf16.gmra.mxu3 %v2185_v32  ;;  %v2101_v31 = vor.u32 %v2477_v24, %v2098_v25  ;;  %v2105_v32 = vor.u32 %v2481_v27, %v2104_v26  ;;  %v2436_v26 = vld [vmem:[%s2744_s30 + $0x7c] sm:$0xf]  ;;  %v1938_v27 = vld [vmem:[%s2744_s30 + $0x94] sm:$0xf0] }
  0x6c   : > { %1257 = vmatmul.bf16.gmra.mxu1 %v1989_v33  ;;  %1454 = vmatpush.bf16.msrb.mxu0 %v2538_v47 }
  0x6d   : > { %1330 = vmatmul.bf16.gmra.mxu2 %v1993_v17 }
  0x6e   : > { %1375 = vmatpush.bf16.msrb.mxu3 %v2536_v23 }
  0x70   : > { %1455 = vmatpush.bf16.msrb.mxu0 %v2537_v21 }
  0x72   : > { %1376 = vmatpush.bf16.msrb.mxu3 %v2535_v46 }
  0x76   : > { %1377 = vmatpush.bf16.msrb.mxu3 %v2534_v49 }
  0x7a   : > { %1378 = vmatpush.bf16.msrb.mxu3 %v2533_v50 }
  0x7b   : > { %1189 = vmatmul.bf16.gmra.mxu0 %v2013_v42  ;;  %1297 = vmatmul.bf16.gmra.mxu3 %v732_v43  ;;  %v1882_v42 = vld [vmem:[%s2744_s30 + $0x24] sm:$0xf0]  ;;  %v2126_v43 = vld [vmem:[%s2744_s30 + $0x214] sm:$0xf0] }
  0x7c   : > { %1262 = vmatmul.bf16.gmra.mxu1 %v2017_v44  ;;  %v2132_v44 = vld [vmem:[%s2744_s30 + $0x200] sm:$0xf]  ;;  %v1885_v49 = vor.u32 %v2422_v41, %v1882_v42  ;;  %v2129_v52 = vor.u32 %v2484_v40, %v2126_v43 }
  0x7d   : > { %1335 = vmatmul.bf16.gmra.mxu2 %v2021_v45  ;;  %v2488_v45 = vld [vmem:[%s2744_s30 + $0x218] sm:$0xf0] }
  0x7e   : > { %1379 = vmatpush.bf16.msrb.mxu3 %v2532_v63  ;;  %v2133_v53 = vor.u32 %v2488_v45, %v2132_v44  ;;  %v1910_v63 = vld [vmem:[%s2744_s30 + $0x5c] sm:$0xf0] }
  0x82   : > { %1380 = vmatpush.bf16.msrb.mxu3 %v2531_v0  ;;  %v1888_v0 = vld [vmem:[%s2744_s30 + $0x10] sm:$0xf] }
  0x86   : > { %1381 = vmatpush.bf16.msrb.mxu3 %v2530_v1  ;;  %v2426_v1 = vld [vmem:[%s2744_s30 + $0x28] sm:$0xf0] }
  0x87   : > { %v1889_v13 = vor.u32 %v2426_v1, %v1888_v0 }
  0x8a   : > { %1382 = vmatpush.bf16.msrb.mxu3 %v2529_v16  ;;  %v1893_v16 = vor.u32 %v2423_v3, %v1890_v4 }
  0x8b   : > { %1194 = vmatmul.bf16.gmra.mxu0 %v2041_v59  ;;  %1360 = vmatmul.bf16.vlgmr.msra.gmra.mxu3 %v2161_v60 }
  0x8c   : > { %1267 = vmatmul.bf16.gmra.mxu1 %v2045_v61 }
  0x8d   : > { %1340 = vmatmul.bf16.gmra.mxu2 %v2049_v62  ;;  %v2429_v62 = vld [vmem:[%s2744_s30 + $0x44] sm:$0xf] }
  0x8e   : > { %v1913_v12 = vor.u32 %v2429_v62, %v1910_v63 }
  0x9b   : > { %1199 = vmatmul.bf16.gmra.mxu0 %v2069_v2  ;;  %1365 = vmatmul.bf16.gmra.mxu3 %v2189_v15 }
  0x9c   : > { %1272 = vmatmul.bf16.gmra.mxu1 %v2073_v18  ;;  %v1897_v18 = vor.u32 %v2427_v7, %v1896_v6 }
  0x9d   : > { %1345 = vmatmul.bf16.gmra.mxu2 %v2077_v19 }
  0xa8   : > { %v1165_v30 = vpop.f32.mrf.mxu0 }
  0xa9   : > { %v1238_v33 = vpop.f32.mrf.mxu1 }
  0xaa   : > { %v1239_v17 = vadd.f32 %v1238_v33, %v1165_v30  ;;  %v2430_v30 = vld [vmem:[%s2744_s30 + $0x4c] sm:$0xf] }
  0xab   : > { %1204 = vmatmul.bf16.gmra.mxu0 %v2097_v28  ;;  %1370 = vmatmul.bf16.gmra.mxu3 %v733_v29  ;;  %v1916_v28 = vld [vmem:[%s2744_s30 + $0x48] sm:$0xf]  ;;  %v2433_v29 = vld [vmem:[%s2744_s30 + $0x60] sm:$0xf0]  ;;  %v2434_v33 = vld [vmem:[%s2744_s30 + $0x68] sm:$0xf0] }
  0xac   : > { %1277 = vmatmul.bf16.gmra.mxu1 %v2101_v31  ;;  %v1918_v31 = vld [vmem:[%s2744_s30 + $0x64] sm:$0xf0] }
  0xad   : > { %1350 = vmatmul.bf16.gmra.mxu2 %v2105_v32  ;;  %v1924_v32 = vld [vmem:[%s2744_s30 + $0x50] sm:$0xf]  ;;  %v1921_v39 = vor.u32 %v2430_v30, %v1918_v31 }
  0xae   : > { %v2944_v20 = vpop.f32.mrf.mxu3  ;;  %v1925_v40 = vor.u32 %v2434_v33, %v1924_v32 }
  0xb0   : > { %v1311_v34 = vpop.f32.mrf.mxu2  ;;  %v1167_v35 = vpop.f32.mrf.mxu0 }
  0xb1   : > { %v2946_v23 = vadd.f32 %v1311_v34, %v1239_v17  ;;  %v1240_v36 = vpop.f32.mrf.mxu1 }
  0xb2   : > { %v1241_v37 = vadd.f32 %v1240_v36, %v1167_v35  ;;  %v1941_v35 = vor.u32 %v2436_v26, %v1938_v27  ;;  %v1917_v36 = vor.u32 %v2433_v29, %v1916_v28  ;;  %v2444_v26 = vld [vmem:[%s2744_s30 + $0xbc] sm:$0xf]  ;;  %v1974_v27 = vld [vmem:[%s2744_s30 + $0xd4] sm:$0xf0]  ;;  %v1980_v28 = vld [vmem:[%s2744_s30 + $0xc0] sm:$0xf] }
  0xb3   : > { %v2448_v29 = vld [vmem:[%s2744_s30 + $0xd8] sm:$0xf0] }
  0xb6   : > { %v2956_v46 = vpop.f32.mrf.mxu3 }
  0xb8   : > { %v1313_v47 = vpop.f32.mrf.mxu2  ;;  %v1170_v51 = vpop.f32.mrf.mxu0 }
  0xb9   : > { %v2958_v50 = vadd.f32 %v1313_v47, %v1241_v37  ;;  %v1243_v54 = vpop.f32.mrf.mxu1 }
  0xba   : > { %v1244_v55 = vadd.f32 %v1243_v54, %v1170_v51  ;;  %v1944_v54 = vld [vmem:[%s2744_s30 + $0x80] sm:$0xf] }
  0xbb   : > { %1209 = vmatmul.bf16.gmra.mxu0 %v2125_v48  ;;  %1383 = vmatmul.bf16.vlgmr.msrb.gmra.mxu3 %v1885_v49 }
  0xbc   : > { %1282 = vmatmul.bf16.gmra.mxu1 %v2129_v52  ;;  %v2443_v52 = vld [vmem:[%s2744_s30 + $0xb4] sm:$0xf] }
  0xbd   : > { %1355 = vmatmul.bf16.gmra.mxu2 %v2133_v53  ;;  %v1966_v53 = vld [vmem:[%s2744_s30 + $0xcc] sm:$0xf0] }
  0xbe   : > { %v2960_v56 = vpop.f32.mrf.mxu3  ;;  %v1969_v0 = vor.u32 %v2443_v52, %v1966_v53  ;;  %v2000_v52 = vld [vmem:[%s2744_s30 + $0xf0] sm:$0xf]  ;;  %v2454_v53 = vld [vmem:[%s2744_s30 + $0x108] sm:$0xf0] }
  0xc0   : > { %v1316_v57 = vpop.f32.mrf.mxu2  ;;  %v1172_v59 = vpop.f32.mrf.mxu0 }
  0xc1   : > { %v2962_v58 = vadd.f32 %v1316_v57, %v1244_v55  ;;  %v1245_v60 = vpop.f32.mrf.mxu1  ;;  %v2440_v55 = vld [vmem:[%s2744_s30 + $0x98] sm:$0xf0]  ;;  %v2437_v57 = vld [vmem:[%s2744_s30 + $0x84] sm:$0xf] }
  0xc2   : > { %v1246_v61 = vadd.f32 %v1245_v60, %v1172_v59  ;;  %v1946_v59 = vld [vmem:[%s2744_s30 + $0x9c] sm:$0xf0]  ;;  %v1952_v60 = vld [vmem:[%s2744_s30 + $0x88] sm:$0xf]  ;;  %v1945_v1 = vor.u32 %v2440_v55, %v1944_v54  ;;  %v2451_v54 = vld [vmem:[%s2744_s30 + $0xf4] sm:$0xf] }
  0xc3   : > { %v1949_v6 = vor.u32 %v2437_v57, %v1946_v59  ;;  %v2002_v55 = vld [vmem:[%s2744_s30 + $0x10c] sm:$0xf0]  ;;  %v2008_v57 = vld [vmem:[%s2744_s30 + $0xf8] sm:$0xf]  ;;  %v2455_v59 = vld [vmem:[%s2744_s30 + $0x110] sm:$0xf0] }
  0xc6   : > { %v2972_v9 = vpop.f32.mrf.mxu3 }
  0xc8   : > { %v1318_v10 = vpop.f32.mrf.mxu2  ;;  %v1175_v15 = vpop.f32.mrf.mxu0 }
  0xc9   : > { %v2974_v2 = vadd.f32 %v1318_v10, %v1246_v61  ;;  %v1248_v19 = vpop.f32.mrf.mxu1  ;;  %v2441_v61 = vld [vmem:[%s2744_s30 + $0xa0] sm:$0xf0] }
  0xca   : > { %v1249_v21 = vadd.f32 %v1248_v19, %v1175_v15  ;;  %v1953_v7 = vor.u32 %v2441_v61, %v1952_v60 }
  0xcb   : > { %1388 = vmatmul.bf16.gmra.mxu3 %v1913_v12  ;;  %1456 = vmatmul.bf16.vlgmr.msrb.gmra.mxu0 %v1889_v13 }
  0xcc   : > { %1529 = vmatmul.bf16.vlgmr.msrb.gmra.mxu1 %v1893_v16 }
  0xcd   : > { %2406 = vmatmul.msk.bf16.vlgmr.msrb.gmra.mxu2 %vm1116_vm0, %v1897_v18 }
  0xce   : > { %v2977_v22 = vpop.f32.mrf.mxu3 }
  0xd0   : > { %v1321_v8 = vpop.f32.mrf.mxu2  ;;  %v1177_v14 = vpop.f32.mrf.mxu0 }
  0xd1   : > { %v2979_v11 = vadd.f32 %v1321_v8, %v1249_v21  ;;  %v1250_v24 = vpop.f32.mrf.mxu1  ;;  %v2450_v8 = vld [vmem:[%s2744_s30 + $0xec] sm:$0xf] }
  0xd2   : > { %v1251_v25 = vadd.f32 %v1250_v24, %v1177_v14  ;;  %v1994_v14 = vld [vmem:[%s2744_s30 + $0x104] sm:$0xf0]  ;;  %v1972_v24 = vld [vmem:[%s2744_s30 + $0xb8] sm:$0xf] }
  0xd3   : > { %v1997_v32 = vor.u32 %v2450_v8, %v1994_v14  ;;  %v2464_v8 = vld [vmem:[%s2744_s30 + $0x15c] sm:$0xf]  ;;  %v2050_v14 = vld [vmem:[%s2744_s30 + $0x174] sm:$0xf0] }
  0xd6   : > { %v1227_v17 = vpop.f32.mrf.mxu3 }
  0xd8   : > { %v1323_v34 = vpop.f32.mrf.mxu2  ;;  %v1180_v38 = vpop.f32.mrf.mxu0 }
  0xd9   : > { %v2989_v37 = vadd.f32 %v1323_v34, %v1251_v25  ;;  %v1253_v41 = vpop.f32.mrf.mxu1  ;;  %v2447_v25 = vld [vmem:[%s2744_s30 + $0xd0] sm:$0xf0] }
  0xda   : > { %v1254_v42 = vadd.f32 %v1253_v41, %v1180_v38  ;;  %v1973_v33 = vor.u32 %v2447_v25, %v1972_v24  ;;  %v2028_v24 = vld [vmem:[%s2744_s30 + $0x128] sm:$0xf]  ;;  %v2461_v25 = vld [vmem:[%s2744_s30 + $0x140] sm:$0xf0] }
  0xdb   : > { %1393 = vmatmul.bf16.gmra.mxu3 %v1941_v35  ;;  %1461 = vmatmul.bf16.gmra.mxu0 %v1917_v36  ;;  %v1977_v35 = vor.u32 %v2444_v26, %v1974_v27  ;;  %v1981_v36 = vor.u32 %v2448_v29, %v1980_v28  ;;  %v2458_v26 = vld [vmem:[%s2744_s30 + $0x12c] sm:$0xf]  ;;  %v2030_v27 = vld [vmem:[%s2744_s30 + $0x144] sm:$0xf0]  ;;  %v2036_v28 = vld [vmem:[%s2744_s30 + $0x130] sm:$0xf] }
  0xdc   : > { %1534 = vmatmul.bf16.gmra.mxu1 %v1921_v39  ;;  %v2462_v29 = vld [vmem:[%s2744_s30 + $0x148] sm:$0xf0] }
  0xdd   : > { %2407 = vmatmul.msk.bf16.gmra.mxu2 %vm1116_vm0, %v1925_v40 }
  0xde   : > { %v1288_v43 = vpop.f32.mrf.mxu3 }
  0xdf   : > { %v2993_v44 = vadd.f32 %v1288_v43, %v2944_v20 }
  0xe0   : > { %v1326_v45 = vpop.f32.mrf.mxu2  ;;  %v1182_v48 = vpop.f32.mrf.mxu0 }
  0xe1   : > { %v2995_v47 = vadd.f32 %v1326_v45, %v1254_v42  ;;  %v1255_v49 = vpop.f32.mrf.mxu1 }
  0xe2   : > { %v1256_v51 = vadd.f32 %v1255_v49, %v1182_v48  ;;  %v2457_v49 = vld [vmem:[%s2744_s30 + $0x124] sm:$0xf] }
  0xe6   : > { %v1290_v62 = vpop.f32.mrf.mxu3 }
  0xe7   : > { %v3006_v63 = vadd.f32 %v1290_v62, %v2956_v46 }
  0xe8   : > { %v1328_v20 = vpop.f32.mrf.mxu2  ;;  %v1185_v4 = vpop.f32.mrf.mxu0 }
  0xe9   : > { %v3008_v3 = vadd.f32 %v1328_v20, %v1256_v51  ;;  %v1258_v10 = vpop.f32.mrf.mxu1  ;;  %v2022_v51 = vld [vmem:[%s2744_s30 + $0x13c] sm:$0xf0]  ;;  %v2001_v20 = vor.u32 %v2454_v53, %v2000_v52  ;;  %v2471_v52 = vld [vmem:[%s2744_s30 + $0x194] sm:$0xf]  ;;  %v2078_v53 = vld [vmem:[%s2744_s30 + $0x1ac] sm:$0xf0] }
  0xea   : > { %v1259_v12 = vadd.f32 %v1258_v10, %v1185_v4  ;;  %v2025_v62 = vor.u32 %v2457_v49, %v2022_v51  ;;  %v2009_v4 = vor.u32 %v2455_v59, %v2008_v57  ;;  %v2465_v57 = vld [vmem:[%s2744_s30 + $0x164] sm:$0xf]  ;;  %v2058_v59 = vld [vmem:[%s2744_s30 + $0x17c] sm:$0xf0] }
  0xeb   : > { %1398 = vmatmul.bf16.gmra.mxu3 %v1969_v0  ;;  %1466 = vmatmul.bf16.gmra.mxu0 %v1945_v1  ;;  %v2005_v1 = vor.u32 %v2451_v54, %v2002_v55  ;;  %v2056_v54 = vld [vmem:[%s2744_s30 + $0x160] sm:$0xf]  ;;  %v2468_v55 = vld [vmem:[%s2744_s30 + $0x178] sm:$0xf0] }
  0xec   : > { %1539 = vmatmul.bf16.gmra.mxu1 %v1949_v6 }
  0xed   : > { %2408 = vmatmul.msk.bf16.gmra.mxu2 %vm1116_vm0, %v1953_v7 }
  0xee   : > { %v1293_v46 = vpop.f32.mrf.mxu3 }
  0xef   : > { %v3012_v13 = vadd.f32 %v1293_v46, %v2960_v56 }
  0xf0   : > { %v1331_v15 = vpop.f32.mrf.mxu2  ;;  %v1187_v18 = vpop.f32.mrf.mxu0 }
  0xf1   : > { %v3014_v16 = vadd.f32 %v1331_v15, %v1259_v12  ;;  %v1260_v19 = vpop.f32.mrf.mxu1 }
  0xf2   : > { %v1261_v21 = vadd.f32 %v1260_v19, %v1187_v18 }
  0xf6   : > { %v1295_v30 = vpop.f32.mrf.mxu3 }
  0xf7   : > { %v3025_v31 = vadd.f32 %v1295_v30, %v2972_v9 }
  0xf8   : > { %v1333_v56 = vpop.f32.mrf.mxu2  ;;  %v1190_v34 = vpop.f32.mrf.mxu0 }
  0xf9   : > { %v3027_v17 = vadd.f32 %v1333_v56, %v1261_v21  ;;  %v1263_v38 = vpop.f32.mrf.mxu1 }
  0xfa   : > { %v1264_v39 = vadd.f32 %v1263_v38, %v1190_v34  ;;  %v2037_v38 = vor.u32 %v2462_v29, %v2036_v28  ;;  %v2084_v28 = vld [vmem:[%s2744_s30 + $0x198] sm:$0xf]  ;;  %v2475_v29 = vld [vmem:[%s2744_s30 + $0x1b0] sm:$0xf0] }
  0xfb   : > { %1403 = vmatmul.bf16.gmra.mxu3 %v1997_v32  ;;  %1471 = vmatmul.bf16.gmra.mxu0 %v1973_v33  ;;  %v2029_v33 = vor.u32 %v2461_v25, %v2028_v24 }
  0xfc   : > { %1544 = vmatmul.bf16.gmra.mxu1 %v1977_v35 }
  0xfd   : > { %2409 = vmatmul.msk.bf16.gmra.mxu2 %vm1116_vm0, %v1981_v36  ;;  %v2033_v36 = vor.u32 %v2458_v26, %v2030_v27  ;;  %v2478_v26 = vld [vmem:[%s2744_s30 + $0x1cc] sm:$0xf]  ;;  %v2106_v27 = vld [vmem:[%s2744_s30 + $0x1e4] sm:$0xf0] }
  0xfe   : > { %v1298_v9 = vpop.f32.mrf.mxu3 }
  0xff   : > { %v3031_v40 = vadd.f32 %v1298_v9, %v2977_v22 }
 0x100   : > { %v1336_v41 = vpop.f32.mrf.mxu2  ;;  %v1192_v43 = vpop.f32.mrf.mxu0 }
 0x101   : > { %v3033_v42 = vadd.f32 %v1336_v41, %v1264_v39  ;;  %v1265_v45 = vpop.f32.mrf.mxu1 }
 0x102   : > { %v1266_v48 = vadd.f32 %v1265_v45, %v1192_v43 }
 0x106   : > { %v1300_v60 = vpop.f32.mrf.mxu3 }
 0x107   : > { %v2064_v60 = vld [vmem:[%s2744_s30 + $0x168] sm:$0xf] }
 0x108   : > { %v1338_v61 = vpop.f32.mrf.mxu2  ;;  %v1195_v0 = vpop.f32.mrf.mxu0 }
 0x109   : > { %v3043_v22 = vadd.f32 %v1338_v61, %v1266_v48  ;;  %v1268_v6 = vpop.f32.mrf.mxu1  ;;  %v2469_v61 = vld [vmem:[%s2744_s30 + $0x180] sm:$0xf0] }
 0x10a   : > { %v1269_v7 = vadd.f32 %v1268_v6, %v1195_v0 }
 0x10b   : > { %1408 = vmatmul.bf16.gmra.mxu3 %v2025_v62  ;;  %1476 = vmatmul.bf16.gmra.mxu0 %v2001_v20 }
 0x10c   : > { %1549 = vmatmul.bf16.gmra.mxu1 %v2005_v1  ;;  %v2057_v1 = vor.u32 %v2468_v55, %v2056_v54 }
 0x10d   : > { %2410 = vmatmul.msk.bf16.gmra.mxu2 %vm1116_vm0, %v2009_v4 }
 0x10e   : > { %v1361_v10 = vpop.f32.mrf.mxu3 }
 0x10f   : > { %v3047_v46 = vadd.f32 %v1361_v10, %v2993_v44  ;;  %v2053_v44 = vor.u32 %v2464_v8, %v2050_v14  ;;  %v2065_v10 = vor.u32 %v2469_v61, %v2064_v60  ;;  %v2485_v60 = vld [vmem:[%s2744_s30 + $0x204] sm:$0xf]  ;;  %v2134_v61 = vld [vmem:[%s2744_s30 + $0x21c] sm:$0xf0] }
 0x110   : > { %v1341_v12 = vpop.f32.mrf.mxu2  ;;  %v1197_v18 = vpop.f32.mrf.mxu0 }
 0x111   : > { %v3049_v15 = vadd.f32 %v1341_v12, %v1269_v7  ;;  %v1270_v19 = vpop.f32.mrf.mxu1  ;;  %v2061_v7 = vor.u32 %v2465_v57, %v2058_v59 }
 0x112   : > { %v1271_v21 = vadd.f32 %v1270_v19, %v1197_v18 }
 0x116   : > { %v1363_v30 = vpop.f32.mrf.mxu3 }
 0x117   : > { %v3060_v32 = vadd.f32 %v1363_v30, %v3006_v63  ;;  %v2472_v30 = vld [vmem:[%s2744_s30 + $0x19c] sm:$0xf] }
 0x118   : > { %v1343_v56 = vpop.f32.mrf.mxu2  ;;  %v1200_v35 = vpop.f32.mrf.mxu0 }
 0x119   : > { %v3062_v34 = vadd.f32 %v1343_v56, %v1271_v21  ;;  %v1273_v39 = vpop.f32.mrf.mxu1  ;;  %v2086_v56 = vld [vmem:[%s2744_s30 + $0x1b4] sm:$0xf0] }
 0x11a   : > { %v1274_v9 = vadd.f32 %v1273_v39, %v1200_v35  ;;  %v2085_v39 = vor.u32 %v2475_v29, %v2084_v28 }
 0x11b   : > { %1413 = vmatmul.bf16.gmra.mxu3 %v2053_v44  ;;  %1481 = vmatmul.bf16.gmra.mxu0 %v2029_v33  ;;  %v2092_v44 = vld [vmem:[%s2744_s30 + $0x1a0] sm:$0xf]  ;;  %v2476_v33 = vld [vmem:[%s2744_s30 + $0x1b8] sm:$0xf0] }
 0x11c   : > { %1554 = vmatmul.bf16.gmra.mxu1 %v2033_v36 }
 0x11d   : > { %2411 = vmatmul.msk.bf16.gmra.mxu2 %vm1116_vm0, %v2037_v38  ;;  %v2109_v38 = vor.u32 %v2478_v26, %v2106_v27 }
 0x11e   : > { %v1366_v63 = vpop.f32.mrf.mxu3 }
 0x11f   : > { %v3066_v43 = vadd.f32 %v1366_v63, %v3012_v13  ;;  %v2081_v13 = vor.u32 %v2471_v52, %v2078_v53  ;;  %v2089_v63 = vor.u32 %v2472_v30, %v2086_v56 }
 0x120   : > { %v1346_v41 = vpop.f32.mrf.mxu2  ;;  %v1202_v48 = vpop.f32.mrf.mxu0 }
 0x121   : > { %v3068_v45 = vadd.f32 %v1346_v41, %v1274_v9  ;;  %v1275_v49 = vpop.f32.mrf.mxu1  ;;  %v2093_v41 = vor.u32 %v2476_v33, %v2092_v44 }
 0x122   : > { %v1276_v51 = vadd.f32 %v1275_v49, %v1202_v48 }
 0x126   : > { %v1368_v62 = vpop.f32.mrf.mxu3 }
 0x127   : > { %v3079_v0 = vadd.f32 %v1368_v62, %v3025_v31  ;;  %v2112_v62 = vld [vmem:[%s2744_s30 + $0x1d0] sm:$0xf] }
 0x128   : > { %v1348_v20 = vpop.f32.mrf.mxu2  ;;  %v1205_v6 = vpop.f32.mrf.mxu0 }
 0x129   : > { %v3081_v4 = vadd.f32 %v1348_v20, %v1276_v51  ;;  %v1278_v12 = vpop.f32.mrf.mxu1  ;;  %v2482_v20 = vld [vmem:[%s2744_s30 + $0x1e8] sm:$0xf0] }
 0x12a   : > { %v1279_v18 = vadd.f32 %v1278_v12, %v1205_v6  ;;  %v2120_v6 = vld [vmem:[%s2744_s30 + $0x1d8] sm:$0xf] }
 0x12b   : > { %1418 = vmatmul.bf16.gmra.mxu3 %v2081_v13  ;;  %1486 = vmatmul.bf16.gmra.mxu0 %v2057_v1  ;;  %v2479_v13 = vld [vmem:[%s2744_s30 + $0x1d4] sm:$0xf]  ;;  %v2114_v1 = vld [vmem:[%s2744_s30 + $0x1ec] sm:$0xf0] }
 0x12c   : > { %1559 = vmatmul.bf16.gmra.mxu1 %v2061_v7  ;;  %v2483_v7 = vld [vmem:[%s2744_s30 + $0x1f0] sm:$0xf0] }
 0x12d   : > { %2412 = vmatmul.msk.bf16.gmra.mxu2 %vm1116_vm0, %v2065_v10 }
 0x12e   : > { %v1371_v31 = vpop.f32.mrf.mxu3 }
 0x12f   : > { %v3085_v21 = vadd.f32 %v1371_v31, %v3031_v40  ;;  %v2137_v31 = vor.u32 %v2485_v60, %v2134_v61 }
 0x130   : > { %v1351_v19 = vpop.f32.mrf.mxu2  ;;  %v1207_v14 = vpop.f32.mrf.mxu0 }
 0x131   : > { %v3087_v8 = vadd.f32 %v1351_v19, %v1279_v18  ;;  %v1280_v24 = vpop.f32.mrf.mxu1  ;;  %v2113_v19 = vor.u32 %v2482_v20, %v2112_v62 }
 0x132   : > { %v1281_v25 = vadd.f32 %v1280_v24, %v1207_v14  ;;  %v2117_v24 = vor.u32 %v2479_v13, %v2114_v1 }
 0x136   : > { %v1373_v35 = vpop.f32.mrf.mxu3 }
 0x138   : > { %v1353_v36 = vpop.f32.mrf.mxu2  ;;  %v1210_v40 = vpop.f32.mrf.mxu0 }
 0x139   : > { %v3097_v9 = vadd.f32 %v1353_v36, %v1281_v25  ;;  %v1283_v48 = vpop.f32.mrf.mxu1  ;;  %v2121_v25 = vor.u32 %v2483_v7, %v2120_v6 }
 0x13a   : > { %v1284_v49 = vadd.f32 %v1283_v48, %v1210_v40  ;;  %v2140_v40 = vld [vmem:[%s2744_s30 + $0x208] sm:$0xf] }
 0x13b   : > { %1423 = vmatmul.bf16.gmra.mxu3 %v2109_v38  ;;  %1491 = vmatmul.bf16.gmra.mxu0 %v2085_v39  ;;  %v2492_v38 = vld [vmem:[%s2744_s30 + $0x23c] sm:$0xf]  ;;  %v2162_v39 = vld [vmem:[%s2744_s30 + $0x254] sm:$0xf0]  ;;  %v2142_v48 = vld [vmem:[%s2744_s30 + $0x224] sm:$0xf0] }
 0x13c   : > { %1564 = vmatmul.bf16.gmra.mxu1 %v2089_v63  ;;  %v2489_v63 = vld [vmem:[%s2744_s30 + $0x220] sm:$0xf0] }
 0x13d   : > { %2413 = vmatmul.msk.bf16.gmra.mxu2 %vm1116_vm0, %v2093_v41  ;;  %v2486_v41 = vld [vmem:[%s2744_s30 + $0x20c] sm:$0xf] }
 0x13e   : > { %v1384_v51 = vpop.f32.mrf.mxu3  ;;  %v2145_v61 = vor.u32 %v2486_v41, %v2142_v48 }
 0x13f   : > { %v1385_v53 = vadd.f32 %v1384_v51, %v2946_v23  ;;  %v2490_v51 = vld [vmem:[%s2744_s30 + $0x228] sm:$0xf0] }
 0x140   : > { %v1356_v52 = vpop.f32.mrf.mxu2  ;;  %v1212_v55 = vpop.f32.mrf.mxu0 }
 0x141   : > { %v3101_v54 = vadd.f32 %v1356_v52, %v1284_v49  ;;  %v1285_v57 = vpop.f32.mrf.mxu1  ;;  %v2148_v49 = vld [vmem:[%s2744_s30 + $0x210] sm:$0xf] }
 0x142   : > { %v1286_v59 = vadd.f32 %v1285_v57, %v1212_v55  ;;  %v2141_v57 = vor.u32 %v2489_v63, %v2140_v40  ;;  %v2149_v62 = vor.u32 %v2490_v51, %v2148_v49 }
 0x146   : > { %v1386_v10 = vpop.f32.mrf.mxu3 }
 0x147   : > { %v1387_v18 = vadd.f32 %v1386_v10, %v2958_v50 }
 0x148   : > { %v1358_v12 = vpop.f32.mrf.mxu2  ;;  %v1457_v14 = vpop.f32.mrf.mxu0 }
 0x149   : > { %v3112_v23 = vadd.f32 %v1358_v12, %v1286_v59  ;;  %v1458_v26 = vadd.f32 %v1457_v14, %v1385_v53  ;;  %v1530_v27 = vpop.f32.mrf.mxu1  ;;  %v2499_v14 = vld [vmem:[%s2744_s30 + $0x274] sm:$0xf] }
 0x14b   : > { %v1531_v28 = vadd.f32 %v1530_v27, %v1458_v26  ;;  %1428 = vmatmul.bf16.gmra.mxu3 %v2137_v31  ;;  %1496 = vmatmul.bf16.gmra.mxu0 %v2113_v19  ;;  %v2496_v26 = vld [vmem:[%s2744_s30 + $0x258] sm:$0xf0]  ;;  %v2493_v27 = vld [vmem:[%s2744_s30 + $0x244] sm:$0xf] }
 0x14c   : > { %1569 = vmatmul.bf16.gmra.mxu1 %v2117_v24  ;;  %v2190_v24 = vld [vmem:[%s2744_s30 + $0x28c] sm:$0xf0] }
 0x14d   : > { %2414 = vmatmul.msk.bf16.gmra.mxu2 %vm1116_vm0, %v2121_v25  ;;  %v2168_v25 = vld [vmem:[%s2744_s30 + $0x240] sm:$0xf] }
 0x14e   : > { %v1389_v50 = vpop.f32.mrf.mxu3 }
 0x14f   : > { %v1390_v29 = vadd.f32 %v1389_v50, %v2962_v58  ;;  %v2165_v58 = vor.u32 %v2492_v38, %v2162_v39  ;;  %v2176_v50 = vld [vmem:[%s2744_s30 + $0x248] sm:$0xf] }
 0x150   : > { %v1603_v30 = vpop.f32.mrf.mxu2  ;;  %v1459_v44 = vpop.f32.mrf.mxu0 }
 0x151   : > { %v3116_v56 = vadd.f32 %v1603_v30, %v1531_v28  ;;  %v1460_v33 = vadd.f32 %v1459_v44, %v1387_v18  ;;  %v1532_v35 = vpop.f32.mrf.mxu1  ;;  %v2170_v28 = vld [vmem:[%s2744_s30 + $0x25c] sm:$0xf0] }
 0x152   : > { %v2173_v39 = vor.u32 %v2493_v27, %v2170_v28 }
 0x153   : > { %v1533_v36 = vadd.f32 %v1532_v35, %v1460_v33  ;;  %v2169_v35 = vor.u32 %v2496_v26, %v2168_v25 }
 0x156   : > { %v1391_v52 = vpop.f32.mrf.mxu3 }
 0x157   : > { %v1392_v53 = vadd.f32 %v1391_v52, %v2974_v2 }
 0x158   : > { %v1605_v55 = vpop.f32.mrf.mxu2  ;;  %v1462_v60 = vpop.f32.mrf.mxu0 }
 0x159   : > { %v3127_v59 = vadd.f32 %v1605_v55, %v1533_v36  ;;  %v1463_v20 = vadd.f32 %v1462_v60, %v1390_v29  ;;  %v1535_v13 = vpop.f32.mrf.mxu1  ;;  %v2497_v29 = vld [vmem:[%s2744_s30 + $0x260] sm:$0xf0] }
 0x15a   : > { %v2177_v40 = vor.u32 %v2497_v29, %v2176_v50 }
 0x15b   : > { %v1536_v1 = vadd.f32 %v1535_v13, %v1463_v20  ;;  %1433 = vmatmul.bf16.gmra.mxu3 %v2165_v58  ;;  %1501 = vmatmul.bf16.gmra.mxu0 %v2141_v57  ;;  %v643_v57 = vunpack.c.h.b16 %v2935_v5  ;;  %v2500_v20 = vld [vmem:[%s2744_s30 + $0x27c] sm:$0xf]  ;;  %v2198_v13 = vld [vmem:[%s2744_s30 + $0x294] sm:$0xf0] }
 0x15c   : > { %1574 = vmatmul.bf16.gmra.mxu1 %v2145_v61  ;;  %v2196_v61 = vld [vmem:[%s2744_s30 + $0x278] sm:$0xf] }
 0x15d   : > { %2415 = vmatmul.msk.bf16.gmra.mxu2 %vm1116_vm0, %v2149_v62  ;;  %v2503_v62 = vld [vmem:[%s2744_s30 + $0x290] sm:$0xf0] }
 0x15e   : > { %v1394_v2 = vpop.f32.mrf.mxu3 }
 0x15f   : > { %v1395_v6 = vadd.f32 %v1394_v2, %v2979_v11  ;;  %v2193_v11 = vor.u32 %v2499_v14, %v2190_v24  ;;  %v2504_v2 = vld [vmem:[%s2744_s30 + $0x298] sm:$0xf0]  ;;  %v2201_v14 = vor.u32 %v2500_v20, %v2198_v13 }
 0x160   : > { %v1608_v7 = vpop.f32.mrf.mxu2  ;;  %v1464_v12 = vpop.f32.mrf.mxu0 }
 0x161   : > { %v3131_v10 = vadd.f32 %v1608_v7, %v1536_v1  ;;  %v1465_v18 = vadd.f32 %v1464_v12, %v1392_v53  ;;  %v1537_v31 = vpop.f32.mrf.mxu1  ;;  %v2204_v1 = vld [vmem:[%s2744_s30 + $0x280] sm:$0xf] }
 0x162   : > { %v2205_v24 = vor.u32 %v2504_v2, %v2204_v1 }
 0x163   : > { %v1538_v19 = vadd.f32 %v1537_v31, %v1465_v18  ;;  %v2197_v18 = vor.u32 %v2503_v62, %v2196_v61 }
 0x166   : > { %v1396_v30 = vpop.f32.mrf.mxu3 }
 0x167   : > { %v1397_v44 = vadd.f32 %v1396_v30, %v2989_v37  ;;  %v270_v30 = vld [vmem:[%s2744_s30 + $0x2b0] sm:$0x33] }
 0x168   : > { %v1610_v33 = vpop.f32.mrf.mxu2  ;;  %v1467_v38 = vpop.f32.mrf.mxu0 }
 0x169   : > { %v3142_v36 = vadd.f32 %v1610_v33, %v1538_v19  ;;  %v1468_v63 = vadd.f32 %v1467_v38, %v1395_v6  ;;  %v1540_v41 = vpop.f32.mrf.mxu1  ;;  %v644_v38 = vunpack.c.l.b16 %v270_v30 }
 0x16b   : > { %v1541_v48 = vadd.f32 %v1540_v41, %v1468_v63  ;;  %1438 = vmatmul.bf16.gmra.mxu3 %v2193_v11  ;;  %1506 = vmatmul.bf16.gmra.mxu0 %v2169_v35  ;;  %v271_v11 = vld [vmem:[%s2744_s30 + $0x2b8] sm:$0x3] }
 0x16c   : > { %1579 = vmatmul.bf16.gmra.mxu1 %v2173_v39  ;;  %v645_v39 = vunpack.c.h.b16 %v270_v30 }
 0x16d   : > { %2416 = vmatmul.msk.bf16.gmra.mxu2 %vm1116_vm0, %v2177_v40  ;;  %v646_v40 = vunpack.c.l.b16 %v271_v11 }
 0x16e   : > { %v1399_v37 = vpop.f32.mrf.mxu3 }
 0x16f   : > { %v1400_v49 = vadd.f32 %v1399_v37, %v2995_v47  ;;  %v734_v47 = vpack.c.b16 %v643_v57, %v643_v57  ;;  %v735_v37 = vpack.c.b16 %v644_v38, %v644_v38 }
 0x170   : > { %v1613_v51 = vpop.f32.mrf.mxu2  ;;  %v1469_v53 = vpop.f32.mrf.mxu0 }
 0x171   : > { %v3146_v52 = vadd.f32 %v1613_v51, %v1541_v48  ;;  %v1470_v55 = vadd.f32 %v1469_v53, %v1397_v44  ;;  %v1542_v58 = vpop.f32.mrf.mxu1  ;;  %v737_v53 = vpack.c.b16 %v646_v40, %v646_v40 }
 0x173   : > { %v1543_v60 = vadd.f32 %v1542_v58, %v1470_v55 }
 0x176   : > { %v1401_v6 = vpop.f32.mrf.mxu3 }
 0x177   : > { %v1402_v7 = vadd.f32 %v1401_v6, %v3008_v3 }
 0x178   : > { %v1615_v12 = vpop.f32.mrf.mxu2  ;;  %v1472_v19 = vpop.f32.mrf.mxu0 }
 0x179   : > { %v3156_v31 = vadd.f32 %v1615_v12, %v1543_v60  ;;  %v1473_v5 = vadd.f32 %v1472_v19, %v1400_v49  ;;  %v1545_v25 = vpop.f32.mrf.mxu1 }
 0x17b   : > { %v1546_v26 = vadd.f32 %v1545_v25, %v1473_v5  ;;  %1443 = vmatmul.bf16.gmra.mxu3 %v734_v47  ;;  %1511 = vmatmul.bf16.gmra.mxu0 %v2197_v18 }
 0x17c   : > { %1584 = vmatmul.bf16.gmra.mxu1 %v2201_v14 }
 0x17d   : > { %2417 = vmatmul.msk.bf16.gmra.mxu2 %vm1116_vm0, %v2205_v24 }
 0x17e   : > { %v1404_v27 = vpop.f32.mrf.mxu3 }
 0x17f   : > { %v1405_v3 = vadd.f32 %v1404_v27, %v3014_v16  ;;  %v736_v16 = vpack.c.b16 %v645_v39, %v645_v39 }
 0x180   : > { %v1618_v28 = vpop.f32.mrf.mxu2  ;;  %v1474_v29 = vpop.f32.mrf.mxu0 }
 0x181   : > { %v3160_v50 = vadd.f32 %v1618_v28, %v1546_v26  ;;  %v1475_v44 = vadd.f32 %v1474_v29, %v1402_v7  ;;  %v1547_v33 = vpop.f32.mrf.mxu1 }
 0x183   : > { %v1548_v35 = vadd.f32 %v1547_v33, %v1475_v44  ;;  %v1675_v57 = vrot.slane %v3160_v50, 1 }
 0x186   : > { %v1406_v63 = vpop.f32.mrf.mxu3 }
 0x187   : > { %v1407_v41 = vadd.f32 %v1406_v63, %v3027_v17 }
 0x188   : > { %v1620_v48 = vpop.f32.mrf.mxu2  ;;  %v1477_v51 = vpop.f32.mrf.mxu0 }
 0x189   : > { %v1621_v49 = vadd.f32 %v1620_v48, %v1548_v35  ;;  %v1478_v55 = vadd.f32 %v1477_v51, %v1405_v3  ;;  %v1550_v58 = vpop.f32.mrf.mxu1 }
 0x18b   : > { %v1676_v60 = vrot.slane %v1621_v49, 1  ;;  %v1551_v61 = vadd.f32 %v1550_v58, %v1478_v55  ;;  %1516 = vmatmul.bf16.gmra.mxu0 %v735_v37 }
 0x18c   : > { %1589 = vmatmul.bf16.gmra.mxu1 %v736_v16 }
 0x18d   : > { %v3167_v62 = vsel %vm1674_vm1, %v1675_v57, %v1676_v60  ;;  %2418 = vmatmul.msk.bf16.gmra.mxu2 %vm1116_vm0, %v737_v53 }
 0x18e   : > { %v1695_v17 = vmax.f32 %v3116_v56, %v3167_v62  ;;  %v1409_v20 = vpop.f32.mrf.mxu3 }
 0x18f   : > { %v1410_v13 = vadd.f32 %v1409_v20, %v3033_v42 }
 0x190   : > { %v1623_v1 = vpop.f32.mrf.mxu2  ;;  %v1479_v6 = vpop.f32.mrf.mxu0 }
 0x191   : > { %v1624_v2 = vadd.f32 %v1623_v1, %v1551_v61  ;;  %v1480_v7 = vadd.f32 %v1479_v6, %v1407_v41  ;;  %v1552_v12 = vpop.f32.mrf.mxu1 }
 0x193   : > { %v1678_v47 = vrot.slane %v1624_v2, 1  ;;  %v1553_v18 = vadd.f32 %v1552_v12, %v1480_v7 }
 0x195   : > { %v3174_v19 = vsel %vm1674_vm1, %v1676_v60, %v1678_v47 }
 0x196   : > { %v1696_v14 = vmax.f32 %v3127_v59, %v3174_v19  ;;  %v1411_v24 = vpop.f32.mrf.mxu3 }
 0x197   : > { %v1412_v5 = vadd.f32 %v1411_v24, %v3043_v22 }
 0x198   : > { %v1625_v25 = vpop.f32.mrf.mxu2  ;;  %v1482_v27 = vpop.f32.mrf.mxu0 }
 0x199   : > { %v1626_v26 = vadd.f32 %v1625_v25, %v1553_v18  ;;  %v1483_v42 = vadd.f32 %v1482_v27, %v1410_v13  ;;  %v1555_v3 = vpop.f32.mrf.mxu1 }
 0x19b   : > { %v1680_v28 = vrot.slane %v1626_v26, 1  ;;  %v1556_v29 = vadd.f32 %v1555_v3, %v1483_v42 }
 0x19d   : > { %v3180_v30 = vsel %vm1674_vm1, %v1678_v47, %v1680_v28 }
 0x19e   : > { %v1697_v44 = vmax.f32 %v3131_v10, %v3180_v30  ;;  %v1414_v33 = vpop.f32.mrf.mxu3 }
 0x19f   : > { %v1415_v11 = vadd.f32 %v1414_v33, %v3049_v15 }
 0x1a0   : > { %v1628_v35 = vpop.f32.mrf.mxu2  ;;  %v1484_v39 = vpop.f32.mrf.mxu0 }
 0x1a1   : > { %v1629_v38 = vadd.f32 %v1628_v35, %v1556_v29  ;;  %v1485_v22 = vadd.f32 %v1484_v39, %v1412_v5  ;;  %v1557_v40 = vpop.f32.mrf.mxu1 }
 0x1a3   : > { %v1682_v63 = vrot.slane %v1629_v38, 1  ;;  %v1558_v41 = vadd.f32 %v1557_v40, %v1485_v22 }
 0x1a5   : > { %v3186_v48 = vsel %vm1674_vm1, %v1680_v28, %v1682_v63 }
 0x1a6   : > { %v1698_v37 = vmax.f32 %v3142_v36, %v3186_v48  ;;  %v1416_v49 = vpop.f32.mrf.mxu3 }
 0x1a7   : > { %v1417_v51 = vadd.f32 %v1416_v49, %v3062_v34 }
 0x1a8   : > { %v1630_v16 = vpop.f32.mrf.mxu2  ;;  %v1487_v55 = vpop.f32.mrf.mxu0 }
 0x1a9   : > { %v1631_v53 = vadd.f32 %v1630_v16, %v1558_v41  ;;  %v1488_v15 = vadd.f32 %v1487_v55, %v1415_v11  ;;  %v1560_v58 = vpop.f32.mrf.mxu1 }
 0x1ab   : > { %v1684_v57 = vrot.slane %v1631_v53, 1  ;;  %v1561_v60 = vadd.f32 %v1560_v58, %v1488_v15 }
 0x1ad   : > { %v3192_v61 = vsel %vm1674_vm1, %v1682_v63, %v1684_v57 }
 0x1ae   : > { %v1699_v20 = vmax.f32 %v3146_v52, %v3192_v61  ;;  %v1419_v13 = vpop.f32.mrf.mxu3 }
 0x1af   : > { %v3197_v1 = vadd.f32 %v1419_v13, %v3068_v45 }
 0x1b0   : > { %v1633_v2 = vpop.f32.mrf.mxu2  ;;  %v1489_v34 = vpop.f32.mrf.mxu0 }
 0x1b1   : > { %v3199_v6 = vadd.f32 %v1633_v2, %v1561_v60  ;;  %v1490_v7 = vadd.f32 %v1489_v34, %v1417_v51  ;;  %v1562_v12 = vpop.f32.mrf.mxu1 }
 0x1b3   : > { %v1686_v47 = vrot.slane %v3199_v6, 1  ;;  %v1563_v18 = vadd.f32 %v1562_v12, %v1490_v7 }
 0x1b5   : > { %v3203_v24 = vsel %vm1674_vm1, %v1684_v57, %v1686_v47  ;;  %v3206_v5 = vmax.f32 %v3160_v50, %v1686_v47 }
 0x1b6   : > { %v1700_v25 = vmax.f32 %v3156_v31, %v3203_v24  ;;  %v1421_v45 = vpop.f32.mrf.mxu3 }
 0x1b7   : > { %v1422_v26 = vadd.f32 %v1421_v45, %v3081_v4 }
 0x1b8   : > { %v1635_v27 = vpop.f32.mrf.mxu2  ;;  %v1492_v3 = vpop.f32.mrf.mxu0 }
 0x1b9   : > { %v1636_v42 = vadd.f32 %v1635_v27, %v1563_v18  ;;  %v3211_v28 = vpop.f32.mrf.mxu1 }
 0x1be   : > { %v1424_v29 = vpop.f32.mrf.mxu3 }
 0x1bf   : > { %v3214_v33 = vadd.f32 %v1424_v29, %v3087_v8 }
 0x1c0   : > { %v3216_v11 = vpop.f32.mrf.mxu2  ;;  %v1494_v35 = vpop.f32.mrf.mxu0 }
 0x1c1   : > { %v1495_v50 = vadd.f32 %v1494_v35, %v1422_v26  ;;  %v1567_v38 = vpop.f32.mrf.mxu1 }
 0x1c3   : > { %v1568_v39 = vadd.f32 %v1567_v38, %v1495_v50 }
 0x1c6   : > { %v1426_v22 = vpop.f32.mrf.mxu3 }
 0x1c7   : > { %v3219_v40 = vadd.f32 %v1426_v22, %v3097_v9 }
 0x1c8   : > { %v1640_v4 = vpop.f32.mrf.mxu2  ;;  %v3223_v41 = vpop.f32.mrf.mxu0 }
 0x1c9   : > { %v3221_v63 = vadd.f32 %v1640_v4, %v1568_v39  ;;  %v3225_v49 = vpop.f32.mrf.mxu1 }
 0x1ce   : > { %v1429_v51 = vpop.f32.mrf.mxu3 }
 0x1cf   : > { %v1430_v57 = vadd.f32 %v1429_v51, %v3101_v54 }
 0x1d0   : > { %v3227_v8 = vpop.f32.mrf.mxu2  ;;  %v3229_v16 = vpop.f32.mrf.mxu0 }
 0x1d1   : > { %v3231_v53 = vpop.f32.mrf.mxu1 }
 0x1d6   : > { %v1431_v55 = vpop.f32.mrf.mxu3 }
 0x1d7   : > { %v1432_v2 = vadd.f32 %v1431_v55, %v3112_v23 }
 0x1d8   : > { %v3233_v15 = vpop.f32.mrf.mxu2  ;;  %v1502_v58 = vpop.f32.mrf.mxu0 }
 0x1d9   : > { %v1575_v9 = vpop.f32.mrf.mxu1  ;;  %v1503_v34 = vadd.f32 %v1502_v58, %v1430_v57 }
 0x1db   : > { %v1576_v18 = vadd.f32 %v1575_v9, %v1503_v34 }
 0x1de   : > { %v1434_v60 = vpop.f32.mrf.mxu3 }
 0x1df   : > { %v1435_v35 = vadd.f32 %v1434_v60, %v3047_v46 }
 0x1e0   : > { %v1648_v13 = vpop.f32.mrf.mxu2  ;;  %v1504_v7 = vpop.f32.mrf.mxu0 }
 0x1e1   : > { %v1577_v12 = vpop.f32.mrf.mxu1  ;;  %v1505_v47 = vadd.f32 %v1504_v7, %v1432_v2  ;;  %v3237_v45 = vadd.f32 %v1648_v13, %v1576_v18 }
 0x1e3   : > { %v1578_v26 = vadd.f32 %v1577_v12, %v1505_v47  ;;  %v1709_v54 = vrot.slane %v3237_v45, 1  ;;  %v1493_v12 = vadd.f32 %v1492_v3, %v3197_v1 }
 0x1e6   : > { %v1436_v27 = vpop.f32.mrf.mxu3 }
 0x1e7   : > { %v1437_v57 = vadd.f32 %v1436_v27, %v3060_v32  ;;  %v1566_v27 = vadd.f32 %v3211_v28, %v1493_v12 }
 0x1e8   : > { %v1650_v29 = vpop.f32.mrf.mxu2  ;;  %v1507_v38 = vpop.f32.mrf.mxu0 }
 0x1e9   : > { %v1651_v50 = vadd.f32 %v1650_v29, %v1578_v26  ;;  %v1580_v39 = vpop.f32.mrf.mxu1  ;;  %v1508_v4 = vadd.f32 %v1507_v38, %v1435_v35 }
 0x1eb   : > { %v1710_v22 = vrot.slane %v1651_v50, 1  ;;  %v1581_v55 = vadd.f32 %v1580_v39, %v1508_v4 }
 0x1ed   : > { %v1711_v23 = vsel %vm1674_vm1, %v1709_v54, %v1710_v22 }
 0x1ee   : > { %v1729_v51 = vmax.f32 %v3199_v6, %v1711_v23  ;;  %v1439_v58 = vpop.f32.mrf.mxu3 }
 0x1ef   : > { %v1440_v50 = vadd.f32 %v1439_v58, %v3066_v43  ;;  %v3257_v43 = vld [vmem:[%s3318_s2] ss:$0 sm:$0xff] }
 0x1f0   : > { %v1653_v9 = vpop.f32.mrf.mxu2  ;;  %v1509_v2 = vpop.f32.mrf.mxu0  ;;  %v1744_v29 = vrot.slane %v1729_v51, 2 }
 0x1f1   : > { %v1654_v13 = vadd.f32 %v1653_v9, %v1581_v55  ;;  %v1582_v34 = vpop.f32.mrf.mxu1  ;;  %v1510_v60 = vadd.f32 %v1509_v2, %v1437_v57 }
 0x1f3   : > { %v1712_v46 = vrot.slane %v1654_v13, 1  ;;  %v1583_v18 = vadd.f32 %v1582_v34, %v1510_v60 }
 0x1f5   : > { %v1713_v7 = vsel %vm1674_vm1, %v1710_v22, %v1712_v46  ;;  %v1639_v22 = vadd.f32 %v3216_v11, %v1566_v27 }
 0x1f6   : > { %v1730_v47 = vmax.f32 %v1636_v42, %v1713_v7  ;;  %v1441_v26 = vpop.f32.mrf.mxu3 }
 0x1f7   : > { %v1442_v56 = vadd.f32 %v1441_v26, %v3079_v0  ;;  %v1498_v0 = vadd.f32 %v3223_v41, %v3214_v33 }
 0x1f8   : > { %v1745_v6 = vrot.slane %v1730_v47, 2  ;;  %v1655_v35 = vpop.f32.mrf.mxu2  ;;  %v1512_v32 = vpop.f32.mrf.mxu0 }
 0x1f9   : > { %v1656_v38 = vadd.f32 %v1655_v35, %v1583_v18  ;;  %v1585_v54 = vpop.f32.mrf.mxu1  ;;  %v1513_v3 = vadd.f32 %v1512_v32, %v1440_v50  ;;  %v1571_v33 = vadd.f32 %v3225_v49, %v1498_v0 }
 0x1fa   : > { %v1746_v39 = vsel %vm1743_vm2, %v1744_v29, %v1745_v6 }
 0x1fb   : > { %v1764_v1 = vmax.f32 %v1695_v17, %v1746_v39  ;;  %v1714_v42 = vrot.slane %v1656_v38, 1  ;;  %v1586_v28 = vadd.f32 %v1585_v54, %v1513_v3  ;;  %v1644_v27 = vadd.f32 %v3227_v8, %v1571_v33 }
 0x1fd   : > { %v1715_v4 = vsel %vm1674_vm1, %v1712_v46, %v1714_v42  ;;  %v1775_v57 = vadd.f32 %v3257_v43, %v1764_v1 }
 0x1fe   : > { %v1731_v23 = vmax.f32 %v1639_v22, %v1715_v4  ;;  %v1444_v51 = vpop.f32.mrf.mxu3 }
 0x1ff   : > { %v1782_v12 = vmax.f32 %v1775_v57, 0.0  ;;  %v1445_v29 = vadd.f32 %v1444_v51, %v3085_v21  ;;  %v1500_v21 = vadd.f32 %v3229_v16, %v3219_v40 }
 0x200   : > { %v1747_v55 = vrot.slane %v1731_v23, 2  ;;  %v1658_v58 = vpop.f32.mrf.mxu2  ;;  %v1514_v17 = vpop.f32.mrf.mxu0 }
 0x201   : > { %v1659_v62 = vadd.f32 %v1658_v58, %v1586_v28  ;;  %v1587_v11 = vpop.f32.mrf.mxu1  ;;  %v1515_v34 = vadd.f32 %v1514_v17, %v1442_v56  ;;  %v1573_v4 = vadd.f32 %v3231_v53, %v1500_v21 }
 0x202   : > { %v1748_v9 = vsel %vm1743_vm2, %v1745_v6, %v1747_v55 }
 0x203   : > { %v1765_v13 = vmax.f32 %v1696_v14, %v1748_v9  ;;  %v1716_v2 = vrot.slane %v1659_v62, 1  ;;  %v1588_v18 = vadd.f32 %v1587_v11, %v1515_v34  ;;  %v1646_v40 = vadd.f32 %v3233_v15, %v1573_v4 }
 0x205   : > { %v1776_v46 = vadd.f32 %v3257_v43, %v1765_v13  ;;  %v1717_v60 = vsel %vm1674_vm1, %v1714_v42, %v1716_v2 }
 0x206   : > { %v1732_v7 = vmax.f32 %v3221_v63, %v1717_v60  ;;  %v1446_v26 = vpop.f32.mrf.mxu3 }
 0x207   : > { %v1783_v47 = vmax.f32 %v1776_v46, 0.0 }
 0x208   : > { %v1749_v59 = vrot.slane %v1732_v7, 2  ;;  %v1660_v19 = vpop.f32.mrf.mxu2  ;;  %v1517_v35 = vpop.f32.mrf.mxu0 }
 0x209   : > { %v2558_v14 = vpack.c.bf16 %v1783_v47, %v1782_v12  ;;  %v1661_v6 = vadd.f32 %v1660_v19, %v1588_v18  ;;  %v1590_v41 = vpop.f32.mrf.mxu1  ;;  %v1518_v32 = vadd.f32 %v1517_v35, %v1445_v29 }
 0x20a   : > { %v1750_v63 = vsel %vm1743_vm2, %v1747_v55, %v1749_v59 }
 0x20b   : > { %2559 = vst [vmem:[%s3274_s24] sm:$0xff] %v2558_v14   ;;  %v1766_v50 = vmax.f32 %v1697_v44, %v1750_v63  ;;  %v1718_v38 = vrot.slane %v1661_v6, 1  ;;  %v1591_v1 = vadd.f32 %v1590_v41, %v1518_v32 }
 0x20d   : > { %v1719_v39 = vsel %vm1674_vm1, %v1716_v2, %v1718_v38  ;;  %v1777_v44 = vadd.f32 %v3257_v43, %v1766_v50  ;;  %v1805_v2 = vld [vmem:[%s3274_s24 + $0x18] sm:$0x1] }
 0x20e   : > { %v1733_v54 = vmax.f32 %v1644_v27, %v1719_v39 }
 0x20f   : > { %v1784_v55 = vmax.f32 %v1777_v44, 0.0 }
 0x210   : > { %v1751_v49 = vrot.slane %v1733_v54, 2  ;;  %v1663_v42 = vpop.f32.mrf.mxu2  ;;  %v1519_v22 = vpop.f32.mrf.mxu0 }
 0x211   : > { %v1664_v3 = vadd.f32 %v1663_v42, %v1591_v1  ;;  %v1592_v30 = vpop.f32.mrf.mxu1 }
 0x212   : > { %v1752_v10 = vsel %vm1743_vm2, %v1749_v59, %v1751_v49 }
 0x213   : > { %v1767_v8 = vmax.f32 %v1698_v37, %v1752_v10  ;;  %v1720_v23 = vrot.slane %v1664_v3, 1 }
 0x215   : > { %v1778_v16 = vadd.f32 %v3257_v43, %v1767_v8  ;;  %v1721_v28 = vsel %vm1674_vm1, %v1718_v38, %v1720_v23  ;;  %v1735_v51 = vmax.f32 %v3237_v45, %v1720_v23 }
 0x216   : > { %v1734_v53 = vmax.f32 %v1646_v40, %v1721_v28 }
 0x217   : > { %v1785_v58 = vmax.f32 %v1778_v16, 0.0  ;;  %v1755_v56 = vrot.slane %v1735_v51, 2 }
 0x218   : > { %v1753_v62 = vrot.slane %v1734_v53, 2  ;;  %v1665_v17 = vpop.f32.mrf.mxu2 }
 0x219   : > { %v2563_v9 = vpack.c.bf16 %v1785_v58, %v1784_v55  ;;  %v1770_v36 = vmax.f32 %v3206_v5, %v1755_v56 }
 0x21a   : > { %v1754_v48 = vsel %vm1743_vm2, %v1751_v49, %v1753_v62  ;;  %v1756_v37 = vsel %vm1743_vm2, %v1753_v62, %v1755_v56 }
 0x21b   : > { %2570 = vst [vmem:[%s3274_s24 + $0x8] sm:$0xff] %v2563_v9   ;;  %v1768_v15 = vmax.f32 %v1699_v20, %v1754_v48  ;;  %v1769_v45 = vmax.f32 %v1700_v25, %v1756_v37  ;;  %v1781_v11 = vadd.f32 %v3257_v43, %v1770_v36 }
 0x21d   : > { %v1779_v5 = vadd.f32 %v3257_v43, %v1768_v15  ;;  %v1780_v57 = vadd.f32 %v3257_v43, %v1769_v45  ;;  %v1788_v13 = vmax.f32 %v1781_v11, 0.0 }
 0x21f   : > { %v1786_v34 = vmax.f32 %v1779_v5, 0.0  ;;  %v1787_v46 = vmax.f32 %v1780_v57, 0.0  ;;  %v1795_v60 = vpack.c.bf16 %v1788_v13, %v1788_v13 }
 0x221   : > { %v2568_v52 = vpack.c.bf16 %v1787_v46, %v1786_v34  ;;  %v1806_v61 = vsel %vm1804_vm5, %v1795_v60, %v1805_v2 }
 0x222   : > { %1807 = vst [vmem:[%s3274_s24 + $0x18] sm:$0x1] %v1806_v61 }
 0x223   : > { %2571 = vst [vmem:[%s3274_s24 + $0x10] sm:$0xff] %v2568_v52  }
 0x224 PF: > { %s13_s12 = sadd.s32 1, %s2613_s12  }
 0x225   : > { %p10_p4 = scmp.ge.s32.totalorder %s13_s12, 4  }
 0x227   :  { %12 = sbr.rel (!%p10_p4) target bundleno = 1 (0x1), region = 62 }

// kernel: net_forward.5
= control target key start
LH: loop header
LB: loop body
LE: loop exit
PB: predicated region body
PF: predicated region fallthrough
CT: control target
= control target key end

     0   :  { %10 = vsyncpa [#allocation5], 0  ;;  %s13494_s18 = smov 0   ;;  %s13496_s19 = smov 0   ;;  %s16219_s0 = inlined_call_operand.vmem [shape: bf16[2,3136], index: 0, kind: input, shape index: {}]   ;;  %s16220_s1 = inlined_call_operand.vmem [shape: bf16[3136,1024], index: 1, kind: input, shape index: {}]   ;;  %s16221_s2 = inlined_call_operand.vmem [shape: f32[1,1024], index: 2, kind: input, shape index: {}]   ;;  %s16222_s3 = inlined_call_operand.vmem [shape: bf16[1024,128], index: 3, kind: input, shape index: {}]   ;;  %s16223_s4 = inlined_call_operand.vmem [shape: f32[1,128], index: 4, kind: input, shape index: {}]   ;;  %s16224_s5 = inlined_call_operand.hbm [shape: f32[2,128], index: 5, kind: output, shape index: {}]  }
   0x1   :  { %s13498_s20 = smov 0  }
   0x2 LB: > { %s13510_s21 = sadd.s32 4294967295, %s13444_s20   ;;  %s13513_s22 = sadd.s32 1, %s13444_s20   ;;  %s13444_s20 = sphi %s13498_s20, %s16232_s20   ;;  %s13440_s19 = sphi %s13496_s19, %s16231_s19   ;;  %s13436_s18 = sphi %s13494_s18, %s16230_s18  }
   0x3   : > { %s41_s23 = ssub.s32 %s13444_s20, %s13513_s22  ;;  %s44_s24 = sadd.s32 1, %s13440_s19 }
   0x4   : > { %p42_p0 = scmp.eq.s32.totalorder %s41_s23, 0  ;;  %p51_p1 = scmp.ne.s32.totalorder %s13440_s19, %s13436_s18 }
   0x5   : > { %p52_p2 = scmp.eq.s32.totalorder %s13444_s20, 0  ;;  %p9197_p4 = scmp.ge.s32.totalorder %s13444_s20, 2 }
   0x6   : > { %s13522_s25 = scalar_select %p42_p0, %s13440_s19, %s44_s24  }
   0x7   : > { %p53_p3 = por %p52_p2, %p51_p1  ;;  %177 = sbr.rel (%p9197_p4) target bundleno = 410 (0x19a), region = 24 }
   0xc   : > { %180 = sbr.rel (!%p53_p3) target bundleno = 410 (0x19a), region = 28  ;;  %s182_s26 = sand.u32 (%p53_p3), 1, %s13440_s19  }
   0xd   : > { %s12480_s27 = sshll.u32 (%p53_p3), %s13444_s20, 4  ;;  %s13527_s28 = smul.u32 (%p53_p3), 6272, %s182_s26 }
   0xe   : > { %s13532_s6 = scalar_lea.vmem (%p53_p3), %s16220_s1, %s12480_s27   ;;  %s13542_s10 = smov (%p53_p3), 0  }
   0xf   : > { %s184_s7 = scalar_lea.vmem (%p53_p3), [#allocation3], %s13527_s28   ;;  %s16226_s9 = smov (%p53_p3), %s13532_s6 }
  0x10   : > { %s16225_s8 = smov (%p53_p3), %s184_s7  ;;  %s13544_s11 = smov (%p53_p3), 0  }
  0x11 LB: >> { %v201_v0 = vld [vmem:[%s13452_s9] sm:$0xff]  ;;  %s985_s12 = sadd.s32 1, %s13456_s10  ;;  %s197_s11 = sadd.s32 1, %s13460_s11   ;;  %s13460_s11 = sphi %s13544_s11, %s197_s11   ;;  %s13456_s10 = sphi %s13542_s10, %s16229_s10   ;;  %s13452_s9 = sphi %s16226_s9, %s16228_s9   ;;  %s13448_s8 = sphi %s16225_s8, %s16227_s8  }
  0x12   : >> { %v203_v1 = vld [vmem:[%s13452_s9 + $0x20] sm:$0xff]  ;;  %202 = vst [vmem:[%s13448_s8] sm:$0xff] %v201_v0  ;;  %p986_p5 = scmp.ge.s32.totalorder %s985_s12, 2  ;;  %p194_p6 = scmp.ge.s32.totalorder %s197_s11, 2  }
  0x13   : >> { %v205_v2 = vld [vmem:[%s13452_s9 + $0x40] sm:$0xff]  ;;  %204 = vst [vmem:[%s13448_s8 + $0x10] sm:$0xff] %v203_v1 }
  0x14   : >> { %v207_v3 = vld [vmem:[%s13452_s9 + $0x60] sm:$0xff]  ;;  %206 = vst [vmem:[%s13448_s8 + $0x20] sm:$0xff] %v205_v2  ;;  %s16234_s12 = smov (%p986_p5, %s985_s12), 0 }
  0x15   : >> { %v209_v4 = vld [vmem:[%s13452_s9 + $0x80] sm:$0xff]  ;;  %208 = vst [vmem:[%s13448_s8 + $0x30] sm:$0xff] %v207_v3  ;;  %s9200_s13 = sshll.u32 %s16234_s12, 3  ;;  %s16229_s10 = smov %s16234_s12 }
  0x16   : >> { %v211_v5 = vld [vmem:[%s13452_s9 + $0xa0] sm:$0xff]  ;;  %210 = vst [vmem:[%s13448_s8 + $0x40] sm:$0xff] %v209_v4  ;;  %s14094_s14 = scalar_lea.vmem %s13532_s6, %s9200_s13   ;;  %s14098_s15 = scalar_lea.vmem %s184_s7, %s9200_s13 [#allocation3]  }
  0x17   : >> { %v213_v6 = vld [vmem:[%s13452_s9 + $0xc0] sm:$0xff]  ;;  %212 = vst [vmem:[%s13448_s8 + $0x50] sm:$0xff] %v211_v5 }
  0x18   : >> { %v215_v7 = vld [vmem:[%s13452_s9 + $0xe0] sm:$0xff]  ;;  %214 = vst [vmem:[%s13448_s8 + $0x60] sm:$0xff] %v213_v6 }
  0x19   : >> { %v217_v8 = vld [vmem:[%s13452_s9 + $0x100] sm:$0xff]  ;;  %216 = vst [vmem:[%s13448_s8 + $0x70] sm:$0xff] %v215_v7 }
  0x1a   : >> { %v219_v9 = vld [vmem:[%s13452_s9 + $0x120] sm:$0xff]  ;;  %218 = vst [vmem:[%s13448_s8 + $0x80] sm:$0xff] %v217_v8 }
  0x1b   : >> { %v221_v10 = vld [vmem:[%s13452_s9 + $0x140] sm:$0xff]  ;;  %220 = vst [vmem:[%s13448_s8 + $0x90] sm:$0xff] %v219_v9 }
  0x1c   : >> { %v223_v11 = vld [vmem:[%s13452_s9 + $0x160] sm:$0xff]  ;;  %222 = vst [vmem:[%s13448_s8 + $0xa0] sm:$0xff] %v221_v10 }
  0x1d   : >> { %v225_v12 = vld [vmem:[%s13452_s9 + $0x180] sm:$0xff]  ;;  %224 = vst [vmem:[%s13448_s8 + $0xb0] sm:$0xff] %v223_v11 }
  0x1e   : >> { %v227_v13 = vld [vmem:[%s13452_s9 + $0x1a0] sm:$0xff]  ;;  %226 = vst [vmem:[%s13448_s8 + $0xc0] sm:$0xff] %v225_v12 }
  0x1f   : >> { %v229_v14 = vld [vmem:[%s13452_s9 + $0x1c0] sm:$0xff]  ;;  %228 = vst [vmem:[%s13448_s8 + $0xd0] sm:$0xff] %v227_v13 }
  0x20   : >> { %v231_v15 = vld [vmem:[%s13452_s9 + $0x1e0] sm:$0xff]  ;;  %230 = vst [vmem:[%s13448_s8 + $0xe0] sm:$0xff] %v229_v14 }
  0x21   : >> { %v233_v16 = vld [vmem:[%s13452_s9 + $0x200] sm:$0xff]  ;;  %232 = vst [vmem:[%s13448_s8 + $0xf0] sm:$0xff] %v231_v15 }
  0x22   : >> { %v235_v17 = vld [vmem:[%s13452_s9 + $0x220] sm:$0xff]  ;;  %234 = vst [vmem:[%s13448_s8 + $0x100] sm:$0xff] %v233_v16 }
  0x23   : >> { %v237_v18 = vld [vmem:[%s13452_s9 + $0x240] sm:$0xff]  ;;  %236 = vst [vmem:[%s13448_s8 + $0x110] sm:$0xff] %v235_v17 }
  0x24   : >> { %v239_v19 = vld [vmem:[%s13452_s9 + $0x260] sm:$0xff]  ;;  %238 = vst [vmem:[%s13448_s8 + $0x120] sm:$0xff] %v237_v18 }
  0x25   : >> { %v241_v20 = vld [vmem:[%s13452_s9 + $0x280] sm:$0xff]  ;;  %240 = vst [vmem:[%s13448_s8 + $0x130] sm:$0xff] %v239_v19 }
  0x26   : >> { %v243_v21 = vld [vmem:[%s13452_s9 + $0x2a0] sm:$0xff]  ;;  %242 = vst [vmem:[%s13448_s8 + $0x140] sm:$0xff] %v241_v20 }
  0x27   : >> { %v245_v22 = vld [vmem:[%s13452_s9 + $0x2c0] sm:$0xff]  ;;  %244 = vst [vmem:[%s13448_s8 + $0x150] sm:$0xff] %v243_v21 }
  0x28   : >> { %v247_v23 = vld [vmem:[%s13452_s9 + $0x2e0] sm:$0xff]  ;;  %246 = vst [vmem:[%s13448_s8 + $0x160] sm:$0xff] %v245_v22 }
  0x29   : >> { %v249_v24 = vld [vmem:[%s13452_s9 + $0x300] sm:$0xff]  ;;  %248 = vst [vmem:[%s13448_s8 + $0x170] sm:$0xff] %v247_v23 }
  0x2a   : >> { %v251_v25 = vld [vmem:[%s13452_s9 + $0x320] sm:$0xff]  ;;  %250 = vst [vmem:[%s13448_s8 + $0x180] sm:$0xff] %v249_v24 }
  0x2b   : >> { %v253_v26 = vld [vmem:[%s13452_s9 + $0x340] sm:$0xff]  ;;  %252 = vst [vmem:[%s13448_s8 + $0x190] sm:$0xff] %v251_v25 }
  0x2c   : >> { %v255_v27 = vld [vmem:[%s13452_s9 + $0x360] sm:$0xff]  ;;  %254 = vst [vmem:[%s13448_s8 + $0x1a0] sm:$0xff] %v253_v26 }
  0x2d   : >> { %v257_v28 = vld [vmem:[%s13452_s9 + $0x380] sm:$0xff]  ;;  %256 = vst [vmem:[%s13448_s8 + $0x1b0] sm:$0xff] %v255_v27 }
  0x2e   : >> { %v259_v29 = vld [vmem:[%s13452_s9 + $0x3a0] sm:$0xff]  ;;  %258 = vst [vmem:[%s13448_s8 + $0x1c0] sm:$0xff] %v257_v28 }
  0x2f   : >> { %v261_v30 = vld [vmem:[%s13452_s9 + $0x3c0] sm:$0xff]  ;;  %260 = vst [vmem:[%s13448_s8 + $0x1d0] sm:$0xff] %v259_v29 }
  0x30   : >> { %v263_v31 = vld [vmem:[%s13452_s9 + $0x3e0] sm:$0xff]  ;;  %262 = vst [vmem:[%s13448_s8 + $0x1e0] sm:$0xff] %v261_v30 }
  0x31   : >> { %v265_v32 = vld [vmem:[%s13452_s9 + $0x400] sm:$0xff]  ;;  %264 = vst [vmem:[%s13448_s8 + $0x1f0] sm:$0xff] %v263_v31 }
  0x32   : >> { %v267_v33 = vld [vmem:[%s13452_s9 + $0x420] sm:$0xff]  ;;  %266 = vst [vmem:[%s13448_s8 + $0x200] sm:$0xff] %v265_v32 }
  0x33   : >> { %v269_v34 = vld [vmem:[%s13452_s9 + $0x440] sm:$0xff]  ;;  %268 = vst [vmem:[%s13448_s8 + $0x210] sm:$0xff] %v267_v33 }
  0x34   : >> { %v271_v35 = vld [vmem:[%s13452_s9 + $0x460] sm:$0xff]  ;;  %270 = vst [vmem:[%s13448_s8 + $0x220] sm:$0xff] %v269_v34 }
  0x35   : >> { %v273_v36 = vld [vmem:[%s13452_s9 + $0x480] sm:$0xff]  ;;  %272 = vst [vmem:[%s13448_s8 + $0x230] sm:$0xff] %v271_v35 }
  0x36   : >> { %v275_v37 = vld [vmem:[%s13452_s9 + $0x4a0] sm:$0xff]  ;;  %274 = vst [vmem:[%s13448_s8 + $0x240] sm:$0xff] %v273_v36 }
  0x37   : >> { %v277_v38 = vld [vmem:[%s13452_s9 + $0x4c0] sm:$0xff]  ;;  %276 = vst [vmem:[%s13448_s8 + $0x250] sm:$0xff] %v275_v37 }
  0x38   : >> { %v279_v39 = vld [vmem:[%s13452_s9 + $0x4e0] sm:$0xff]  ;;  %278 = vst [vmem:[%s13448_s8 + $0x260] sm:$0xff] %v277_v38 }
  0x39   : >> { %v281_v40 = vld [vmem:[%s13452_s9 + $0x500] sm:$0xff]  ;;  %280 = vst [vmem:[%s13448_s8 + $0x270] sm:$0xff] %v279_v39 }
  0x3a   : >> { %v283_v41 = vld [vmem:[%s13452_s9 + $0x520] sm:$0xff]  ;;  %282 = vst [vmem:[%s13448_s8 + $0x280] sm:$0xff] %v281_v40 }
  0x3b   : >> { %v285_v42 = vld [vmem:[%s13452_s9 + $0x540] sm:$0xff]  ;;  %284 = vst [vmem:[%s13448_s8 + $0x290] sm:$0xff] %v283_v41 }
  0x3c   : >> { %v287_v43 = vld [vmem:[%s13452_s9 + $0x560] sm:$0xff]  ;;  %286 = vst [vmem:[%s13448_s8 + $0x2a0] sm:$0xff] %v285_v42 }
  0x3d   : >> { %v289_v44 = vld [vmem:[%s13452_s9 + $0x580] sm:$0xff]  ;;  %288 = vst [vmem:[%s13448_s8 + $0x2b0] sm:$0xff] %v287_v43 }
  0x3e   : >> { %v291_v45 = vld [vmem:[%s13452_s9 + $0x5a0] sm:$0xff]  ;;  %290 = vst [vmem:[%s13448_s8 + $0x2c0] sm:$0xff] %v289_v44 }
  0x3f   : >> { %v293_v46 = vld [vmem:[%s13452_s9 + $0x5c0] sm:$0xff]  ;;  %292 = vst [vmem:[%s13448_s8 + $0x2d0] sm:$0xff] %v291_v45 }
  0x40   : >> { %v295_v47 = vld [vmem:[%s13452_s9 + $0x5e0] sm:$0xff]  ;;  %294 = vst [vmem:[%s13448_s8 + $0x2e0] sm:$0xff] %v293_v46 }
  0x41   : >> { %v297_v48 = vld [vmem:[%s13452_s9 + $0x600] sm:$0xff]  ;;  %296 = vst [vmem:[%s13448_s8 + $0x2f0] sm:$0xff] %v295_v47 }
  0x42   : >> { %v299_v49 = vld [vmem:[%s13452_s9 + $0x620] sm:$0xff]  ;;  %298 = vst [vmem:[%s13448_s8 + $0x300] sm:$0xff] %v297_v48 }
  0x43   : >> { %v301_v50 = vld [vmem:[%s13452_s9 + $0x640] sm:$0xff]  ;;  %300 = vst [vmem:[%s13448_s8 + $0x310] sm:$0xff] %v299_v49 }
  0x44   : >> { %v303_v51 = vld [vmem:[%s13452_s9 + $0x660] sm:$0xff]  ;;  %302 = vst [vmem:[%s13448_s8 + $0x320] sm:$0xff] %v301_v50 }
  0x45   : >> { %v305_v52 = vld [vmem:[%s13452_s9 + $0x680] sm:$0xff]  ;;  %304 = vst [vmem:[%s13448_s8 + $0x330] sm:$0xff] %v303_v51 }
  0x46   : >> { %v307_v53 = vld [vmem:[%s13452_s9 + $0x6a0] sm:$0xff]  ;;  %306 = vst [vmem:[%s13448_s8 + $0x340] sm:$0xff] %v305_v52 }
  0x47   : >> { %v309_v54 = vld [vmem:[%s13452_s9 + $0x6c0] sm:$0xff]  ;;  %308 = vst [vmem:[%s13448_s8 + $0x350] sm:$0xff] %v307_v53 }
  0x48   : >> { %v311_v55 = vld [vmem:[%s13452_s9 + $0x6e0] sm:$0xff]  ;;  %310 = vst [vmem:[%s13448_s8 + $0x360] sm:$0xff] %v309_v54 }
  0x49   : >> { %v313_v56 = vld [vmem:[%s13452_s9 + $0x700] sm:$0xff]  ;;  %312 = vst [vmem:[%s13448_s8 + $0x370] sm:$0xff] %v311_v55 }
  0x4a   : >> { %v315_v57 = vld [vmem:[%s13452_s9 + $0x720] sm:$0xff]  ;;  %314 = vst [vmem:[%s13448_s8 + $0x380] sm:$0xff] %v313_v56 }
  0x4b   : >> { %v317_v58 = vld [vmem:[%s13452_s9 + $0x740] sm:$0xff]  ;;  %316 = vst [vmem:[%s13448_s8 + $0x390] sm:$0xff] %v315_v57 }
  0x4c   : >> { %v319_v59 = vld [vmem:[%s13452_s9 + $0x760] sm:$0xff]  ;;  %318 = vst [vmem:[%s13448_s8 + $0x3a0] sm:$0xff] %v317_v58 }
  0x4d   : >> { %v321_v60 = vld [vmem:[%s13452_s9 + $0x780] sm:$0xff]  ;;  %320 = vst [vmem:[%s13448_s8 + $0x3b0] sm:$0xff] %v319_v59 }
  0x4e   : >> { %v323_v61 = vld [vmem:[%s13452_s9 + $0x7a0] sm:$0xff]  ;;  %322 = vst [vmem:[%s13448_s8 + $0x3c0] sm:$0xff] %v321_v60 }
  0x4f   : >> { %v325_v62 = vld [vmem:[%s13452_s9 + $0x7c0] sm:$0xff]  ;;  %324 = vst [vmem:[%s13448_s8 + $0x3d0] sm:$0xff] %v323_v61 }
  0x50   : >> { %v327_v63 = vld [vmem:[%s13452_s9 + $0x7e0] sm:$0xff]  ;;  %326 = vst [vmem:[%s13448_s8 + $0x3e0] sm:$0xff] %v325_v62 }
  0x51   : >> { %v329_v0 = vld [vmem:[%s13452_s9 + $0x800] sm:$0xff]  ;;  %328 = vst [vmem:[%s13448_s8 + $0x3f0] sm:$0xff] %v327_v63 }
  0x52   : >> { %v331_v1 = vld [vmem:[%s13452_s9 + $0x820] sm:$0xff]  ;;  %330 = vst [vmem:[%s13448_s8 + $0x400] sm:$0xff] %v329_v0 }
  0x53   : >> { %v333_v2 = vld [vmem:[%s13452_s9 + $0x840] sm:$0xff]  ;;  %332 = vst [vmem:[%s13448_s8 + $0x410] sm:$0xff] %v331_v1 }
  0x54   : >> { %v335_v3 = vld [vmem:[%s13452_s9 + $0x860] sm:$0xff]  ;;  %334 = vst [vmem:[%s13448_s8 + $0x420] sm:$0xff] %v333_v2 }
  0x55   : >> { %v337_v4 = vld [vmem:[%s13452_s9 + $0x880] sm:$0xff]  ;;  %336 = vst [vmem:[%s13448_s8 + $0x430] sm:$0xff] %v335_v3 }
  0x56   : >> { %v339_v5 = vld [vmem:[%s13452_s9 + $0x8a0] sm:$0xff]  ;;  %338 = vst [vmem:[%s13448_s8 + $0x440] sm:$0xff] %v337_v4 }
  0x57   : >> { %v341_v6 = vld [vmem:[%s13452_s9 + $0x8c0] sm:$0xff]  ;;  %340 = vst [vmem:[%s13448_s8 + $0x450] sm:$0xff] %v339_v5 }
  0x58   : >> { %v343_v7 = vld [vmem:[%s13452_s9 + $0x8e0] sm:$0xff]  ;;  %342 = vst [vmem:[%s13448_s8 + $0x460] sm:$0xff] %v341_v6 }
  0x59   : >> { %v345_v8 = vld [vmem:[%s13452_s9 + $0x900] sm:$0xff]  ;;  %344 = vst [vmem:[%s13448_s8 + $0x470] sm:$0xff] %v343_v7 }
  0x5a   : >> { %v347_v9 = vld [vmem:[%s13452_s9 + $0x920] sm:$0xff]  ;;  %346 = vst [vmem:[%s13448_s8 + $0x480] sm:$0xff] %v345_v8 }
  0x5b   : >> { %v349_v10 = vld [vmem:[%s13452_s9 + $0x940] sm:$0xff]  ;;  %348 = vst [vmem:[%s13448_s8 + $0x490] sm:$0xff] %v347_v9 }
  0x5c   : >> { %v351_v11 = vld [vmem:[%s13452_s9 + $0x960] sm:$0xff]  ;;  %350 = vst [vmem:[%s13448_s8 + $0x4a0] sm:$0xff] %v349_v10 }
  0x5d   : >> { %v353_v12 = vld [vmem:[%s13452_s9 + $0x980] sm:$0xff]  ;;  %352 = vst [vmem:[%s13448_s8 + $0x4b0] sm:$0xff] %v351_v11 }
  0x5e   : >> { %v355_v13 = vld [vmem:[%s13452_s9 + $0x9a0] sm:$0xff]  ;;  %354 = vst [vmem:[%s13448_s8 + $0x4c0] sm:$0xff] %v353_v12 }
  0x5f   : >> { %v357_v14 = vld [vmem:[%s13452_s9 + $0x9c0] sm:$0xff]  ;;  %356 = vst [vmem:[%s13448_s8 + $0x4d0] sm:$0xff] %v355_v13 }
  0x60   : >> { %v359_v15 = vld [vmem:[%s13452_s9 + $0x9e0] sm:$0xff]  ;;  %358 = vst [vmem:[%s13448_s8 + $0x4e0] sm:$0xff] %v357_v14 }
  0x61   : >> { %v361_v16 = vld [vmem:[%s13452_s9 + $0xa00] sm:$0xff]  ;;  %360 = vst [vmem:[%s13448_s8 + $0x4f0] sm:$0xff] %v359_v15 }
  0x62   : >> { %v363_v17 = vld [vmem:[%s13452_s9 + $0xa20] sm:$0xff]  ;;  %362 = vst [vmem:[%s13448_s8 + $0x500] sm:$0xff] %v361_v16 }
  0x63   : >> { %v365_v18 = vld [vmem:[%s13452_s9 + $0xa40] sm:$0xff]  ;;  %364 = vst [vmem:[%s13448_s8 + $0x510] sm:$0xff] %v363_v17 }
  0x64   : >> { %v367_v19 = vld [vmem:[%s13452_s9 + $0xa60] sm:$0xff]  ;;  %366 = vst [vmem:[%s13448_s8 + $0x520] sm:$0xff] %v365_v18 }
  0x65   : >> { %v369_v20 = vld [vmem:[%s13452_s9 + $0xa80] sm:$0xff]  ;;  %368 = vst [vmem:[%s13448_s8 + $0x530] sm:$0xff] %v367_v19 }
  0x66   : >> { %v371_v21 = vld [vmem:[%s13452_s9 + $0xaa0] sm:$0xff]  ;;  %370 = vst [vmem:[%s13448_s8 + $0x540] sm:$0xff] %v369_v20 }
  0x67   : >> { %v373_v22 = vld [vmem:[%s13452_s9 + $0xac0] sm:$0xff]  ;;  %372 = vst [vmem:[%s13448_s8 + $0x550] sm:$0xff] %v371_v21 }
  0x68   : >> { %v375_v23 = vld [vmem:[%s13452_s9 + $0xae0] sm:$0xff]  ;;  %374 = vst [vmem:[%s13448_s8 + $0x560] sm:$0xff] %v373_v22 }
  0x69   : >> { %v377_v24 = vld [vmem:[%s13452_s9 + $0xb00] sm:$0xff]  ;;  %376 = vst [vmem:[%s13448_s8 + $0x570] sm:$0xff] %v375_v23 }
  0x6a   : >> { %v379_v25 = vld [vmem:[%s13452_s9 + $0xb20] sm:$0xff]  ;;  %378 = vst [vmem:[%s13448_s8 + $0x580] sm:$0xff] %v377_v24 }
  0x6b   : >> { %v381_v26 = vld [vmem:[%s13452_s9 + $0xb40] sm:$0xff]  ;;  %380 = vst [vmem:[%s13448_s8 + $0x590] sm:$0xff] %v379_v25 }
  0x6c   : >> { %v383_v27 = vld [vmem:[%s13452_s9 + $0xb60] sm:$0xff]  ;;  %382 = vst [vmem:[%s13448_s8 + $0x5a0] sm:$0xff] %v381_v26 }
  0x6d   : >> { %v385_v28 = vld [vmem:[%s13452_s9 + $0xb80] sm:$0xff]  ;;  %384 = vst [vmem:[%s13448_s8 + $0x5b0] sm:$0xff] %v383_v27 }
  0x6e   : >> { %v387_v29 = vld [vmem:[%s13452_s9 + $0xba0] sm:$0xff]  ;;  %386 = vst [vmem:[%s13448_s8 + $0x5c0] sm:$0xff] %v385_v28 }
  0x6f   : >> { %v389_v30 = vld [vmem:[%s13452_s9 + $0xbc0] sm:$0xff]  ;;  %388 = vst [vmem:[%s13448_s8 + $0x5d0] sm:$0xff] %v387_v29 }
  0x70   : >> { %v391_v31 = vld [vmem:[%s13452_s9 + $0xbe0] sm:$0xff]  ;;  %390 = vst [vmem:[%s13448_s8 + $0x5e0] sm:$0xff] %v389_v30 }
  0x71   : >> { %v393_v32 = vld [vmem:[%s13452_s9 + $0xc00] sm:$0xff]  ;;  %392 = vst [vmem:[%s13448_s8 + $0x5f0] sm:$0xff] %v391_v31 }
  0x72   : >> { %v395_v33 = vld [vmem:[%s13452_s9 + $0xc20] sm:$0xff]  ;;  %394 = vst [vmem:[%s13448_s8 + $0x600] sm:$0xff] %v393_v32 }
  0x73   : >> { %v397_v34 = vld [vmem:[%s13452_s9 + $0xc40] sm:$0xff]  ;;  %396 = vst [vmem:[%s13448_s8 + $0x610] sm:$0xff] %v395_v33 }
  0x74   : >> { %v399_v35 = vld [vmem:[%s13452_s9 + $0xc60] sm:$0xff]  ;;  %398 = vst [vmem:[%s13448_s8 + $0x620] sm:$0xff] %v397_v34 }
  0x75   : >> { %v401_v36 = vld [vmem:[%s13452_s9 + $0xc80] sm:$0xff]  ;;  %400 = vst [vmem:[%s13448_s8 + $0x630] sm:$0xff] %v399_v35 }
  0x76   : >> { %v403_v37 = vld [vmem:[%s13452_s9 + $0xca0] sm:$0xff]  ;;  %402 = vst [vmem:[%s13448_s8 + $0x640] sm:$0xff] %v401_v36 }
  0x77   : >> { %v405_v38 = vld [vmem:[%s13452_s9 + $0xcc0] sm:$0xff]  ;;  %404 = vst [vmem:[%s13448_s8 + $0x650] sm:$0xff] %v403_v37 }
  0x78   : >> { %v407_v39 = vld [vmem:[%s13452_s9 + $0xce0] sm:$0xff]  ;;  %406 = vst [vmem:[%s13448_s8 + $0x660] sm:$0xff] %v405_v38 }
  0x79   : >> { %v409_v40 = vld [vmem:[%s13452_s9 + $0xd00] sm:$0xff]  ;;  %408 = vst [vmem:[%s13448_s8 + $0x670] sm:$0xff] %v407_v39 }
  0x7a   : >> { %v411_v41 = vld [vmem:[%s13452_s9 + $0xd20] sm:$0xff]  ;;  %410 = vst [vmem:[%s13448_s8 + $0x680] sm:$0xff] %v409_v40 }
  0x7b   : >> { %v413_v42 = vld [vmem:[%s13452_s9 + $0xd40] sm:$0xff]  ;;  %412 = vst [vmem:[%s13448_s8 + $0x690] sm:$0xff] %v411_v41 }
  0x7c   : >> { %v415_v43 = vld [vmem:[%s13452_s9 + $0xd60] sm:$0xff]  ;;  %414 = vst [vmem:[%s13448_s8 + $0x6a0] sm:$0xff] %v413_v42 }
  0x7d   : >> { %v417_v44 = vld [vmem:[%s13452_s9 + $0xd80] sm:$0xff]  ;;  %416 = vst [vmem:[%s13448_s8 + $0x6b0] sm:$0xff] %v415_v43 }
  0x7e   : >> { %v419_v45 = vld [vmem:[%s13452_s9 + $0xda0] sm:$0xff]  ;;  %418 = vst [vmem:[%s13448_s8 + $0x6c0] sm:$0xff] %v417_v44 }
  0x7f   : >> { %v421_v46 = vld [vmem:[%s13452_s9 + $0xdc0] sm:$0xff]  ;;  %420 = vst [vmem:[%s13448_s8 + $0x6d0] sm:$0xff] %v419_v45 }
  0x80   : >> { %v423_v47 = vld [vmem:[%s13452_s9 + $0xde0] sm:$0xff]  ;;  %422 = vst [vmem:[%s13448_s8 + $0x6e0] sm:$0xff] %v421_v46 }
  0x81   : >> { %v425_v48 = vld [vmem:[%s13452_s9 + $0xe00] sm:$0xff]  ;;  %424 = vst [vmem:[%s13448_s8 + $0x6f0] sm:$0xff] %v423_v47 }
  0x82   : >> { %v427_v49 = vld [vmem:[%s13452_s9 + $0xe20] sm:$0xff]  ;;  %426 = vst [vmem:[%s13448_s8 + $0x700] sm:$0xff] %v425_v48 }
  0x83   : >> { %v429_v50 = vld [vmem:[%s13452_s9 + $0xe40] sm:$0xff]  ;;  %428 = vst [vmem:[%s13448_s8 + $0x710] sm:$0xff] %v427_v49 }
  0x84   : >> { %v431_v51 = vld [vmem:[%s13452_s9 + $0xe60] sm:$0xff]  ;;  %430 = vst [vmem:[%s13448_s8 + $0x720] sm:$0xff] %v429_v50 }
  0x85   : >> { %v433_v52 = vld [vmem:[%s13452_s9 + $0xe80] sm:$0xff]  ;;  %432 = vst [vmem:[%s13448_s8 + $0x730] sm:$0xff] %v431_v51 }
  0x86   : >> { %v435_v53 = vld [vmem:[%s13452_s9 + $0xea0] sm:$0xff]  ;;  %434 = vst [vmem:[%s13448_s8 + $0x740] sm:$0xff] %v433_v52 }
  0x87   : >> { %v437_v54 = vld [vmem:[%s13452_s9 + $0xec0] sm:$0xff]  ;;  %436 = vst [vmem:[%s13448_s8 + $0x750] sm:$0xff] %v435_v53 }
  0x88   : >> { %v439_v55 = vld [vmem:[%s13452_s9 + $0xee0] sm:$0xff]  ;;  %438 = vst [vmem:[%s13448_s8 + $0x760] sm:$0xff] %v437_v54 }
  0x89   : >> { %v441_v56 = vld [vmem:[%s13452_s9 + $0xf00] sm:$0xff]  ;;  %440 = vst [vmem:[%s13448_s8 + $0x770] sm:$0xff] %v439_v55 }
  0x8a   : >> { %v443_v57 = vld [vmem:[%s13452_s9 + $0xf20] sm:$0xff]  ;;  %442 = vst [vmem:[%s13448_s8 + $0x780] sm:$0xff] %v441_v56 }
  0x8b   : >> { %v445_v58 = vld [vmem:[%s13452_s9 + $0xf40] sm:$0xff]  ;;  %444 = vst [vmem:[%s13448_s8 + $0x790] sm:$0xff] %v443_v57 }
  0x8c   : >> { %v447_v59 = vld [vmem:[%s13452_s9 + $0xf60] sm:$0xff]  ;;  %446 = vst [vmem:[%s13448_s8 + $0x7a0] sm:$0xff] %v445_v58 }
  0x8d   : >> { %v449_v60 = vld [vmem:[%s13452_s9 + $0xf80] sm:$0xff]  ;;  %448 = vst [vmem:[%s13448_s8 + $0x7b0] sm:$0xff] %v447_v59 }
  0x8e   : >> { %v451_v61 = vld [vmem:[%s13452_s9 + $0xfa0] sm:$0xff]  ;;  %450 = vst [vmem:[%s13448_s8 + $0x7c0] sm:$0xff] %v449_v60 }
  0x8f   : >> { %v453_v62 = vld [vmem:[%s13452_s9 + $0xfc0] sm:$0xff]  ;;  %452 = vst [vmem:[%s13448_s8 + $0x7d0] sm:$0xff] %v451_v61 }
  0x90   : >> { %v455_v63 = vld [vmem:[%s13452_s9 + $0xfe0] sm:$0xff]  ;;  %454 = vst [vmem:[%s13448_s8 + $0x7e0] sm:$0xff] %v453_v62 }
  0x91   : >> { %v457_v0 = vld [vmem:[%s13452_s9 + $0x1000] sm:$0xff]  ;;  %456 = vst [vmem:[%s13448_s8 + $0x7f0] sm:$0xff] %v455_v63 }
  0x92   : >> { %v459_v1 = vld [vmem:[%s13452_s9 + $0x1020] sm:$0xff]  ;;  %458 = vst [vmem:[%s13448_s8 + $0x800] sm:$0xff] %v457_v0 }
  0x93   : >> { %v461_v2 = vld [vmem:[%s13452_s9 + $0x1040] sm:$0xff]  ;;  %460 = vst [vmem:[%s13448_s8 + $0x810] sm:$0xff] %v459_v1 }
  0x94   : >> { %v463_v3 = vld [vmem:[%s13452_s9 + $0x1060] sm:$0xff]  ;;  %462 = vst [vmem:[%s13448_s8 + $0x820] sm:$0xff] %v461_v2 }
  0x95   : >> { %v465_v4 = vld [vmem:[%s13452_s9 + $0x1080] sm:$0xff]  ;;  %464 = vst [vmem:[%s13448_s8 + $0x830] sm:$0xff] %v463_v3 }
  0x96   : >> { %v467_v5 = vld [vmem:[%s13452_s9 + $0x10a0] sm:$0xff]  ;;  %466 = vst [vmem:[%s13448_s8 + $0x840] sm:$0xff] %v465_v4 }
  0x97   : >> { %v469_v6 = vld [vmem:[%s13452_s9 + $0x10c0] sm:$0xff]  ;;  %468 = vst [vmem:[%s13448_s8 + $0x850] sm:$0xff] %v467_v5 }
  0x98   : >> { %v471_v7 = vld [vmem:[%s13452_s9 + $0x10e0] sm:$0xff]  ;;  %470 = vst [vmem:[%s13448_s8 + $0x860] sm:$0xff] %v469_v6 }
  0x99   : >> { %v473_v8 = vld [vmem:[%s13452_s9 + $0x1100] sm:$0xff]  ;;  %472 = vst [vmem:[%s13448_s8 + $0x870] sm:$0xff] %v471_v7 }
  0x9a   : >> { %v475_v9 = vld [vmem:[%s13452_s9 + $0x1120] sm:$0xff]  ;;  %474 = vst [vmem:[%s13448_s8 + $0x880] sm:$0xff] %v473_v8 }
  0x9b   : >> { %v477_v10 = vld [vmem:[%s13452_s9 + $0x1140] sm:$0xff]  ;;  %476 = vst [vmem:[%s13448_s8 + $0x890] sm:$0xff] %v475_v9 }
  0x9c   : >> { %v479_v11 = vld [vmem:[%s13452_s9 + $0x1160] sm:$0xff]  ;;  %478 = vst [vmem:[%s13448_s8 + $0x8a0] sm:$0xff] %v477_v10 }
  0x9d   : >> { %v481_v12 = vld [vmem:[%s13452_s9 + $0x1180] sm:$0xff]  ;;  %480 = vst [vmem:[%s13448_s8 + $0x8b0] sm:$0xff] %v479_v11 }
  0x9e   : >> { %v483_v13 = vld [vmem:[%s13452_s9 + $0x11a0] sm:$0xff]  ;;  %482 = vst [vmem:[%s13448_s8 + $0x8c0] sm:$0xff] %v481_v12 }
  0x9f   : >> { %v485_v14 = vld [vmem:[%s13452_s9 + $0x11c0] sm:$0xff]  ;;  %484 = vst [vmem:[%s13448_s8 + $0x8d0] sm:$0xff] %v483_v13 }
  0xa0   : >> { %v487_v15 = vld [vmem:[%s13452_s9 + $0x11e0] sm:$0xff]  ;;  %486 = vst [vmem:[%s13448_s8 + $0x8e0] sm:$0xff] %v485_v14 }
  0xa1   : >> { %v489_v16 = vld [vmem:[%s13452_s9 + $0x1200] sm:$0xff]  ;;  %488 = vst [vmem:[%s13448_s8 + $0x8f0] sm:$0xff] %v487_v15 }
  0xa2   : >> { %v491_v17 = vld [vmem:[%s13452_s9 + $0x1220] sm:$0xff]  ;;  %490 = vst [vmem:[%s13448_s8 + $0x900] sm:$0xff] %v489_v16 }
  0xa3   : >> { %v493_v18 = vld [vmem:[%s13452_s9 + $0x1240] sm:$0xff]  ;;  %492 = vst [vmem:[%s13448_s8 + $0x910] sm:$0xff] %v491_v17 }
  0xa4   : >> { %v495_v19 = vld [vmem:[%s13452_s9 + $0x1260] sm:$0xff]  ;;  %494 = vst [vmem:[%s13448_s8 + $0x920] sm:$0xff] %v493_v18 }
  0xa5   : >> { %v497_v20 = vld [vmem:[%s13452_s9 + $0x1280] sm:$0xff]  ;;  %496 = vst [vmem:[%s13448_s8 + $0x930] sm:$0xff] %v495_v19 }
  0xa6   : >> { %v499_v21 = vld [vmem:[%s13452_s9 + $0x12a0] sm:$0xff]  ;;  %498 = vst [vmem:[%s13448_s8 + $0x940] sm:$0xff] %v497_v20 }
  0xa7   : >> { %v501_v22 = vld [vmem:[%s13452_s9 + $0x12c0] sm:$0xff]  ;;  %500 = vst [vmem:[%s13448_s8 + $0x950] sm:$0xff] %v499_v21 }
  0xa8   : >> { %v503_v23 = vld [vmem:[%s13452_s9 + $0x12e0] sm:$0xff]  ;;  %502 = vst [vmem:[%s13448_s8 + $0x960] sm:$0xff] %v501_v22 }
  0xa9   : >> { %v505_v24 = vld [vmem:[%s13452_s9 + $0x1300] sm:$0xff]  ;;  %504 = vst [vmem:[%s13448_s8 + $0x970] sm:$0xff] %v503_v23 }
  0xaa   : >> { %v507_v25 = vld [vmem:[%s13452_s9 + $0x1320] sm:$0xff]  ;;  %506 = vst [vmem:[%s13448_s8 + $0x980] sm:$0xff] %v505_v24 }
  0xab   : >> { %v509_v26 = vld [vmem:[%s13452_s9 + $0x1340] sm:$0xff]  ;;  %508 = vst [vmem:[%s13448_s8 + $0x990] sm:$0xff] %v507_v25 }
  0xac   : >> { %v511_v27 = vld [vmem:[%s13452_s9 + $0x1360] sm:$0xff]  ;;  %510 = vst [vmem:[%s13448_s8 + $0x9a0] sm:$0xff] %v509_v26 }
  0xad   : >> { %v513_v28 = vld [vmem:[%s13452_s9 + $0x1380] sm:$0xff]  ;;  %512 = vst [vmem:[%s13448_s8 + $0x9b0] sm:$0xff] %v511_v27 }
  0xae   : >> { %v515_v29 = vld [vmem:[%s13452_s9 + $0x13a0] sm:$0xff]  ;;  %514 = vst [vmem:[%s13448_s8 + $0x9c0] sm:$0xff] %v513_v28 }
  0xaf   : >> { %v517_v30 = vld [vmem:[%s13452_s9 + $0x13c0] sm:$0xff]  ;;  %516 = vst [vmem:[%s13448_s8 + $0x9d0] sm:$0xff] %v515_v29 }
  0xb0   : >> { %v519_v31 = vld [vmem:[%s13452_s9 + $0x13e0] sm:$0xff]  ;;  %518 = vst [vmem:[%s13448_s8 + $0x9e0] sm:$0xff] %v517_v30 }
  0xb1   : >> { %v521_v32 = vld [vmem:[%s13452_s9 + $0x1400] sm:$0xff]  ;;  %520 = vst [vmem:[%s13448_s8 + $0x9f0] sm:$0xff] %v519_v31 }
  0xb2   : >> { %v523_v33 = vld [vmem:[%s13452_s9 + $0x1420] sm:$0xff]  ;;  %522 = vst [vmem:[%s13448_s8 + $0xa00] sm:$0xff] %v521_v32 }
  0xb3   : >> { %v525_v34 = vld [vmem:[%s13452_s9 + $0x1440] sm:$0xff]  ;;  %524 = vst [vmem:[%s13448_s8 + $0xa10] sm:$0xff] %v523_v33 }
  0xb4   : >> { %v527_v35 = vld [vmem:[%s13452_s9 + $0x1460] sm:$0xff]  ;;  %526 = vst [vmem:[%s13448_s8 + $0xa20] sm:$0xff] %v525_v34 }
  0xb5   : >> { %v529_v36 = vld [vmem:[%s13452_s9 + $0x1480] sm:$0xff]  ;;  %528 = vst [vmem:[%s13448_s8 + $0xa30] sm:$0xff] %v527_v35 }
  0xb6   : >> { %v531_v37 = vld [vmem:[%s13452_s9 + $0x14a0] sm:$0xff]  ;;  %530 = vst [vmem:[%s13448_s8 + $0xa40] sm:$0xff] %v529_v36 }
  0xb7   : >> { %v533_v38 = vld [vmem:[%s13452_s9 + $0x14c0] sm:$0xff]  ;;  %532 = vst [vmem:[%s13448_s8 + $0xa50] sm:$0xff] %v531_v37 }
  0xb8   : >> { %v535_v39 = vld [vmem:[%s13452_s9 + $0x14e0] sm:$0xff]  ;;  %534 = vst [vmem:[%s13448_s8 + $0xa60] sm:$0xff] %v533_v38 }
  0xb9   : >> { %v537_v40 = vld [vmem:[%s13452_s9 + $0x1500] sm:$0xff]  ;;  %536 = vst [vmem:[%s13448_s8 + $0xa70] sm:$0xff] %v535_v39 }
  0xba   : >> { %v539_v41 = vld [vmem:[%s13452_s9 + $0x1520] sm:$0xff]  ;;  %538 = vst [vmem:[%s13448_s8 + $0xa80] sm:$0xff] %v537_v40 }
  0xbb   : >> { %v541_v42 = vld [vmem:[%s13452_s9 + $0x1540] sm:$0xff]  ;;  %540 = vst [vmem:[%s13448_s8 + $0xa90] sm:$0xff] %v539_v41 }
  0xbc   : >> { %v543_v43 = vld [vmem:[%s13452_s9 + $0x1560] sm:$0xff]  ;;  %542 = vst [vmem:[%s13448_s8 + $0xaa0] sm:$0xff] %v541_v42 }
  0xbd   : >> { %v545_v44 = vld [vmem:[%s13452_s9 + $0x1580] sm:$0xff]  ;;  %544 = vst [vmem:[%s13448_s8 + $0xab0] sm:$0xff] %v543_v43 }
  0xbe   : >> { %v547_v45 = vld [vmem:[%s13452_s9 + $0x15a0] sm:$0xff]  ;;  %546 = vst [vmem:[%s13448_s8 + $0xac0] sm:$0xff] %v545_v44 }
  0xbf   : >> { %v549_v46 = vld [vmem:[%s13452_s9 + $0x15c0] sm:$0xff]  ;;  %548 = vst [vmem:[%s13448_s8 + $0xad0] sm:$0xff] %v547_v45 }
  0xc0   : >> { %v551_v47 = vld [vmem:[%s13452_s9 + $0x15e0] sm:$0xff]  ;;  %550 = vst [vmem:[%s13448_s8 + $0xae0] sm:$0xff] %v549_v46 }
  0xc1   : >> { %v553_v48 = vld [vmem:[%s13452_s9 + $0x1600] sm:$0xff]  ;;  %552 = vst [vmem:[%s13448_s8 + $0xaf0] sm:$0xff] %v551_v47 }
  0xc2   : >> { %v555_v49 = vld [vmem:[%s13452_s9 + $0x1620] sm:$0xff]  ;;  %554 = vst [vmem:[%s13448_s8 + $0xb00] sm:$0xff] %v553_v48 }
  0xc3   : >> { %v557_v50 = vld [vmem:[%s13452_s9 + $0x1640] sm:$0xff]  ;;  %556 = vst [vmem:[%s13448_s8 + $0xb10] sm:$0xff] %v555_v49 }
  0xc4   : >> { %v559_v51 = vld [vmem:[%s13452_s9 + $0x1660] sm:$0xff]  ;;  %558 = vst [vmem:[%s13448_s8 + $0xb20] sm:$0xff] %v557_v50 }
  0xc5   : >> { %v561_v52 = vld [vmem:[%s13452_s9 + $0x1680] sm:$0xff]  ;;  %560 = vst [vmem:[%s13448_s8 + $0xb30] sm:$0xff] %v559_v51 }
  0xc6   : >> { %v563_v53 = vld [vmem:[%s13452_s9 + $0x16a0] sm:$0xff]  ;;  %562 = vst [vmem:[%s13448_s8 + $0xb40] sm:$0xff] %v561_v52 }
  0xc7   : >> { %v565_v54 = vld [vmem:[%s13452_s9 + $0x16c0] sm:$0xff]  ;;  %564 = vst [vmem:[%s13448_s8 + $0xb50] sm:$0xff] %v563_v53 }
  0xc8   : >> { %v567_v55 = vld [vmem:[%s13452_s9 + $0x16e0] sm:$0xff]  ;;  %566 = vst [vmem:[%s13448_s8 + $0xb60] sm:$0xff] %v565_v54 }
  0xc9   : >> { %v569_v56 = vld [vmem:[%s13452_s9 + $0x1700] sm:$0xff]  ;;  %568 = vst [vmem:[%s13448_s8 + $0xb70] sm:$0xff] %v567_v55 }
  0xca   : >> { %v571_v57 = vld [vmem:[%s13452_s9 + $0x1720] sm:$0xff]  ;;  %570 = vst [vmem:[%s13448_s8 + $0xb80] sm:$0xff] %v569_v56 }
  0xcb   : >> { %v573_v58 = vld [vmem:[%s13452_s9 + $0x1740] sm:$0xff]  ;;  %572 = vst [vmem:[%s13448_s8 + $0xb90] sm:$0xff] %v571_v57 }
  0xcc   : >> { %v575_v59 = vld [vmem:[%s13452_s9 + $0x1760] sm:$0xff]  ;;  %574 = vst [vmem:[%s13448_s8 + $0xba0] sm:$0xff] %v573_v58 }
  0xcd   : >> { %v577_v60 = vld [vmem:[%s13452_s9 + $0x1780] sm:$0xff]  ;;  %576 = vst [vmem:[%s13448_s8 + $0xbb0] sm:$0xff] %v575_v59 }
  0xce   : >> { %v579_v61 = vld [vmem:[%s13452_s9 + $0x17a0] sm:$0xff]  ;;  %578 = vst [vmem:[%s13448_s8 + $0xbc0] sm:$0xff] %v577_v60 }
  0xcf   : >> { %v581_v62 = vld [vmem:[%s13452_s9 + $0x17c0] sm:$0xff]  ;;  %580 = vst [vmem:[%s13448_s8 + $0xbd0] sm:$0xff] %v579_v61 }
  0xd0   : >> { %v583_v63 = vld [vmem:[%s13452_s9 + $0x17e0] sm:$0xff]  ;;  %582 = vst [vmem:[%s13448_s8 + $0xbe0] sm:$0xff] %v581_v62 }
  0xd1   : >> { %v585_v0 = vld [vmem:[%s13452_s9 + $0x1800] sm:$0xff]  ;;  %584 = vst [vmem:[%s13448_s8 + $0xbf0] sm:$0xff] %v583_v63 }
  0xd2   : >> { %v587_v1 = vld [vmem:[%s13452_s9 + $0x1820] sm:$0xff]  ;;  %586 = vst [vmem:[%s13448_s8 + $0xc00] sm:$0xff] %v585_v0 }
  0xd3   : >> { %v589_v2 = vld [vmem:[%s13452_s9 + $0x1840] sm:$0xff]  ;;  %588 = vst [vmem:[%s13448_s8 + $0xc10] sm:$0xff] %v587_v1 }
  0xd4   : >> { %v591_v3 = vld [vmem:[%s13452_s9 + $0x1860] sm:$0xff]  ;;  %590 = vst [vmem:[%s13448_s8 + $0xc20] sm:$0xff] %v589_v2 }
  0xd5   : >> { %v593_v4 = vld [vmem:[%s13452_s9 + $0x1880] sm:$0xff]  ;;  %592 = vst [vmem:[%s13448_s8 + $0xc30] sm:$0xff] %v591_v3 }
  0xd6   : >> { %v595_v5 = vld [vmem:[%s13452_s9 + $0x18a0] sm:$0xff]  ;;  %594 = vst [vmem:[%s13448_s8 + $0xc40] sm:$0xff] %v593_v4 }
  0xd7   : >> { %v597_v6 = vld [vmem:[%s13452_s9 + $0x18c0] sm:$0xff]  ;;  %596 = vst [vmem:[%s13448_s8 + $0xc50] sm:$0xff] %v595_v5 }
  0xd8   : >> { %v599_v7 = vld [vmem:[%s13452_s9 + $0x18e0] sm:$0xff]  ;;  %598 = vst [vmem:[%s13448_s8 + $0xc60] sm:$0xff] %v597_v6 }
  0xd9   : >> { %v601_v8 = vld [vmem:[%s13452_s9 + $0x1900] sm:$0xff]  ;;  %600 = vst [vmem:[%s13448_s8 + $0xc70] sm:$0xff] %v599_v7 }
  0xda   : >> { %v603_v9 = vld [vmem:[%s13452_s9 + $0x1920] sm:$0xff]  ;;  %602 = vst [vmem:[%s13448_s8 + $0xc80] sm:$0xff] %v601_v8 }
  0xdb   : >> { %v605_v10 = vld [vmem:[%s13452_s9 + $0x1940] sm:$0xff]  ;;  %604 = vst [vmem:[%s13448_s8 + $0xc90] sm:$0xff] %v603_v9 }
  0xdc   : >> { %v607_v11 = vld [vmem:[%s13452_s9 + $0x1960] sm:$0xff]  ;;  %606 = vst [vmem:[%s13448_s8 + $0xca0] sm:$0xff] %v605_v10 }
  0xdd   : >> { %v609_v12 = vld [vmem:[%s13452_s9 + $0x1980] sm:$0xff]  ;;  %608 = vst [vmem:[%s13448_s8 + $0xcb0] sm:$0xff] %v607_v11 }
  0xde   : >> { %v611_v13 = vld [vmem:[%s13452_s9 + $0x19a0] sm:$0xff]  ;;  %610 = vst [vmem:[%s13448_s8 + $0xcc0] sm:$0xff] %v609_v12 }
  0xdf   : >> { %v613_v14 = vld [vmem:[%s13452_s9 + $0x19c0] sm:$0xff]  ;;  %612 = vst [vmem:[%s13448_s8 + $0xcd0] sm:$0xff] %v611_v13 }
  0xe0   : >> { %v615_v15 = vld [vmem:[%s13452_s9 + $0x19e0] sm:$0xff]  ;;  %614 = vst [vmem:[%s13448_s8 + $0xce0] sm:$0xff] %v613_v14 }
  0xe1   : >> { %v617_v16 = vld [vmem:[%s13452_s9 + $0x1a00] sm:$0xff]  ;;  %616 = vst [vmem:[%s13448_s8 + $0xcf0] sm:$0xff] %v615_v15 }
  0xe2   : >> { %v619_v17 = vld [vmem:[%s13452_s9 + $0x1a20] sm:$0xff]  ;;  %618 = vst [vmem:[%s13448_s8 + $0xd00] sm:$0xff] %v617_v16 }
  0xe3   : >> { %v621_v18 = vld [vmem:[%s13452_s9 + $0x1a40] sm:$0xff]  ;;  %620 = vst [vmem:[%s13448_s8 + $0xd10] sm:$0xff] %v619_v17 }
  0xe4   : >> { %v623_v19 = vld [vmem:[%s13452_s9 + $0x1a60] sm:$0xff]  ;;  %622 = vst [vmem:[%s13448_s8 + $0xd20] sm:$0xff] %v621_v18 }
  0xe5   : >> { %v625_v20 = vld [vmem:[%s13452_s9 + $0x1a80] sm:$0xff]  ;;  %624 = vst [vmem:[%s13448_s8 + $0xd30] sm:$0xff] %v623_v19 }
  0xe6   : >> { %v627_v21 = vld [vmem:[%s13452_s9 + $0x1aa0] sm:$0xff]  ;;  %626 = vst [vmem:[%s13448_s8 + $0xd40] sm:$0xff] %v625_v20 }
  0xe7   : >> { %v629_v22 = vld [vmem:[%s13452_s9 + $0x1ac0] sm:$0xff]  ;;  %628 = vst [vmem:[%s13448_s8 + $0xd50] sm:$0xff] %v627_v21 }
  0xe8   : >> { %v631_v23 = vld [vmem:[%s13452_s9 + $0x1ae0] sm:$0xff]  ;;  %630 = vst [vmem:[%s13448_s8 + $0xd60] sm:$0xff] %v629_v22 }
  0xe9   : >> { %v633_v24 = vld [vmem:[%s13452_s9 + $0x1b00] sm:$0xff]  ;;  %632 = vst [vmem:[%s13448_s8 + $0xd70] sm:$0xff] %v631_v23 }
  0xea   : >> { %v635_v25 = vld [vmem:[%s13452_s9 + $0x1b20] sm:$0xff]  ;;  %634 = vst [vmem:[%s13448_s8 + $0xd80] sm:$0xff] %v633_v24 }
  0xeb   : >> { %v637_v26 = vld [vmem:[%s13452_s9 + $0x1b40] sm:$0xff]  ;;  %636 = vst [vmem:[%s13448_s8 + $0xd90] sm:$0xff] %v635_v25 }
  0xec   : >> { %v639_v27 = vld [vmem:[%s13452_s9 + $0x1b60] sm:$0xff]  ;;  %638 = vst [vmem:[%s13448_s8 + $0xda0] sm:$0xff] %v637_v26 }
  0xed   : >> { %v641_v28 = vld [vmem:[%s13452_s9 + $0x1b80] sm:$0xff]  ;;  %640 = vst [vmem:[%s13448_s8 + $0xdb0] sm:$0xff] %v639_v27 }
  0xee   : >> { %v643_v29 = vld [vmem:[%s13452_s9 + $0x1ba0] sm:$0xff]  ;;  %642 = vst [vmem:[%s13448_s8 + $0xdc0] sm:$0xff] %v641_v28 }
  0xef   : >> { %v645_v30 = vld [vmem:[%s13452_s9 + $0x1bc0] sm:$0xff]  ;;  %644 = vst [vmem:[%s13448_s8 + $0xdd0] sm:$0xff] %v643_v29 }
  0xf0   : >> { %v647_v31 = vld [vmem:[%s13452_s9 + $0x1be0] sm:$0xff]  ;;  %646 = vst [vmem:[%s13448_s8 + $0xde0] sm:$0xff] %v645_v30 }
  0xf1   : >> { %v649_v32 = vld [vmem:[%s13452_s9 + $0x1c00] sm:$0xff]  ;;  %648 = vst [vmem:[%s13448_s8 + $0xdf0] sm:$0xff] %v647_v31 }
  0xf2   : >> { %v651_v33 = vld [vmem:[%s13452_s9 + $0x1c20] sm:$0xff]  ;;  %650 = vst [vmem:[%s13448_s8 + $0xe00] sm:$0xff] %v649_v32 }
  0xf3   : >> { %v653_v34 = vld [vmem:[%s13452_s9 + $0x1c40] sm:$0xff]  ;;  %652 = vst [vmem:[%s13448_s8 + $0xe10] sm:$0xff] %v651_v33 }
  0xf4   : >> { %v655_v35 = vld [vmem:[%s13452_s9 + $0x1c60] sm:$0xff]  ;;  %654 = vst [vmem:[%s13448_s8 + $0xe20] sm:$0xff] %v653_v34 }
  0xf5   : >> { %v657_v36 = vld [vmem:[%s13452_s9 + $0x1c80] sm:$0xff]  ;;  %656 = vst [vmem:[%s13448_s8 + $0xe30] sm:$0xff] %v655_v35 }
  0xf6   : >> { %v659_v37 = vld [vmem:[%s13452_s9 + $0x1ca0] sm:$0xff]  ;;  %658 = vst [vmem:[%s13448_s8 + $0xe40] sm:$0xff] %v657_v36 }
  0xf7   : >> { %v661_v38 = vld [vmem:[%s13452_s9 + $0x1cc0] sm:$0xff]  ;;  %660 = vst [vmem:[%s13448_s8 + $0xe50] sm:$0xff] %v659_v37 }
  0xf8   : >> { %v663_v39 = vld [vmem:[%s13452_s9 + $0x1ce0] sm:$0xff]  ;;  %662 = vst [vmem:[%s13448_s8 + $0xe60] sm:$0xff] %v661_v38 }
  0xf9   : >> { %v665_v40 = vld [vmem:[%s13452_s9 + $0x1d00] sm:$0xff]  ;;  %664 = vst [vmem:[%s13448_s8 + $0xe70] sm:$0xff] %v663_v39 }
  0xfa   : >> { %v667_v41 = vld [vmem:[%s13452_s9 + $0x1d20] sm:$0xff]  ;;  %666 = vst [vmem:[%s13448_s8 + $0xe80] sm:$0xff] %v665_v40 }
  0xfb   : >> { %v669_v42 = vld [vmem:[%s13452_s9 + $0x1d40] sm:$0xff]  ;;  %668 = vst [vmem:[%s13448_s8 + $0xe90] sm:$0xff] %v667_v41 }
  0xfc   : >> { %v671_v43 = vld [vmem:[%s13452_s9 + $0x1d60] sm:$0xff]  ;;  %670 = vst [vmem:[%s13448_s8 + $0xea0] sm:$0xff] %v669_v42 }
  0xfd   : >> { %v673_v44 = vld [vmem:[%s13452_s9 + $0x1d80] sm:$0xff]  ;;  %672 = vst [vmem:[%s13448_s8 + $0xeb0] sm:$0xff] %v671_v43 }
  0xfe   : >> { %v675_v45 = vld [vmem:[%s13452_s9 + $0x1da0] sm:$0xff]  ;;  %674 = vst [vmem:[%s13448_s8 + $0xec0] sm:$0xff] %v673_v44 }
  0xff   : >> { %v677_v46 = vld [vmem:[%s13452_s9 + $0x1dc0] sm:$0xff]  ;;  %676 = vst [vmem:[%s13448_s8 + $0xed0] sm:$0xff] %v675_v45 }
 0x100   : >> { %v679_v47 = vld [vmem:[%s13452_s9 + $0x1de0] sm:$0xff]  ;;  %678 = vst [vmem:[%s13448_s8 + $0xee0] sm:$0xff] %v677_v46 }
 0x101   : >> { %v681_v48 = vld [vmem:[%s13452_s9 + $0x1e00] sm:$0xff]  ;;  %680 = vst [vmem:[%s13448_s8 + $0xef0] sm:$0xff] %v679_v47 }
 0x102   : >> { %v683_v49 = vld [vmem:[%s13452_s9 + $0x1e20] sm:$0xff]  ;;  %682 = vst [vmem:[%s13448_s8 + $0xf00] sm:$0xff] %v681_v48 }
 0x103   : >> { %v685_v50 = vld [vmem:[%s13452_s9 + $0x1e40] sm:$0xff]  ;;  %684 = vst [vmem:[%s13448_s8 + $0xf10] sm:$0xff] %v683_v49 }
 0x104   : >> { %v687_v51 = vld [vmem:[%s13452_s9 + $0x1e60] sm:$0xff]  ;;  %686 = vst [vmem:[%s13448_s8 + $0xf20] sm:$0xff] %v685_v50 }
 0x105   : >> { %v689_v52 = vld [vmem:[%s13452_s9 + $0x1e80] sm:$0xff]  ;;  %688 = vst [vmem:[%s13448_s8 + $0xf30] sm:$0xff] %v687_v51 }
 0x106   : >> { %v691_v53 = vld [vmem:[%s13452_s9 + $0x1ea0] sm:$0xff]  ;;  %690 = vst [vmem:[%s13448_s8 + $0xf40] sm:$0xff] %v689_v52 }
 0x107   : >> { %v693_v54 = vld [vmem:[%s13452_s9 + $0x1ec0] sm:$0xff]  ;;  %692 = vst [vmem:[%s13448_s8 + $0xf50] sm:$0xff] %v691_v53 }
 0x108   : >> { %v695_v55 = vld [vmem:[%s13452_s9 + $0x1ee0] sm:$0xff]  ;;  %694 = vst [vmem:[%s13448_s8 + $0xf60] sm:$0xff] %v693_v54 }
 0x109   : >> { %v697_v56 = vld [vmem:[%s13452_s9 + $0x1f00] sm:$0xff]  ;;  %696 = vst [vmem:[%s13448_s8 + $0xf70] sm:$0xff] %v695_v55 }
 0x10a   : >> { %v699_v57 = vld [vmem:[%s13452_s9 + $0x1f20] sm:$0xff]  ;;  %698 = vst [vmem:[%s13448_s8 + $0xf80] sm:$0xff] %v697_v56 }
 0x10b   : >> { %v701_v58 = vld [vmem:[%s13452_s9 + $0x1f40] sm:$0xff]  ;;  %700 = vst [vmem:[%s13448_s8 + $0xf90] sm:$0xff] %v699_v57 }
 0x10c   : >> { %v703_v59 = vld [vmem:[%s13452_s9 + $0x1f60] sm:$0xff]  ;;  %702 = vst [vmem:[%s13448_s8 + $0xfa0] sm:$0xff] %v701_v58 }
 0x10d   : >> { %v705_v60 = vld [vmem:[%s13452_s9 + $0x1f80] sm:$0xff]  ;;  %704 = vst [vmem:[%s13448_s8 + $0xfb0] sm:$0xff] %v703_v59 }
 0x10e   : >> { %v707_v61 = vld [vmem:[%s13452_s9 + $0x1fa0] sm:$0xff]  ;;  %706 = vst [vmem:[%s13448_s8 + $0xfc0] sm:$0xff] %v705_v60 }
 0x10f   : >> { %v709_v62 = vld [vmem:[%s13452_s9 + $0x1fc0] sm:$0xff]  ;;  %708 = vst [vmem:[%s13448_s8 + $0xfd0] sm:$0xff] %v707_v61 }
 0x110   : >> { %v711_v63 = vld [vmem:[%s13452_s9 + $0x1fe0] sm:$0xff]  ;;  %710 = vst [vmem:[%s13448_s8 + $0xfe0] sm:$0xff] %v709_v62 }
 0x111   : >> { %v713_v0 = vld [vmem:[%s13452_s9 + $0x2000] sm:$0xff]  ;;  %712 = vst [vmem:[%s13448_s8 + $0xff0] sm:$0xff] %v711_v63 }
 0x112   : >> { %v715_v1 = vld [vmem:[%s13452_s9 + $0x2020] sm:$0xff]  ;;  %714 = vst [vmem:[%s13448_s8 + $0x1000] sm:$0xff] %v713_v0 }
 0x113   : >> { %v717_v2 = vld [vmem:[%s13452_s9 + $0x2040] sm:$0xff]  ;;  %716 = vst [vmem:[%s13448_s8 + $0x1010] sm:$0xff] %v715_v1 }
 0x114   : >> { %v719_v3 = vld [vmem:[%s13452_s9 + $0x2060] sm:$0xff]  ;;  %718 = vst [vmem:[%s13448_s8 + $0x1020] sm:$0xff] %v717_v2 }
 0x115   : >> { %v721_v4 = vld [vmem:[%s13452_s9 + $0x2080] sm:$0xff]  ;;  %720 = vst [vmem:[%s13448_s8 + $0x1030] sm:$0xff] %v719_v3 }
 0x116   : >> { %v723_v5 = vld [vmem:[%s13452_s9 + $0x20a0] sm:$0xff]  ;;  %722 = vst [vmem:[%s13448_s8 + $0x1040] sm:$0xff] %v721_v4 }
 0x117   : >> { %v725_v6 = vld [vmem:[%s13452_s9 + $0x20c0] sm:$0xff]  ;;  %724 = vst [vmem:[%s13448_s8 + $0x1050] sm:$0xff] %v723_v5 }
 0x118   : >> { %v727_v7 = vld [vmem:[%s13452_s9 + $0x20e0] sm:$0xff]  ;;  %726 = vst [vmem:[%s13448_s8 + $0x1060] sm:$0xff] %v725_v6 }
 0x119   : >> { %v729_v8 = vld [vmem:[%s13452_s9 + $0x2100] sm:$0xff]  ;;  %728 = vst [vmem:[%s13448_s8 + $0x1070] sm:$0xff] %v727_v7 }
 0x11a   : >> { %v731_v9 = vld [vmem:[%s13452_s9 + $0x2120] sm:$0xff]  ;;  %730 = vst [vmem:[%s13448_s8 + $0x1080] sm:$0xff] %v729_v8 }
 0x11b   : >> { %v733_v10 = vld [vmem:[%s13452_s9 + $0x2140] sm:$0xff]  ;;  %732 = vst [vmem:[%s13448_s8 + $0x1090] sm:$0xff] %v731_v9 }
 0x11c   : >> { %v735_v11 = vld [vmem:[%s13452_s9 + $0x2160] sm:$0xff]  ;;  %734 = vst [vmem:[%s13448_s8 + $0x10a0] sm:$0xff] %v733_v10 }
 0x11d   : >> { %v737_v12 = vld [vmem:[%s13452_s9 + $0x2180] sm:$0xff]  ;;  %736 = vst [vmem:[%s13448_s8 + $0x10b0] sm:$0xff] %v735_v11 }
 0x11e   : >> { %v739_v13 = vld [vmem:[%s13452_s9 + $0x21a0] sm:$0xff]  ;;  %738 = vst [vmem:[%s13448_s8 + $0x10c0] sm:$0xff] %v737_v12 }
 0x11f   : >> { %v741_v14 = vld [vmem:[%s13452_s9 + $0x21c0] sm:$0xff]  ;;  %740 = vst [vmem:[%s13448_s8 + $0x10d0] sm:$0xff] %v739_v13 }
 0x120   : >> { %v743_v15 = vld [vmem:[%s13452_s9 + $0x21e0] sm:$0xff]  ;;  %742 = vst [vmem:[%s13448_s8 + $0x10e0] sm:$0xff] %v741_v14 }
 0x121   : >> { %v745_v16 = vld [vmem:[%s13452_s9 + $0x2200] sm:$0xff]  ;;  %744 = vst [vmem:[%s13448_s8 + $0x10f0] sm:$0xff] %v743_v15 }
 0x122   : >> { %v747_v17 = vld [vmem:[%s13452_s9 + $0x2220] sm:$0xff]  ;;  %746 = vst [vmem:[%s13448_s8 + $0x1100] sm:$0xff] %v745_v16 }
 0x123   : >> { %v749_v18 = vld [vmem:[%s13452_s9 + $0x2240] sm:$0xff]  ;;  %748 = vst [vmem:[%s13448_s8 + $0x1110] sm:$0xff] %v747_v17 }
 0x124   : >> { %v751_v19 = vld [vmem:[%s13452_s9 + $0x2260] sm:$0xff]  ;;  %750 = vst [vmem:[%s13448_s8 + $0x1120] sm:$0xff] %v749_v18 }
 0x125   : >> { %v753_v20 = vld [vmem:[%s13452_s9 + $0x2280] sm:$0xff]  ;;  %752 = vst [vmem:[%s13448_s8 + $0x1130] sm:$0xff] %v751_v19 }
 0x126   : >> { %v755_v21 = vld [vmem:[%s13452_s9 + $0x22a0] sm:$0xff]  ;;  %754 = vst [vmem:[%s13448_s8 + $0x1140] sm:$0xff] %v753_v20 }
 0x127   : >> { %v757_v22 = vld [vmem:[%s13452_s9 + $0x22c0] sm:$0xff]  ;;  %756 = vst [vmem:[%s13448_s8 + $0x1150] sm:$0xff] %v755_v21 }
 0x128   : >> { %v759_v23 = vld [vmem:[%s13452_s9 + $0x22e0] sm:$0xff]  ;;  %758 = vst [vmem:[%s13448_s8 + $0x1160] sm:$0xff] %v757_v22 }
 0x129   : >> { %v761_v24 = vld [vmem:[%s13452_s9 + $0x2300] sm:$0xff]  ;;  %760 = vst [vmem:[%s13448_s8 + $0x1170] sm:$0xff] %v759_v23 }
 0x12a   : >> { %v763_v25 = vld [vmem:[%s13452_s9 + $0x2320] sm:$0xff]  ;;  %762 = vst [vmem:[%s13448_s8 + $0x1180] sm:$0xff] %v761_v24 }
 0x12b   : >> { %v765_v26 = vld [vmem:[%s13452_s9 + $0x2340] sm:$0xff]  ;;  %764 = vst [vmem:[%s13448_s8 + $0x1190] sm:$0xff] %v763_v25 }
 0x12c   : >> { %v767_v27 = vld [vmem:[%s13452_s9 + $0x2360] sm:$0xff]  ;;  %766 = vst [vmem:[%s13448_s8 + $0x11a0] sm:$0xff] %v765_v26 }
 0x12d   : >> { %v769_v28 = vld [vmem:[%s13452_s9 + $0x2380] sm:$0xff]  ;;  %768 = vst [vmem:[%s13448_s8 + $0x11b0] sm:$0xff] %v767_v27 }
 0x12e   : >> { %v771_v29 = vld [vmem:[%s13452_s9 + $0x23a0] sm:$0xff]  ;;  %770 = vst [vmem:[%s13448_s8 + $0x11c0] sm:$0xff] %v769_v28 }
 0x12f   : >> { %v773_v30 = vld [vmem:[%s13452_s9 + $0x23c0] sm:$0xff]  ;;  %772 = vst [vmem:[%s13448_s8 + $0x11d0] sm:$0xff] %v771_v29 }
 0x130   : >> { %v775_v31 = vld [vmem:[%s13452_s9 + $0x23e0] sm:$0xff]  ;;  %774 = vst [vmem:[%s13448_s8 + $0x11e0] sm:$0xff] %v773_v30 }
 0x131   : >> { %v777_v32 = vld [vmem:[%s13452_s9 + $0x2400] sm:$0xff]  ;;  %776 = vst [vmem:[%s13448_s8 + $0x11f0] sm:$0xff] %v775_v31 }
 0x132   : >> { %v779_v33 = vld [vmem:[%s13452_s9 + $0x2420] sm:$0xff]  ;;  %778 = vst [vmem:[%s13448_s8 + $0x1200] sm:$0xff] %v777_v32 }
 0x133   : >> { %v781_v34 = vld [vmem:[%s13452_s9 + $0x2440] sm:$0xff]  ;;  %780 = vst [vmem:[%s13448_s8 + $0x1210] sm:$0xff] %v779_v33 }
 0x134   : >> { %v783_v35 = vld [vmem:[%s13452_s9 + $0x2460] sm:$0xff]  ;;  %782 = vst [vmem:[%s13448_s8 + $0x1220] sm:$0xff] %v781_v34 }
 0x135   : >> { %v785_v36 = vld [vmem:[%s13452_s9 + $0x2480] sm:$0xff]  ;;  %784 = vst [vmem:[%s13448_s8 + $0x1230] sm:$0xff] %v783_v35 }
 0x136   : >> { %v787_v37 = vld [vmem:[%s13452_s9 + $0x24a0] sm:$0xff]  ;;  %786 = vst [vmem:[%s13448_s8 + $0x1240] sm:$0xff] %v785_v36 }
 0x137   : >> { %v789_v38 = vld [vmem:[%s13452_s9 + $0x24c0] sm:$0xff]  ;;  %788 = vst [vmem:[%s13448_s8 + $0x1250] sm:$0xff] %v787_v37 }
 0x138   : >> { %v791_v39 = vld [vmem:[%s13452_s9 + $0x24e0] sm:$0xff]  ;;  %790 = vst [vmem:[%s13448_s8 + $0x1260] sm:$0xff] %v789_v38 }
 0x139   : >> { %v793_v40 = vld [vmem:[%s13452_s9 + $0x2500] sm:$0xff]  ;;  %792 = vst [vmem:[%s13448_s8 + $0x1270] sm:$0xff] %v791_v39 }
 0x13a   : >> { %v795_v41 = vld [vmem:[%s13452_s9 + $0x2520] sm:$0xff]  ;;  %794 = vst [vmem:[%s13448_s8 + $0x1280] sm:$0xff] %v793_v40 }
 0x13b   : >> { %v797_v42 = vld [vmem:[%s13452_s9 + $0x2540] sm:$0xff]  ;;  %796 = vst [vmem:[%s13448_s8 + $0x1290] sm:$0xff] %v795_v41 }
 0x13c   : >> { %v799_v43 = vld [vmem:[%s13452_s9 + $0x2560] sm:$0xff]  ;;  %798 = vst [vmem:[%s13448_s8 + $0x12a0] sm:$0xff] %v797_v42 }
 0x13d   : >> { %v801_v44 = vld [vmem:[%s13452_s9 + $0x2580] sm:$0xff]  ;;  %800 = vst [vmem:[%s13448_s8 + $0x12b0] sm:$0xff] %v799_v43 }
 0x13e   : >> { %v803_v45 = vld [vmem:[%s13452_s9 + $0x25a0] sm:$0xff]  ;;  %802 = vst [vmem:[%s13448_s8 + $0x12c0] sm:$0xff] %v801_v44 }
 0x13f   : >> { %v805_v46 = vld [vmem:[%s13452_s9 + $0x25c0] sm:$0xff]  ;;  %804 = vst [vmem:[%s13448_s8 + $0x12d0] sm:$0xff] %v803_v45 }
 0x140   : >> { %v807_v47 = vld [vmem:[%s13452_s9 + $0x25e0] sm:$0xff]  ;;  %806 = vst [vmem:[%s13448_s8 + $0x12e0] sm:$0xff] %v805_v46 }
 0x141   : >> { %v809_v48 = vld [vmem:[%s13452_s9 + $0x2600] sm:$0xff]  ;;  %808 = vst [vmem:[%s13448_s8 + $0x12f0] sm:$0xff] %v807_v47 }
 0x142   : >> { %v811_v49 = vld [vmem:[%s13452_s9 + $0x2620] sm:$0xff]  ;;  %810 = vst [vmem:[%s13448_s8 + $0x1300] sm:$0xff] %v809_v48 }
 0x143   : >> { %v813_v50 = vld [vmem:[%s13452_s9 + $0x2640] sm:$0xff]  ;;  %812 = vst [vmem:[%s13448_s8 + $0x1310] sm:$0xff] %v811_v49 }
 0x144   : >> { %v815_v51 = vld [vmem:[%s13452_s9 + $0x2660] sm:$0xff]  ;;  %814 = vst [vmem:[%s13448_s8 + $0x1320] sm:$0xff] %v813_v50 }
 0x145   : >> { %v817_v52 = vld [vmem:[%s13452_s9 + $0x2680] sm:$0xff]  ;;  %816 = vst [vmem:[%s13448_s8 + $0x1330] sm:$0xff] %v815_v51 }
 0x146   : >> { %v819_v53 = vld [vmem:[%s13452_s9 + $0x26a0] sm:$0xff]  ;;  %818 = vst [vmem:[%s13448_s8 + $0x1340] sm:$0xff] %v817_v52 }
 0x147   : >> { %v821_v54 = vld [vmem:[%s13452_s9 + $0x26c0] sm:$0xff]  ;;  %820 = vst [vmem:[%s13448_s8 + $0x1350] sm:$0xff] %v819_v53 }
 0x148   : >> { %v823_v55 = vld [vmem:[%s13452_s9 + $0x26e0] sm:$0xff]  ;;  %822 = vst [vmem:[%s13448_s8 + $0x1360] sm:$0xff] %v821_v54 }
 0x149   : >> { %v825_v56 = vld [vmem:[%s13452_s9 + $0x2700] sm:$0xff]  ;;  %824 = vst [vmem:[%s13448_s8 + $0x1370] sm:$0xff] %v823_v55 }
 0x14a   : >> { %v827_v57 = vld [vmem:[%s13452_s9 + $0x2720] sm:$0xff]  ;;  %826 = vst [vmem:[%s13448_s8 + $0x1380] sm:$0xff] %v825_v56 }
 0x14b   : >> { %v829_v58 = vld [vmem:[%s13452_s9 + $0x2740] sm:$0xff]  ;;  %828 = vst [vmem:[%s13448_s8 + $0x1390] sm:$0xff] %v827_v57 }
 0x14c   : >> { %v831_v59 = vld [vmem:[%s13452_s9 + $0x2760] sm:$0xff]  ;;  %830 = vst [vmem:[%s13448_s8 + $0x13a0] sm:$0xff] %v829_v58 }
 0x14d   : >> { %v833_v60 = vld [vmem:[%s13452_s9 + $0x2780] sm:$0xff]  ;;  %832 = vst [vmem:[%s13448_s8 + $0x13b0] sm:$0xff] %v831_v59 }
 0x14e   : >> { %v835_v61 = vld [vmem:[%s13452_s9 + $0x27a0] sm:$0xff]  ;;  %834 = vst [vmem:[%s13448_s8 + $0x13c0] sm:$0xff] %v833_v60 }
 0x14f   : >> { %v837_v62 = vld [vmem:[%s13452_s9 + $0x27c0] sm:$0xff]  ;;  %836 = vst [vmem:[%s13448_s8 + $0x13d0] sm:$0xff] %v835_v61 }
 0x150   : >> { %v839_v63 = vld [vmem:[%s13452_s9 + $0x27e0] sm:$0xff]  ;;  %838 = vst [vmem:[%s13448_s8 + $0x13e0] sm:$0xff] %v837_v62 }
 0x151   : >> { %v841_v0 = vld [vmem:[%s13452_s9 + $0x2800] sm:$0xff]  ;;  %840 = vst [vmem:[%s13448_s8 + $0x13f0] sm:$0xff] %v839_v63 }
 0x152   : >> { %v843_v1 = vld [vmem:[%s13452_s9 + $0x2820] sm:$0xff]  ;;  %842 = vst [vmem:[%s13448_s8 + $0x1400] sm:$0xff] %v841_v0 }
 0x153   : >> { %v845_v2 = vld [vmem:[%s13452_s9 + $0x2840] sm:$0xff]  ;;  %844 = vst [vmem:[%s13448_s8 + $0x1410] sm:$0xff] %v843_v1 }
 0x154   : >> { %v847_v3 = vld [vmem:[%s13452_s9 + $0x2860] sm:$0xff]  ;;  %846 = vst [vmem:[%s13448_s8 + $0x1420] sm:$0xff] %v845_v2 }
 0x155   : >> { %v849_v4 = vld [vmem:[%s13452_s9 + $0x2880] sm:$0xff]  ;;  %848 = vst [vmem:[%s13448_s8 + $0x1430] sm:$0xff] %v847_v3 }
 0x156   : >> { %v851_v5 = vld [vmem:[%s13452_s9 + $0x28a0] sm:$0xff]  ;;  %850 = vst [vmem:[%s13448_s8 + $0x1440] sm:$0xff] %v849_v4 }
 0x157   : >> { %v853_v6 = vld [vmem:[%s13452_s9 + $0x28c0] sm:$0xff]  ;;  %852 = vst [vmem:[%s13448_s8 + $0x1450] sm:$0xff] %v851_v5 }
 0x158   : >> { %v855_v7 = vld [vmem:[%s13452_s9 + $0x28e0] sm:$0xff]  ;;  %854 = vst [vmem:[%s13448_s8 + $0x1460] sm:$0xff] %v853_v6 }
 0x159   : >> { %v857_v8 = vld [vmem:[%s13452_s9 + $0x2900] sm:$0xff]  ;;  %856 = vst [vmem:[%s13448_s8 + $0x1470] sm:$0xff] %v855_v7 }
 0x15a   : >> { %v859_v9 = vld [vmem:[%s13452_s9 + $0x2920] sm:$0xff]  ;;  %858 = vst [vmem:[%s13448_s8 + $0x1480] sm:$0xff] %v857_v8 }
 0x15b   : >> { %v861_v10 = vld [vmem:[%s13452_s9 + $0x2940] sm:$0xff]  ;;  %860 = vst [vmem:[%s13448_s8 + $0x1490] sm:$0xff] %v859_v9 }
 0x15c   : >> { %v863_v11 = vld [vmem:[%s13452_s9 + $0x2960] sm:$0xff]  ;;  %862 = vst [vmem:[%s13448_s8 + $0x14a0] sm:$0xff] %v861_v10 }
 0x15d   : >> { %v865_v12 = vld [vmem:[%s13452_s9 + $0x2980] sm:$0xff]  ;;  %864 = vst [vmem:[%s13448_s8 + $0x14b0] sm:$0xff] %v863_v11 }
 0x15e   : >> { %v867_v13 = vld [vmem:[%s13452_s9 + $0x29a0] sm:$0xff]  ;;  %866 = vst [vmem:[%s13448_s8 + $0x14c0] sm:$0xff] %v865_v12 }
 0x15f   : >> { %v869_v14 = vld [vmem:[%s13452_s9 + $0x29c0] sm:$0xff]  ;;  %868 = vst [vmem:[%s13448_s8 + $0x14d0] sm:$0xff] %v867_v13 }
 0x160   : >> { %v871_v15 = vld [vmem:[%s13452_s9 + $0x29e0] sm:$0xff]  ;;  %870 = vst [vmem:[%s13448_s8 + $0x14e0] sm:$0xff] %v869_v14 }
 0x161   : >> { %v873_v16 = vld [vmem:[%s13452_s9 + $0x2a00] sm:$0xff]  ;;  %872 = vst [vmem:[%s13448_s8 + $0x14f0] sm:$0xff] %v871_v15 }
 0x162   : >> { %v875_v17 = vld [vmem:[%s13452_s9 + $0x2a20] sm:$0xff]  ;;  %874 = vst [vmem:[%s13448_s8 + $0x1500] sm:$0xff] %v873_v16 }
 0x163   : >> { %v877_v18 = vld [vmem:[%s13452_s9 + $0x2a40] sm:$0xff]  ;;  %876 = vst [vmem:[%s13448_s8 + $0x1510] sm:$0xff] %v875_v17 }
 0x164   : >> { %v879_v19 = vld [vmem:[%s13452_s9 + $0x2a60] sm:$0xff]  ;;  %878 = vst [vmem:[%s13448_s8 + $0x1520] sm:$0xff] %v877_v18 }
 0x165   : >> { %v881_v20 = vld [vmem:[%s13452_s9 + $0x2a80] sm:$0xff]  ;;  %880 = vst [vmem:[%s13448_s8 + $0x1530] sm:$0xff] %v879_v19 }
 0x166   : >> { %v883_v21 = vld [vmem:[%s13452_s9 + $0x2aa0] sm:$0xff]  ;;  %882 = vst [vmem:[%s13448_s8 + $0x1540] sm:$0xff] %v881_v20 }
 0x167   : >> { %v885_v22 = vld [vmem:[%s13452_s9 + $0x2ac0] sm:$0xff]  ;;  %884 = vst [vmem:[%s13448_s8 + $0x1550] sm:$0xff] %v883_v21 }
 0x168   : >> { %v887_v23 = vld [vmem:[%s13452_s9 + $0x2ae0] sm:$0xff]  ;;  %886 = vst [vmem:[%s13448_s8 + $0x1560] sm:$0xff] %v885_v22 }
 0x169   : >> { %v889_v24 = vld [vmem:[%s13452_s9 + $0x2b00] sm:$0xff]  ;;  %888 = vst [vmem:[%s13448_s8 + $0x1570] sm:$0xff] %v887_v23 }
 0x16a   : >> { %v891_v25 = vld [vmem:[%s13452_s9 + $0x2b20] sm:$0xff]  ;;  %890 = vst [vmem:[%s13448_s8 + $0x1580] sm:$0xff] %v889_v24 }
 0x16b   : >> { %v893_v26 = vld [vmem:[%s13452_s9 + $0x2b40] sm:$0xff]  ;;  %892 = vst [vmem:[%s13448_s8 + $0x1590] sm:$0xff] %v891_v25 }
 0x16c   : >> { %v895_v27 = vld [vmem:[%s13452_s9 + $0x2b60] sm:$0xff]  ;;  %894 = vst [vmem:[%s13448_s8 + $0x15a0] sm:$0xff] %v893_v26 }
 0x16d   : >> { %v897_v28 = vld [vmem:[%s13452_s9 + $0x2b80] sm:$0xff]  ;;  %896 = vst [vmem:[%s13448_s8 + $0x15b0] sm:$0xff] %v895_v27 }
 0x16e   : >> { %v899_v29 = vld [vmem:[%s13452_s9 + $0x2ba0] sm:$0xff]  ;;  %898 = vst [vmem:[%s13448_s8 + $0x15c0] sm:$0xff] %v897_v28 }
 0x16f   : >> { %v901_v30 = vld [vmem:[%s13452_s9 + $0x2bc0] sm:$0xff]  ;;  %900 = vst [vmem:[%s13448_s8 + $0x15d0] sm:$0xff] %v899_v29 }
 0x170   : >> { %v903_v31 = vld [vmem:[%s13452_s9 + $0x2be0] sm:$0xff]  ;;  %902 = vst [vmem:[%s13448_s8 + $0x15e0] sm:$0xff] %v901_v30 }
 0x171   : >> { %v905_v32 = vld [vmem:[%s13452_s9 + $0x2c00] sm:$0xff]  ;;  %904 = vst [vmem:[%s13448_s8 + $0x15f0] sm:$0xff] %v903_v31 }
 0x172   : >> { %v907_v33 = vld [vmem:[%s13452_s9 + $0x2c20] sm:$0xff]  ;;  %906 = vst [vmem:[%s13448_s8 + $0x1600] sm:$0xff] %v905_v32 }
 0x173   : >> { %v909_v34 = vld [vmem:[%s13452_s9 + $0x2c40] sm:$0xff]  ;;  %908 = vst [vmem:[%s13448_s8 + $0x1610] sm:$0xff] %v907_v33 }
 0x174   : >> { %v911_v35 = vld [vmem:[%s13452_s9 + $0x2c60] sm:$0xff]  ;;  %910 = vst [vmem:[%s13448_s8 + $0x1620] sm:$0xff] %v909_v34 }
 0x175   : >> { %v913_v36 = vld [vmem:[%s13452_s9 + $0x2c80] sm:$0xff]  ;;  %912 = vst [vmem:[%s13448_s8 + $0x1630] sm:$0xff] %v911_v35 }
 0x176   : >> { %v915_v37 = vld [vmem:[%s13452_s9 + $0x2ca0] sm:$0xff]  ;;  %914 = vst [vmem:[%s13448_s8 + $0x1640] sm:$0xff] %v913_v36 }
 0x177   : >> { %v917_v38 = vld [vmem:[%s13452_s9 + $0x2cc0] sm:$0xff]  ;;  %916 = vst [vmem:[%s13448_s8 + $0x1650] sm:$0xff] %v915_v37 }
 0x178   : >> { %v919_v39 = vld [vmem:[%s13452_s9 + $0x2ce0] sm:$0xff]  ;;  %918 = vst [vmem:[%s13448_s8 + $0x1660] sm:$0xff] %v917_v38 }
 0x179   : >> { %v921_v40 = vld [vmem:[%s13452_s9 + $0x2d00] sm:$0xff]  ;;  %920 = vst [vmem:[%s13448_s8 + $0x1670] sm:$0xff] %v919_v39 }
 0x17a   : >> { %v923_v41 = vld [vmem:[%s13452_s9 + $0x2d20] sm:$0xff]  ;;  %922 = vst [vmem:[%s13448_s8 + $0x1680] sm:$0xff] %v921_v40 }
 0x17b   : >> { %v925_v42 = vld [vmem:[%s13452_s9 + $0x2d40] sm:$0xff]  ;;  %924 = vst [vmem:[%s13448_s8 + $0x1690] sm:$0xff] %v923_v41 }
 0x17c   : >> { %v927_v43 = vld [vmem:[%s13452_s9 + $0x2d60] sm:$0xff]  ;;  %926 = vst [vmem:[%s13448_s8 + $0x16a0] sm:$0xff] %v925_v42 }
 0x17d   : >> { %v929_v44 = vld [vmem:[%s13452_s9 + $0x2d80] sm:$0xff]  ;;  %928 = vst [vmem:[%s13448_s8 + $0x16b0] sm:$0xff] %v927_v43 }
 0x17e   : >> { %v931_v45 = vld [vmem:[%s13452_s9 + $0x2da0] sm:$0xff]  ;;  %930 = vst [vmem:[%s13448_s8 + $0x16c0] sm:$0xff] %v929_v44 }
 0x17f   : >> { %v933_v46 = vld [vmem:[%s13452_s9 + $0x2dc0] sm:$0xff]  ;;  %932 = vst [vmem:[%s13448_s8 + $0x16d0] sm:$0xff] %v931_v45 }
 0x180   : >> { %v935_v47 = vld [vmem:[%s13452_s9 + $0x2de0] sm:$0xff]  ;;  %934 = vst [vmem:[%s13448_s8 + $0x16e0] sm:$0xff] %v933_v46 }
 0x181   : >> { %v937_v48 = vld [vmem:[%s13452_s9 + $0x2e00] sm:$0xff]  ;;  %936 = vst [vmem:[%s13448_s8 + $0x16f0] sm:$0xff] %v935_v47 }
 0x182   : >> { %v939_v49 = vld [vmem:[%s13452_s9 + $0x2e20] sm:$0xff]  ;;  %938 = vst [vmem:[%s13448_s8 + $0x1700] sm:$0xff] %v937_v48 }
 0x183   : >> { %v941_v50 = vld [vmem:[%s13452_s9 + $0x2e40] sm:$0xff]  ;;  %940 = vst [vmem:[%s13448_s8 + $0x1710] sm:$0xff] %v939_v49 }
 0x184   : >> { %v943_v51 = vld [vmem:[%s13452_s9 + $0x2e60] sm:$0xff]  ;;  %942 = vst [vmem:[%s13448_s8 + $0x1720] sm:$0xff] %v941_v50 }
 0x185   : >> { %v945_v52 = vld [vmem:[%s13452_s9 + $0x2e80] sm:$0xff]  ;;  %944 = vst [vmem:[%s13448_s8 + $0x1730] sm:$0xff] %v943_v51 }
 0x186   : >> { %v947_v53 = vld [vmem:[%s13452_s9 + $0x2ea0] sm:$0xff]  ;;  %946 = vst [vmem:[%s13448_s8 + $0x1740] sm:$0xff] %v945_v52 }
 0x187   : >> { %v949_v54 = vld [vmem:[%s13452_s9 + $0x2ec0] sm:$0xff]  ;;  %948 = vst [vmem:[%s13448_s8 + $0x1750] sm:$0xff] %v947_v53 }
 0x188   : >> { %v951_v55 = vld [vmem:[%s13452_s9 + $0x2ee0] sm:$0xff]  ;;  %950 = vst [vmem:[%s13448_s8 + $0x1760] sm:$0xff] %v949_v54 }
 0x189   : >> { %v953_v56 = vld [vmem:[%s13452_s9 + $0x2f00] sm:$0xff]  ;;  %952 = vst [vmem:[%s13448_s8 + $0x1770] sm:$0xff] %v951_v55 }
 0x18a   : >> { %v955_v57 = vld [vmem:[%s13452_s9 + $0x2f20] sm:$0xff]  ;;  %954 = vst [vmem:[%s13448_s8 + $0x1780] sm:$0xff] %v953_v56 }
 0x18b   : >> { %v957_v58 = vld [vmem:[%s13452_s9 + $0x2f40] sm:$0xff]  ;;  %956 = vst [vmem:[%s13448_s8 + $0x1790] sm:$0xff] %v955_v57 }
 0x18c   : >> { %v959_v59 = vld [vmem:[%s13452_s9 + $0x2f60] sm:$0xff]  ;;  %958 = vst [vmem:[%s13448_s8 + $0x17a0] sm:$0xff] %v957_v58 }
 0x18d   : >> { %v961_v60 = vld [vmem:[%s13452_s9 + $0x2f80] sm:$0xff]  ;;  %960 = vst [vmem:[%s13448_s8 + $0x17b0] sm:$0xff] %v959_v59 }
 0x18e   : >> { %v963_v61 = vld [vmem:[%s13452_s9 + $0x2fa0] sm:$0xff]  ;;  %962 = vst [vmem:[%s13448_s8 + $0x17c0] sm:$0xff] %v961_v60 }
 0x18f   : >> { %v965_v62 = vld [vmem:[%s13452_s9 + $0x2fc0] sm:$0xff]  ;;  %964 = vst [vmem:[%s13448_s8 + $0x17d0] sm:$0xff] %v963_v61 }
 0x190   : >> { %v967_v63 = vld [vmem:[%s13452_s9 + $0x2fe0] sm:$0xff]  ;;  %966 = vst [vmem:[%s13448_s8 + $0x17e0] sm:$0xff] %v965_v62 }
 0x191   : >> { %v969_v0 = vld [vmem:[%s13452_s9 + $0x3000] sm:$0xff]  ;;  %968 = vst [vmem:[%s13448_s8 + $0x17f0] sm:$0xff] %v967_v63 }
 0x192   : >> { %v971_v1 = vld [vmem:[%s13452_s9 + $0x3020] sm:$0xff]  ;;  %970 = vst [vmem:[%s13448_s8 + $0x1800] sm:$0xff] %v969_v0 }
 0x193   : >> { %v973_v2 = vld [vmem:[%s13452_s9 + $0x3040] sm:$0xff]  ;;  %972 = vst [vmem:[%s13448_s8 + $0x1810] sm:$0xff] %v971_v1 }
 0x194   : >> { %v975_v3 = vld [vmem:[%s13452_s9 + $0x3060] sm:$0xff]  ;;  %974 = vst [vmem:[%s13448_s8 + $0x1820] sm:$0xff] %v973_v2 }
 0x195   : >> { %v977_v4 = vld [vmem:[%s13452_s9 + $0x3080] sm:$0xff]  ;;  %976 = vst [vmem:[%s13448_s8 + $0x1830] sm:$0xff] %v975_v3  ;;  %196 = sbr.rel (!%p194_p6) target bundleno = 17 (0x11), region = 125 }
 0x196   : >> { %v979_v5 = vld [vmem:[%s13452_s9 + $0x30a0] sm:$0xff]  ;;  %978 = vst [vmem:[%s13448_s8 + $0x1840] sm:$0xff] %v977_v4 }
 0x197   : >> { %v981_v6 = vld [vmem:[%s13452_s9 + $0x30c0] sm:$0xff]  ;;  %980 = vst [vmem:[%s13448_s8 + $0x1850] sm:$0xff] %v979_v5 }
 0x198   : >> { %v983_v7 = vld [vmem:[%s13452_s9 + $0x30e0] sm:$0xff]  ;;  %982 = vst [vmem:[%s13448_s8 + $0x1860] sm:$0xff] %v981_v6  ;;  %s16228_s9 = smov %s14094_s14 }
 0x199   : >> { %984 = vst [vmem:[%s13448_s8 + $0x1870] sm:$0xff] %v983_v7  ;;  %s16227_s8 = smov %s14098_s15 }
 0x19a PF: > { %p9202_p7 = scmp.ge.s32.totalorder %s13444_s20, 1  ;;  %p2609_p8 = scmp.lt.s32.totalorder %s13444_s20, 3 }
 0x19c   : > { %p2610_p9 = pnand %p9202_p7, %p2609_p8 }
 0x19d   : > { %s2616_s16 = sand.u32 (!%p2610_p9), 1, %s13436_s18   ;;  %s9203_s17 = sshll.u32 (!%p2610_p9), %s13510_s21, 2 }
 0x19e   : > { %2613 = sbr.rel (%p2610_p9) target bundleno = 1780 (0x6f4), region = 73  ;;  %p2649_p10 = scmp.lt.s32.totalorder (!%p2610_p9), %s9203_s17, 7 }
 0x19f   : > { %s13298_s23 = smul.u32 (!%p2610_p9), 6272, %s2616_s16  ;;  %s9204_s24 = sshll.u32 (!%p2610_p9), %s13510_s21, 6 }
 0x1a0   : > { %p2654_p11 = scmp.lt.s32.totalorder (!%p2610_p9), %s9204_s24, 127  ;;  %p9206_p12 = scmp.ne.s32.totalorder (!%p2610_p9), %s13510_s21, 0 }
 0x1a1   : > { %s14380_s7 = scalar_lea.vmem (!%p2610_p9), [#allocation3], %s13298_s23 }
 0x1a3   : > { %s16236_s17 = smov (!%p2649_p10, %s9203_s17), 7  ;;  %s16238_s24 = smov (!%p2654_p11, %s9204_s24), 127 }
 0x1a4   : > { %s14373_s28 = scalar_lea.vmem %s16221_s2, %s16236_s17  ;;  %s9205_s29 = sshll.u32 %s16238_s24, 2 }
 0x1a5   : > { %s14378_s6 = scalar_lea.vmem %s16222_s3, %s9205_s29  ;;  %2663 = sbr.rel (%p9206_p12) target bundleno = 428 (0x1ac), region = 81 }
 0x1aa   : > { %v13462_v8 = vmov 0.0  }
 0x1ab   : > { %2664 = vst [vmem:[#allocation2] sm:$0x3] %v13462_v8 }
 0x1ac PF: > { %v9321_v9 = vld [vmem:[%s14380_s7 + $0xe0] sm:$0xf]  ;;  %v12511_v10 = vld [vmem:[%s14380_s7 + $0xec] sm:$0xf0]  ;;  %vm7440_vm0 = vcmask 523264   ;;  %p12475_p13 = scmp.ne.s32.totalorder %s13510_s21, 1 }
 0x1ad   : > { %v9449_v11 = vld [vmem:[%s14380_s7 + $0x1e0] sm:$0xf]  ;;  %v9322_v12 = vor.u32 %v12511_v10, %v9321_v9  ;;  %v12543_v13 = vld [vmem:[%s14380_s7 + $0x1ec] sm:$0xf0] }
 0x1ae   : > { %v9577_v14 = vld [vmem:[%s14380_s7 + $0x2e0] sm:$0xf]  ;;  %v12575_v15 = vld [vmem:[%s14380_s7 + $0x2ec] sm:$0xf0]  ;;  %v9450_v16 = vor.u32 %v12543_v13, %v9449_v11 }
 0x1af   : > { %v9578_v17 = vor.u32 %v12575_v15, %v9577_v14  ;;  %v9705_v18 = vld [vmem:[%s14380_s7 + $0x3e0] sm:$0xf]  ;;  %v12607_v19 = vld [vmem:[%s14380_s7 + $0x3ec] sm:$0xf0]  ;;  %7443 = vmatpush.bf16.msra.mxu0 %v9322_v12 }
 0x1b0   : > { %v9305_v20 = vld [vmem:[%s14380_s7 + $0xc0] sm:$0xf]  ;;  %v9706_v21 = vor.u32 %v12607_v19, %v9705_v18  ;;  %v12507_v22 = vld [vmem:[%s14380_s7 + $0xcc] sm:$0xf0]  ;;  %7456 = vmatpush.bf16.msra.mxu1 %v9450_v16 }
 0x1b1   : > { %v9433_v23 = vld [vmem:[%s14380_s7 + $0x1c0] sm:$0xf]  ;;  %v12539_v24 = vld [vmem:[%s14380_s7 + $0x1cc] sm:$0xf0]  ;;  %7469 = vmatpush.bf16.msra.mxu2 %v9578_v17  ;;  %v9306_v25 = vor.u32 %v12507_v22, %v9305_v20 }
 0x1b2   : > { %v9434_v26 = vor.u32 %v12539_v24, %v9433_v23  ;;  %v9561_v27 = vld [vmem:[%s14380_s7 + $0x2c0] sm:$0xf]  ;;  %v12571_v28 = vld [vmem:[%s14380_s7 + $0x2cc] sm:$0xf0]  ;;  %7482 = vmatpush.bf16.msra.mxu3 %v9706_v21 }
 0x1b3   : > { %v9689_v29 = vld [vmem:[%s14380_s7 + $0x3c0] sm:$0xf]  ;;  %v9562_v30 = vor.u32 %v12571_v28, %v9561_v27  ;;  %v12603_v31 = vld [vmem:[%s14380_s7 + $0x3cc] sm:$0xf0]  ;;  %7444 = vmatpush.bf16.msra.mxu0 %v9306_v25 }
 0x1b4   : > { %v9289_v32 = vld [vmem:[%s14380_s7 + $0xa0] sm:$0xf]  ;;  %v12503_v33 = vld [vmem:[%s14380_s7 + $0xac] sm:$0xf0]  ;;  %v9690_v34 = vor.u32 %v12603_v31, %v9689_v29  ;;  %7457 = vmatpush.bf16.msra.mxu1 %v9434_v26 }
 0x1b5   : > { %v9417_v35 = vld [vmem:[%s14380_s7 + $0x1a0] sm:$0xf]  ;;  %v12535_v36 = vld [vmem:[%s14380_s7 + $0x1ac] sm:$0xf0]  ;;  %v9290_v38 = vor.u32 %v12503_v33, %v9289_v32  ;;  %7470 = vmatpush.bf16.msra.mxu2 %v9562_v30 }
 0x1b6   : > { %v9545_v37 = vld [vmem:[%s14380_s7 + $0x2a0] sm:$0xf]  ;;  %v12567_v39 = vld [vmem:[%s14380_s7 + $0x2ac] sm:$0xf0]  ;;  %v9418_v42 = vor.u32 %v12535_v36, %v9417_v35  ;;  %7483 = vmatpush.bf16.msra.mxu3 %v9690_v34 }
 0x1b7   : > { %v9673_v40 = vld [vmem:[%s14380_s7 + $0x3a0] sm:$0xf]  ;;  %v12599_v41 = vld [vmem:[%s14380_s7 + $0x3ac] sm:$0xf0]  ;;  %v9546_v43 = vor.u32 %v12567_v39, %v9545_v37  ;;  %7445 = vmatpush.bf16.msra.mxu0 %v9290_v38 }
 0x1b8   : > { %v9273_v44 = vld [vmem:[%s14380_s7 + $0x80] sm:$0xf]  ;;  %v12499_v45 = vld [vmem:[%s14380_s7 + $0x8c] sm:$0xf0]  ;;  %v9674_v47 = vor.u32 %v12599_v41, %v9673_v40  ;;  %7458 = vmatpush.bf16.msra.mxu1 %v9418_v42 }
 0x1b9   : > { %v9401_v46 = vld [vmem:[%s14380_s7 + $0x180] sm:$0xf]  ;;  %v12531_v48 = vld [vmem:[%s14380_s7 + $0x18c] sm:$0xf0]  ;;  %v9274_v53 = vor.u32 %v12499_v45, %v9273_v44  ;;  %7471 = vmatpush.bf16.msra.mxu2 %v9546_v43 }
 0x1ba   : > { %v9529_v49 = vld [vmem:[%s14380_s7 + $0x280] sm:$0xf]  ;;  %v12563_v50 = vld [vmem:[%s14380_s7 + $0x28c] sm:$0xf0]  ;;  %v9402_v54 = vor.u32 %v12531_v48, %v9401_v46  ;;  %7484 = vmatpush.bf16.msra.mxu3 %v9674_v47 }
 0x1bb   : > { %v9657_v51 = vld [vmem:[%s14380_s7 + $0x380] sm:$0xf]  ;;  %v12595_v52 = vld [vmem:[%s14380_s7 + $0x38c] sm:$0xf0]  ;;  %v9530_v55 = vor.u32 %v12563_v50, %v9529_v49  ;;  %7446 = vmatpush.bf16.msra.mxu0 %v9274_v53 }
 0x1bc   : > { %v9257_v56 = vld [vmem:[%s14380_s7 + $0x60] sm:$0xf]  ;;  %v12495_v57 = vld [vmem:[%s14380_s7 + $0x6c] sm:$0xf0]  ;;  %v9658_v59 = vor.u32 %v12595_v52, %v9657_v51  ;;  %7459 = vmatpush.bf16.msra.mxu1 %v9402_v54 }
 0x1bd   : > { %v9385_v58 = vld [vmem:[%s14380_s7 + $0x160] sm:$0xf]  ;;  %v12527_v60 = vld [vmem:[%s14380_s7 + $0x16c] sm:$0xf0]  ;;  %v9258_v1 = vor.u32 %v12495_v57, %v9257_v56  ;;  %7472 = vmatpush.bf16.msra.mxu2 %v9530_v55 }
 0x1be   : > { %v9513_v61 = vld [vmem:[%s14380_s7 + $0x260] sm:$0xf]  ;;  %v12559_v62 = vld [vmem:[%s14380_s7 + $0x26c] sm:$0xf0]  ;;  %v9386_v2 = vor.u32 %v12527_v60, %v9385_v58  ;;  %7485 = vmatpush.bf16.msra.mxu3 %v9658_v59 }
 0x1bf   : > { %v9641_v63 = vld [vmem:[%s14380_s7 + $0x360] sm:$0xf]  ;;  %v12591_v0 = vld [vmem:[%s14380_s7 + $0x36c] sm:$0xf0]  ;;  %v9514_v3 = vor.u32 %v12559_v62, %v9513_v61  ;;  %7447 = vmatpush.bf16.msra.mxu0 %v9258_v1 }
 0x1c0   : > { %v9241_v4 = vld [vmem:[%s14380_s7 + $0x40] sm:$0xf]  ;;  %v12491_v5 = vld [vmem:[%s14380_s7 + $0x4c] sm:$0xf0]  ;;  %v9642_v7 = vor.u32 %v12591_v0, %v9641_v63  ;;  %7460 = vmatpush.bf16.msra.mxu1 %v9386_v2 }
 0x1c1   : > { %v9369_v6 = vld [vmem:[%s14380_s7 + $0x140] sm:$0xf]  ;;  %v12523_v8 = vld [vmem:[%s14380_s7 + $0x14c] sm:$0xf0]  ;;  %v9242_v13 = vor.u32 %v12491_v5, %v9241_v4  ;;  %7473 = vmatpush.bf16.msra.mxu2 %v9514_v3  ;;  %v2665_v4 = vld [vmem:[%s16219_s0] sm:$0xff] }
 0x1c2   : > { %v9497_v9 = vld [vmem:[%s14380_s7 + $0x240] sm:$0xf]  ;;  %v12555_v10 = vld [vmem:[%s14380_s7 + $0x24c] sm:$0xf0]  ;;  %v9370_v14 = vor.u32 %v12523_v8, %v9369_v6  ;;  %7486 = vmatpush.bf16.msra.mxu3 %v9642_v7  ;;  %3464 = vst [vmem:[#allocation1] ss:$9 sm:$0xff] %v2665_v4 }
 0x1c3   : > { %v9625_v11 = vld [vmem:[%s14380_s7 + $0x340] sm:$0xf]  ;;  %v12587_v12 = vld [vmem:[%s14380_s7 + $0x34c] sm:$0xf0]  ;;  %v9498_v15 = vor.u32 %v12555_v10, %v9497_v9  ;;  %7448 = vmatpush.bf16.msra.mxu0 %v9242_v13 }
 0x1c4   : > { %v9225_v16 = vld [vmem:[%s14380_s7 + $0x20] sm:$0xf]  ;;  %v12487_v17 = vld [vmem:[%s14380_s7 + $0x2c] sm:$0xf0]  ;;  %v9626_v19 = vor.u32 %v12587_v12, %v9625_v11  ;;  %7461 = vmatpush.bf16.msra.mxu1 %v9370_v14 }
 0x1c5   : > { %v9353_v18 = vld [vmem:[%s14380_s7 + $0x120] sm:$0xf]  ;;  %v12519_v20 = vld [vmem:[%s14380_s7 + $0x12c] sm:$0xf0]  ;;  %v9226_v25 = vor.u32 %v12487_v17, %v9225_v16  ;;  %7474 = vmatpush.bf16.msra.mxu2 %v9498_v15 }
 0x1c6   : > { %v9481_v21 = vld [vmem:[%s14380_s7 + $0x220] sm:$0xf]  ;;  %v12551_v22 = vld [vmem:[%s14380_s7 + $0x22c] sm:$0xf0]  ;;  %v9354_v28 = vor.u32 %v12519_v20, %v9353_v18  ;;  %7487 = vmatpush.bf16.msra.mxu3 %v9626_v19 }
 0x1c7   : > { %v9609_v23 = vld [vmem:[%s14380_s7 + $0x320] sm:$0xf]  ;;  %v12583_v24 = vld [vmem:[%s14380_s7 + $0x32c] sm:$0xf0]  ;;  %v9482_v29 = vor.u32 %v12551_v22, %v9481_v21  ;;  %7449 = vmatpush.bf16.msra.mxu0 %v9226_v25 }
 0x1c8   : > { %v9209_v26 = vld [vmem:[%s14380_s7] sm:$0xf]  ;;  %v12483_v27 = vld [vmem:[%s14380_s7 + $0xc] sm:$0xf0]  ;;  %v9610_v33 = vor.u32 %v12583_v24, %v9609_v23  ;;  %7462 = vmatpush.bf16.msra.mxu1 %v9354_v28 }
 0x1c9   : > { %v9337_v30 = vld [vmem:[%s14380_s7 + $0x100] sm:$0xf]  ;;  %v12515_v31 = vld [vmem:[%s14380_s7 + $0x10c] sm:$0xf0]  ;;  %v9210_v40 = vor.u32 %v12483_v27, %v9209_v26  ;;  %7475 = vmatpush.bf16.msra.mxu2 %v9482_v29  ;;  %v14486_v29 = vld [vmem:[#allocation1 + $0x12] sm:$0xff] }
 0x1ca   : > { %v9465_v32 = vld [vmem:[%s14380_s7 + $0x200] sm:$0xf]  ;;  %v12547_v34 = vld [vmem:[%s14380_s7 + $0x20c] sm:$0xf0]  ;;  %v9338_v44 = vor.u32 %v12515_v31, %v9337_v30  ;;  %7488 = vmatpush.bf16.msra.mxu3 %v9610_v33  ;;  %v14488_v30 = vld [vmem:[#allocation1] sm:$0xff] }
 0x1cb   : > { %v9593_v35 = vld [vmem:[%s14380_s7 + $0x300] sm:$0xf]  ;;  %v12579_v36 = vld [vmem:[%s14380_s7 + $0x30c] sm:$0xf0]  ;;  %v9466_v45 = vor.u32 %v12547_v34, %v9465_v32  ;;  %7450 = vmatpush.bf16.msra.mxu0 %v9210_v40 }
 0x1cc   : > { %v9833_v37 = vld [vmem:[%s14380_s7 + $0x4e0] sm:$0xf]  ;;  %v12639_v38 = vld [vmem:[%s14380_s7 + $0x4ec] sm:$0xf0]  ;;  %v9594_v48 = vor.u32 %v12579_v36, %v9593_v35  ;;  %7463 = vmatpush.bf16.msra.mxu1 %v9338_v44 }
 0x1cd   : > { %v9961_v39 = vld [vmem:[%s14380_s7 + $0x5e0] sm:$0xf]  ;;  %v12671_v41 = vld [vmem:[%s14380_s7 + $0x5ec] sm:$0xf0]  ;;  %v9834_v49 = vor.u32 %v12639_v38, %v9833_v37  ;;  %7476 = vmatpush.bf16.msra.mxu2 %v9466_v45 }
 0x1ce   : > { %v10089_v42 = vld [vmem:[%s14380_s7 + $0x6e0] sm:$0xf]  ;;  %v12703_v43 = vld [vmem:[%s14380_s7 + $0x6ec] sm:$0xf0]  ;;  %v9962_v50 = vor.u32 %v12671_v41, %v9961_v39  ;;  %7489 = vmatpush.bf16.msra.mxu3 %v9594_v48  ;;  %7451 = vmatmul.bf16.vlgmr.msra.gmra.mxu0 %v14488_v30 }
 0x1cf   : > { %v10217_v46 = vld [vmem:[%s14380_s7 + $0x7e0] sm:$0xf]  ;;  %v12735_v47 = vld [vmem:[%s14380_s7 + $0x7ec] sm:$0xf0]  ;;  %v10090_v51 = vor.u32 %v12703_v43, %v10089_v42  ;;  %7495 = vmatpush.bf16.msrb.mxu0 %v9834_v49 }
 0x1d0   : > { %v9817_v52 = vld [vmem:[%s14380_s7 + $0x4c0] sm:$0xf]  ;;  %v12635_v53 = vld [vmem:[%s14380_s7 + $0x4cc] sm:$0xf0]  ;;  %v10218_v55 = vor.u32 %v12735_v47, %v10217_v46  ;;  %7508 = vmatpush.bf16.msrb.mxu1 %v9962_v50  ;;  %7477 = vmatmul.bf16.vlgmr.msra.gmra.mxu2 %v14486_v29 }
 0x1d1   : > { %v9945_v54 = vld [vmem:[%s14380_s7 + $0x5c0] sm:$0xf]  ;;  %v12667_v56 = vld [vmem:[%s14380_s7 + $0x5cc] sm:$0xf0]  ;;  %v9818_v61 = vor.u32 %v12635_v53, %v9817_v52  ;;  %7521 = vmatpush.bf16.msrb.mxu2 %v10090_v51 }
 0x1d2   : > { %v10073_v57 = vld [vmem:[%s14380_s7 + $0x6c0] sm:$0xf]  ;;  %v12699_v58 = vld [vmem:[%s14380_s7 + $0x6cc] sm:$0xf0]  ;;  %v9946_v0 = vor.u32 %v12667_v56, %v9945_v54  ;;  %7534 = vmatpush.bf16.msrb.mxu3 %v10218_v55 }
 0x1d3   : > { %v10201_v59 = vld [vmem:[%s14380_s7 + $0x7c0] sm:$0xf]  ;;  %v12731_v60 = vld [vmem:[%s14380_s7 + $0x7cc] sm:$0xf0]  ;;  %v10074_v1 = vor.u32 %v12699_v58, %v10073_v57  ;;  %7496 = vmatpush.bf16.msrb.mxu0 %v9818_v61 }
 0x1d4   : > { %v9801_v62 = vld [vmem:[%s14380_s7 + $0x4a0] sm:$0xf]  ;;  %v12631_v63 = vld [vmem:[%s14380_s7 + $0x4ac] sm:$0xf0]  ;;  %v10202_v5 = vor.u32 %v12731_v60, %v10201_v59  ;;  %7509 = vmatpush.bf16.msrb.mxu1 %v9946_v0 }
 0x1d5   : > { %v9929_v2 = vld [vmem:[%s14380_s7 + $0x5a0] sm:$0xf]  ;;  %v12663_v3 = vld [vmem:[%s14380_s7 + $0x5ac] sm:$0xf0]  ;;  %v9802_v10 = vor.u32 %v12631_v63, %v9801_v62  ;;  %7522 = vmatpush.bf16.msrb.mxu2 %v10074_v1 }
 0x1d6   : > { %v10057_v6 = vld [vmem:[%s14380_s7 + $0x6a0] sm:$0xf]  ;;  %v12695_v7 = vld [vmem:[%s14380_s7 + $0x6ac] sm:$0xf0]  ;;  %v9930_v11 = vor.u32 %v12663_v3, %v9929_v2  ;;  %7535 = vmatpush.bf16.msrb.mxu3 %v10202_v5 }
 0x1d7   : > { %v10185_v8 = vld [vmem:[%s14380_s7 + $0x7a0] sm:$0xf]  ;;  %v12727_v9 = vld [vmem:[%s14380_s7 + $0x7ac] sm:$0xf0]  ;;  %v10058_v12 = vor.u32 %v12695_v7, %v10057_v6  ;;  %7497 = vmatpush.bf16.msrb.mxu0 %v9802_v10  ;;  %v14531_v10 = vld [vmem:[#allocation1 + $0x3f] sm:$0xff] }
 0x1d8   : > { %v9785_v13 = vld [vmem:[%s14380_s7 + $0x480] sm:$0xf]  ;;  %v12627_v14 = vld [vmem:[%s14380_s7 + $0x48c] sm:$0xf0]  ;;  %v10186_v16 = vor.u32 %v12727_v9, %v10185_v8  ;;  %7510 = vmatpush.bf16.msrb.mxu1 %v9930_v11 }
 0x1d9   : > { %v9913_v15 = vld [vmem:[%s14380_s7 + $0x580] sm:$0xf]  ;;  %v12659_v17 = vld [vmem:[%s14380_s7 + $0x58c] sm:$0xf0]  ;;  %v9786_v23 = vor.u32 %v12627_v14, %v9785_v13  ;;  %7523 = vmatpush.bf16.msrb.mxu2 %v10058_v12 }
 0x1da   : > { %v10041_v18 = vld [vmem:[%s14380_s7 + $0x680] sm:$0xf]  ;;  %v12691_v19 = vld [vmem:[%s14380_s7 + $0x68c] sm:$0xf0]  ;;  %v9914_v27 = vor.u32 %v12659_v17, %v9913_v15  ;;  %7536 = vmatpush.bf16.msrb.mxu3 %v10186_v16 }
 0x1db   : > { %v10169_v20 = vld [vmem:[%s14380_s7 + $0x780] sm:$0xf]  ;;  %v12723_v21 = vld [vmem:[%s14380_s7 + $0x78c] sm:$0xf0]  ;;  %v10042_v28 = vor.u32 %v12691_v19, %v10041_v18  ;;  %7498 = vmatpush.bf16.msrb.mxu0 %v9786_v23 }
 0x1dc   : > { %v9769_v22 = vld [vmem:[%s14380_s7 + $0x460] sm:$0xf]  ;;  %v12623_v24 = vld [vmem:[%s14380_s7 + $0x46c] sm:$0xf0]  ;;  %v10170_v32 = vor.u32 %v12723_v21, %v10169_v20  ;;  %7511 = vmatpush.bf16.msrb.mxu1 %v9914_v27 }
 0x1dd   : > { %v9897_v25 = vld [vmem:[%s14380_s7 + $0x560] sm:$0xf]  ;;  %v12655_v26 = vld [vmem:[%s14380_s7 + $0x56c] sm:$0xf0]  ;;  %v9770_v38 = vor.u32 %v12623_v24, %v9769_v22  ;;  %7524 = vmatpush.bf16.msrb.mxu2 %v10042_v28 }
 0x1de   : > { %v14490_v31 = vld [vmem:[#allocation1 + $0x1b] sm:$0xff]  ;;  %v10025_v33 = vld [vmem:[%s14380_s7 + $0x660] sm:$0xf]  ;;  %v9898_v39 = vor.u32 %v12655_v26, %v9897_v25  ;;  %7537 = vmatpush.bf16.msrb.mxu3 %v10170_v32 }
 0x1df   : > { %v12687_v34 = vld [vmem:[%s14380_s7 + $0x66c] sm:$0xf0]  ;;  %v14495_v35 = vld [vmem:[#allocation1 + $0x9] sm:$0xff]  ;;  %7490 = vmatmul.bf16.vlgmr.msra.gmra.mxu3 %v14490_v31  ;;  %7499 = vmatpush.bf16.msrb.mxu0 %v9770_v38 }
 0x1e0   : > { %v10153_v36 = vld [vmem:[%s14380_s7 + $0x760] sm:$0xf]  ;;  %v12719_v37 = vld [vmem:[%s14380_s7 + $0x76c] sm:$0xf0]  ;;  %7464 = vmatmul.bf16.vlgmr.msra.gmra.mxu1 %v14495_v35  ;;  %v10026_v40 = vor.u32 %v12687_v34, %v10025_v33 }
 0x1e1   : > { %v9753_v41 = vld [vmem:[%s14380_s7 + $0x440] sm:$0xf]  ;;  %v12619_v42 = vld [vmem:[%s14380_s7 + $0x44c] sm:$0xf0]  ;;  %v10154_v44 = vor.u32 %v12719_v37, %v10153_v36  ;;  %7512 = vmatpush.bf16.msrb.mxu1 %v9898_v39 }
 0x1e2   : > { %v9881_v43 = vld [vmem:[%s14380_s7 + $0x540] sm:$0xf]  ;;  %v12651_v45 = vld [vmem:[%s14380_s7 + $0x54c] sm:$0xf0]  ;;  %v9754_v50 = vor.u32 %v12619_v42, %v9753_v41  ;;  %7525 = vmatpush.bf16.msrb.mxu2 %v10026_v40 }
 0x1e3   : > { %v10009_v46 = vld [vmem:[%s14380_s7 + $0x640] sm:$0xf]  ;;  %v12683_v47 = vld [vmem:[%s14380_s7 + $0x64c] sm:$0xf0]  ;;  %v9882_v52 = vor.u32 %v12651_v45, %v9881_v43  ;;  %7538 = vmatpush.bf16.msrb.mxu3 %v10154_v44 }
 0x1e4   : > { %v10137_v48 = vld [vmem:[%s14380_s7 + $0x740] sm:$0xf]  ;;  %v12715_v49 = vld [vmem:[%s14380_s7 + $0x74c] sm:$0xf0]  ;;  %v10010_v53 = vor.u32 %v12683_v47, %v10009_v46  ;;  %7500 = vmatpush.bf16.msrb.mxu0 %v9754_v50 }
 0x1e5   : > { %v9737_v51 = vld [vmem:[%s14380_s7 + $0x420] sm:$0xf]  ;;  %v12615_v54 = vld [vmem:[%s14380_s7 + $0x42c] sm:$0xf0]  ;;  %v10138_v57 = vor.u32 %v12715_v49, %v10137_v48  ;;  %7513 = vmatpush.bf16.msrb.mxu1 %v9882_v52 }
 0x1e6   : > { %v9865_v55 = vld [vmem:[%s14380_s7 + $0x520] sm:$0xf]  ;;  %v12647_v56 = vld [vmem:[%s14380_s7 + $0x52c] sm:$0xf0]  ;;  %v9738_v0 = vor.u32 %v12615_v54, %v9737_v51  ;;  %7526 = vmatpush.bf16.msrb.mxu2 %v10010_v53 }
 0x1e7   : > { %v9993_v58 = vld [vmem:[%s14380_s7 + $0x620] sm:$0xf]  ;;  %v12679_v59 = vld [vmem:[%s14380_s7 + $0x62c] sm:$0xf0]  ;;  %v9866_v7 = vor.u32 %v12647_v56, %v9865_v55  ;;  %7539 = vmatpush.bf16.msrb.mxu3 %v10138_v57 }
 0x1e8   : > { %v10121_v60 = vld [vmem:[%s14380_s7 + $0x720] sm:$0xf]  ;;  %v12711_v61 = vld [vmem:[%s14380_s7 + $0x72c] sm:$0xf0]  ;;  %v9994_v8 = vor.u32 %v12679_v59, %v9993_v58  ;;  %7501 = vmatpush.bf16.msrb.mxu0 %v9738_v0 }
 0x1e9   : > { %v9721_v62 = vld [vmem:[%s14380_s7 + $0x400] sm:$0xf]  ;;  %v12611_v63 = vld [vmem:[%s14380_s7 + $0x40c] sm:$0xf0]  ;;  %v10122_v12 = vor.u32 %v12711_v61, %v10121_v60  ;;  %7514 = vmatpush.bf16.msrb.mxu1 %v9866_v7 }
 0x1ea   : > { %v9849_v1 = vld [vmem:[%s14380_s7 + $0x500] sm:$0xf]  ;;  %v12643_v2 = vld [vmem:[%s14380_s7 + $0x50c] sm:$0xf0]  ;;  %v9722_v18 = vor.u32 %v12611_v63, %v9721_v62  ;;  %7527 = vmatpush.bf16.msrb.mxu2 %v9994_v8 }
 0x1eb   : > { %v9977_v3 = vld [vmem:[%s14380_s7 + $0x600] sm:$0xf]  ;;  %v12675_v4 = vld [vmem:[%s14380_s7 + $0x60c] sm:$0xf0]  ;;  %v9850_v22 = vor.u32 %v12643_v2, %v9849_v1  ;;  %7540 = vmatpush.bf16.msrb.mxu3 %v10122_v12 }
 0x1ec   : > { %v14524_v5 = vld [vmem:[#allocation1 + $0x36] sm:$0xff]  ;;  %v2666_v6 = vld [vmem:[%s16219_s0 + $0x8] sm:$0xff]  ;;  %v9978_v23 = vor.u32 %v12675_v4, %v9977_v3  ;;  %7502 = vmatpush.bf16.msrb.mxu0 %v9722_v18 }
 0x1ed   : > { %v14529_v9 = vld [vmem:[#allocation1 + $0x24] sm:$0xff]  ;;  %v14533_v11 = vld [vmem:[#allocation1 + $0x2d] sm:$0xff]  ;;  %v12707_v14 = vld [vmem:[%s14380_s7 + $0x70c] sm:$0xf0]  ;;  %7515 = vmatpush.bf16.msrb.mxu1 %v9850_v22 }
 0x1ee   : > { %v10105_v13 = vld [vmem:[%s14380_s7 + $0x700] sm:$0xf]  ;;  %3474 = vst [vmem:[#allocation1] ss:$9 sm:$0xff] %v2666_v6  ;;  %v12767_v16 = vld [vmem:[%s14380_s7 + $0x8ec] sm:$0xf0]  ;;  %7528 = vmatpush.bf16.msrb.mxu2 %v9978_v23 }
 0x1ef   : > { %v10345_v15 = vld [vmem:[%s14380_s7 + $0x8e0] sm:$0xf]  ;;  %v12799_v19 = vld [vmem:[%s14380_s7 + $0x9ec] sm:$0xf0]  ;;  %v10106_v26 = vor.u32 %v12707_v14, %v10105_v13  ;;  %7503 = vmatmul.bf16.vlgmr.msrb.gmra.mxu0 %v14529_v9 }
 0x1f0   : > { %v10473_v17 = vld [vmem:[%s14380_s7 + $0x9e0] sm:$0xf]  ;;  %v12831_v21 = vld [vmem:[%s14380_s7 + $0xaec] sm:$0xf0]  ;;  %v10346_v27 = vor.u32 %v12767_v16, %v10345_v15  ;;  %7516 = vmatmul.bf16.vlgmr.msrb.gmra.mxu1 %v14533_v11 }
 0x1f1   : > { %v10601_v20 = vld [vmem:[%s14380_s7 + $0xae0] sm:$0xf]  ;;  %v12863_v25 = vld [vmem:[%s14380_s7 + $0xbec] sm:$0xf0]  ;;  %v10474_v28 = vor.u32 %v12799_v19, %v10473_v17  ;;  %7541 = vmatpush.bf16.msrb.mxu3 %v10106_v26  ;;  %7529 = vmatmul.bf16.vlgmr.msrb.gmra.mxu2 %v14524_v5 }
 0x1f2   : > { %v10729_v24 = vld [vmem:[%s14380_s7 + $0xbe0] sm:$0xf]  ;;  %v10602_v32 = vor.u32 %v12831_v21, %v10601_v20  ;;  %v12763_v34 = vld [vmem:[%s14380_s7 + $0x8cc] sm:$0xf0]  ;;  %7547 = vmatpush.bf16.msra.mxu0 %v10346_v27 }
 0x1f3   : > { %v10329_v33 = vld [vmem:[%s14380_s7 + $0x8c0] sm:$0xf]  ;;  %v10730_v37 = vor.u32 %v12863_v25, %v10729_v24  ;;  %v12795_v38 = vld [vmem:[%s14380_s7 + $0x9cc] sm:$0xf0]  ;;  %7560 = vmatpush.bf16.msra.mxu1 %v10474_v28 }
 0x1f4   : > { %v10457_v36 = vld [vmem:[%s14380_s7 + $0x9c0] sm:$0xf]  ;;  %v12827_v40 = vld [vmem:[%s14380_s7 + $0xacc] sm:$0xf0]  ;;  %v10330_v43 = vor.u32 %v12763_v34, %v10329_v33  ;;  %7573 = vmatpush.bf16.msra.mxu2 %v10602_v32  ;;  %7542 = vmatmul.bf16.vlgmr.msrb.gmra.mxu3 %v14531_v10 }
 0x1f5   : > { %v10585_v39 = vld [vmem:[%s14380_s7 + $0xac0] sm:$0xf]  ;;  %v12859_v42 = vld [vmem:[%s14380_s7 + $0xbcc] sm:$0xf0]  ;;  %v10458_v44 = vor.u32 %v12795_v38, %v10457_v36  ;;  %7586 = vmatpush.bf16.msra.mxu3 %v10730_v37 }
 0x1f6   : > { %v10713_v41 = vld [vmem:[%s14380_s7 + $0xbc0] sm:$0xf]  ;;  %v10586_v45 = vor.u32 %v12827_v40, %v10585_v39  ;;  %v12759_v47 = vld [vmem:[%s14380_s7 + $0x8ac] sm:$0xf0]  ;;  %7548 = vmatpush.bf16.msra.mxu0 %v10330_v43 }
 0x1f7   : > { %v10313_v46 = vld [vmem:[%s14380_s7 + $0x8a0] sm:$0xf]  ;;  %v10714_v49 = vor.u32 %v12859_v42, %v10713_v41  ;;  %v12791_v50 = vld [vmem:[%s14380_s7 + $0x9ac] sm:$0xf0]  ;;  %7561 = vmatpush.bf16.msra.mxu1 %v10458_v44 }
 0x1f8   : > { %v10441_v48 = vld [vmem:[%s14380_s7 + $0x9a0] sm:$0xf]  ;;  %v12823_v52 = vld [vmem:[%s14380_s7 + $0xaac] sm:$0xf0]  ;;  %v10314_v55 = vor.u32 %v12759_v47, %v10313_v46  ;;  %7574 = vmatpush.bf16.msra.mxu2 %v10586_v45 }
 0x1f9   : > { %v10569_v51 = vld [vmem:[%s14380_s7 + $0xaa0] sm:$0xf]  ;;  %v12855_v54 = vld [vmem:[%s14380_s7 + $0xbac] sm:$0xf0]  ;;  %v10442_v56 = vor.u32 %v12791_v50, %v10441_v48  ;;  %7587 = vmatpush.bf16.msra.mxu3 %v10714_v49 }
 0x1fa   : > { %v10697_v53 = vld [vmem:[%s14380_s7 + $0xba0] sm:$0xf]  ;;  %v10570_v57 = vor.u32 %v12823_v52, %v10569_v51  ;;  %v12755_v59 = vld [vmem:[%s14380_s7 + $0x88c] sm:$0xf0]  ;;  %7549 = vmatpush.bf16.msra.mxu0 %v10314_v55 }
 0x1fb   : > { %v10297_v58 = vld [vmem:[%s14380_s7 + $0x880] sm:$0xf]  ;;  %v10698_v61 = vor.u32 %v12855_v54, %v10697_v53  ;;  %v12787_v62 = vld [vmem:[%s14380_s7 + $0x98c] sm:$0xf0]  ;;  %7562 = vmatpush.bf16.msra.mxu1 %v10442_v56 }
 0x1fc   : > { %v10425_v60 = vld [vmem:[%s14380_s7 + $0x980] sm:$0xf]  ;;  %v12819_v0 = vld [vmem:[%s14380_s7 + $0xa8c] sm:$0xf0]  ;;  %v10298_v3 = vor.u32 %v12755_v59, %v10297_v58  ;;  %7575 = vmatpush.bf16.msra.mxu2 %v10570_v57 }
 0x1fd   : > { %v10553_v63 = vld [vmem:[%s14380_s7 + $0xa80] sm:$0xf]  ;;  %v12851_v2 = vld [vmem:[%s14380_s7 + $0xb8c] sm:$0xf0]  ;;  %v10426_v4 = vor.u32 %v12787_v62, %v10425_v60  ;;  %7588 = vmatpush.bf16.msra.mxu3 %v10698_v61 }
 0x1fe   : > { %v10681_v1 = vld [vmem:[%s14380_s7 + $0xb80] sm:$0xf]  ;;  %v10554_v6 = vor.u32 %v12819_v0, %v10553_v63  ;;  %v12751_v8 = vld [vmem:[%s14380_s7 + $0x86c] sm:$0xf0]  ;;  %7550 = vmatpush.bf16.msra.mxu0 %v10298_v3 }
 0x1ff   : > { %v10281_v7 = vld [vmem:[%s14380_s7 + $0x860] sm:$0xf]  ;;  %v10682_v13 = vor.u32 %v12851_v2, %v10681_v1  ;;  %v12783_v14 = vld [vmem:[%s14380_s7 + $0x96c] sm:$0xf0]  ;;  %7563 = vmatpush.bf16.msra.mxu1 %v10426_v4 }
 0x200   : > { %v10409_v12 = vld [vmem:[%s14380_s7 + $0x960] sm:$0xf]  ;;  %v12815_v16 = vld [vmem:[%s14380_s7 + $0xa6c] sm:$0xf0]  ;;  %v10282_v19 = vor.u32 %v12751_v8, %v10281_v7  ;;  %7576 = vmatpush.bf16.msra.mxu2 %v10554_v6 }
 0x201   : > { %v10537_v15 = vld [vmem:[%s14380_s7 + $0xa60] sm:$0xf]  ;;  %v12847_v18 = vld [vmem:[%s14380_s7 + $0xb6c] sm:$0xf0]  ;;  %v10410_v20 = vor.u32 %v12783_v14, %v10409_v12  ;;  %7589 = vmatpush.bf16.msra.mxu3 %v10682_v13 }
 0x202   : > { %v10665_v17 = vld [vmem:[%s14380_s7 + $0xb60] sm:$0xf]  ;;  %v10538_v21 = vor.u32 %v12815_v16, %v10537_v15  ;;  %v12747_v23 = vld [vmem:[%s14380_s7 + $0x84c] sm:$0xf0]  ;;  %7551 = vmatpush.bf16.msra.mxu0 %v10282_v19 }
 0x203   : > { %v10265_v22 = vld [vmem:[%s14380_s7 + $0x840] sm:$0xf]  ;;  %v10666_v25 = vor.u32 %v12847_v18, %v10665_v17  ;;  %v12779_v26 = vld [vmem:[%s14380_s7 + $0x94c] sm:$0xf0]  ;;  %7564 = vmatpush.bf16.msra.mxu1 %v10410_v20 }
 0x204   : > { %v10393_v24 = vld [vmem:[%s14380_s7 + $0x940] sm:$0xf]  ;;  %v12811_v28 = vld [vmem:[%s14380_s7 + $0xa4c] sm:$0xf0]  ;;  %v10266_v34 = vor.u32 %v12747_v23, %v10265_v22  ;;  %7577 = vmatpush.bf16.msra.mxu2 %v10538_v21  ;;  %v14619_v21 = vld [vmem:[#allocation1] sm:$0xff] }
 0x205   : > { %v10521_v27 = vld [vmem:[%s14380_s7 + $0xa40] sm:$0xf]  ;;  %v12843_v33 = vld [vmem:[%s14380_s7 + $0xb4c] sm:$0xf0]  ;;  %v10394_v36 = vor.u32 %v12779_v26, %v10393_v24  ;;  %7590 = vmatpush.bf16.msra.mxu3 %v10666_v25  ;;  %v14623_v24 = vld [vmem:[#allocation1 + $0x12] sm:$0xff] }
 0x206   : > { %v10649_v32 = vld [vmem:[%s14380_s7 + $0xb40] sm:$0xf]  ;;  %v10522_v37 = vor.u32 %v12811_v28, %v10521_v27  ;;  %v12743_v39 = vld [vmem:[%s14380_s7 + $0x82c] sm:$0xf0]  ;;  %7552 = vmatpush.bf16.msra.mxu0 %v10266_v34 }
 0x207   : > { %v10249_v38 = vld [vmem:[%s14380_s7 + $0x820] sm:$0xf]  ;;  %v10650_v41 = vor.u32 %v12843_v33, %v10649_v32  ;;  %v12775_v42 = vld [vmem:[%s14380_s7 + $0x92c] sm:$0xf0]  ;;  %7565 = vmatpush.bf16.msra.mxu1 %v10394_v36 }
 0x208   : > { %v10377_v40 = vld [vmem:[%s14380_s7 + $0x920] sm:$0xf]  ;;  %v12807_v44 = vld [vmem:[%s14380_s7 + $0xa2c] sm:$0xf0]  ;;  %v10250_v47 = vor.u32 %v12743_v39, %v10249_v38  ;;  %7578 = vmatpush.bf16.msra.mxu2 %v10522_v37 }
 0x209   : > { %v10505_v43 = vld [vmem:[%s14380_s7 + $0xa20] sm:$0xf]  ;;  %v12839_v46 = vld [vmem:[%s14380_s7 + $0xb2c] sm:$0xf0]  ;;  %v10378_v50 = vor.u32 %v12775_v42, %v10377_v40  ;;  %7591 = vmatpush.bf16.msra.mxu3 %v10650_v41 }
 0x20a   : > { %v10633_v45 = vld [vmem:[%s14380_s7 + $0xb20] sm:$0xf]  ;;  %v12739_v49 = vld [vmem:[%s14380_s7 + $0x80c] sm:$0xf0]  ;;  %v10506_v51 = vor.u32 %v12807_v44, %v10505_v43  ;;  %7553 = vmatpush.bf16.msra.mxu0 %v10250_v47 }
 0x20b   : > { %v10233_v48 = vld [vmem:[%s14380_s7 + $0x800] sm:$0xf]  ;;  %v12771_v53 = vld [vmem:[%s14380_s7 + $0x90c] sm:$0xf0]  ;;  %v10634_v55 = vor.u32 %v12839_v46, %v10633_v45  ;;  %7566 = vmatpush.bf16.msra.mxu1 %v10378_v50 }
 0x20c   : > { %v10361_v52 = vld [vmem:[%s14380_s7 + $0x900] sm:$0xf]  ;;  %v12803_v56 = vld [vmem:[%s14380_s7 + $0xa0c] sm:$0xf0]  ;;  %v10234_v62 = vor.u32 %v12739_v49, %v10233_v48  ;;  %7579 = vmatpush.bf16.msra.mxu2 %v10506_v51 }
 0x20d   : > { %v10489_v54 = vld [vmem:[%s14380_s7 + $0xa00] sm:$0xf]  ;;  %v12835_v58 = vld [vmem:[%s14380_s7 + $0xb0c] sm:$0xf0]  ;;  %v10362_v2 = vor.u32 %v12771_v53, %v10361_v52  ;;  %7592 = vmatpush.bf16.msra.mxu3 %v10634_v55 }
 0x20e   : > { %v10617_v57 = vld [vmem:[%s14380_s7 + $0xb00] sm:$0xf]  ;;  %v12895_v60 = vld [vmem:[%s14380_s7 + $0xcec] sm:$0xf0]  ;;  %v10490_v3 = vor.u32 %v12803_v56, %v10489_v54  ;;  %7554 = vmatpush.bf16.msra.mxu0 %v10234_v62 }
 0x20f   : > { %v10857_v59 = vld [vmem:[%s14380_s7 + $0xce0] sm:$0xf]  ;;  %v12927_v63 = vld [vmem:[%s14380_s7 + $0xdec] sm:$0xf0]  ;;  %v10618_v7 = vor.u32 %v12835_v58, %v10617_v57  ;;  %7567 = vmatpush.bf16.msra.mxu1 %v10362_v2 }
 0x210   : > { %v10985_v61 = vld [vmem:[%s14380_s7 + $0xde0] sm:$0xf]  ;;  %v12959_v1 = vld [vmem:[%s14380_s7 + $0xeec] sm:$0xf0]  ;;  %v10858_v8 = vor.u32 %v12895_v60, %v10857_v59  ;;  %7580 = vmatpush.bf16.msra.mxu2 %v10490_v3 }
 0x211   : > { %v11113_v0 = vld [vmem:[%s14380_s7 + $0xee0] sm:$0xf]  ;;  %v12991_v6 = vld [vmem:[%s14380_s7 + $0xfec] sm:$0xf0]  ;;  %v10986_v12 = vor.u32 %v12927_v63, %v10985_v61  ;;  %7593 = vmatpush.bf16.msra.mxu3 %v10618_v7  ;;  %7555 = vmatmul.bf16.vlgmr.msra.gmra.mxu0 %v14619_v21 }
 0x212   : > { %v11241_v4 = vld [vmem:[%s14380_s7 + $0xfe0] sm:$0xf]  ;;  %v11114_v13 = vor.u32 %v12959_v1, %v11113_v0  ;;  %v12891_v15 = vld [vmem:[%s14380_s7 + $0xccc] sm:$0xf0]  ;;  %7599 = vmatpush.bf16.msrb.mxu0 %v10858_v8 }
 0x213   : > { %v10841_v14 = vld [vmem:[%s14380_s7 + $0xcc0] sm:$0xf]  ;;  %v11242_v17 = vor.u32 %v12991_v6, %v11241_v4  ;;  %v12923_v18 = vld [vmem:[%s14380_s7 + $0xdcc] sm:$0xf0]  ;;  %7612 = vmatpush.bf16.msrb.mxu1 %v10986_v12  ;;  %7581 = vmatmul.bf16.vlgmr.msra.gmra.mxu2 %v14623_v24 }
 0x214   : > { %v10969_v16 = vld [vmem:[%s14380_s7 + $0xdc0] sm:$0xf]  ;;  %v12955_v20 = vld [vmem:[%s14380_s7 + $0xecc] sm:$0xf0]  ;;  %v10842_v27 = vor.u32 %v12891_v15, %v10841_v14  ;;  %7625 = vmatpush.bf16.msrb.mxu2 %v11114_v13 }
 0x215   : > { %v11097_v19 = vld [vmem:[%s14380_s7 + $0xec0] sm:$0xf]  ;;  %v12987_v23 = vld [vmem:[%s14380_s7 + $0xfcc] sm:$0xf0]  ;;  %v10970_v28 = vor.u32 %v12923_v18, %v10969_v16  ;;  %7638 = vmatpush.bf16.msrb.mxu3 %v11242_v17 }
 0x216   : > { %v11225_v22 = vld [vmem:[%s14380_s7 + $0xfc0] sm:$0xf]  ;;  %v14627_v26 = vld [vmem:[#allocation1 + $0x1b] sm:$0xff]  ;;  %v11098_v32 = vor.u32 %v12955_v20, %v11097_v19  ;;  %7600 = vmatpush.bf16.msrb.mxu0 %v10842_v27 }
 0x217   : > { %v14625_v25 = vld [vmem:[#allocation1 + $0x9] sm:$0xff]  ;;  %v12887_v34 = vld [vmem:[%s14380_s7 + $0xcac] sm:$0xf0]  ;;  %v11226_v37 = vor.u32 %v12987_v23, %v11225_v22  ;;  %7594 = vmatmul.bf16.vlgmr.msra.gmra.mxu3 %v14627_v26  ;;  %7613 = vmatpush.bf16.msrb.mxu1 %v10970_v28 }
 0x218   : > { %v10825_v33 = vld [vmem:[%s14380_s7 + $0xca0] sm:$0xf]  ;;  %v12919_v38 = vld [vmem:[%s14380_s7 + $0xdac] sm:$0xf0]  ;;  %7568 = vmatmul.bf16.vlgmr.msra.gmra.mxu1 %v14625_v25  ;;  %7626 = vmatpush.bf16.msrb.mxu2 %v11098_v32 }
 0x219   : > { %v10953_v36 = vld [vmem:[%s14380_s7 + $0xda0] sm:$0xf]  ;;  %v12951_v40 = vld [vmem:[%s14380_s7 + $0xeac] sm:$0xf0]  ;;  %v10826_v43 = vor.u32 %v12887_v34, %v10825_v33  ;;  %7639 = vmatpush.bf16.msrb.mxu3 %v11226_v37 }
 0x21a   : > { %v11081_v39 = vld [vmem:[%s14380_s7 + $0xea0] sm:$0xf]  ;;  %v12983_v42 = vld [vmem:[%s14380_s7 + $0xfac] sm:$0xf0]  ;;  %v10954_v44 = vor.u32 %v12919_v38, %v10953_v36 }
 0x21b   : > { %v11209_v41 = vld [vmem:[%s14380_s7 + $0xfa0] sm:$0xf]  ;;  %v11082_v45 = vor.u32 %v12951_v40, %v11081_v39  ;;  %v12883_v47 = vld [vmem:[%s14380_s7 + $0xc8c] sm:$0xf0]  ;;  %7601 = vmatpush.bf16.msrb.mxu0 %v10826_v43 }
 0x21c   : > { %v10809_v46 = vld [vmem:[%s14380_s7 + $0xc80] sm:$0xf]  ;;  %v11210_v49 = vor.u32 %v12983_v42, %v11209_v41  ;;  %v12915_v50 = vld [vmem:[%s14380_s7 + $0xd8c] sm:$0xf0]  ;;  %7614 = vmatpush.bf16.msrb.mxu1 %v10954_v44 }
 0x21d   : > { %v10937_v48 = vld [vmem:[%s14380_s7 + $0xd80] sm:$0xf]  ;;  %v12947_v52 = vld [vmem:[%s14380_s7 + $0xe8c] sm:$0xf0]  ;;  %v10810_v55 = vor.u32 %v12883_v47, %v10809_v46  ;;  %7627 = vmatpush.bf16.msrb.mxu2 %v11082_v45 }
 0x21e   : > { %v11065_v51 = vld [vmem:[%s14380_s7 + $0xe80] sm:$0xf]  ;;  %v12979_v54 = vld [vmem:[%s14380_s7 + $0xf8c] sm:$0xf0]  ;;  %v10938_v56 = vor.u32 %v12915_v50, %v10937_v48  ;;  %7640 = vmatpush.bf16.msrb.mxu3 %v11210_v49 }
 0x21f   : > { %v11193_v53 = vld [vmem:[%s14380_s7 + $0xf80] sm:$0xf]  ;;  %v11066_v57 = vor.u32 %v12947_v52, %v11065_v51  ;;  %v12879_v59 = vld [vmem:[%s14380_s7 + $0xc6c] sm:$0xf0]  ;;  %7602 = vmatpush.bf16.msrb.mxu0 %v10810_v55 }
 0x220   : > { %v10793_v58 = vld [vmem:[%s14380_s7 + $0xc60] sm:$0xf]  ;;  %v11194_v61 = vor.u32 %v12979_v54, %v11193_v53  ;;  %v12911_v62 = vld [vmem:[%s14380_s7 + $0xd6c] sm:$0xf0]  ;;  %7615 = vmatpush.bf16.msrb.mxu1 %v10938_v56 }
 0x221   : > { %v10921_v60 = vld [vmem:[%s14380_s7 + $0xd60] sm:$0xf]  ;;  %v12943_v0 = vld [vmem:[%s14380_s7 + $0xe6c] sm:$0xf0]  ;;  %v10794_v3 = vor.u32 %v12879_v59, %v10793_v58  ;;  %7628 = vmatpush.bf16.msrb.mxu2 %v11066_v57  ;;  %v14691_v58 = vld [vmem:[#allocation1 + $0x3f] sm:$0xff] }
 0x222   : > { %v11049_v63 = vld [vmem:[%s14380_s7 + $0xe60] sm:$0xf]  ;;  %v12975_v2 = vld [vmem:[%s14380_s7 + $0xf6c] sm:$0xf0]  ;;  %v10922_v4 = vor.u32 %v12911_v62, %v10921_v60  ;;  %7641 = vmatpush.bf16.msrb.mxu3 %v11194_v61  ;;  %v2667_v59 = vld [vmem:[%s16219_s0 + $0x10] sm:$0xff] }
 0x223   : > { %v11177_v1 = vld [vmem:[%s14380_s7 + $0xf60] sm:$0xf]  ;;  %v11050_v6 = vor.u32 %v12943_v0, %v11049_v63  ;;  %v12875_v8 = vld [vmem:[%s14380_s7 + $0xc4c] sm:$0xf0]  ;;  %7603 = vmatpush.bf16.msrb.mxu0 %v10794_v3 }
 0x224   : > { %v10777_v7 = vld [vmem:[%s14380_s7 + $0xc40] sm:$0xf]  ;;  %v11178_v13 = vor.u32 %v12975_v2, %v11177_v1  ;;  %v12907_v14 = vld [vmem:[%s14380_s7 + $0xd4c] sm:$0xf0]  ;;  %7616 = vmatpush.bf16.msrb.mxu1 %v10922_v4 }
 0x225   : > { %v10905_v12 = vld [vmem:[%s14380_s7 + $0xd40] sm:$0xf]  ;;  %v12939_v16 = vld [vmem:[%s14380_s7 + $0xe4c] sm:$0xf0]  ;;  %v10778_v19 = vor.u32 %v12875_v8, %v10777_v7  ;;  %7629 = vmatpush.bf16.msrb.mxu2 %v11050_v6 }
 0x226   : > { %v11033_v15 = vld [vmem:[%s14380_s7 + $0xe40] sm:$0xf]  ;;  %v12971_v18 = vld [vmem:[%s14380_s7 + $0xf4c] sm:$0xf0]  ;;  %v10906_v22 = vor.u32 %v12907_v14, %v10905_v12  ;;  %7642 = vmatpush.bf16.msrb.mxu3 %v11178_v13 }
 0x227   : > { %v11161_v17 = vld [vmem:[%s14380_s7 + $0xf40] sm:$0xf]  ;;  %v11034_v23 = vor.u32 %v12939_v16, %v11033_v15  ;;  %v12871_v27 = vld [vmem:[%s14380_s7 + $0xc2c] sm:$0xf0]  ;;  %7604 = vmatpush.bf16.msrb.mxu0 %v10778_v19 }
 0x228   : > { %v10761_v20 = vld [vmem:[%s14380_s7 + $0xc20] sm:$0xf]  ;;  %v12903_v32 = vld [vmem:[%s14380_s7 + $0xd2c] sm:$0xf0]  ;;  %v11162_v33 = vor.u32 %v12971_v18, %v11161_v17  ;;  %7617 = vmatpush.bf16.msrb.mxu1 %v10906_v22 }
 0x229   : > { %v10889_v28 = vld [vmem:[%s14380_s7 + $0xd20] sm:$0xf]  ;;  %v12935_v36 = vld [vmem:[%s14380_s7 + $0xe2c] sm:$0xf0]  ;;  %v10762_v41 = vor.u32 %v12871_v27, %v10761_v20  ;;  %7630 = vmatpush.bf16.msrb.mxu2 %v11034_v23 }
 0x22a   : > { %v11017_v34 = vld [vmem:[%s14380_s7 + $0xe20] sm:$0xf]  ;;  %v12967_v38 = vld [vmem:[%s14380_s7 + $0xf2c] sm:$0xf0]  ;;  %v10890_v46 = vor.u32 %v12903_v32, %v10889_v28  ;;  %7643 = vmatpush.bf16.msrb.mxu3 %v11162_v33 }
 0x22b   : > { %v11145_v37 = vld [vmem:[%s14380_s7 + $0xf20] sm:$0xf]  ;;  %v12867_v40 = vld [vmem:[%s14380_s7 + $0xc0c] sm:$0xf0]  ;;  %v11018_v47 = vor.u32 %v12935_v36, %v11017_v34  ;;  %7605 = vmatpush.bf16.msrb.mxu0 %v10762_v41 }
 0x22c   : > { %v10745_v39 = vld [vmem:[%s14380_s7 + $0xc00] sm:$0xf]  ;;  %v12899_v43 = vld [vmem:[%s14380_s7 + $0xd0c] sm:$0xf0]  ;;  %v11146_v52 = vor.u32 %v12967_v38, %v11145_v37  ;;  %7618 = vmatpush.bf16.msrb.mxu1 %v10890_v46 }
 0x22d   : > { %v10873_v42 = vld [vmem:[%s14380_s7 + $0xd00] sm:$0xf]  ;;  %v12931_v45 = vld [vmem:[%s14380_s7 + $0xe0c] sm:$0xf0]  ;;  %v10746_v60 = vor.u32 %v12867_v40, %v10745_v39  ;;  %7631 = vmatpush.bf16.msrb.mxu2 %v11018_v47 }
 0x22e   : > { %v11001_v44 = vld [vmem:[%s14380_s7 + $0xe00] sm:$0xf]  ;;  %v12963_v49 = vld [vmem:[%s14380_s7 + $0xf0c] sm:$0xf0]  ;;  %v10874_v63 = vor.u32 %v12899_v43, %v10873_v42  ;;  %7644 = vmatpush.bf16.msrb.mxu3 %v11146_v52 }
 0x22f   : > { %v11129_v48 = vld [vmem:[%s14380_s7 + $0xf00] sm:$0xf]  ;;  %v13023_v51 = vld [vmem:[%s14380_s7 + $0x10ec] sm:$0xf0]  ;;  %v11002_v0 = vor.u32 %v12931_v45, %v11001_v44  ;;  %7606 = vmatpush.bf16.msrb.mxu0 %v10746_v60 }
 0x230   : > { %v11369_v50 = vld [vmem:[%s14380_s7 + $0x10e0] sm:$0xf]  ;;  %v13055_v54 = vld [vmem:[%s14380_s7 + $0x11ec] sm:$0xf0]  ;;  %v11130_v3 = vor.u32 %v12963_v49, %v11129_v48  ;;  %7619 = vmatpush.bf16.msrb.mxu1 %v10874_v63 }
 0x231   : > { %v11497_v53 = vld [vmem:[%s14380_s7 + $0x11e0] sm:$0xf]  ;;  %v14687_v56 = vld [vmem:[#allocation1 + $0x36] sm:$0xff]  ;;  %v11370_v4 = vor.u32 %v13023_v51, %v11369_v50  ;;  %7632 = vmatpush.bf16.msrb.mxu2 %v11002_v0 }
 0x232   : > { %v14685_v55 = vld [vmem:[#allocation1 + $0x24] sm:$0xff]  ;;  %v14689_v57 = vld [vmem:[#allocation1 + $0x2d] sm:$0xff]  ;;  %v13087_v62 = vld [vmem:[%s14380_s7 + $0x12ec] sm:$0xf0]  ;;  %v11498_v6 = vor.u32 %v13055_v54, %v11497_v53  ;;  %7645 = vmatpush.bf16.msrb.mxu3 %v11130_v3 }
 0x233   : > { %v11625_v61 = vld [vmem:[%s14380_s7 + $0x12e0] sm:$0xf]  ;;  %3484 = vst [vmem:[#allocation1] ss:$9 sm:$0xff] %v2667_v59  ;;  %v13119_v2 = vld [vmem:[%s14380_s7 + $0x13ec] sm:$0xf0]  ;;  %7651 = vmatpush.bf16.msra.mxu0 %v11370_v4  ;;  %7620 = vmatmul.bf16.vlgmr.msrb.gmra.mxu1 %v14689_v57 }
 0x234   : > { %v11753_v1 = vld [vmem:[%s14380_s7 + $0x13e0] sm:$0xf]  ;;  %v11626_v7 = vor.u32 %v13087_v62, %v11625_v61  ;;  %v13019_v12 = vld [vmem:[%s14380_s7 + $0x10cc] sm:$0xf0]  ;;  %7664 = vmatpush.bf16.msra.mxu1 %v11498_v6  ;;  %7607 = vmatmul.bf16.vlgmr.msrb.gmra.mxu0 %v14685_v55 }
 0x235   : > { %v11353_v8 = vld [vmem:[%s14380_s7 + $0x10c0] sm:$0xf]  ;;  %v11754_v14 = vor.u32 %v13119_v2, %v11753_v1  ;;  %v13051_v15 = vld [vmem:[%s14380_s7 + $0x11cc] sm:$0xf0]  ;;  %7633 = vmatmul.bf16.vlgmr.msrb.gmra.mxu2 %v14687_v56  ;;  %7646 = vmatmul.bf16.vlgmr.msrb.gmra.mxu3 %v14691_v58 }
 0x236   : > { %v11481_v13 = vld [vmem:[%s14380_s7 + $0x11c0] sm:$0xf]  ;;  %v13083_v17 = vld [vmem:[%s14380_s7 + $0x12cc] sm:$0xf0]  ;;  %v11354_v20 = vor.u32 %v13019_v12, %v11353_v8  ;;  %7677 = vmatpush.bf16.msra.mxu2 %v11626_v7 }
 0x237   : > { %v11609_v16 = vld [vmem:[%s14380_s7 + $0x12c0] sm:$0xf]  ;;  %v13115_v19 = vld [vmem:[%s14380_s7 + $0x13cc] sm:$0xf0]  ;;  %v11482_v22 = vor.u32 %v13051_v15, %v11481_v13  ;;  %7690 = vmatpush.bf16.msra.mxu3 %v11754_v14 }
 0x238   : > { %v11737_v18 = vld [vmem:[%s14380_s7 + $0x13c0] sm:$0xf]  ;;  %v11610_v23 = vor.u32 %v13083_v17, %v11609_v16  ;;  %v13015_v28 = vld [vmem:[%s14380_s7 + $0x10ac] sm:$0xf0]  ;;  %7652 = vmatpush.bf16.msra.mxu0 %v11354_v20 }
 0x239   : > { %v11337_v27 = vld [vmem:[%s14380_s7 + $0x10a0] sm:$0xf]  ;;  %v11738_v33 = vor.u32 %v13115_v19, %v11737_v18  ;;  %v13047_v34 = vld [vmem:[%s14380_s7 + $0x11ac] sm:$0xf0]  ;;  %7665 = vmatpush.bf16.msra.mxu1 %v11482_v22 }
 0x23a   : > { %v11465_v32 = vld [vmem:[%s14380_s7 + $0x11a0] sm:$0xf]  ;;  %v13079_v37 = vld [vmem:[%s14380_s7 + $0x12ac] sm:$0xf0]  ;;  %v11338_v40 = vor.u32 %v13015_v28, %v11337_v27  ;;  %7678 = vmatpush.bf16.msra.mxu2 %v11610_v23 }
 0x23b   : > { %v11593_v36 = vld [vmem:[%s14380_s7 + $0x12a0] sm:$0xf]  ;;  %v13111_v39 = vld [vmem:[%s14380_s7 + $0x13ac] sm:$0xf0]  ;;  %v11466_v41 = vor.u32 %v13047_v34, %v11465_v32  ;;  %7691 = vmatpush.bf16.msra.mxu3 %v11738_v33 }
 0x23c   : > { %v11721_v38 = vld [vmem:[%s14380_s7 + $0x13a0] sm:$0xf]  ;;  %v11594_v42 = vor.u32 %v13079_v37, %v11593_v36  ;;  %v13011_v44 = vld [vmem:[%s14380_s7 + $0x108c] sm:$0xf0]  ;;  %7653 = vmatpush.bf16.msra.mxu0 %v11338_v40 }
 0x23d   : > { %v11321_v43 = vld [vmem:[%s14380_s7 + $0x1080] sm:$0xf]  ;;  %v11722_v46 = vor.u32 %v13111_v39, %v11721_v38  ;;  %v13043_v47 = vld [vmem:[%s14380_s7 + $0x118c] sm:$0xf0]  ;;  %7666 = vmatpush.bf16.msra.mxu1 %v11466_v41 }
 0x23e   : > { %v11449_v45 = vld [vmem:[%s14380_s7 + $0x1180] sm:$0xf]  ;;  %v13075_v49 = vld [vmem:[%s14380_s7 + $0x128c] sm:$0xf0]  ;;  %v11322_v52 = vor.u32 %v13011_v44, %v11321_v43  ;;  %7679 = vmatpush.bf16.msra.mxu2 %v11594_v42 }
 0x23f   : > { %v11577_v48 = vld [vmem:[%s14380_s7 + $0x1280] sm:$0xf]  ;;  %v13107_v51 = vld [vmem:[%s14380_s7 + $0x138c] sm:$0xf0]  ;;  %v11450_v53 = vor.u32 %v13043_v47, %v11449_v45  ;;  %7692 = vmatpush.bf16.msra.mxu3 %v11722_v46 }
 0x240   : > { %v11705_v50 = vld [vmem:[%s14380_s7 + $0x1380] sm:$0xf]  ;;  %v11578_v54 = vor.u32 %v13075_v49, %v11577_v48  ;;  %v13007_v60 = vld [vmem:[%s14380_s7 + $0x106c] sm:$0xf0]  ;;  %7654 = vmatpush.bf16.msra.mxu0 %v11322_v52 }
 0x241   : > { %v11305_v59 = vld [vmem:[%s14380_s7 + $0x1060] sm:$0xf]  ;;  %v11706_v62 = vor.u32 %v13107_v51, %v11705_v50  ;;  %v13039_v63 = vld [vmem:[%s14380_s7 + $0x116c] sm:$0xf0]  ;;  %7667 = vmatpush.bf16.msra.mxu1 %v11450_v53 }
 0x242   : > { %v11433_v61 = vld [vmem:[%s14380_s7 + $0x1160] sm:$0xf]  ;;  %v13071_v1 = vld [vmem:[%s14380_s7 + $0x126c] sm:$0xf0]  ;;  %v11306_v4 = vor.u32 %v13007_v60, %v11305_v59  ;;  %7680 = vmatpush.bf16.msra.mxu2 %v11578_v54 }
 0x243   : > { %v11561_v0 = vld [vmem:[%s14380_s7 + $0x1260] sm:$0xf]  ;;  %v13103_v3 = vld [vmem:[%s14380_s7 + $0x136c] sm:$0xf0]  ;;  %v11434_v6 = vor.u32 %v13039_v63, %v11433_v61  ;;  %7693 = vmatpush.bf16.msra.mxu3 %v11706_v62 }
 0x244   : > { %v11689_v2 = vld [vmem:[%s14380_s7 + $0x1360] sm:$0xf]  ;;  %v11562_v7 = vor.u32 %v13071_v1, %v11561_v0  ;;  %v13003_v12 = vld [vmem:[%s14380_s7 + $0x104c] sm:$0xf0]  ;;  %7655 = vmatpush.bf16.msra.mxu0 %v11306_v4 }
 0x245   : > { %v11289_v8 = vld [vmem:[%s14380_s7 + $0x1040] sm:$0xf]  ;;  %v11690_v14 = vor.u32 %v13103_v3, %v11689_v2  ;;  %v13035_v15 = vld [vmem:[%s14380_s7 + $0x114c] sm:$0xf0]  ;;  %7668 = vmatpush.bf16.msra.mxu1 %v11434_v6 }
 0x246   : > { %v11417_v13 = vld [vmem:[%s14380_s7 + $0x1140] sm:$0xf]  ;;  %v13067_v17 = vld [vmem:[%s14380_s7 + $0x124c] sm:$0xf0]  ;;  %v11290_v20 = vor.u32 %v13003_v12, %v11289_v8  ;;  %7681 = vmatpush.bf16.msra.mxu2 %v11562_v7 }
 0x247   : > { %v11545_v16 = vld [vmem:[%s14380_s7 + $0x1240] sm:$0xf]  ;;  %v13099_v19 = vld [vmem:[%s14380_s7 + $0x134c] sm:$0xf0]  ;;  %v11418_v22 = vor.u32 %v13035_v15, %v11417_v13  ;;  %7694 = vmatpush.bf16.msra.mxu3 %v11690_v14 }
 0x248   : > { %v11673_v18 = vld [vmem:[%s14380_s7 + $0x1340] sm:$0xf]  ;;  %v11546_v23 = vor.u32 %v13067_v17, %v11545_v16  ;;  %v12999_v28 = vld [vmem:[%s14380_s7 + $0x102c] sm:$0xf0]  ;;  %7656 = vmatpush.bf16.msra.mxu0 %v11290_v20 }
 0x249   : > { %v11273_v27 = vld [vmem:[%s14380_s7 + $0x1020] sm:$0xf]  ;;  %v11674_v33 = vor.u32 %v13099_v19, %v11673_v18  ;;  %v13031_v34 = vld [vmem:[%s14380_s7 + $0x112c] sm:$0xf0]  ;;  %7669 = vmatpush.bf16.msra.mxu1 %v11418_v22  ;;  %v14774_v18 = vld [vmem:[#allocation1] sm:$0xff] }
 0x24a   : > { %v11401_v32 = vld [vmem:[%s14380_s7 + $0x1120] sm:$0xf]  ;;  %v13063_v37 = vld [vmem:[%s14380_s7 + $0x122c] sm:$0xf0]  ;;  %v11274_v40 = vor.u32 %v12999_v28, %v11273_v27  ;;  %7682 = vmatpush.bf16.msra.mxu2 %v11546_v23  ;;  %v14778_v22 = vld [vmem:[#allocation1 + $0x12] sm:$0xff] }
 0x24b   : > { %v11529_v36 = vld [vmem:[%s14380_s7 + $0x1220] sm:$0xf]  ;;  %v13095_v39 = vld [vmem:[%s14380_s7 + $0x132c] sm:$0xf0]  ;;  %v11402_v43 = vor.u32 %v13031_v34, %v11401_v32  ;;  %7695 = vmatpush.bf16.msra.mxu3 %v11674_v33 }
 0x24c   : > { %v11657_v38 = vld [vmem:[%s14380_s7 + $0x1320] sm:$0xf]  ;;  %v12995_v42 = vld [vmem:[%s14380_s7 + $0x100c] sm:$0xf0]  ;;  %v11530_v44 = vor.u32 %v13063_v37, %v11529_v36  ;;  %7657 = vmatpush.bf16.msra.mxu0 %v11274_v40 }
 0x24d   : > { %v11257_v41 = vld [vmem:[%s14380_s7 + $0x1000] sm:$0xf]  ;;  %v13027_v46 = vld [vmem:[%s14380_s7 + $0x110c] sm:$0xf0]  ;;  %v11658_v48 = vor.u32 %v13095_v39, %v11657_v38  ;;  %7670 = vmatpush.bf16.msra.mxu1 %v11402_v43 }
 0x24e   : > { %v11385_v45 = vld [vmem:[%s14380_s7 + $0x1100] sm:$0xf]  ;;  %v13059_v49 = vld [vmem:[%s14380_s7 + $0x120c] sm:$0xf0]  ;;  %v11258_v59 = vor.u32 %v12995_v42, %v11257_v41  ;;  %7683 = vmatpush.bf16.msra.mxu2 %v11530_v44 }
 0x24f   : > { %v11513_v47 = vld [vmem:[%s14380_s7 + $0x1200] sm:$0xf]  ;;  %v13091_v51 = vld [vmem:[%s14380_s7 + $0x130c] sm:$0xf0]  ;;  %v11386_v63 = vor.u32 %v13027_v46, %v11385_v45  ;;  %7696 = vmatpush.bf16.msra.mxu3 %v11658_v48 }
 0x250   : > { %v11641_v50 = vld [vmem:[%s14380_s7 + $0x1300] sm:$0xf]  ;;  %v13151_v53 = vld [vmem:[%s14380_s7 + $0x14ec] sm:$0xf0]  ;;  %v11514_v0 = vor.u32 %v13059_v49, %v11513_v47  ;;  %7658 = vmatpush.bf16.msra.mxu0 %v11258_v59 }
 0x251   : > { %v11881_v52 = vld [vmem:[%s14380_s7 + $0x14e0] sm:$0xf]  ;;  %v13183_v60 = vld [vmem:[%s14380_s7 + $0x15ec] sm:$0xf0]  ;;  %v11642_v3 = vor.u32 %v13091_v51, %v11641_v50  ;;  %7671 = vmatpush.bf16.msra.mxu1 %v11386_v63 }
 0x252   : > { %v12009_v54 = vld [vmem:[%s14380_s7 + $0x15e0] sm:$0xf]  ;;  %v13215_v62 = vld [vmem:[%s14380_s7 + $0x16ec] sm:$0xf0]  ;;  %v11882_v4 = vor.u32 %v13151_v53, %v11881_v52  ;;  %7684 = vmatpush.bf16.msra.mxu2 %v11514_v0 }
 0x253   : > { %v12137_v61 = vld [vmem:[%s14380_s7 + $0x16e0] sm:$0xf]  ;;  %v13247_v2 = vld [vmem:[%s14380_s7 + $0x17ec] sm:$0xf0]  ;;  %v12010_v6 = vor.u32 %v13183_v60, %v12009_v54  ;;  %7697 = vmatpush.bf16.msra.mxu3 %v11642_v3  ;;  %7659 = vmatmul.bf16.vlgmr.msra.gmra.mxu0 %v14774_v18 }
 0x254   : > { %v12265_v1 = vld [vmem:[%s14380_s7 + $0x17e0] sm:$0xf]  ;;  %v12138_v7 = vor.u32 %v13215_v62, %v12137_v61  ;;  %v13147_v12 = vld [vmem:[%s14380_s7 + $0x14cc] sm:$0xf0]  ;;  %7703 = vmatpush.bf16.msrb.mxu0 %v11882_v4 }
 0x255   : > { %v11865_v8 = vld [vmem:[%s14380_s7 + $0x14c0] sm:$0xf]  ;;  %v12266_v14 = vor.u32 %v13247_v2, %v12265_v1  ;;  %v13179_v15 = vld [vmem:[%s14380_s7 + $0x15cc] sm:$0xf0]  ;;  %7716 = vmatpush.bf16.msrb.mxu1 %v12010_v6  ;;  %7685 = vmatmul.bf16.vlgmr.msra.gmra.mxu2 %v14778_v22 }
 0x256   : > { %v11993_v13 = vld [vmem:[%s14380_s7 + $0x15c0] sm:$0xf]  ;;  %v13211_v17 = vld [vmem:[%s14380_s7 + $0x16cc] sm:$0xf0]  ;;  %v11866_v28 = vor.u32 %v13147_v12, %v11865_v8  ;;  %7729 = vmatpush.bf16.msrb.mxu2 %v12138_v7  ;;  %v3453_v12 = vld [vmem:[%s14373_s28] sm:$0xf] }
 0x257   : > { %v12121_v16 = vld [vmem:[%s14380_s7 + $0x16c0] sm:$0xf]  ;;  %v13243_v20 = vld [vmem:[%s14380_s7 + $0x17cc] sm:$0xf0]  ;;  %v11994_v32 = vor.u32 %v13179_v15, %v11993_v13  ;;  %7742 = vmatpush.bf16.msrb.mxu3 %v12266_v14 }
 0x258   : > { %v12249_v19 = vld [vmem:[%s14380_s7 + $0x17c0] sm:$0xf]  ;;  %v14782_v27 = vld [vmem:[#allocation1 + $0x1b] sm:$0xff]  ;;  %v12122_v33 = vor.u32 %v13211_v17, %v12121_v16  ;;  %7704 = vmatpush.bf16.msrb.mxu0 %v11866_v28  ;;  %v2668_v17 = vld [vmem:[%s16219_s0 + $0x18] sm:$0x1] }
 0x259   : > { %v14780_v23 = vld [vmem:[#allocation1 + $0x9] sm:$0xff]  ;;  %v13143_v36 = vld [vmem:[%s14380_s7 + $0x14ac] sm:$0xf0]  ;;  %v12250_v38 = vor.u32 %v13243_v20, %v12249_v19  ;;  %7698 = vmatmul.bf16.vlgmr.msra.gmra.mxu3 %v14782_v27  ;;  %7717 = vmatpush.bf16.msrb.mxu1 %v11994_v32  ;;  %v14819_v16 = vld [vmem:[#allocation1 + $0x3f] sm:$0xff] }
 0x25a   : > { %v11849_v34 = vld [vmem:[%s14380_s7 + $0x14a0] sm:$0xf]  ;;  %v13175_v39 = vld [vmem:[%s14380_s7 + $0x15ac] sm:$0xf0]  ;;  %7672 = vmatmul.bf16.vlgmr.msra.gmra.mxu1 %v14780_v23  ;;  %7730 = vmatpush.bf16.msrb.mxu2 %v12122_v33 }
 0x25b   : > { %v11977_v37 = vld [vmem:[%s14380_s7 + $0x15a0] sm:$0xf]  ;;  %v13207_v41 = vld [vmem:[%s14380_s7 + $0x16ac] sm:$0xf0]  ;;  %v11850_v44 = vor.u32 %v13143_v36, %v11849_v34  ;;  %7743 = vmatpush.bf16.msrb.mxu3 %v12250_v38  ;;  %v3455_v36 = vperm.slane %v3453_v12, 0 }
 0x25c   : > { %v12105_v40 = vld [vmem:[%s14380_s7 + $0x16a0] sm:$0xf]  ;;  %v13239_v43 = vld [vmem:[%s14380_s7 + $0x17ac] sm:$0xf0]  ;;  %v11978_v46 = vor.u32 %v13175_v39, %v11977_v37 }
 0x25d   : > { %v12233_v42 = vld [vmem:[%s14380_s7 + $0x17a0] sm:$0xf]  ;;  %v12106_v47 = vor.u32 %v13207_v41, %v12105_v40  ;;  %v13139_v48 = vld [vmem:[%s14380_s7 + $0x148c] sm:$0xf0]  ;;  %7705 = vmatpush.bf16.msrb.mxu0 %v11850_v44  ;;  %v7452_v44 = vpop.f32.mrf.mxu0 }
 0x25e   : > { %v11833_v45 = vld [vmem:[%s14380_s7 + $0x1480] sm:$0xf]  ;;  %v13171_v50 = vld [vmem:[%s14380_s7 + $0x158c] sm:$0xf0]  ;;  %v12234_v51 = vor.u32 %v13239_v43, %v12233_v42  ;;  %7718 = vmatpush.bf16.msrb.mxu1 %v11978_v46 }
 0x25f   : > { %v11961_v49 = vld [vmem:[%s14380_s7 + $0x1580] sm:$0xf]  ;;  %v13203_v53 = vld [vmem:[%s14380_s7 + $0x168c] sm:$0xf0]  ;;  %v11834_v62 = vor.u32 %v13139_v48, %v11833_v45  ;;  %7731 = vmatpush.bf16.msrb.mxu2 %v12106_v47 }
 0x260   : > { %v12089_v52 = vld [vmem:[%s14380_s7 + $0x1680] sm:$0xf]  ;;  %v13235_v59 = vld [vmem:[%s14380_s7 + $0x178c] sm:$0xf0]  ;;  %v11962_v2 = vor.u32 %v13171_v50, %v11961_v49  ;;  %7744 = vmatpush.bf16.msrb.mxu3 %v12234_v51  ;;  %v7453_v50 = vadd.f32 %v7452_v44, %v3455_v36  ;;  %v7465_v51 = vpop.f32.mrf.mxu1  ;;  %v12509_v36 = vld [vmem:[%s14380_s7 + $0xe4] sm:$0xf] }
 0x261   : > { %v12217_v54 = vld [vmem:[%s14380_s7 + $0x1780] sm:$0xf]  ;;  %v13135_v61 = vld [vmem:[%s14380_s7 + $0x146c] sm:$0xf0]  ;;  %v12090_v3 = vor.u32 %v13203_v53, %v12089_v52  ;;  %7706 = vmatpush.bf16.msrb.mxu0 %v11834_v62 }
 0x262   : > { %v11817_v60 = vld [vmem:[%s14380_s7 + $0x1460] sm:$0xf]  ;;  %v13167_v0 = vld [vmem:[%s14380_s7 + $0x156c] sm:$0xf0]  ;;  %v12218_v8 = vor.u32 %v13235_v59, %v12217_v54  ;;  %7719 = vmatpush.bf16.msrb.mxu1 %v11962_v2  ;;  %v7466_v62 = vadd.f32 %v7465_v51, %v7453_v50 }
 0x263   : > { %v11945_v63 = vld [vmem:[%s14380_s7 + $0x1560] sm:$0xf]  ;;  %v13199_v4 = vld [vmem:[%s14380_s7 + $0x166c] sm:$0xf0]  ;;  %v11818_v19 = vor.u32 %v13135_v61, %v11817_v60  ;;  %7732 = vmatpush.bf16.msrb.mxu2 %v12090_v3 }
 0x264   : > { %v12073_v1 = vld [vmem:[%s14380_s7 + $0x1660] sm:$0xf]  ;;  %v13231_v7 = vld [vmem:[%s14380_s7 + $0x176c] sm:$0xf0]  ;;  %v11946_v28 = vor.u32 %v13167_v0, %v11945_v63  ;;  %7745 = vmatpush.bf16.msrb.mxu3 %v12218_v8  ;;  %v7478_v8 = vpop.f32.mrf.mxu2 }
 0x265   : > { %v12201_v6 = vld [vmem:[%s14380_s7 + $0x1760] sm:$0xf]  ;;  %v14815_v14 = vld [vmem:[#allocation1 + $0x36] sm:$0xff]  ;;  %v12074_v32 = vor.u32 %v13199_v4, %v12073_v1  ;;  %7707 = vmatpush.bf16.msrb.mxu0 %v11818_v19 }
 0x266   : > { %v14813_v13 = vld [vmem:[#allocation1 + $0x24] sm:$0xff]  ;;  %v14817_v15 = vld [vmem:[#allocation1 + $0x2d] sm:$0xff]  ;;  %v13131_v33 = vld [vmem:[%s14380_s7 + $0x144c] sm:$0xf0]  ;;  %v12202_v37 = vor.u32 %v13231_v7, %v12201_v6  ;;  %7720 = vmatpush.bf16.msrb.mxu1 %v11946_v28  ;;  %v7479_v28 = vadd.f32 %v7478_v8, %v7466_v62 }
 0x267   : > { %v11801_v20 = vld [vmem:[%s14380_s7 + $0x1440] sm:$0xf]  ;;  %3494 = vst [vmem:[#allocation1] ss:$9 sm:$0xff] %v2668_v17  ;;  %v13163_v38 = vld [vmem:[%s14380_s7 + $0x154c] sm:$0xf0]  ;;  %7733 = vmatpush.bf16.msrb.mxu2 %v12074_v32  ;;  %v7491_v32 = vpop.f32.mrf.mxu3 }
 0x268   : > { %v11929_v34 = vld [vmem:[%s14380_s7 + $0x1540] sm:$0xf]  ;;  %v13195_v40 = vld [vmem:[%s14380_s7 + $0x164c] sm:$0xf0]  ;;  %v11802_v43 = vor.u32 %v13131_v33, %v11801_v20  ;;  %7746 = vmatpush.bf16.msrb.mxu3 %v12202_v37  ;;  %v9435_v62 = vld [vmem:[%s14380_s7 + $0x1d0] sm:$0xf0] }
 0x269   : > { %v12057_v39 = vld [vmem:[%s14380_s7 + $0x1640] sm:$0xf]  ;;  %v13227_v42 = vld [vmem:[%s14380_s7 + $0x174c] sm:$0xf0]  ;;  %v11930_v45 = vor.u32 %v13163_v38, %v11929_v34  ;;  %v9323_v38 = vld [vmem:[%s14380_s7 + $0xf0] sm:$0xf0] }
 0x26a   : > { %v12185_v41 = vld [vmem:[%s14380_s7 + $0x1740] sm:$0xf]  ;;  %v12058_v46 = vor.u32 %v13195_v40, %v12057_v39  ;;  %v13127_v48 = vld [vmem:[%s14380_s7 + $0x142c] sm:$0xf0]  ;;  %7708 = vmatpush.bf16.msrb.mxu0 %v11802_v43  ;;  %v12541_v39 = vld [vmem:[%s14380_s7 + $0x1e4] sm:$0xf]  ;;  %v9326_v50 = vor.u32 %v12509_v36, %v9323_v38 }
 0x26b   : > { %v11785_v47 = vld [vmem:[%s14380_s7 + $0x1420] sm:$0xf]  ;;  %v12186_v52 = vor.u32 %v13227_v42, %v12185_v41  ;;  %v13159_v53 = vld [vmem:[%s14380_s7 + $0x152c] sm:$0xf0]  ;;  %7721 = vmatpush.bf16.msrb.mxu1 %v11930_v45  ;;  %v9451_v40 = vld [vmem:[%s14380_s7 + $0x1f0] sm:$0xf0]  ;;  %v14854_v41 = vadd.f32 %v7491_v32, %v7479_v28  ;;  %v7454_v42 = vpop.f32.mrf.mxu0 }
 0x26c   : > { %v11913_v49 = vld [vmem:[%s14380_s7 + $0x1520] sm:$0xf]  ;;  %v13191_v59 = vld [vmem:[%s14380_s7 + $0x162c] sm:$0xf0]  ;;  %v11786_v63 = vor.u32 %v13127_v48, %v11785_v47  ;;  %7734 = vmatpush.bf16.msrb.mxu2 %v12058_v46  ;;  %v12573_v45 = vld [vmem:[%s14380_s7 + $0x2e4] sm:$0xf]  ;;  %v7467_v47 = vpop.f32.mrf.mxu1  ;;  %v9454_v51 = vor.u32 %v12541_v39, %v9451_v40 }
 0x26d   : > { %v12041_v54 = vld [vmem:[%s14380_s7 + $0x1620] sm:$0xf]  ;;  %v13223_v61 = vld [vmem:[%s14380_s7 + $0x172c] sm:$0xf0]  ;;  %v11914_v2 = vor.u32 %v13159_v53, %v11913_v49  ;;  %7747 = vmatpush.bf16.msrb.mxu3 %v12186_v52  ;;  %v9579_v46 = vld [vmem:[%s14380_s7 + $0x2f0] sm:$0xf0] }
 0x26e   : > { %v12169_v60 = vld [vmem:[%s14380_s7 + $0x1720] sm:$0xf]  ;;  %v13123_v1 = vld [vmem:[%s14380_s7 + $0x140c] sm:$0xf0]  ;;  %v12042_v3 = vor.u32 %v13191_v59, %v12041_v54  ;;  %7709 = vmatpush.bf16.msrb.mxu0 %v11786_v63  ;;  %v12505_v54 = vld [vmem:[%s14380_s7 + $0xc4] sm:$0xf]  ;;  %v9582_v59 = vor.u32 %v12573_v45, %v9579_v46 }
 0x26f   : > { %v11769_v0 = vld [vmem:[%s14380_s7 + $0x1400] sm:$0xf]  ;;  %v13155_v6 = vld [vmem:[%s14380_s7 + $0x150c] sm:$0xf0]  ;;  %v12170_v12 = vor.u32 %v13223_v61, %v12169_v60  ;;  %7722 = vmatpush.bf16.msrb.mxu1 %v11914_v2  ;;  %v9307_v60 = vld [vmem:[%s14380_s7 + $0xd0] sm:$0xf0] }
 0x270   : > { %v11897_v4 = vld [vmem:[%s14380_s7 + $0x1500] sm:$0xf]  ;;  %v13187_v17 = vld [vmem:[%s14380_s7 + $0x160c] sm:$0xf0]  ;;  %v11770_v37 = vor.u32 %v13123_v1, %v11769_v0  ;;  %7735 = vmatpush.bf16.msrb.mxu2 %v12042_v3  ;;  %v12537_v61 = vld [vmem:[%s14380_s7 + $0x1c4] sm:$0xf]  ;;  %v7480_v1 = vpop.f32.mrf.mxu2  ;;  %v7493_v3 = vpop.f32.mrf.mxu3 }
 0x271   : > { %v12025_v7 = vld [vmem:[%s14380_s7 + $0x1600] sm:$0xf]  ;;  %v13219_v20 = vld [vmem:[%s14380_s7 + $0x170c] sm:$0xf0]  ;;  %v11898_v43 = vor.u32 %v13155_v6, %v11897_v4  ;;  %7748 = vmatpush.bf16.msrb.mxu3 %v12170_v12  ;;  %v12569_v63 = vld [vmem:[%s14380_s7 + $0x2c4] sm:$0xf]  ;;  %v9310_v4 = vor.u32 %v12505_v54, %v9307_v60  ;;  %v9438_v6 = vor.u32 %v12537_v61, %v9435_v62 }
 0x272   : > { %v12153_v19 = vld [vmem:[%s14380_s7 + $0x1700] sm:$0xf]  ;;  %v13263_v34 = vld [vmem:[%s14380_s7 + $0x186c] sm:$0xf0]  ;;  %v12026_v44 = vor.u32 %v13187_v17, %v12025_v7  ;;  %7710 = vmatpush.bf16.msrb.mxu0 %v11770_v37  ;;  %v9563_v0 = vld [vmem:[%s14380_s7 + $0x2d0] sm:$0xf0] }
 0x273   : > { %v12329_v33 = vld [vmem:[%s14380_s7 + $0x1860] sm:$0xf]  ;;  %v12154_v48 = vor.u32 %v13219_v20, %v12153_v19  ;;  %v13259_v53 = vld [vmem:[%s14380_s7 + $0x184c] sm:$0xf0]  ;;  %7723 = vmatpush.bf16.msrb.mxu1 %v11898_v43  ;;  %v12501_v12 = vld [vmem:[%s14380_s7 + $0xa4] sm:$0xf]  ;;  %v9566_v17 = vor.u32 %v12569_v63, %v9563_v0 }
 0x274   : > { %v12330_v49 = vor.u32 %v13263_v34, %v12329_v33  ;;  %v12313_v52 = vld [vmem:[%s14380_s7 + $0x1840] sm:$0xf]  ;;  %7736 = vmatpush.bf16.msrb.mxu2 %v12026_v44  ;;  %v13255_v8 = vld [vmem:[%s14380_s7 + $0x182c] sm:$0xf0]  ;;  %v9291_v19 = vld [vmem:[%s14380_s7 + $0xb0] sm:$0xf0]  ;;  %v7517_v61 = vpop.f32.mrf.mxu1 }
 0x275   : > { %7749 = vmatpush.bf16.msrb.mxu3 %v12154_v48  ;;  %v12314_v2 = vor.u32 %v13259_v53, %v12313_v52  ;;  %v12297_v7 = vld [vmem:[%s14380_s7 + $0x1820] sm:$0xf]  ;;  %7711 = vmatmul.bf16.vlgmr.msrb.gmra.mxu0 %v14813_v13  ;;  %v12533_v20 = vld [vmem:[%s14380_s7 + $0x1a4] sm:$0xf]  ;;  %v9419_v28 = vld [vmem:[%s14380_s7 + $0x1b0] sm:$0xf0]  ;;  %v9294_v37 = vor.u32 %v12501_v12, %v9291_v19 }
 0x276   : > { %7759 = vmatpush.bf16.msra.mxu0 %v12330_v49  ;;  %7724 = vmatmul.bf16.vlgmr.msrb.gmra.mxu1 %v14817_v15  ;;  %v12565_v32 = vld [vmem:[%s14380_s7 + $0x2a4] sm:$0xf]  ;;  %v9547_v33 = vld [vmem:[%s14380_s7 + $0x2b0] sm:$0xf0]  ;;  %v12298_v34 = vor.u32 %v13255_v8, %v12297_v7  ;;  %v12281_v36 = vld [vmem:[%s14380_s7 + $0x1800] sm:$0xf]  ;;  %v9422_v38 = vor.u32 %v12533_v20, %v9419_v28 }
 0x277   : > { %7768 = vmatpush.bf16.msra.mxu1 %v9326_v50  ;;  %7737 = vmatmul.bf16.vlgmr.msrb.gmra.mxu2 %v14815_v14  ;;  %v13251_v39 = vld [vmem:[%s14380_s7 + $0x180c] sm:$0xf0]  ;;  %v12497_v40 = vld [vmem:[%s14380_s7 + $0x84] sm:$0xf]  ;;  %v9275_v42 = vld [vmem:[%s14380_s7 + $0x90] sm:$0xf0]  ;;  %v9550_v43 = vor.u32 %v12565_v32, %v9547_v33 }
 0x278   : > { %7781 = vmatpush.bf16.msra.mxu2 %v9454_v51  ;;  %7750 = vmatmul.bf16.vlgmr.msrb.gmra.mxu3 %v14819_v16  ;;  %v12529_v44 = vld [vmem:[%s14380_s7 + $0x184] sm:$0xf]  ;;  %v9403_v45 = vld [vmem:[%s14380_s7 + $0x190] sm:$0xf0]  ;;  %v12282_v50 = vor.u32 %v13251_v39, %v12281_v36  ;;  %v7504_v51 = vpop.f32.mrf.mxu0  ;;  %v9278_v52 = vor.u32 %v12497_v40, %v9275_v42  ;;  %v7530_v19 = vpop.f32.mrf.mxu2 }
 0x279   : > { %7794 = vmatpush.bf16.msra.mxu3 %v9582_v59  ;;  %v12561_v46 = vld [vmem:[%s14380_s7 + $0x284] sm:$0xf]  ;;  %v9531_v47 = vld [vmem:[%s14380_s7 + $0x290] sm:$0xf0]  ;;  %v9406_v53 = vor.u32 %v12529_v44, %v9403_v45  ;;  %v7505_v60 = vadd.f32 %v7504_v51, %v14854_v41 }
 0x27a   : > { %7760 = vmatpush.bf16.msra.mxu0 %v12314_v2  ;;  %v12605_v48 = vld [vmem:[%s14380_s7 + $0x3e4] sm:$0xf]  ;;  %v9707_v49 = vld [vmem:[%s14380_s7 + $0x3f0] sm:$0xf0]  ;;  %v9534_v62 = vor.u32 %v12561_v46, %v9531_v47 }
 0x27b   : > { %7769 = vmatpush.bf16.msra.mxu1 %v9310_v4  ;;  %v12493_v54 = vld [vmem:[%s14380_s7 + $0x64] sm:$0xf]  ;;  %v9259_v59 = vld [vmem:[%s14380_s7 + $0x70] sm:$0xf0]  ;;  %v9710_v63 = vor.u32 %v12605_v48, %v9707_v49  ;;  %v7518_v7 = vadd.f32 %v7517_v61, %v7505_v60 }
 0x27c   : > { %7782 = vmatpush.bf16.msra.mxu2 %v9438_v6  ;;  %v12525_v0 = vld [vmem:[%s14380_s7 + $0x164] sm:$0xf]  ;;  %v9387_v1 = vld [vmem:[%s14380_s7 + $0x170] sm:$0xf0]  ;;  %v9262_v41 = vor.u32 %v12493_v54, %v9259_v59  ;;  %v7519_v49 = vpop.f32.mrf.mxu1 }
 0x27d   : > { %7795 = vmatpush.bf16.msra.mxu3 %v9566_v17  ;;  %v12557_v2 = vld [vmem:[%s14380_s7 + $0x264] sm:$0xf]  ;;  %v9515_v3 = vld [vmem:[%s14380_s7 + $0x270] sm:$0xf0]  ;;  %v9390_v8 = vor.u32 %v12525_v0, %v9387_v1  ;;  %v7531_v36 = vadd.f32 %v7530_v19, %v7518_v7 }
 0x27e   : > { %7761 = vmatpush.bf16.msra.mxu0 %v12298_v34  ;;  %v12601_v4 = vld [vmem:[%s14380_s7 + $0x3c4] sm:$0xf]  ;;  %v9691_v6 = vld [vmem:[%s14380_s7 + $0x3d0] sm:$0xf0]  ;;  %v9518_v20 = vor.u32 %v12557_v2, %v9515_v3 }
 0x27f   : > { %7770 = vmatpush.bf16.msra.mxu1 %v9294_v37  ;;  %v12489_v12 = vld [vmem:[%s14380_s7 + $0x44] sm:$0xf]  ;;  %v9243_v17 = vld [vmem:[%s14380_s7 + $0x50] sm:$0xf0]  ;;  %v9694_v28 = vor.u32 %v12601_v4, %v9691_v6  ;;  %v7543_v37 = vpop.f32.mrf.mxu3 }
 0x280   : > { %7783 = vmatpush.bf16.msra.mxu2 %v9422_v38  ;;  %v12521_v32 = vld [vmem:[%s14380_s7 + $0x144] sm:$0xf]  ;;  %v9371_v33 = vld [vmem:[%s14380_s7 + $0x150] sm:$0xf0]  ;;  %v7506_v44 = vpop.f32.mrf.mxu0  ;;  %v9246_v45 = vor.u32 %v12489_v12, %v9243_v17  ;;  %v7532_v3 = vpop.f32.mrf.mxu2 }
 0x281   : > { %7796 = vmatpush.bf16.msra.mxu3 %v9550_v43  ;;  %v12553_v34 = vld [vmem:[%s14380_s7 + $0x244] sm:$0xf]  ;;  %v9499_v38 = vld [vmem:[%s14380_s7 + $0x250] sm:$0xf0]  ;;  %v14905_v43 = vadd.f32 %v7543_v37, %v7531_v36  ;;  %v9374_v46 = vor.u32 %v12521_v32, %v9371_v33 }
 0x282   : > { %7762 = vmatpush.bf16.msra.mxu0 %v12282_v50  ;;  %v12597_v39 = vld [vmem:[%s14380_s7 + $0x3a4] sm:$0xf]  ;;  %v9675_v40 = vld [vmem:[%s14380_s7 + $0x3b0] sm:$0xf0]  ;;  %v9502_v50 = vor.u32 %v12553_v34, %v9499_v38 }
 0x283   : > { %7771 = vmatpush.bf16.msra.mxu1 %v9278_v52  ;;  %v3495_v42 = vld [vmem:[#allocation1] sm:$0xff]  ;;  %v12485_v47 = vld [vmem:[%s14380_s7 + $0x24] sm:$0xf]  ;;  %v9678_v51 = vor.u32 %v12597_v39, %v9675_v40 }
 0x284   : > { %7784 = vmatpush.bf16.msra.mxu2 %v9406_v53  ;;  %v9227_v48 = vld [vmem:[%s14380_s7 + $0x30] sm:$0xf0]  ;;  %v12517_v52 = vld [vmem:[%s14380_s7 + $0x124] sm:$0xf] }
 0x285   : > { %7797 = vmatpush.bf16.msra.mxu3 %v9534_v62  ;;  %v9355_v53 = vld [vmem:[%s14380_s7 + $0x130] sm:$0xf0]  ;;  %v12549_v54 = vld [vmem:[%s14380_s7 + $0x224] sm:$0xf]  ;;  %12343 = vmatmul.msk.bf16.vlgmr.msra.gmra.mxu0 %vm7440_vm0, %v3495_v42  ;;  %v9230_v62 = vor.u32 %v12485_v47, %v9227_v48 }
 0x286   : > { %7807 = vmatpush.bf16.msrb.mxu0 %v9710_v63  ;;  %v9483_v59 = vld [vmem:[%s14380_s7 + $0x230] sm:$0xf0]  ;;  %v12593_v60 = vld [vmem:[%s14380_s7 + $0x384] sm:$0xf]  ;;  %v9358_v63 = vor.u32 %v12517_v52, %v9355_v53 }
 0x287   : > { %7772 = vmatpush.bf16.msra.mxu1 %v9262_v41  ;;  %v9659_v61 = vld [vmem:[%s14380_s7 + $0x390] sm:$0xf0]  ;;  %v12481_v0 = vld [vmem:[%s14380_s7 + $0x4] sm:$0xf]  ;;  %v9486_v4 = vor.u32 %v12549_v54, %v9483_v59  ;;  %v7545_v12 = vpop.f32.mrf.mxu3 }
 0x288   : > { %7785 = vmatpush.bf16.msra.mxu2 %v9390_v8  ;;  %v9211_v1 = vld [vmem:[%s14380_s7 + $0x10] sm:$0xf0]  ;;  %v12513_v2 = vld [vmem:[%s14380_s7 + $0x104] sm:$0xf]  ;;  %v9662_v6 = vor.u32 %v12593_v60, %v9659_v61 }
 0x289   : > { %7798 = vmatpush.bf16.msra.mxu3 %v9518_v20  ;;  %v9339_v7 = vld [vmem:[%s14380_s7 + $0x110] sm:$0xf0]  ;;  %v12545_v41 = vld [vmem:[%s14380_s7 + $0x204] sm:$0xf]  ;;  %v9214_v34 = vor.u32 %v12481_v0, %v9211_v1 }
 0x28a   : > { %7808 = vmatpush.bf16.msrb.mxu0 %v9694_v28  ;;  %v9467_v8 = vld [vmem:[%s14380_s7 + $0x210] sm:$0xf0]  ;;  %v12589_v17 = vld [vmem:[%s14380_s7 + $0x364] sm:$0xf]  ;;  %v9342_v36 = vor.u32 %v12513_v2, %v9339_v7 }
 0x28b   : > { %7773 = vmatpush.bf16.msra.mxu1 %v9246_v45  ;;  %v9643_v19 = vld [vmem:[%s14380_s7 + $0x370] sm:$0xf0]  ;;  %v12637_v20 = vld [vmem:[%s14380_s7 + $0x4e4] sm:$0xf]  ;;  %v9470_v39 = vor.u32 %v12545_v41, %v9467_v8 }
 0x28c   : > { %7786 = vmatpush.bf16.msra.mxu2 %v9374_v46  ;;  %v9835_v28 = vld [vmem:[%s14380_s7 + $0x4f0] sm:$0xf0]  ;;  %v12669_v32 = vld [vmem:[%s14380_s7 + $0x5e4] sm:$0xf]  ;;  %v9646_v40 = vor.u32 %v12589_v17, %v9643_v19 }
 0x28d   : > { %7799 = vmatpush.bf16.msra.mxu3 %v9502_v50  ;;  %v9963_v33 = vld [vmem:[%s14380_s7 + $0x5f0] sm:$0xf0]  ;;  %v12701_v37 = vld [vmem:[%s14380_s7 + $0x6e4] sm:$0xf]  ;;  %v9838_v42 = vor.u32 %v12637_v20, %v9835_v28 }
 0x28e   : > { %7809 = vmatpush.bf16.msrb.mxu0 %v9678_v51  ;;  %v10091_v38 = vld [vmem:[%s14380_s7 + $0x6f0] sm:$0xf0]  ;;  %v9966_v44 = vor.u32 %v12669_v32, %v9963_v33  ;;  %v12585_v45 = vld [vmem:[%s14380_s7 + $0x344] sm:$0xf] }
 0x28f   : > { %7774 = vmatpush.bf16.msra.mxu1 %v9230_v62  ;;  %v9627_v46 = vld [vmem:[%s14380_s7 + $0x350] sm:$0xf0]  ;;  %v12633_v47 = vld [vmem:[%s14380_s7 + $0x4c4] sm:$0xf]  ;;  %v10094_v48 = vor.u32 %v12701_v37, %v10091_v38 }
 0x290   : > { %7787 = vmatpush.bf16.msra.mxu2 %v9358_v63  ;;  %v9819_v49 = vld [vmem:[%s14380_s7 + $0x4d0] sm:$0xf0]  ;;  %v12665_v50 = vld [vmem:[%s14380_s7 + $0x5c4] sm:$0xf]  ;;  %v9630_v54 = vor.u32 %v12585_v45, %v9627_v46 }
 0x291   : > { %7800 = vmatpush.bf16.msra.mxu3 %v9486_v4  ;;  %v9947_v51 = vld [vmem:[%s14380_s7 + $0x5d0] sm:$0xf0]  ;;  %v12697_v52 = vld [vmem:[%s14380_s7 + $0x6c4] sm:$0xf]  ;;  %v9822_v59 = vor.u32 %v12633_v47, %v9819_v49 }
 0x292   : > { %7810 = vmatpush.bf16.msrb.mxu0 %v9662_v6  ;;  %v10075_v53 = vld [vmem:[%s14380_s7 + $0x6d0] sm:$0xf0]  ;;  %v9950_v60 = vor.u32 %v12665_v50, %v9947_v51  ;;  %v12581_v61 = vld [vmem:[%s14380_s7 + $0x324] sm:$0xf] }
 0x293   : > { %7775 = vmatpush.bf16.msra.mxu1 %v9214_v34  ;;  %v9611_v62 = vld [vmem:[%s14380_s7 + $0x330] sm:$0xf0]  ;;  %v12629_v63 = vld [vmem:[%s14380_s7 + $0x4a4] sm:$0xf]  ;;  %v10078_v0 = vor.u32 %v12697_v52, %v10075_v53 }
 0x294   : > { %7788 = vmatpush.bf16.msra.mxu2 %v9342_v36  ;;  %v9803_v1 = vld [vmem:[%s14380_s7 + $0x4b0] sm:$0xf0]  ;;  %v12661_v2 = vld [vmem:[%s14380_s7 + $0x5a4] sm:$0xf]  ;;  %v9614_v7 = vor.u32 %v12581_v61, %v9611_v62  ;;  %v7556_v36 = vpop.f32.mrf.mxu0 }
 0x295   : > { %7801 = vmatpush.bf16.msra.mxu3 %v9470_v39  ;;  %v9931_v3 = vld [vmem:[%s14380_s7 + $0x5b0] sm:$0xf0]  ;;  %v12693_v4 = vld [vmem:[%s14380_s7 + $0x6a4] sm:$0xf]  ;;  %v9806_v8 = vor.u32 %v12629_v63, %v9803_v1 }
 0x296   : > { %7811 = vmatpush.bf16.msrb.mxu0 %v9646_v40  ;;  %v10059_v6 = vld [vmem:[%s14380_s7 + $0x6b0] sm:$0xf0]  ;;  %7776 = vmatmul.bf16.vlgmr.msra.gmra.mxu1 %v14488_v30  ;;  %v12577_v41 = vld [vmem:[%s14380_s7 + $0x304] sm:$0xf]  ;;  %v9934_v12 = vor.u32 %v12661_v2, %v9931_v3  ;;  %v7557_v40 = vadd.f32 %v7556_v36, %v14905_v43  ;;  %v7582_v2 = vpop.f32.mrf.mxu2 }
 0x297   : > { %7820 = vmatpush.bf16.msrb.mxu1 %v9838_v42  ;;  %7789 = vmatmul.bf16.vlgmr.msra.gmra.mxu2 %v14495_v35  ;;  %v9595_v17 = vld [vmem:[%s14380_s7 + $0x310] sm:$0xf0]  ;;  %v12625_v19 = vld [vmem:[%s14380_s7 + $0x484] sm:$0xf]  ;;  %v10062_v28 = vor.u32 %v12693_v4, %v10059_v6 }
 0x298   : > { %7833 = vmatpush.bf16.msrb.mxu2 %v9966_v44  ;;  %7802 = vmatmul.bf16.vlgmr.msra.gmra.mxu3 %v14486_v29  ;;  %v9787_v20 = vld [vmem:[%s14380_s7 + $0x490] sm:$0xf0]  ;;  %v12657_v32 = vld [vmem:[%s14380_s7 + $0x584] sm:$0xf]  ;;  %v9598_v42 = vor.u32 %v12577_v41, %v9595_v17  ;;  %v7569_v44 = vpop.f32.mrf.mxu1 }
 0x299   : > { %7846 = vmatpush.bf16.msrb.mxu3 %v10094_v48  ;;  %v9915_v33 = vld [vmem:[%s14380_s7 + $0x590] sm:$0xf0]  ;;  %v12689_v34 = vld [vmem:[%s14380_s7 + $0x684] sm:$0xf]  ;;  %v9790_v45 = vor.u32 %v12625_v19, %v9787_v20  ;;  %v7570_v50 = vadd.f32 %v7569_v44, %v7557_v40 }
 0x29a   : > { %7812 = vmatpush.bf16.msrb.mxu0 %v9630_v54  ;;  %v10043_v37 = vld [vmem:[%s14380_s7 + $0x690] sm:$0xf0]  ;;  %v12733_v38 = vld [vmem:[%s14380_s7 + $0x7e4] sm:$0xf]  ;;  %v9918_v46 = vor.u32 %v12657_v32, %v9915_v33 }
 0x29b   : > { %7821 = vmatpush.bf16.msrb.mxu1 %v9822_v59  ;;  %v10219_v39 = vld [vmem:[%s14380_s7 + $0x7f0] sm:$0xf0]  ;;  %v12621_v47 = vld [vmem:[%s14380_s7 + $0x464] sm:$0xf]  ;;  %v10046_v49 = vor.u32 %v12689_v34, %v10043_v37  ;;  %v7583_v41 = vadd.f32 %v7582_v2, %v7570_v50 }
 0x29c   : > { %7834 = vmatpush.bf16.msrb.mxu2 %v9950_v60  ;;  %v9771_v48 = vld [vmem:[%s14380_s7 + $0x470] sm:$0xf0]  ;;  %v10222_v51 = vor.u32 %v12733_v38, %v10219_v39  ;;  %v12653_v52 = vld [vmem:[%s14380_s7 + $0x564] sm:$0xf]  ;;  %v7558_v20 = vpop.f32.mrf.mxu0 }
 0x29d   : > { %7847 = vmatpush.bf16.msrb.mxu3 %v10078_v0  ;;  %v9899_v53 = vld [vmem:[%s14380_s7 + $0x570] sm:$0xf0]  ;;  %v12685_v43 = vld [vmem:[%s14380_s7 + $0x664] sm:$0xf]  ;;  %v9774_v61 = vor.u32 %v12621_v47, %v9771_v48 }
 0x29e   : > { %7813 = vmatpush.bf16.msrb.mxu0 %v9614_v7  ;;  %v10027_v54 = vld [vmem:[%s14380_s7 + $0x670] sm:$0xf0]  ;;  %v12729_v59 = vld [vmem:[%s14380_s7 + $0x7c4] sm:$0xf]  ;;  %v9902_v62 = vor.u32 %v12653_v52, %v9899_v53 }
 0x29f   : > { %7822 = vmatpush.bf16.msrb.mxu1 %v9806_v8  ;;  %v10203_v60 = vld [vmem:[%s14380_s7 + $0x7d0] sm:$0xf0]  ;;  %v12617_v63 = vld [vmem:[%s14380_s7 + $0x444] sm:$0xf]  ;;  %v10030_v1 = vor.u32 %v12685_v43, %v10027_v54  ;;  %v7595_v8 = vpop.f32.mrf.mxu3 }
 0x2a0   : > { %7835 = vmatpush.bf16.msrb.mxu2 %v9934_v12  ;;  %v9755_v0 = vld [vmem:[%s14380_s7 + $0x450] sm:$0xf0]  ;;  %v10206_v3 = vor.u32 %v12729_v59, %v10203_v60  ;;  %v12649_v4 = vld [vmem:[%s14380_s7 + $0x544] sm:$0xf]  ;;  %v14977_v32 = vadd.f32 %v7595_v8, %v7583_v41 }
 0x2a1   : > { %7848 = vmatpush.bf16.msrb.mxu3 %v10062_v28  ;;  %v9883_v6 = vld [vmem:[%s14380_s7 + $0x550] sm:$0xf0]  ;;  %v12681_v7 = vld [vmem:[%s14380_s7 + $0x644] sm:$0xf]  ;;  %v7571_v28 = vpop.f32.mrf.mxu1  ;;  %v9758_v33 = vor.u32 %v12617_v63, %v9755_v0 }
 0x2a2   : > { %7814 = vmatpush.bf16.msrb.mxu0 %v9598_v42  ;;  %v10011_v12 = vld [vmem:[%s14380_s7 + $0x650] sm:$0xf0]  ;;  %v12725_v17 = vld [vmem:[%s14380_s7 + $0x7a4] sm:$0xf]  ;;  %v9886_v34 = vor.u32 %v12649_v4, %v9883_v6 }
 0x2a3   : > { %7823 = vmatpush.bf16.msrb.mxu1 %v9790_v45  ;;  %v10187_v19 = vld [vmem:[%s14380_s7 + $0x7b0] sm:$0xf0]  ;;  %v12613_v36 = vld [vmem:[%s14380_s7 + $0x424] sm:$0xf]  ;;  %v10014_v38 = vor.u32 %v12681_v7, %v10011_v12 }
 0x2a4   : > { %7836 = vmatpush.bf16.msrb.mxu2 %v9918_v46  ;;  %v9739_v37 = vld [vmem:[%s14380_s7 + $0x430] sm:$0xf0]  ;;  %v10190_v39 = vor.u32 %v12725_v17, %v10187_v19  ;;  %v12645_v40 = vld [vmem:[%s14380_s7 + $0x524] sm:$0xf] }
 0x2a5   : > { %7849 = vmatpush.bf16.msrb.mxu3 %v10046_v49  ;;  %7815 = vmatmul.bf16.vlgmr.msrb.gmra.mxu0 %v14490_v31  ;;  %v9867_v42 = vld [vmem:[%s14380_s7 + $0x530] sm:$0xf0]  ;;  %v12677_v44 = vld [vmem:[%s14380_s7 + $0x624] sm:$0xf]  ;;  %v9742_v48 = vor.u32 %v12613_v36, %v9739_v37 }
 0x2a6   : > { %7859 = vmatpush.bf16.msra.mxu0 %v10222_v51  ;;  %v9995_v45 = vld [vmem:[%s14380_s7 + $0x630] sm:$0xf0]  ;;  %v12721_v46 = vld [vmem:[%s14380_s7 + $0x784] sm:$0xf]  ;;  %v9870_v49 = vor.u32 %v12645_v40, %v9867_v42 }
 0x2a7   : > { %7824 = vmatpush.bf16.msrb.mxu1 %v9774_v61  ;;  %v10171_v47 = vld [vmem:[%s14380_s7 + $0x790] sm:$0xf0]  ;;  %v12609_v50 = vld [vmem:[%s14380_s7 + $0x404] sm:$0xf]  ;;  %v9998_v53 = vor.u32 %v12677_v44, %v9995_v45  ;;  %v7584_v61 = vpop.f32.mrf.mxu2 }
 0x2a8   : > { %7837 = vmatpush.bf16.msrb.mxu2 %v9902_v62  ;;  %v9723_v51 = vld [vmem:[%s14380_s7 + $0x410] sm:$0xf0]  ;;  %v12641_v52 = vld [vmem:[%s14380_s7 + $0x504] sm:$0xf]  ;;  %v10174_v43 = vor.u32 %v12721_v46, %v10171_v47 }
 0x2a9   : > { %7850 = vmatpush.bf16.msrb.mxu3 %v10030_v1  ;;  %v9851_v54 = vld [vmem:[%s14380_s7 + $0x510] sm:$0xf0]  ;;  %v12673_v59 = vld [vmem:[%s14380_s7 + $0x604] sm:$0xf]  ;;  %v7597_v1 = vpop.f32.mrf.mxu3  ;;  %v9726_v6 = vor.u32 %v12609_v50, %v9723_v51 }
 0x2aa   : > { %7860 = vmatpush.bf16.msra.mxu0 %v10206_v3  ;;  %v9979_v60 = vld [vmem:[%s14380_s7 + $0x610] sm:$0xf0]  ;;  %v12717_v62 = vld [vmem:[%s14380_s7 + $0x764] sm:$0xf]  ;;  %v9854_v7 = vor.u32 %v12641_v52, %v9851_v54 }
 0x2ab   : > { %7825 = vmatpush.bf16.msrb.mxu1 %v9758_v33  ;;  %v10155_v63 = vld [vmem:[%s14380_s7 + $0x770] sm:$0xf0]  ;;  %v12765_v0 = vld [vmem:[%s14380_s7 + $0x8e4] sm:$0xf]  ;;  %v9982_v12 = vor.u32 %v12673_v59, %v9979_v60 }
 0x2ac   : > { %7838 = vmatpush.bf16.msrb.mxu2 %v9886_v34  ;;  %v10347_v2 = vld [vmem:[%s14380_s7 + $0x8f0] sm:$0xf0]  ;;  %v12797_v3 = vld [vmem:[%s14380_s7 + $0x9e4] sm:$0xf]  ;;  %v10158_v17 = vor.u32 %v12717_v62, %v10155_v63 }
 0x2ad   : > { %7851 = vmatpush.bf16.msrb.mxu3 %v10014_v38  ;;  %v10475_v4 = vld [vmem:[%s14380_s7 + $0x9f0] sm:$0xf0]  ;;  %v12829_v41 = vld [vmem:[%s14380_s7 + $0xae4] sm:$0xf]  ;;  %v10350_v19 = vor.u32 %v12765_v0, %v10347_v2 }
 0x2ae   : > { %7861 = vmatpush.bf16.msra.mxu0 %v10190_v39  ;;  %v10603_v8 = vld [vmem:[%s14380_s7 + $0xaf0] sm:$0xf0]  ;;  %v10478_v20 = vor.u32 %v12797_v3, %v10475_v4  ;;  %v12713_v28 = vld [vmem:[%s14380_s7 + $0x744] sm:$0xf] }
 0x2af   : > { %7826 = vmatpush.bf16.msrb.mxu1 %v9742_v48  ;;  %v10139_v33 = vld [vmem:[%s14380_s7 + $0x750] sm:$0xf0]  ;;  %v12761_v34 = vld [vmem:[%s14380_s7 + $0x8c4] sm:$0xf]  ;;  %v10606_v36 = vor.u32 %v12829_v41, %v10603_v8 }
 0x2b0   : > { %7839 = vmatpush.bf16.msrb.mxu2 %v9870_v49  ;;  %v10331_v37 = vld [vmem:[%s14380_s7 + $0x8d0] sm:$0xf0]  ;;  %v12793_v38 = vld [vmem:[%s14380_s7 + $0x9c4] sm:$0xf]  ;;  %v10142_v44 = vor.u32 %v12713_v28, %v10139_v33 }
 0x2b1   : > { %7852 = vmatpush.bf16.msrb.mxu3 %v9998_v53  ;;  %v10459_v39 = vld [vmem:[%s14380_s7 + $0x9d0] sm:$0xf0]  ;;  %v12825_v40 = vld [vmem:[%s14380_s7 + $0xac4] sm:$0xf]  ;;  %v10334_v45 = vor.u32 %v12761_v34, %v10331_v37 }
 0x2b2   : > { %7862 = vmatpush.bf16.msra.mxu0 %v10174_v43  ;;  %v10587_v42 = vld [vmem:[%s14380_s7 + $0xad0] sm:$0xf0]  ;;  %v10462_v46 = vor.u32 %v12793_v38, %v10459_v39  ;;  %v12709_v47 = vld [vmem:[%s14380_s7 + $0x724] sm:$0xf] }
 0x2b3   : > { %7827 = vmatpush.bf16.msrb.mxu1 %v9726_v6  ;;  %v10123_v48 = vld [vmem:[%s14380_s7 + $0x730] sm:$0xf0]  ;;  %v12757_v49 = vld [vmem:[%s14380_s7 + $0x8a4] sm:$0xf]  ;;  %v10590_v50 = vor.u32 %v12825_v40, %v10587_v42 }
 0x2b4   : > { %7840 = vmatpush.bf16.msrb.mxu2 %v9854_v7  ;;  %v10315_v51 = vld [vmem:[%s14380_s7 + $0x8b0] sm:$0xf0]  ;;  %v12789_v52 = vld [vmem:[%s14380_s7 + $0x9a4] sm:$0xf]  ;;  %v10126_v59 = vor.u32 %v12709_v47, %v10123_v48  ;;  %v7608_v7 = vpop.f32.mrf.mxu0 }
 0x2b5   : > { %7853 = vmatpush.bf16.msrb.mxu3 %v9982_v12  ;;  %v10443_v53 = vld [vmem:[%s14380_s7 + $0x9b0] sm:$0xf0]  ;;  %v12821_v43 = vld [vmem:[%s14380_s7 + $0xaa4] sm:$0xf]  ;;  %v10318_v61 = vor.u32 %v12757_v49, %v10315_v51 }
 0x2b6   : > { %7863 = vmatpush.bf16.msra.mxu0 %v10158_v17  ;;  %v10571_v54 = vld [vmem:[%s14380_s7 + $0xab0] sm:$0xf0]  ;;  %7828 = vmatmul.bf16.vlgmr.msrb.gmra.mxu1 %v14529_v9  ;;  %v12705_v60 = vld [vmem:[%s14380_s7 + $0x704] sm:$0xf]  ;;  %v10446_v62 = vor.u32 %v12789_v52, %v10443_v53  ;;  %v7609_v17 = vadd.f32 %v7608_v7, %v14977_v32 }
 0x2b7   : > { %7872 = vmatpush.bf16.msra.mxu1 %v10350_v19  ;;  %7841 = vmatmul.bf16.vlgmr.msrb.gmra.mxu2 %v14533_v11  ;;  %v10107_v63 = vld [vmem:[%s14380_s7 + $0x710] sm:$0xf0]  ;;  %v12753_v0 = vld [vmem:[%s14380_s7 + $0x884] sm:$0xf]  ;;  %v10574_v2 = vor.u32 %v12821_v43, %v10571_v54 }
 0x2b8   : > { %7885 = vmatpush.bf16.msra.mxu2 %v10478_v20  ;;  %7854 = vmatmul.bf16.vlgmr.msrb.gmra.mxu3 %v14524_v5  ;;  %v10299_v1 = vld [vmem:[%s14380_s7 + $0x890] sm:$0xf0]  ;;  %v12785_v3 = vld [vmem:[%s14380_s7 + $0x984] sm:$0xf]  ;;  %v10110_v19 = vor.u32 %v12705_v60, %v10107_v63  ;;  %v7621_v20 = vpop.f32.mrf.mxu1  ;;  %v7634_v52 = vpop.f32.mrf.mxu2 }
 0x2b9   : > { %7898 = vmatpush.bf16.msra.mxu3 %v10606_v36  ;;  %v10427_v4 = vld [vmem:[%s14380_s7 + $0x990] sm:$0xf0]  ;;  %v12817_v6 = vld [vmem:[%s14380_s7 + $0xa84] sm:$0xf]  ;;  %v10302_v28 = vor.u32 %v12753_v0, %v10299_v1  ;;  %v7622_v38 = vadd.f32 %v7621_v20, %v7609_v17 }
 0x2ba   : > { %7864 = vmatpush.bf16.msra.mxu0 %v10142_v44  ;;  %v10555_v41 = vld [vmem:[%s14380_s7 + $0xa90] sm:$0xf0]  ;;  %v12861_v8 = vld [vmem:[%s14380_s7 + $0xbe4] sm:$0xf]  ;;  %v10430_v33 = vor.u32 %v12785_v3, %v10427_v4 }
 0x2bb   : > { %7873 = vmatpush.bf16.msra.mxu1 %v10334_v45  ;;  %v10731_v12 = vld [vmem:[%s14380_s7 + $0xbf0] sm:$0xf0]  ;;  %v12749_v34 = vld [vmem:[%s14380_s7 + $0x864] sm:$0xf]  ;;  %v10558_v37 = vor.u32 %v12817_v6, %v10555_v41  ;;  %v7635_v60 = vadd.f32 %v7634_v52, %v7622_v38 }
 0x2bc   : > { %7886 = vmatpush.bf16.msra.mxu2 %v10462_v46  ;;  %v10283_v36 = vld [vmem:[%s14380_s7 + $0x870] sm:$0xf0]  ;;  %v10734_v39 = vor.u32 %v12861_v8, %v10731_v12  ;;  %v12781_v40 = vld [vmem:[%s14380_s7 + $0x964] sm:$0xf]  ;;  %v7610_v1 = vpop.f32.mrf.mxu0 }
 0x2bd   : > { %7899 = vmatpush.bf16.msra.mxu3 %v10590_v50  ;;  %v10411_v42 = vld [vmem:[%s14380_s7 + $0x970] sm:$0xf0]  ;;  %v12813_v32 = vld [vmem:[%s14380_s7 + $0xa64] sm:$0xf]  ;;  %v10286_v47 = vor.u32 %v12749_v34, %v10283_v36 }
 0x2be   : > { %7865 = vmatpush.bf16.msra.mxu0 %v10126_v59  ;;  %v10539_v44 = vld [vmem:[%s14380_s7 + $0xa70] sm:$0xf0]  ;;  %v12857_v45 = vld [vmem:[%s14380_s7 + $0xbc4] sm:$0xf]  ;;  %v10414_v48 = vor.u32 %v12781_v40, %v10411_v42 }
 0x2bf   : > { %7874 = vmatpush.bf16.msra.mxu1 %v10318_v61  ;;  %v10715_v46 = vld [vmem:[%s14380_s7 + $0xbd0] sm:$0xf0]  ;;  %v12745_v49 = vld [vmem:[%s14380_s7 + $0x844] sm:$0xf]  ;;  %v10542_v51 = vor.u32 %v12813_v32, %v10539_v44  ;;  %v7647_v61 = vpop.f32.mrf.mxu3 }
 0x2c0   : > { %7887 = vmatpush.bf16.msra.mxu2 %v10446_v62  ;;  %v10267_v50 = vld [vmem:[%s14380_s7 + $0x850] sm:$0xf0]  ;;  %v10718_v53 = vor.u32 %v12857_v45, %v10715_v46  ;;  %v12777_v43 = vld [vmem:[%s14380_s7 + $0x944] sm:$0xf]  ;;  %v15048_v3 = vadd.f32 %v7647_v61, %v7635_v60 }
 0x2c1   : > { %7900 = vmatpush.bf16.msra.mxu3 %v10574_v2  ;;  %v10395_v54 = vld [vmem:[%s14380_s7 + $0x950] sm:$0xf0]  ;;  %v12809_v59 = vld [vmem:[%s14380_s7 + $0xa44] sm:$0xf]  ;;  %v7623_v2 = vpop.f32.mrf.mxu1  ;;  %v10270_v4 = vor.u32 %v12745_v49, %v10267_v50 }
 0x2c2   : > { %7866 = vmatpush.bf16.msra.mxu0 %v10110_v19  ;;  %v10523_v62 = vld [vmem:[%s14380_s7 + $0xa50] sm:$0xf0]  ;;  %v12853_v63 = vld [vmem:[%s14380_s7 + $0xba4] sm:$0xf]  ;;  %v10398_v6 = vor.u32 %v12777_v43, %v10395_v54 }
 0x2c3   : > { %7875 = vmatpush.bf16.msra.mxu1 %v10302_v28  ;;  %v10699_v0 = vld [vmem:[%s14380_s7 + $0xbb0] sm:$0xf0]  ;;  %v12741_v7 = vld [vmem:[%s14380_s7 + $0x824] sm:$0xf]  ;;  %v10526_v8 = vor.u32 %v12809_v59, %v10523_v62 }
 0x2c4   : > { %7888 = vmatpush.bf16.msra.mxu2 %v10430_v33  ;;  %v10251_v41 = vld [vmem:[%s14380_s7 + $0x830] sm:$0xf0]  ;;  %v10702_v12 = vor.u32 %v12853_v63, %v10699_v0  ;;  %v12773_v17 = vld [vmem:[%s14380_s7 + $0x924] sm:$0xf] }
 0x2c5   : > { %7901 = vmatpush.bf16.msra.mxu3 %v10558_v37  ;;  %7867 = vmatmul.bf16.vlgmr.msra.gmra.mxu0 %v14531_v10  ;;  %v10379_v19 = vld [vmem:[%s14380_s7 + $0x930] sm:$0xf0]  ;;  %v12805_v20 = vld [vmem:[%s14380_s7 + $0xa24] sm:$0xf]  ;;  %v10254_v36 = vor.u32 %v12741_v7, %v10251_v41 }
 0x2c6   : > { %7911 = vmatpush.bf16.msrb.mxu0 %v10734_v39  ;;  %v10507_v28 = vld [vmem:[%s14380_s7 + $0xa30] sm:$0xf0]  ;;  %v12849_v33 = vld [vmem:[%s14380_s7 + $0xb84] sm:$0xf]  ;;  %v10382_v37 = vor.u32 %v12773_v17, %v10379_v19 }
 0x2c7   : > { %7876 = vmatpush.bf16.msra.mxu1 %v10286_v47  ;;  %v10683_v34 = vld [vmem:[%s14380_s7 + $0xb90] sm:$0xf0]  ;;  %v12737_v38 = vld [vmem:[%s14380_s7 + $0x804] sm:$0xf]  ;;  %v10510_v42 = vor.u32 %v12805_v20, %v10507_v28  ;;  %v7636_v47 = vpop.f32.mrf.mxu2 }
 0x2c8   : > { %7889 = vmatpush.bf16.msra.mxu2 %v10414_v48  ;;  %v10235_v39 = vld [vmem:[%s14380_s7 + $0x810] sm:$0xf0]  ;;  %v12769_v40 = vld [vmem:[%s14380_s7 + $0x904] sm:$0xf]  ;;  %v10686_v32 = vor.u32 %v12849_v33, %v10683_v34 }
 0x2c9   : > { %7902 = vmatpush.bf16.msra.mxu3 %v10542_v51  ;;  %v10363_v44 = vld [vmem:[%s14380_s7 + $0x910] sm:$0xf0]  ;;  %v12801_v45 = vld [vmem:[%s14380_s7 + $0xa04] sm:$0xf]  ;;  %v7649_v51 = vpop.f32.mrf.mxu3  ;;  %v10238_v54 = vor.u32 %v12737_v38, %v10235_v39 }
 0x2ca   : > { %7912 = vmatpush.bf16.msrb.mxu0 %v10718_v53  ;;  %v10491_v46 = vld [vmem:[%s14380_s7 + $0xa10] sm:$0xf0]  ;;  %v12845_v48 = vld [vmem:[%s14380_s7 + $0xb64] sm:$0xf]  ;;  %v10366_v59 = vor.u32 %v12769_v40, %v10363_v44 }
 0x2cb   : > { %7877 = vmatpush.bf16.msra.mxu1 %v10270_v4  ;;  %v10667_v49 = vld [vmem:[%s14380_s7 + $0xb70] sm:$0xf0]  ;;  %v12893_v50 = vld [vmem:[%s14380_s7 + $0xce4] sm:$0xf]  ;;  %v10494_v62 = vor.u32 %v12801_v45, %v10491_v46 }
 0x2cc   : > { %7890 = vmatpush.bf16.msra.mxu2 %v10398_v6  ;;  %v10859_v52 = vld [vmem:[%s14380_s7 + $0xcf0] sm:$0xf0]  ;;  %v12925_v53 = vld [vmem:[%s14380_s7 + $0xde4] sm:$0xf]  ;;  %v10670_v63 = vor.u32 %v12845_v48, %v10667_v49 }
 0x2cd   : > { %7903 = vmatpush.bf16.msra.mxu3 %v10526_v8  ;;  %v10987_v43 = vld [vmem:[%s14380_s7 + $0xdf0] sm:$0xf0]  ;;  %v12957_v60 = vld [vmem:[%s14380_s7 + $0xee4] sm:$0xf]  ;;  %v10862_v0 = vor.u32 %v12893_v50, %v10859_v52 }
 0x2ce   : > { %7913 = vmatpush.bf16.msrb.mxu0 %v10702_v12  ;;  %v11115_v61 = vld [vmem:[%s14380_s7 + $0xef0] sm:$0xf0]  ;;  %v10990_v1 = vor.u32 %v12925_v53, %v10987_v43  ;;  %v12841_v2 = vld [vmem:[%s14380_s7 + $0xb44] sm:$0xf] }
 0x2cf   : > { %7878 = vmatpush.bf16.msra.mxu1 %v10254_v36  ;;  %v10651_v4 = vld [vmem:[%s14380_s7 + $0xb50] sm:$0xf0]  ;;  %v12889_v6 = vld [vmem:[%s14380_s7 + $0xcc4] sm:$0xf]  ;;  %v11118_v7 = vor.u32 %v12957_v60, %v11115_v61 }
 0x2d0   : > { %7891 = vmatpush.bf16.msra.mxu2 %v10382_v37  ;;  %v10843_v41 = vld [vmem:[%s14380_s7 + $0xcd0] sm:$0xf0]  ;;  %v12921_v8 = vld [vmem:[%s14380_s7 + $0xdc4] sm:$0xf]  ;;  %v10654_v20 = vor.u32 %v12841_v2, %v10651_v4 }
 0x2d1   : > { %7904 = vmatpush.bf16.msra.mxu3 %v10510_v42  ;;  %v10971_v12 = vld [vmem:[%s14380_s7 + $0xdd0] sm:$0xf0]  ;;  %v12953_v17 = vld [vmem:[%s14380_s7 + $0xec4] sm:$0xf]  ;;  %v10846_v28 = vor.u32 %v12889_v6, %v10843_v41 }
 0x2d2   : > { %7914 = vmatpush.bf16.msrb.mxu0 %v10686_v32  ;;  %v11099_v19 = vld [vmem:[%s14380_s7 + $0xed0] sm:$0xf0]  ;;  %v10974_v33 = vor.u32 %v12921_v8, %v10971_v12  ;;  %v12837_v34 = vld [vmem:[%s14380_s7 + $0xb24] sm:$0xf] }
 0x2d3   : > { %7879 = vmatpush.bf16.msra.mxu1 %v10238_v54  ;;  %v10635_v36 = vld [vmem:[%s14380_s7 + $0xb30] sm:$0xf0]  ;;  %v12885_v37 = vld [vmem:[%s14380_s7 + $0xca4] sm:$0xf]  ;;  %v11102_v38 = vor.u32 %v12953_v17, %v11099_v19 }
 0x2d4   : > { %7892 = vmatpush.bf16.msra.mxu2 %v10366_v59  ;;  %v10827_v39 = vld [vmem:[%s14380_s7 + $0xcb0] sm:$0xf0]  ;;  %v12917_v40 = vld [vmem:[%s14380_s7 + $0xda4] sm:$0xf]  ;;  %v10638_v45 = vor.u32 %v12837_v34, %v10635_v36  ;;  %v7660_v59 = vpop.f32.mrf.mxu0 }
 0x2d5   : > { %7905 = vmatpush.bf16.msra.mxu3 %v10494_v62  ;;  %v10955_v42 = vld [vmem:[%s14380_s7 + $0xdb0] sm:$0xf0]  ;;  %v12949_v32 = vld [vmem:[%s14380_s7 + $0xea4] sm:$0xf]  ;;  %v10830_v47 = vor.u32 %v12885_v37, %v10827_v39 }
 0x2d6   : > { %7915 = vmatpush.bf16.msrb.mxu0 %v10670_v63  ;;  %7880 = vmatmul.bf16.vlgmr.msra.gmra.mxu1 %v14619_v21  ;;  %v11083_v44 = vld [vmem:[%s14380_s7 + $0xeb0] sm:$0xf0]  ;;  %v12833_v46 = vld [vmem:[%s14380_s7 + $0xb04] sm:$0xf]  ;;  %v10958_v48 = vor.u32 %v12917_v40, %v10955_v42  ;;  %v7661_v63 = vadd.f32 %v7660_v59, %v15048_v3 }
 0x2d7   : > { %7924 = vmatpush.bf16.msrb.mxu1 %v10862_v0  ;;  %7893 = vmatmul.bf16.vlgmr.msra.gmra.mxu2 %v14625_v25  ;;  %v10619_v49 = vld [vmem:[%s14380_s7 + $0xb10] sm:$0xf0]  ;;  %v12881_v50 = vld [vmem:[%s14380_s7 + $0xc84] sm:$0xf]  ;;  %v11086_v52 = vor.u32 %v12949_v32, %v11083_v44 }
 0x2d8   : > { %7937 = vmatpush.bf16.msrb.mxu2 %v10990_v1  ;;  %7906 = vmatmul.bf16.vlgmr.msra.gmra.mxu3 %v14623_v24  ;;  %v10811_v51 = vld [vmem:[%s14380_s7 + $0xc90] sm:$0xf0]  ;;  %v12913_v53 = vld [vmem:[%s14380_s7 + $0xd84] sm:$0xf]  ;;  %v10622_v0 = vor.u32 %v12833_v46, %v10619_v49  ;;  %v7673_v1 = vpop.f32.mrf.mxu1  ;;  %v7686_v40 = vpop.f32.mrf.mxu2 }
 0x2d9   : > { %7950 = vmatpush.bf16.msrb.mxu3 %v11118_v7  ;;  %v10939_v43 = vld [vmem:[%s14380_s7 + $0xd90] sm:$0xf0]  ;;  %v12945_v54 = vld [vmem:[%s14380_s7 + $0xe84] sm:$0xf]  ;;  %v10814_v2 = vor.u32 %v12881_v50, %v10811_v51  ;;  %v7674_v8 = vadd.f32 %v7673_v1, %v7661_v63 }
 0x2da   : > { %7916 = vmatpush.bf16.msrb.mxu0 %v10654_v20  ;;  %v11067_v60 = vld [vmem:[%s14380_s7 + $0xe90] sm:$0xf0]  ;;  %v12989_v61 = vld [vmem:[%s14380_s7 + $0xfe4] sm:$0xf]  ;;  %v10942_v4 = vor.u32 %v12913_v53, %v10939_v43 }
 0x2db   : > { %7925 = vmatpush.bf16.msrb.mxu1 %v10846_v28  ;;  %v11243_v62 = vld [vmem:[%s14380_s7 + $0xff0] sm:$0xf0]  ;;  %v12877_v6 = vld [vmem:[%s14380_s7 + $0xc64] sm:$0xf]  ;;  %v11070_v41 = vor.u32 %v12945_v54, %v11067_v60  ;;  %v7687_v46 = vadd.f32 %v7686_v40, %v7674_v8 }
 0x2dc   : > { %7938 = vmatpush.bf16.msrb.mxu2 %v10974_v33  ;;  %v10795_v7 = vld [vmem:[%s14380_s7 + $0xc70] sm:$0xf0]  ;;  %v11246_v12 = vor.u32 %v12989_v61, %v11243_v62  ;;  %v12909_v17 = vld [vmem:[%s14380_s7 + $0xd64] sm:$0xf]  ;;  %v7662_v51 = vpop.f32.mrf.mxu0 }
 0x2dd   : > { %7951 = vmatpush.bf16.msrb.mxu3 %v11102_v38  ;;  %v10923_v19 = vld [vmem:[%s14380_s7 + $0xd70] sm:$0xf0]  ;;  %v12941_v3 = vld [vmem:[%s14380_s7 + $0xe64] sm:$0xf]  ;;  %v10798_v34 = vor.u32 %v12877_v6, %v10795_v7 }
 0x2de   : > { %7917 = vmatpush.bf16.msrb.mxu0 %v10638_v45  ;;  %v11051_v20 = vld [vmem:[%s14380_s7 + $0xe70] sm:$0xf0]  ;;  %v12985_v28 = vld [vmem:[%s14380_s7 + $0xfc4] sm:$0xf]  ;;  %v10926_v36 = vor.u32 %v12909_v17, %v10923_v19 }
 0x2df   : > { %7926 = vmatpush.bf16.msrb.mxu1 %v10830_v47  ;;  %v11227_v33 = vld [vmem:[%s14380_s7 + $0xfd0] sm:$0xf0]  ;;  %v12873_v37 = vld [vmem:[%s14380_s7 + $0xc44] sm:$0xf]  ;;  %v11054_v39 = vor.u32 %v12941_v3, %v11051_v20  ;;  %v7699_v47 = vpop.f32.mrf.mxu3 }
 0x2e0   : > { %7939 = vmatpush.bf16.msrb.mxu2 %v10958_v48  ;;  %v10779_v38 = vld [vmem:[%s14380_s7 + $0xc50] sm:$0xf0]  ;;  %v11230_v42 = vor.u32 %v12985_v28, %v11227_v33  ;;  %v12905_v32 = vld [vmem:[%s14380_s7 + $0xd44] sm:$0xf]  ;;  %v15119_v53 = vadd.f32 %v7699_v47, %v7687_v46 }
 0x2e1   : > { %7952 = vmatpush.bf16.msrb.mxu3 %v11086_v52  ;;  %v10907_v44 = vld [vmem:[%s14380_s7 + $0xd50] sm:$0xf0]  ;;  %v12937_v45 = vld [vmem:[%s14380_s7 + $0xe44] sm:$0xf]  ;;  %v7675_v52 = vpop.f32.mrf.mxu1  ;;  %v10782_v43 = vor.u32 %v12873_v37, %v10779_v38 }
 0x2e2   : > { %7918 = vmatpush.bf16.msrb.mxu0 %v10622_v0  ;;  %v11035_v48 = vld [vmem:[%s14380_s7 + $0xe50] sm:$0xf0]  ;;  %v12981_v49 = vld [vmem:[%s14380_s7 + $0xfa4] sm:$0xf]  ;;  %v10910_v54 = vor.u32 %v12905_v32, %v10907_v44 }
 0x2e3   : > { %7927 = vmatpush.bf16.msrb.mxu1 %v10814_v2  ;;  %v11211_v50 = vld [vmem:[%s14380_s7 + $0xfb0] sm:$0xf0]  ;;  %v12869_v59 = vld [vmem:[%s14380_s7 + $0xc24] sm:$0xf]  ;;  %v11038_v61 = vor.u32 %v12937_v45, %v11035_v48 }
 0x2e4   : > { %7940 = vmatpush.bf16.msrb.mxu2 %v10942_v4  ;;  %v10763_v60 = vld [vmem:[%s14380_s7 + $0xc30] sm:$0xf0]  ;;  %v11214_v62 = vor.u32 %v12981_v49, %v11211_v50  ;;  %v12901_v63 = vld [vmem:[%s14380_s7 + $0xd24] sm:$0xf] }
 0x2e5   : > { %7953 = vmatpush.bf16.msrb.mxu3 %v11070_v41  ;;  %7919 = vmatmul.bf16.vlgmr.msrb.gmra.mxu0 %v14627_v26  ;;  %v10891_v0 = vld [vmem:[%s14380_s7 + $0xd30] sm:$0xf0]  ;;  %v12933_v1 = vld [vmem:[%s14380_s7 + $0xe24] sm:$0xf]  ;;  %v10766_v7 = vor.u32 %v12869_v59, %v10763_v60 }
 0x2e6   : > { %7963 = vmatpush.bf16.msra.mxu0 %v11246_v12  ;;  %v11019_v2 = vld [vmem:[%s14380_s7 + $0xe30] sm:$0xf0]  ;;  %v12977_v4 = vld [vmem:[%s14380_s7 + $0xf84] sm:$0xf]  ;;  %v10894_v41 = vor.u32 %v12901_v63, %v10891_v0 }
 0x2e7   : > { %7928 = vmatpush.bf16.msrb.mxu1 %v10798_v34  ;;  %v11195_v6 = vld [vmem:[%s14380_s7 + $0xf90] sm:$0xf0]  ;;  %v12865_v8 = vld [vmem:[%s14380_s7 + $0xc04] sm:$0xf]  ;;  %v11022_v19 = vor.u32 %v12933_v1, %v11019_v2  ;;  %v7688_v34 = vpop.f32.mrf.mxu2 }
 0x2e8   : > { %7941 = vmatpush.bf16.msrb.mxu2 %v10926_v36  ;;  %v10747_v12 = vld [vmem:[%s14380_s7 + $0xc10] sm:$0xf0]  ;;  %v12897_v17 = vld [vmem:[%s14380_s7 + $0xd04] sm:$0xf]  ;;  %v11198_v3 = vor.u32 %v12977_v4, %v11195_v6 }
 0x2e9   : > { %7954 = vmatpush.bf16.msrb.mxu3 %v11054_v39  ;;  %v10875_v20 = vld [vmem:[%s14380_s7 + $0xd10] sm:$0xf0]  ;;  %v12929_v28 = vld [vmem:[%s14380_s7 + $0xe04] sm:$0xf]  ;;  %v7701_v39 = vpop.f32.mrf.mxu3  ;;  %v10750_v44 = vor.u32 %v12865_v8, %v10747_v12 }
 0x2ea   : > { %7964 = vmatpush.bf16.msra.mxu0 %v11230_v42  ;;  %v11003_v33 = vld [vmem:[%s14380_s7 + $0xe10] sm:$0xf0]  ;;  %v12973_v36 = vld [vmem:[%s14380_s7 + $0xf64] sm:$0xf]  ;;  %v10878_v45 = vor.u32 %v12897_v17, %v10875_v20 }
 0x2eb   : > { %7929 = vmatpush.bf16.msrb.mxu1 %v10782_v43  ;;  %v11179_v37 = vld [vmem:[%s14380_s7 + $0xf70] sm:$0xf0]  ;;  %v13021_v38 = vld [vmem:[%s14380_s7 + $0x10e4] sm:$0xf]  ;;  %v11006_v48 = vor.u32 %v12929_v28, %v11003_v33 }
 0x2ec   : > { %7942 = vmatpush.bf16.msrb.mxu2 %v10910_v54  ;;  %v11371_v40 = vld [vmem:[%s14380_s7 + $0x10f0] sm:$0xf0]  ;;  %v13053_v42 = vld [vmem:[%s14380_s7 + $0x11e4] sm:$0xf]  ;;  %v11182_v49 = vor.u32 %v12973_v36, %v11179_v37 }
 0x2ed   : > { %7955 = vmatpush.bf16.msrb.mxu3 %v11038_v61  ;;  %v11499_v32 = vld [vmem:[%s14380_s7 + $0x11f0] sm:$0xf0]  ;;  %v13085_v46 = vld [vmem:[%s14380_s7 + $0x12e4] sm:$0xf]  ;;  %v11374_v50 = vor.u32 %v13021_v38, %v11371_v40 }
 0x2ee   : > { %7965 = vmatpush.bf16.msra.mxu0 %v11214_v62  ;;  %v11627_v47 = vld [vmem:[%s14380_s7 + $0x12f0] sm:$0xf0]  ;;  %v11502_v51 = vor.u32 %v13053_v42, %v11499_v32  ;;  %v12969_v52 = vld [vmem:[%s14380_s7 + $0xf44] sm:$0xf] }
 0x2ef   : > { %7930 = vmatpush.bf16.msrb.mxu1 %v10766_v7  ;;  %v11163_v43 = vld [vmem:[%s14380_s7 + $0xf50] sm:$0xf0]  ;;  %v13017_v54 = vld [vmem:[%s14380_s7 + $0x10c4] sm:$0xf]  ;;  %v11630_v59 = vor.u32 %v13085_v46, %v11627_v47 }
 0x2f0   : > { %7943 = vmatpush.bf16.msrb.mxu2 %v10894_v41  ;;  %v11355_v60 = vld [vmem:[%s14380_s7 + $0x10d0] sm:$0xf0]  ;;  %v13049_v61 = vld [vmem:[%s14380_s7 + $0x11c4] sm:$0xf]  ;;  %v11166_v1 = vor.u32 %v12969_v52, %v11163_v43 }
 0x2f1   : > { %7956 = vmatpush.bf16.msrb.mxu3 %v11022_v19  ;;  %v11483_v62 = vld [vmem:[%s14380_s7 + $0x11d0] sm:$0xf0]  ;;  %v13081_v63 = vld [vmem:[%s14380_s7 + $0x12c4] sm:$0xf]  ;;  %v11358_v2 = vor.u32 %v13017_v54, %v11355_v60 }
 0x2f2   : > { %7966 = vmatpush.bf16.msra.mxu0 %v11198_v3  ;;  %v11611_v0 = vld [vmem:[%s14380_s7 + $0x12d0] sm:$0xf0]  ;;  %v11486_v4 = vor.u32 %v13049_v61, %v11483_v62  ;;  %v12965_v6 = vld [vmem:[%s14380_s7 + $0xf24] sm:$0xf] }
 0x2f3   : > { %7931 = vmatpush.bf16.msrb.mxu1 %v10750_v44  ;;  %v11147_v7 = vld [vmem:[%s14380_s7 + $0xf30] sm:$0xf0]  ;;  %v13013_v41 = vld [vmem:[%s14380_s7 + $0x10a4] sm:$0xf]  ;;  %v11614_v8 = vor.u32 %v13081_v63, %v11611_v0 }
 0x2f4   : > { %7944 = vmatpush.bf16.msrb.mxu2 %v10878_v45  ;;  %v11339_v12 = vld [vmem:[%s14380_s7 + $0x10b0] sm:$0xf0]  ;;  %v13045_v17 = vld [vmem:[%s14380_s7 + $0x11a4] sm:$0xf]  ;;  %v11150_v28 = vor.u32 %v12965_v6, %v11147_v7  ;;  %v7712_v45 = vpop.f32.mrf.mxu0 }
 0x2f5   : > { %7957 = vmatpush.bf16.msrb.mxu3 %v11006_v48  ;;  %v11467_v19 = vld [vmem:[%s14380_s7 + $0x11b0] sm:$0xf0]  ;;  %v13077_v3 = vld [vmem:[%s14380_s7 + $0x12a4] sm:$0xf]  ;;  %v11342_v34 = vor.u32 %v13013_v41, %v11339_v12 }
 0x2f6   : > { %7967 = vmatpush.bf16.msra.mxu0 %v11182_v49  ;;  %7932 = vmatmul.bf16.vlgmr.msrb.gmra.mxu1 %v14685_v55  ;;  %v11595_v20 = vld [vmem:[%s14380_s7 + $0x12b0] sm:$0xf0]  ;;  %v12961_v33 = vld [vmem:[%s14380_s7 + $0xf04] sm:$0xf]  ;;  %v11470_v36 = vor.u32 %v13045_v17, %v11467_v19  ;;  %v7713_v49 = vadd.f32 %v7712_v45, %v15119_v53 }
 0x2f7   : > { %7976 = vmatpush.bf16.msra.mxu1 %v11374_v50  ;;  %7945 = vmatmul.bf16.vlgmr.msrb.gmra.mxu2 %v14689_v57  ;;  %v11131_v37 = vld [vmem:[%s14380_s7 + $0xf10] sm:$0xf0]  ;;  %v13009_v38 = vld [vmem:[%s14380_s7 + $0x1084] sm:$0xf]  ;;  %v11598_v40 = vor.u32 %v13077_v3, %v11595_v20 }
 0x2f8   : > { %7989 = vmatpush.bf16.msra.mxu2 %v11502_v51  ;;  %7958 = vmatmul.bf16.vlgmr.msrb.gmra.mxu3 %v14687_v56  ;;  %v11323_v39 = vld [vmem:[%s14380_s7 + $0x1090] sm:$0xf0]  ;;  %v13041_v42 = vld [vmem:[%s14380_s7 + $0x1184] sm:$0xf]  ;;  %v11134_v50 = vor.u32 %v12961_v33, %v11131_v37  ;;  %v7725_v51 = vpop.f32.mrf.mxu1 }
 0x2f9   : > { %8002 = vmatpush.bf16.msra.mxu3 %v11630_v59  ;;  %v11451_v32 = vld [vmem:[%s14380_s7 + $0x1190] sm:$0xf0]  ;;  %v13073_v44 = vld [vmem:[%s14380_s7 + $0x1284] sm:$0xf]  ;;  %v11326_v52 = vor.u32 %v13009_v38, %v11323_v39  ;;  %v7726_v61 = vadd.f32 %v7725_v51, %v7713_v49 }
 0x2fa   : > { %7968 = vmatpush.bf16.msra.mxu0 %v11166_v1  ;;  %v11579_v46 = vld [vmem:[%s14380_s7 + $0x1290] sm:$0xf0]  ;;  %v13117_v47 = vld [vmem:[%s14380_s7 + $0x13e4] sm:$0xf]  ;;  %v11454_v43 = vor.u32 %v13041_v42, %v11451_v32  ;;  %v7738_v17 = vpop.f32.mrf.mxu2 }
 0x2fb   : > { %7977 = vmatpush.bf16.msra.mxu1 %v11358_v2  ;;  %v11755_v48 = vld [vmem:[%s14380_s7 + $0x13f0] sm:$0xf0]  ;;  %v13005_v54 = vld [vmem:[%s14380_s7 + $0x1064] sm:$0xf]  ;;  %v11582_v60 = vor.u32 %v13073_v44, %v11579_v46  ;;  %v7739_v33 = vadd.f32 %v7738_v17, %v7726_v61 }
 0x2fc   : > { %7990 = vmatpush.bf16.msra.mxu2 %v11486_v4  ;;  %v11307_v59 = vld [vmem:[%s14380_s7 + $0x1070] sm:$0xf0]  ;;  %v11758_v62 = vor.u32 %v13117_v47, %v11755_v48  ;;  %v13037_v63 = vld [vmem:[%s14380_s7 + $0x1164] sm:$0xf] }
 0x2fd   : > { %8003 = vmatpush.bf16.msra.mxu3 %v11614_v8  ;;  %v11435_v0 = vld [vmem:[%s14380_s7 + $0x1170] sm:$0xf0]  ;;  %v13069_v53 = vld [vmem:[%s14380_s7 + $0x1264] sm:$0xf]  ;;  %v11310_v6 = vor.u32 %v13005_v54, %v11307_v59 }
 0x2fe   : > { %7969 = vmatpush.bf16.msra.mxu0 %v11150_v28  ;;  %v11563_v1 = vld [vmem:[%s14380_s7 + $0x1270] sm:$0xf0]  ;;  %v13113_v2 = vld [vmem:[%s14380_s7 + $0x13c4] sm:$0xf]  ;;  %v11438_v7 = vor.u32 %v13037_v63, %v11435_v0 }
 0x2ff   : > { %7978 = vmatpush.bf16.msra.mxu1 %v11342_v34  ;;  %v11739_v4 = vld [vmem:[%s14380_s7 + $0x13d0] sm:$0xf0]  ;;  %v13001_v41 = vld [vmem:[%s14380_s7 + $0x1044] sm:$0xf]  ;;  %v11566_v12 = vor.u32 %v13069_v53, %v11563_v1  ;;  %v7714_v34 = vpop.f32.mrf.mxu0 }
 0x300   : > { %7991 = vmatpush.bf16.msra.mxu2 %v11470_v36  ;;  %v11291_v8 = vld [vmem:[%s14380_s7 + $0x1050] sm:$0xf0]  ;;  %v11742_v19 = vor.u32 %v13113_v2, %v11739_v4  ;;  %v13033_v3 = vld [vmem:[%s14380_s7 + $0x1144] sm:$0xf]  ;;  %v7751_v36 = vpop.f32.mrf.mxu3 }
 0x301   : > { %8004 = vmatpush.bf16.msra.mxu3 %v11598_v40  ;;  %v11419_v20 = vld [vmem:[%s14380_s7 + $0x1150] sm:$0xf0]  ;;  %v13065_v28 = vld [vmem:[%s14380_s7 + $0x1244] sm:$0xf]  ;;  %v7727_v40 = vpop.f32.mrf.mxu1  ;;  %v7752_v42 = vadd.f32 %v7751_v36, %v7739_v33  ;;  %v11294_v32 = vor.u32 %v13001_v41, %v11291_v8 }
 0x302   : > { %7970 = vmatpush.bf16.msra.mxu0 %v11134_v50  ;;  %v11547_v37 = vld [vmem:[%s14380_s7 + $0x1250] sm:$0xf0]  ;;  %v13109_v38 = vld [vmem:[%s14380_s7 + $0x13a4] sm:$0xf]  ;;  %v11422_v44 = vor.u32 %v13033_v3, %v11419_v20 }
 0x303   : > { %7979 = vmatpush.bf16.msra.mxu1 %v11326_v52  ;;  %v11723_v39 = vld [vmem:[%s14380_s7 + $0x13b0] sm:$0xf0]  ;;  %v12997_v45 = vld [vmem:[%s14380_s7 + $0x1024] sm:$0xf]  ;;  %v11550_v47 = vor.u32 %v13065_v28, %v11547_v37 }
 0x304   : > { %7992 = vmatpush.bf16.msra.mxu2 %v11454_v43  ;;  %v11275_v46 = vld [vmem:[%s14380_s7 + $0x1030] sm:$0xf0]  ;;  %v11726_v48 = vor.u32 %v13109_v38, %v11723_v39  ;;  %v13029_v49 = vld [vmem:[%s14380_s7 + $0x1124] sm:$0xf] }
 0x305   : > { %8005 = vmatpush.bf16.msra.mxu3 %v11582_v60  ;;  %7971 = vmatmul.bf16.vlgmr.msra.gmra.mxu0 %v14691_v58  ;;  %v11403_v50 = vld [vmem:[%s14380_s7 + $0x1130] sm:$0xf0]  ;;  %v13061_v51 = vld [vmem:[%s14380_s7 + $0x1224] sm:$0xf]  ;;  %v11278_v59 = vor.u32 %v12997_v45, %v11275_v46 }
 0x306   : > { %8015 = vmatpush.bf16.msrb.mxu0 %v11758_v62  ;;  %v11531_v52 = vld [vmem:[%s14380_s7 + $0x1230] sm:$0xf0]  ;;  %v13105_v43 = vld [vmem:[%s14380_s7 + $0x1384] sm:$0xf]  ;;  %v11406_v60 = vor.u32 %v13029_v49, %v11403_v50 }
 0x307   : > { %7980 = vmatpush.bf16.msra.mxu1 %v11310_v6  ;;  %v11707_v54 = vld [vmem:[%s14380_s7 + $0x1390] sm:$0xf0]  ;;  %v12993_v61 = vld [vmem:[%s14380_s7 + $0x1004] sm:$0xf]  ;;  %v11534_v0 = vor.u32 %v13061_v51, %v11531_v52  ;;  %v7740_v6 = vpop.f32.mrf.mxu2  ;;  %v7764_v17 = vpop.f32.mrf.mxu0 }
 0x308   : > { %7993 = vmatpush.bf16.msra.mxu2 %v11438_v7  ;;  %v11259_v62 = vld [vmem:[%s14380_s7 + $0x1010] sm:$0xf0]  ;;  %v13025_v63 = vld [vmem:[%s14380_s7 + $0x1104] sm:$0xf]  ;;  %v11710_v53 = vor.u32 %v13105_v43, %v11707_v54  ;;  %v15210_v28 = vadd.f32 %v7764_v17, %v7752_v42 }
 0x309   : > { %8006 = vmatpush.bf16.msra.mxu3 %v11566_v12  ;;  %v11387_v1 = vld [vmem:[%s14380_s7 + $0x1110] sm:$0xf0]  ;;  %v13057_v2 = vld [vmem:[%s14380_s7 + $0x1204] sm:$0xf]  ;;  %v7753_v12 = vpop.f32.mrf.mxu3  ;;  %v11262_v33 = vor.u32 %v12993_v61, %v11259_v62 }
 0x30a   : > { %8016 = vmatpush.bf16.msrb.mxu0 %v11742_v19  ;;  %v11515_v4 = vld [vmem:[%s14380_s7 + $0x1210] sm:$0xf0]  ;;  %v13101_v7 = vld [vmem:[%s14380_s7 + $0x1364] sm:$0xf]  ;;  %v11390_v34 = vor.u32 %v13025_v63, %v11387_v1 }
 0x30b   : > { %7981 = vmatpush.bf16.msra.mxu1 %v11294_v32  ;;  %v11691_v41 = vld [vmem:[%s14380_s7 + $0x1370] sm:$0xf0]  ;;  %v13149_v8 = vld [vmem:[%s14380_s7 + $0x14e4] sm:$0xf]  ;;  %v11518_v38 = vor.u32 %v13057_v2, %v11515_v4 }
 0x30c   : > { %7994 = vmatpush.bf16.msra.mxu2 %v11422_v44  ;;  %v11883_v19 = vld [vmem:[%s14380_s7 + $0x14f0] sm:$0xf0]  ;;  %v13181_v3 = vld [vmem:[%s14380_s7 + $0x15e4] sm:$0xf]  ;;  %v11694_v39 = vor.u32 %v13101_v7, %v11691_v41 }
 0x30d   : > { %8007 = vmatpush.bf16.msra.mxu3 %v11550_v47  ;;  %v12011_v20 = vld [vmem:[%s14380_s7 + $0x15f0] sm:$0xf0]  ;;  %v13213_v36 = vld [vmem:[%s14380_s7 + $0x16e4] sm:$0xf]  ;;  %v11886_v40 = vor.u32 %v13149_v8, %v11883_v19 }
 0x30e   : > { %8017 = vmatpush.bf16.msrb.mxu0 %v11726_v48  ;;  %v12139_v37 = vld [vmem:[%s14380_s7 + $0x16f0] sm:$0xf0]  ;;  %v12014_v32 = vor.u32 %v13181_v3, %v12011_v20  ;;  %v13097_v44 = vld [vmem:[%s14380_s7 + $0x1344] sm:$0xf] }
 0x30f   : > { %7982 = vmatpush.bf16.msra.mxu1 %v11278_v59  ;;  %v11675_v45 = vld [vmem:[%s14380_s7 + $0x1350] sm:$0xf0]  ;;  %v13145_v46 = vld [vmem:[%s14380_s7 + $0x14c4] sm:$0xf]  ;;  %v12142_v42 = vor.u32 %v13213_v36, %v12139_v37  ;;  %v7766_v1 = vpop.f32.mrf.mxu0 }
 0x310   : > { %7995 = vmatpush.bf16.msra.mxu2 %v11406_v60  ;;  %v11867_v47 = vld [vmem:[%s14380_s7 + $0x14d0] sm:$0xf0]  ;;  %v13177_v48 = vld [vmem:[%s14380_s7 + $0x15c4] sm:$0xf]  ;;  %v11678_v52 = vor.u32 %v13097_v44, %v11675_v45 }
 0x311   : > { %8008 = vmatpush.bf16.msra.mxu3 %v11534_v0  ;;  %v11995_v49 = vld [vmem:[%s14380_s7 + $0x15d0] sm:$0xf0]  ;;  %v13209_v50 = vld [vmem:[%s14380_s7 + $0x16c4] sm:$0xf]  ;;  %v11870_v43 = vor.u32 %v13145_v46, %v11867_v47 }
 0x312   : > { %8018 = vmatpush.bf16.msrb.mxu0 %v11710_v53  ;;  %v12123_v51 = vld [vmem:[%s14380_s7 + $0x16d0] sm:$0xf0]  ;;  %v11998_v54 = vor.u32 %v13177_v48, %v11995_v49  ;;  %v13093_v59 = vld [vmem:[%s14380_s7 + $0x1324] sm:$0xf] }
 0x313   : > { %7983 = vmatpush.bf16.msra.mxu1 %v11262_v33  ;;  %v11659_v60 = vld [vmem:[%s14380_s7 + $0x1330] sm:$0xf0]  ;;  %v13141_v61 = vld [vmem:[%s14380_s7 + $0x14a4] sm:$0xf]  ;;  %v12126_v62 = vor.u32 %v13209_v50, %v12123_v51  ;;  %v7777_v44 = vpop.f32.mrf.mxu1 }
 0x314   : > { %7996 = vmatpush.bf16.msra.mxu2 %v11390_v34  ;;  %v11851_v63 = vld [vmem:[%s14380_s7 + $0x14b0] sm:$0xf0]  ;;  %v13173_v0 = vld [vmem:[%s14380_s7 + $0x15a4] sm:$0xf]  ;;  %v11662_v6 = vor.u32 %v13093_v59, %v11659_v60 }
 0x315   : > { %8009 = vmatpush.bf16.msra.mxu3 %v11518_v38  ;;  %v11979_v53 = vld [vmem:[%s14380_s7 + $0x15b0] sm:$0xf0]  ;;  %v13205_v2 = vld [vmem:[%s14380_s7 + $0x16a4] sm:$0xf]  ;;  %v11854_v8 = vor.u32 %v13141_v61, %v11851_v63 }
 0x316   : > { %8019 = vmatpush.bf16.msrb.mxu0 %v11694_v39  ;;  %7984 = vmatmul.bf16.vlgmr.msra.gmra.mxu1 %v14774_v18  ;;  %v12107_v4 = vld [vmem:[%s14380_s7 + $0x16b0] sm:$0xf0]  ;;  %v13089_v7 = vld [vmem:[%s14380_s7 + $0x1304] sm:$0xf]  ;;  %v11982_v12 = vor.u32 %v13173_v0, %v11979_v53 }
 0x317   : > { %8028 = vmatpush.bf16.msrb.mxu1 %v11886_v40  ;;  %7997 = vmatmul.bf16.vlgmr.msra.gmra.mxu2 %v14780_v23  ;;  %v11643_v41 = vld [vmem:[%s14380_s7 + $0x1310] sm:$0xf0]  ;;  %v13137_v17 = vld [vmem:[%s14380_s7 + $0x1484] sm:$0xf]  ;;  %v12110_v20 = vor.u32 %v13205_v2, %v12107_v4 }
 0x318   : > { %8041 = vmatpush.bf16.msrb.mxu2 %v12014_v32  ;;  %8010 = vmatmul.bf16.vlgmr.msra.gmra.mxu3 %v14778_v22  ;;  %v11835_v19 = vld [vmem:[%s14380_s7 + $0x1490] sm:$0xf0]  ;;  %v13169_v3 = vld [vmem:[%s14380_s7 + $0x1584] sm:$0xf]  ;;  %v11646_v32 = vor.u32 %v13089_v7, %v11643_v41 }
 0x319   : > { %8054 = vmatpush.bf16.msrb.mxu3 %v12142_v42  ;;  %v11963_v33 = vld [vmem:[%s14380_s7 + $0x1590] sm:$0xf0]  ;;  %v13201_v34 = vld [vmem:[%s14380_s7 + $0x1684] sm:$0xf]  ;;  %v11838_v45 = vor.u32 %v13137_v17, %v11835_v19 }
 0x31a   : > { %8020 = vmatpush.bf16.msrb.mxu0 %v11678_v52  ;;  %v13363_v36 = vld [vmem:[%s14373_s28] sm:$0xf]  ;;  %v13245_v39 = vld [vmem:[%s14380_s7 + $0x17e4] sm:$0xf]  ;;  %v11966_v46 = vor.u32 %v13169_v3, %v11963_v33  ;;  %v7790_v53 = vpop.f32.mrf.mxu2 }
 0x31b   : > { %8029 = vmatpush.bf16.msrb.mxu1 %v11870_v43  ;;  %v3456_v37 = vperm.slane %v13363_v36, 1  ;;  %v12091_v38 = vld [vmem:[%s14380_s7 + $0x1690] sm:$0xf0]  ;;  %v13133_v42 = vld [vmem:[%s14380_s7 + $0x1464] sm:$0xf] }
 0x31c   : > { %8042 = vmatpush.bf16.msrb.mxu2 %v11998_v54  ;;  %v12267_v40 = vld [vmem:[%s14380_s7 + $0x17f0] sm:$0xf0]  ;;  %v12094_v48 = vor.u32 %v13201_v34, %v12091_v38  ;;  %v13165_v50 = vld [vmem:[%s14380_s7 + $0x1564] sm:$0xf] }
 0x31d   : > { %8055 = vmatpush.bf16.msrb.mxu3 %v12126_v62  ;;  %v11819_v47 = vld [vmem:[%s14380_s7 + $0x1470] sm:$0xf0]  ;;  %v12270_v49 = vor.u32 %v13245_v39, %v12267_v40  ;;  %v13197_v52 = vld [vmem:[%s14380_s7 + $0x1664] sm:$0xf]  ;;  %v7778_v43 = vadd.f32 %v7777_v44, %v3456_v37 }
 0x31e   : > { %8021 = vmatpush.bf16.msrb.mxu0 %v11662_v6  ;;  %v11947_v51 = vld [vmem:[%s14380_s7 + $0x1570] sm:$0xf0]  ;;  %v13241_v59 = vld [vmem:[%s14380_s7 + $0x17c4] sm:$0xf]  ;;  %v11822_v61 = vor.u32 %v13133_v42, %v11819_v47 }
 0x31f   : > { %8030 = vmatpush.bf16.msrb.mxu1 %v11854_v8  ;;  %v12075_v54 = vld [vmem:[%s14380_s7 + $0x1670] sm:$0xf0]  ;;  %v11950_v62 = vor.u32 %v13165_v50, %v11947_v51  ;;  %v13129_v63 = vld [vmem:[%s14380_s7 + $0x1444] sm:$0xf]  ;;  %v7791_v41 = vadd.f32 %v7790_v53, %v7778_v43  ;;  %v7803_v8 = vpop.f32.mrf.mxu3 }
 0x320   : > { %8043 = vmatpush.bf16.msrb.mxu2 %v11982_v12  ;;  %v12251_v60 = vld [vmem:[%s14380_s7 + $0x17d0] sm:$0xf0]  ;;  %v12078_v1 = vor.u32 %v13197_v52, %v12075_v54  ;;  %v13161_v4 = vld [vmem:[%s14380_s7 + $0x1544] sm:$0xf] }
 0x321   : > { %8056 = vmatpush.bf16.msrb.mxu3 %v12110_v20  ;;  %v11803_v0 = vld [vmem:[%s14380_s7 + $0x1450] sm:$0xf0]  ;;  %v12254_v2 = vor.u32 %v13241_v59, %v12251_v60  ;;  %v13193_v7 = vld [vmem:[%s14380_s7 + $0x1644] sm:$0xf]  ;;  %v7804_v3 = vadd.f32 %v7803_v8, %v7791_v41  ;;  %v7779_v20 = vpop.f32.mrf.mxu1 }
 0x322   : > { %8022 = vmatpush.bf16.msrb.mxu0 %v11646_v32  ;;  %v11931_v6 = vld [vmem:[%s14380_s7 + $0x1550] sm:$0xf0]  ;;  %v13237_v17 = vld [vmem:[%s14380_s7 + $0x17a4] sm:$0xf]  ;;  %v11806_v33 = vor.u32 %v13129_v63, %v11803_v0  ;;  %v7816_v47 = vpop.f32.mrf.mxu0  ;;  %v7792_v54 = vpop.f32.mrf.mxu2 }
 0x323   : > { %8031 = vmatpush.bf16.msrb.mxu1 %v11838_v45  ;;  %v12059_v12 = vld [vmem:[%s14380_s7 + $0x1650] sm:$0xf0]  ;;  %v11934_v34 = vor.u32 %v13161_v4, %v11931_v6  ;;  %v13125_v36 = vld [vmem:[%s14380_s7 + $0x1424] sm:$0xf]  ;;  %v15272_v43 = vadd.f32 %v7816_v47, %v7804_v3  ;;  %v9329_v6 = vld [vmem:[%s14380_s7 + $0xe8] sm:$0xf] }
 0x324   : > { %8044 = vmatpush.bf16.msrb.mxu2 %v11966_v46  ;;  %v12235_v19 = vld [vmem:[%s14380_s7 + $0x17b0] sm:$0xf0]  ;;  %v12062_v38 = vor.u32 %v13193_v7, %v12059_v12  ;;  %v13157_v40 = vld [vmem:[%s14380_s7 + $0x1524] sm:$0xf]  ;;  %v12512_v7 = vld [vmem:[%s14380_s7 + $0xf4] sm:$0xf0] }
 0x325   : > { %8057 = vmatpush.bf16.msrb.mxu3 %v12094_v48  ;;  %8023 = vmatmul.bf16.vlgmr.msrb.gmra.mxu0 %v14782_v27  ;;  %v11787_v37 = vld [vmem:[%s14380_s7 + $0x1430] sm:$0xf0]  ;;  %v12238_v39 = vor.u32 %v13237_v17, %v12235_v19  ;;  %v13189_v44 = vld [vmem:[%s14380_s7 + $0x1624] sm:$0xf]  ;;  %v9457_v12 = vld [vmem:[%s14380_s7 + $0x1e8] sm:$0xf] }
 0x326   : > { %8067 = vmatpush.bf16.msra.mxu0 %v12270_v49  ;;  %v11915_v32 = vld [vmem:[%s14380_s7 + $0x1530] sm:$0xf0]  ;;  %v13233_v46 = vld [vmem:[%s14380_s7 + $0x1784] sm:$0xf]  ;;  %v11790_v48 = vor.u32 %v13125_v36, %v11787_v37  ;;  %v12544_v17 = vld [vmem:[%s14380_s7 + $0x1f4] sm:$0xf0] }
 0x327   : > { %8032 = vmatpush.bf16.msrb.mxu1 %v11822_v61  ;;  %v12043_v45 = vld [vmem:[%s14380_s7 + $0x1630] sm:$0xf0]  ;;  %v11918_v49 = vor.u32 %v13157_v40, %v11915_v32  ;;  %v13121_v50 = vld [vmem:[%s14380_s7 + $0x1404] sm:$0xf]  ;;  %v7805_v0 = vpop.f32.mrf.mxu3  ;;  %v9313_v40 = vld [vmem:[%s14380_s7 + $0xc8] sm:$0xf] }
 0x328   : > { %8045 = vmatpush.bf16.msrb.mxu2 %v11950_v62  ;;  %v12219_v42 = vld [vmem:[%s14380_s7 + $0x1790] sm:$0xf0]  ;;  %v13153_v52 = vld [vmem:[%s14380_s7 + $0x1504] sm:$0xf]  ;;  %v12046_v59 = vor.u32 %v13189_v44, %v12043_v45  ;;  %v12508_v32 = vld [vmem:[%s14380_s7 + $0xd4] sm:$0xf0] }
 0x329   : > { %8058 = vmatpush.bf16.msrb.mxu3 %v12078_v1  ;;  %v11771_v51 = vld [vmem:[%s14380_s7 + $0x1410] sm:$0xf0]  ;;  %v12222_v60 = vor.u32 %v13233_v46, %v12219_v42  ;;  %v13185_v62 = vld [vmem:[%s14380_s7 + $0x1604] sm:$0xf]  ;;  %v9441_v45 = vld [vmem:[%s14380_s7 + $0x1c8] sm:$0xf] }
 0x32a   : > { %8068 = vmatpush.bf16.msra.mxu0 %v12254_v2  ;;  %v11899_v61 = vld [vmem:[%s14380_s7 + $0x1510] sm:$0xf0]  ;;  %v13229_v53 = vld [vmem:[%s14380_s7 + $0x1764] sm:$0xf]  ;;  %v11774_v41 = vor.u32 %v13121_v50, %v11771_v51  ;;  %v7818_v44 = vpop.f32.mrf.mxu0  ;;  %v12540_v46 = vld [vmem:[%s14380_s7 + $0x1d4] sm:$0xf0] }
 0x32b   : > { %8033 = vmatpush.bf16.msrb.mxu1 %v11806_v33  ;;  %v12027_v63 = vld [vmem:[%s14380_s7 + $0x1610] sm:$0xf0]  ;;  %v13261_v2 = vld [vmem:[%s14380_s7 + $0x1864] sm:$0xf]  ;;  %v11902_v8 = vor.u32 %v13153_v52, %v11899_v61  ;;  %v9330_v33 = vor.u32 %v12512_v7, %v9329_v6  ;;  %v9442_v52 = vor.u32 %v12540_v46, %v9441_v45  ;;  %v9425_v61 = vld [vmem:[%s14380_s7 + $0x1a8] sm:$0xf] }
 0x32c   : > { %8046 = vmatpush.bf16.msrb.mxu2 %v11934_v34  ;;  %v12203_v1 = vld [vmem:[%s14380_s7 + $0x1770] sm:$0xf0]  ;;  %v12030_v19 = vor.u32 %v13185_v62, %v12027_v63  ;;  %v13225_v34 = vld [vmem:[%s14380_s7 + $0x1744] sm:$0xf]  ;;  %v12536_v62 = vld [vmem:[%s14380_s7 + $0x1b4] sm:$0xf0] }
 0x32d   : > { %8059 = vmatpush.bf16.msrb.mxu3 %v12062_v38  ;;  %v12331_v4 = vld [vmem:[%s14380_s7 + $0x1870] sm:$0xf0]  ;;  %v12206_v3 = vor.u32 %v13229_v53, %v12203_v1  ;;  %v13257_v37 = vld [vmem:[%s14380_s7 + $0x1844] sm:$0xf]  ;;  %v9458_v38 = vor.u32 %v12544_v17, %v9457_v12  ;;  %v9426_v7 = vor.u32 %v12536_v62, %v9425_v61  ;;  %v9409_v12 = vld [vmem:[%s14380_s7 + $0x188] sm:$0xf] }
 0x32e   : > { %8069 = vmatpush.bf16.msra.mxu0 %v12238_v39  ;;  %v12334_v20 = vor.u32 %v13261_v2, %v12331_v4  ;;  %v12187_v36 = vld [vmem:[%s14380_s7 + $0x1750] sm:$0xf0]  ;;  %v13253_v51 = vld [vmem:[%s14380_s7 + $0x1824] sm:$0xf]  ;;  %v12532_v17 = vld [vmem:[%s14380_s7 + $0x194] sm:$0xf0] }
 0x32f   : > { %8034 = vmatpush.bf16.msrb.mxu1 %v11790_v48  ;;  %v12315_v39 = vld [vmem:[%s14380_s7 + $0x1850] sm:$0xf0]  ;;  %v12190_v42 = vor.u32 %v13225_v34, %v12187_v36  ;;  %v9314_v48 = vor.u32 %v12508_v32, %v9313_v40  ;;  %v13217_v0 = vld [vmem:[%s14380_s7 + $0x1704] sm:$0xf]  ;;  %v12608_v34 = vld [vmem:[%s14380_s7 + $0x3f4] sm:$0xf0]  ;;  %v9410_v40 = vor.u32 %v12532_v17, %v9409_v12 }
 0x330   : > { %8047 = vmatpush.bf16.msrb.mxu2 %v11918_v49  ;;  %v12318_v47 = vor.u32 %v13257_v37, %v12315_v39  ;;  %v13221_v49 = vld [vmem:[%s14380_s7 + $0x1724] sm:$0xf]  ;;  %v12171_v50 = vld [vmem:[%s14380_s7 + $0x1730] sm:$0xf0]  ;;  %v9265_v44 = vld [vmem:[%s14380_s7 + $0x68] sm:$0xf] }
 0x331   : > { %8060 = vmatpush.bf16.msrb.mxu3 %v12046_v59  ;;  %v12299_v54 = vld [vmem:[%s14380_s7 + $0x1830] sm:$0xf0]  ;;  %v9297_v59 = vld [vmem:[%s14380_s7 + $0xa8] sm:$0xf]  ;;  %v12174_v63 = vor.u32 %v13221_v49, %v12171_v50  ;;  %v13249_v4 = vld [vmem:[%s14380_s7 + $0x1804] sm:$0xf] }
 0x332   : > { %8070 = vmatpush.bf16.msra.mxu0 %v12222_v60  ;;  %v12504_v60 = vld [vmem:[%s14380_s7 + $0xb4] sm:$0xf0]  ;;  %v12302_v53 = vor.u32 %v13253_v51, %v12299_v54  ;;  %v12155_v2 = vld [vmem:[%s14380_s7 + $0x1710] sm:$0xf0]  ;;  %v9393_v46 = vld [vmem:[%s14380_s7 + $0x168] sm:$0xf] }
 0x333   : > { %8035 = vmatpush.bf16.msrb.mxu1 %v11774_v41  ;;  %v9298_v1 = vor.u32 %v12504_v60, %v9297_v59  ;;  %v12283_v6 = vld [vmem:[%s14380_s7 + $0x1810] sm:$0xf0]  ;;  %v9281_v41 = vld [vmem:[%s14380_s7 + $0x88] sm:$0xf]  ;;  %v7829_v36 = vpop.f32.mrf.mxu1  ;;  %v12496_v45 = vld [vmem:[%s14380_s7 + $0x74] sm:$0xf0] }
 0x334   : > { %8048 = vmatpush.bf16.msrb.mxu2 %v11902_v8  ;;  %v12500_v8 = vld [vmem:[%s14380_s7 + $0x94] sm:$0xf0]  ;;  %v12286_v37 = vor.u32 %v13249_v4, %v12283_v6  ;;  %v7830_v39 = vadd.f32 %v7829_v36, %v15272_v43  ;;  %v9697_v50 = vld [vmem:[%s14380_s7 + $0x3c8] sm:$0xf]  ;;  %v9266_v43 = vor.u32 %v12496_v45, %v9265_v44 }
 0x335   : > { %8061 = vmatpush.bf16.msrb.mxu3 %v12030_v19  ;;  %v9585_v19 = vld [vmem:[%s14380_s7 + $0x2e8] sm:$0xf]  ;;  %v12572_v49 = vld [vmem:[%s14380_s7 + $0x2d4] sm:$0xf0] }
 0x336   : > { %8071 = vmatpush.bf16.msra.mxu0 %v12206_v3  ;;  %8036 = vmatmul.bf16.vlgmr.msrb.gmra.mxu1 %v14813_v13  ;;  %v12576_v3 = vld [vmem:[%s14380_s7 + $0x2f4] sm:$0xf0]  ;;  %v9249_v60 = vld [vmem:[%s14380_s7 + $0x48] sm:$0xf] }
 0x337   : > { %8084 = vmatpush.bf16.msra.mxu1 %v12334_v20  ;;  %8049 = vmatmul.bf16.vlgmr.msrb.gmra.mxu2 %v14817_v15  ;;  %v12158_v20 = vor.u32 %v13217_v0, %v12155_v2  ;;  %v9586_v32 = vor.u32 %v12576_v3, %v9585_v19  ;;  %v12604_v51 = vld [vmem:[%s14380_s7 + $0x3d4] sm:$0xf0]  ;;  %v9377_v62 = vld [vmem:[%s14380_s7 + $0x148] sm:$0xf] }
 0x338   : > { %8093 = vmatpush.bf16.msra.mxu2 %v9330_v33  ;;  %8062 = vmatmul.bf16.vlgmr.msrb.gmra.mxu3 %v14815_v14  ;;  %v9713_v33 = vld [vmem:[%s14380_s7 + $0x3e8] sm:$0xf]  ;;  %v12492_v61 = vld [vmem:[%s14380_s7 + $0x54] sm:$0xf0] }
 0x339   : > { %8106 = vmatpush.bf16.msra.mxu3 %v9458_v38  ;;  %v9282_v38 = vor.u32 %v12500_v8, %v9281_v41  ;;  %v9553_v2 = vld [vmem:[%s14380_s7 + $0x2a8] sm:$0xf]  ;;  %v12568_v4 = vld [vmem:[%s14380_s7 + $0x2b4] sm:$0xf0]  ;;  %v9250_v12 = vor.u32 %v12492_v61, %v9249_v60 }
 0x33a   : > { %8072 = vmatpush.bf16.msra.mxu0 %v12190_v42  ;;  %v9714_v42 = vor.u32 %v12608_v34, %v9713_v33  ;;  %v9681_v6 = vld [vmem:[%s14380_s7 + $0x3a8] sm:$0xf]  ;;  %v9554_v19 = vor.u32 %v12568_v4, %v9553_v2  ;;  %v12520_v36 = vld [vmem:[%s14380_s7 + $0x134] sm:$0xf0] }
 0x33b   : > { %8085 = vmatpush.bf16.msra.mxu1 %v12318_v47  ;;  %v12528_v47 = vld [vmem:[%s14380_s7 + $0x174] sm:$0xf0]  ;;  %v7855_v0 = vpop.f32.mrf.mxu3  ;;  %v7831_v8 = vpop.f32.mrf.mxu1  ;;  %v9233_v3 = vld [vmem:[%s14380_s7 + $0x28] sm:$0xf] }
 0x33c   : > { %8094 = vmatpush.bf16.msra.mxu2 %v9314_v48  ;;  %v9569_v48 = vld [vmem:[%s14380_s7 + $0x2c8] sm:$0xf]  ;;  %v9394_v54 = vor.u32 %v12528_v47, %v9393_v46  ;;  %v12596_v44 = vld [vmem:[%s14380_s7 + $0x394] sm:$0xf0] }
 0x33d   : > { %8107 = vmatpush.bf16.msra.mxu3 %v9442_v52  ;;  %v7842_v52 = vpop.f32.mrf.mxu2  ;;  %v9570_v59 = vor.u32 %v12572_v49, %v9569_v48  ;;  %v9361_v33 = vld [vmem:[%s14380_s7 + $0x128] sm:$0xf]  ;;  %v12560_v60 = vld [vmem:[%s14380_s7 + $0x274] sm:$0xf0] }
 0x33e   : > { %8073 = vmatpush.bf16.msra.mxu0 %v12174_v63  ;;  %v7843_v63 = vadd.f32 %v7842_v52, %v7830_v39  ;;  %v13364_v39 = vld [vmem:[#allocation1] sm:$0xff]  ;;  %v9362_v48 = vor.u32 %v12520_v36, %v9361_v33  ;;  %v9649_v61 = vld [vmem:[%s14380_s7 + $0x368] sm:$0xf] }
 0x33f   : > { %8086 = vmatpush.bf16.msra.mxu1 %v12302_v53  ;;  %v9698_v53 = vor.u32 %v12604_v51, %v9697_v50  ;;  %v12484_v50 = vld [vmem:[%s14380_s7 + $0x14] sm:$0xf0]  ;;  %v9345_v51 = vld [vmem:[%s14380_s7 + $0x108] sm:$0xf] }
 0x340   : > { %8095 = vmatpush.bf16.msra.mxu2 %v9298_v1  ;;  %v12524_v1 = vld [vmem:[%s14380_s7 + $0x154] sm:$0xf0]  ;;  %v7856_v41 = vadd.f32 %v7855_v0, %v7843_v63  ;;  %v9841_v63 = vld [vmem:[%s14380_s7 + $0x4e8] sm:$0xf] }
 0x341   : > { %8108 = vmatpush.bf16.msra.mxu3 %v9426_v7  ;;  %v12600_v7 = vld [vmem:[%s14380_s7 + $0x3b4] sm:$0xf0]  ;;  %v9378_v17 = vor.u32 %v12524_v1, %v9377_v62  ;;  %v9969_v1 = vld [vmem:[%s14380_s7 + $0x5e8] sm:$0xf] }
 0x342   : > { %8074 = vmatpush.bf16.msra.mxu0 %v12158_v20  ;;  %v12488_v20 = vld [vmem:[%s14380_s7 + $0x34] sm:$0xf0]  ;;  %v9682_v34 = vor.u32 %v12600_v7, %v9681_v6  ;;  %v9505_v8 = vld [vmem:[%s14380_s7 + $0x248] sm:$0xf] }
 0x343   : > { %8087 = vmatpush.bf16.msra.mxu1 %v12286_v37  ;;  %v9537_v37 = vld [vmem:[%s14380_s7 + $0x288] sm:$0xf]  ;;  %v9234_v45 = vor.u32 %v12488_v20, %v9233_v3  ;;  %v7857_v52 = vpop.f32.mrf.mxu3  ;;  %v12592_v62 = vld [vmem:[%s14380_s7 + $0x374] sm:$0xf0] }
 0x344   : > { %8096 = vmatpush.bf16.msra.mxu2 %v9282_v38  ;;  %v12564_v38 = vld [vmem:[%s14380_s7 + $0x294] sm:$0xf0]  ;;  %v9650_v7 = vor.u32 %v12592_v62, %v9649_v61  ;;  %v9825_v20 = vld [vmem:[%s14380_s7 + $0x4c8] sm:$0xf] }
 0x345   : > { %8109 = vmatpush.bf16.msra.mxu3 %v9410_v40  ;;  %8075 = vmatmul.bf16.vlgmr.msra.gmra.mxu0 %v14819_v16  ;;  %v7868_v40 = vpop.f32.mrf.mxu0  ;;  %v7844_v47 = vpop.f32.mrf.mxu2  ;;  %v9538_v49 = vor.u32 %v12564_v38, %v9537_v37  ;;  %v12640_v0 = vld [vmem:[%s14380_s7 + $0x4f4] sm:$0xf0]  ;;  %v9953_v36 = vld [vmem:[%s14380_s7 + $0x5c8] sm:$0xf] }
 0x346   : > { %8119 = vmatpush.bf16.msrb.mxu0 %v9586_v32  ;;  %12344 = vmatmul.msk.bf16.vlgmr.msra.gmra.mxu1 %vm7440_vm0, %v13364_v39  ;;  %v9665_v32 = vld [vmem:[%s14380_s7 + $0x388] sm:$0xf]  ;;  %v15343_v46 = vadd.f32 %v7868_v40, %v7856_v41  ;;  %v12672_v2 = vld [vmem:[%s14380_s7 + $0x5f4] sm:$0xf0]  ;;  %v9842_v41 = vor.u32 %v12640_v0, %v9841_v63 }
 0x347   : > { %8132 = vmatpush.bf16.msrb.mxu1 %v9714_v42  ;;  %v9217_v42 = vld [vmem:[%s14380_s7 + $0x8] sm:$0xf]  ;;  %v12588_v3 = vld [vmem:[%s14380_s7 + $0x354] sm:$0xf0] }
 0x348   : > { %8097 = vmatpush.bf16.msra.mxu2 %v9266_v43  ;;  %v12516_v43 = vld [vmem:[%s14380_s7 + $0x114] sm:$0xf0]  ;;  %v9473_v52 = vld [vmem:[%s14380_s7 + $0x208] sm:$0xf] }
 0x349   : > { %8110 = vmatpush.bf16.msra.mxu3 %v9394_v54  ;;  %v9666_v54 = vor.u32 %v12596_v44, %v9665_v32  ;;  %v9346_v4 = vor.u32 %v12516_v43, %v9345_v51  ;;  %v12636_v33 = vld [vmem:[%s14380_s7 + $0x4d4] sm:$0xf0]  ;;  %v9489_v32 = vld [vmem:[%s14380_s7 + $0x228] sm:$0xf] }
 0x34a   : > { %8120 = vmatpush.bf16.msrb.mxu0 %v9570_v59  ;;  %v9521_v59 = vld [vmem:[%s14380_s7 + $0x268] sm:$0xf]  ;;  %v12668_v37 = vld [vmem:[%s14380_s7 + $0x5d4] sm:$0xf0]  ;;  %v9826_v40 = vor.u32 %v12636_v33, %v9825_v20 }
 0x34b   : > { %8133 = vmatpush.bf16.msrb.mxu1 %v9698_v53  ;;  %v9218_v53 = vor.u32 %v12484_v50, %v9217_v42  ;;  %v9522_v6 = vor.u32 %v12560_v60, %v9521_v59  ;;  %v12552_v44 = vld [vmem:[%s14380_s7 + $0x234] sm:$0xf0]  ;;  %v9954_v42 = vor.u32 %v12668_v37, %v9953_v36  ;;  %v9937_v50 = vld [vmem:[%s14380_s7 + $0x5a8] sm:$0xf] }
 0x34c   : > { %8098 = vmatpush.bf16.msra.mxu2 %v9250_v12  ;;  %v12556_v12 = vld [vmem:[%s14380_s7 + $0x254] sm:$0xf0]  ;;  %v9490_v43 = vor.u32 %v12552_v44, %v9489_v32  ;;  %v9601_v61 = vld [vmem:[%s14380_s7 + $0x308] sm:$0xf] }
 0x34d   : > { %8111 = vmatpush.bf16.msra.mxu3 %v9378_v17  ;;  %v9633_v17 = vld [vmem:[%s14380_s7 + $0x348] sm:$0xf]  ;;  %v9506_v38 = vor.u32 %v12556_v12, %v9505_v8  ;;  %v12584_v47 = vld [vmem:[%s14380_s7 + $0x334] sm:$0xf0] }
 0x34e   : > { %8121 = vmatpush.bf16.msrb.mxu0 %v9554_v19  ;;  %v9970_v19 = vor.u32 %v12672_v2, %v9969_v1  ;;  %v9634_v39 = vor.u32 %v12588_v3, %v9633_v17  ;;  %v12664_v51 = vld [vmem:[%s14380_s7 + $0x5b4] sm:$0xf0]  ;;  %v9793_v0 = vld [vmem:[%s14380_s7 + $0x488] sm:$0xf] }
 0x34f   : > { %8134 = vmatpush.bf16.msrb.mxu1 %v9682_v34  ;;  %v7870_v34 = vpop.f32.mrf.mxu0  ;;  %v12548_v60 = vld [vmem:[%s14380_s7 + $0x214] sm:$0xf0]  ;;  %v9938_v63 = vor.u32 %v12664_v51, %v9937_v50  ;;  %v9921_v1 = vld [vmem:[%s14380_s7 + $0x588] sm:$0xf] }
 0x350   : > { %8099 = vmatpush.bf16.msra.mxu2 %v9234_v45  ;;  %v9617_v45 = vld [vmem:[%s14380_s7 + $0x328] sm:$0xf]  ;;  %v12580_v62 = vld [vmem:[%s14380_s7 + $0x314] sm:$0xf0]  ;;  %v9474_v8 = vor.u32 %v12548_v60, %v9473_v52 }
 0x351   : > { %8112 = vmatpush.bf16.msra.mxu3 %v9362_v48  ;;  %v9809_v48 = vld [vmem:[%s14380_s7 + $0x4a8] sm:$0xf]  ;;  %v12736_v17 = vld [vmem:[%s14380_s7 + $0x7f4] sm:$0xf0] }
 0x352   : > { %8122 = vmatpush.bf16.msrb.mxu0 %v9538_v49  ;;  %v12632_v49 = vld [vmem:[%s14380_s7 + $0x4b4] sm:$0xf0]  ;;  %v10225_v12 = vld [vmem:[%s14380_s7 + $0x7e8] sm:$0xf] }
 0x353   : > { %8135 = vmatpush.bf16.msrb.mxu1 %v9666_v54  ;;  %v9618_v54 = vor.u32 %v12584_v47, %v9617_v45  ;;  %v9810_v59 = vor.u32 %v12632_v49, %v9809_v48  ;;  %v7881_v2 = vpop.f32.mrf.mxu1  ;;  %v9777_v34 = vld [vmem:[%s14380_s7 + $0x468] sm:$0xf]  ;;  %v12624_v36 = vld [vmem:[%s14380_s7 + $0x474] sm:$0xf0] }
 0x354   : > { %8100 = vmatpush.bf16.msra.mxu2 %v9218_v53  ;;  %v12628_v53 = vld [vmem:[%s14380_s7 + $0x494] sm:$0xf0]  ;;  %v9905_v37 = vld [vmem:[%s14380_s7 + $0x568] sm:$0xf]  ;;  %v9778_v45 = vor.u32 %v12624_v36, %v9777_v34 }
 0x355   : > { %8113 = vmatpush.bf16.msra.mxu3 %v9346_v4  ;;  %v12660_v4 = vld [vmem:[%s14380_s7 + $0x594] sm:$0xf0]  ;;  %v9794_v3 = vor.u32 %v12628_v53, %v9793_v0  ;;  %v10209_v32 = vld [vmem:[%s14380_s7 + $0x7c8] sm:$0xf] }
 0x356   : > { %8123 = vmatpush.bf16.msrb.mxu0 %v9522_v6  ;;  %v10097_v6 = vld [vmem:[%s14380_s7 + $0x6e8] sm:$0xf]  ;;  %v9922_v20 = vor.u32 %v12660_v4, %v9921_v1  ;;  %v12732_v44 = vld [vmem:[%s14380_s7 + $0x7d4] sm:$0xf0] }
 0x357   : > { %8136 = vmatpush.bf16.msrb.mxu1 %v9650_v7  ;;  %8101 = vmatmul.bf16.vlgmr.msra.gmra.mxu2 %v14488_v30  ;;  %v12704_v7 = vld [vmem:[%s14380_s7 + $0x6f4] sm:$0xf0]  ;;  %v9761_v50 = vld [vmem:[%s14380_s7 + $0x448] sm:$0xf] }
 0x358   : > { %8145 = vmatpush.bf16.msrb.mxu2 %v9842_v41  ;;  %8114 = vmatmul.bf16.vlgmr.msra.gmra.mxu3 %v14495_v35  ;;  %v7882_v41 = vadd.f32 %v7881_v2, %v15343_v46  ;;  %v10098_v33 = vor.u32 %v12704_v7, %v10097_v6  ;;  %v12656_v46 = vld [vmem:[%s14380_s7 + $0x574] sm:$0xf0]  ;;  %v10065_v60 = vld [vmem:[%s14380_s7 + $0x6a8] sm:$0xf] }
 0x359   : > { %8158 = vmatpush.bf16.msrb.mxu3 %v9970_v19  ;;  %v9602_v19 = vor.u32 %v12580_v62, %v9601_v61  ;;  %v12620_v51 = vld [vmem:[%s14380_s7 + $0x454] sm:$0xf0]  ;;  %v9745_v6 = vld [vmem:[%s14380_s7 + $0x428] sm:$0xf] }
 0x35a   : > { %8124 = vmatpush.bf16.msrb.mxu0 %v9506_v38  ;;  %v10226_v38 = vor.u32 %v12736_v17, %v10225_v12  ;;  %v7894_v47 = vpop.f32.mrf.mxu2  ;;  %v12696_v61 = vld [vmem:[%s14380_s7 + $0x6b4] sm:$0xf0]  ;;  %v9762_v1 = vor.u32 %v12620_v51, %v9761_v50  ;;  %v10049_v17 = vld [vmem:[%s14380_s7 + $0x688] sm:$0xf] }
 0x35b   : > { %8137 = vmatpush.bf16.msrb.mxu1 %v9634_v39  ;;  %v10081_v39 = vld [vmem:[%s14380_s7 + $0x6c8] sm:$0xf]  ;;  %v7907_v49 = vpop.f32.mrf.mxu3  ;;  %v7895_v52 = vadd.f32 %v7894_v47, %v7882_v41  ;;  %v7883_v62 = vpop.f32.mrf.mxu1  ;;  %v12728_v0 = vld [vmem:[%s14380_s7 + $0x7b4] sm:$0xf0]  ;;  %v10066_v4 = vor.u32 %v12696_v61, %v10065_v60 }
 0x35c   : > { %8146 = vmatpush.bf16.msrb.mxu2 %v9826_v40  ;;  %v12700_v40 = vld [vmem:[%s14380_s7 + $0x6d4] sm:$0xf0]  ;;  %v9873_v41 = vld [vmem:[%s14380_s7 + $0x528] sm:$0xf] }
 0x35d   : > { %8159 = vmatpush.bf16.msrb.mxu3 %v9954_v42  ;;  %v9906_v42 = vor.u32 %v12656_v46, %v9905_v37  ;;  %v10082_v48 = vor.u32 %v12700_v40, %v10081_v39  ;;  %v7908_v53 = vadd.f32 %v7907_v49, %v7895_v52  ;;  %v12616_v7 = vld [vmem:[%s14380_s7 + $0x434] sm:$0xf0]  ;;  %v9729_v37 = vld [vmem:[%s14380_s7 + $0x408] sm:$0xf] }
 0x35e   : > { %8125 = vmatpush.bf16.msrb.mxu0 %v9490_v43  ;;  %v9889_v43 = vld [vmem:[%s14380_s7 + $0x548] sm:$0xf]  ;;  %v12648_v12 = vld [vmem:[%s14380_s7 + $0x534] sm:$0xf0]  ;;  %v9746_v36 = vor.u32 %v12616_v7, %v9745_v6 }
 0x35f   : > { %8138 = vmatpush.bf16.msrb.mxu1 %v9618_v54  ;;  %v10210_v54 = vor.u32 %v12732_v44, %v10209_v32  ;;  %v12612_v39 = vld [vmem:[%s14380_s7 + $0x414] sm:$0xf0]  ;;  %v9857_v40 = vld [vmem:[%s14380_s7 + $0x508] sm:$0xf] }
 0x360   : > { %8147 = vmatpush.bf16.msrb.mxu2 %v9810_v59  ;;  %v12652_v59 = vld [vmem:[%s14380_s7 + $0x554] sm:$0xf0]  ;;  %v10033_v47 = vld [vmem:[%s14380_s7 + $0x668] sm:$0xf]  ;;  %v9730_v52 = vor.u32 %v12612_v39, %v9729_v37 }
 0x361   : > { %8160 = vmatpush.bf16.msrb.mxu3 %v9938_v63  ;;  %v10193_v63 = vld [vmem:[%s14380_s7 + $0x7a8] sm:$0xf]  ;;  %v9890_v2 = vor.u32 %v12652_v59, %v9889_v43  ;;  %v12644_v32 = vld [vmem:[%s14380_s7 + $0x514] sm:$0xf0] }
 0x362   : > { %8126 = vmatpush.bf16.msrb.mxu0 %v9474_v8  ;;  %v10194_v8 = vor.u32 %v12728_v0, %v10193_v63  ;;  %v7896_v44 = vpop.f32.mrf.mxu2  ;;  %v10161_v49 = vld [vmem:[%s14380_s7 + $0x768] sm:$0xf]  ;;  %v12720_v50 = vld [vmem:[%s14380_s7 + $0x774] sm:$0xf0]  ;;  %v9858_v60 = vor.u32 %v12644_v32, %v9857_v40 }
 0x363   : > { %8139 = vmatpush.bf16.msrb.mxu1 %v9602_v19  ;;  %v12692_v19 = vld [vmem:[%s14380_s7 + $0x694] sm:$0xf0]  ;;  %v10353_v51 = vld [vmem:[%s14380_s7 + $0x8e8] sm:$0xf]  ;;  %v10162_v62 = vor.u32 %v12720_v50, %v10161_v49 }
 0x364   : > { %8148 = vmatpush.bf16.msrb.mxu2 %v9794_v3  ;;  %v7920_v3 = vpop.f32.mrf.mxu0  ;;  %v10050_v46 = vor.u32 %v12692_v19, %v10049_v17  ;;  %v12768_v43 = vld [vmem:[%s14380_s7 + $0x8f4] sm:$0xf0]  ;;  %v10017_v0 = vld [vmem:[%s14380_s7 + $0x648] sm:$0xf] }
 0x365   : > { %8161 = vmatpush.bf16.msrb.mxu3 %v9922_v20  ;;  %8127 = vmatmul.bf16.vlgmr.msrb.gmra.mxu0 %v14486_v29  ;;  %v10177_v20 = vld [vmem:[%s14380_s7 + $0x788] sm:$0xf]  ;;  %v15414_v34 = vadd.f32 %v7920_v3, %v7908_v53  ;;  %v12800_v59 = vld [vmem:[%s14380_s7 + $0x9f4] sm:$0xf0]  ;;  %v10354_v63 = vor.u32 %v12768_v43, %v10353_v51 }
 0x366   : > { %8171 = vmatpush.bf16.msra.mxu0 %v10098_v33  ;;  %8140 = vmatmul.bf16.vlgmr.msrb.gmra.mxu1 %v14490_v31  ;;  %v12724_v33 = vld [vmem:[%s14380_s7 + $0x794] sm:$0xf0]  ;;  %v10337_v6 = vld [vmem:[%s14380_s7 + $0x8c8] sm:$0xf] }
 0x367   : > { %8184 = vmatpush.bf16.msra.mxu1 %v10226_v38  ;;  %v9874_v38 = vor.u32 %v12648_v12, %v9873_v41  ;;  %v12684_v53 = vld [vmem:[%s14380_s7 + $0x654] sm:$0xf0]  ;;  %v10449_v40 = vld [vmem:[%s14380_s7 + $0x9a8] sm:$0xf] }
 0x368   : > { %8149 = vmatpush.bf16.msrb.mxu2 %v9778_v45  ;;  %v7909_v45 = vpop.f32.mrf.mxu3  ;;  %v12764_v7 = vld [vmem:[%s14380_s7 + $0x8d4] sm:$0xf0]  ;;  %v10018_v17 = vor.u32 %v12684_v53, %v10017_v0  ;;  %v10113_v49 = vld [vmem:[%s14380_s7 + $0x708] sm:$0xf] }
 0x369   : > { %8162 = vmatpush.bf16.msrb.mxu3 %v9906_v42  ;;  %v10178_v42 = vor.u32 %v12724_v33, %v10177_v20  ;;  %v12796_v12 = vld [vmem:[%s14380_s7 + $0x9d4] sm:$0xf0]  ;;  %v10338_v3 = vor.u32 %v12764_v7, %v10337_v6  ;;  %v10001_v20 = vld [vmem:[%s14380_s7 + $0x628] sm:$0xf] }
 0x36a   : > { %8172 = vmatpush.bf16.msra.mxu0 %v10082_v48  ;;  %v12688_v48 = vld [vmem:[%s14380_s7 + $0x674] sm:$0xf0]  ;;  %v9985_v45 = vld [vmem:[%s14380_s7 + $0x608] sm:$0xf] }
 0x36b   : > { %8185 = vmatpush.bf16.msra.mxu1 %v10210_v54  ;;  %v10481_v54 = vld [vmem:[%s14380_s7 + $0x9e8] sm:$0xf]  ;;  %v10034_v61 = vor.u32 %v12688_v48, %v10033_v47  ;;  %v12680_v33 = vld [vmem:[%s14380_s7 + $0x634] sm:$0xf0] }
 0x36c   : > { %8150 = vmatpush.bf16.msrb.mxu2 %v9762_v1  ;;  %v10145_v1 = vld [vmem:[%s14380_s7 + $0x748] sm:$0xf]  ;;  %v7922_v41 = vpop.f32.mrf.mxu0  ;;  %v12760_v39 = vld [vmem:[%s14380_s7 + $0x8b4] sm:$0xf0]  ;;  %v10002_v44 = vor.u32 %v12680_v33, %v10001_v20 }
 0x36d   : > { %8163 = vmatpush.bf16.msrb.mxu3 %v9890_v2  ;;  %v10482_v2 = vor.u32 %v12800_v59, %v10481_v54  ;;  %v12792_v32 = vld [vmem:[%s14380_s7 + $0x9b4] sm:$0xf0]  ;;  %v10305_v43 = vld [vmem:[%s14380_s7 + $0x888] sm:$0xf] }
 0x36e   : > { %8173 = vmatpush.bf16.msra.mxu0 %v10066_v4  ;;  %v12716_v4 = vld [vmem:[%s14380_s7 + $0x754] sm:$0xf0]  ;;  %v10450_v51 = vor.u32 %v12792_v32, %v10449_v40  ;;  %v10433_v54 = vld [vmem:[%s14380_s7 + $0x988] sm:$0xf] }
 0x36f   : > { %8186 = vmatpush.bf16.msra.mxu1 %v10194_v8  ;;  %v10465_v8 = vld [vmem:[%s14380_s7 + $0x9c8] sm:$0xf]  ;;  %v10146_v19 = vor.u32 %v12716_v4, %v10145_v1  ;;  %v12676_v48 = vld [vmem:[%s14380_s7 + $0x614] sm:$0xf0] }
 0x370   : > { %8151 = vmatpush.bf16.msrb.mxu2 %v9746_v36  ;;  %v10129_v36 = vld [vmem:[%s14380_s7 + $0x728] sm:$0xf]  ;;  %v10466_v37 = vor.u32 %v12796_v12, %v10465_v8  ;;  %v12708_v50 = vld [vmem:[%s14380_s7 + $0x714] sm:$0xf0]  ;;  %v9986_v0 = vor.u32 %v12676_v48, %v9985_v45 }
 0x371   : > { %8164 = vmatpush.bf16.msrb.mxu3 %v9874_v38  ;;  %v12712_v38 = vld [vmem:[%s14380_s7 + $0x734] sm:$0xf0]  ;;  %v10737_v53 = vld [vmem:[%s14380_s7 + $0xbe8] sm:$0xf] }
 0x372   : > { %8174 = vmatpush.bf16.msra.mxu0 %v10050_v46  ;;  %v10321_v46 = vld [vmem:[%s14380_s7 + $0x8a8] sm:$0xf]  ;;  %v12864_v1 = vld [vmem:[%s14380_s7 + $0xbf4] sm:$0xf0] }
 0x373   : > { %8187 = vmatpush.bf16.msra.mxu1 %v10178_v42  ;;  %v10130_v42 = vor.u32 %v12712_v38, %v10129_v36  ;;  %v10322_v47 = vor.u32 %v12760_v39, %v10321_v46  ;;  %v7933_v59 = vpop.f32.mrf.mxu1  ;;  %v10289_v41 = vld [vmem:[%s14380_s7 + $0x868] sm:$0xf]  ;;  %v12752_v8 = vld [vmem:[%s14380_s7 + $0x874] sm:$0xf0] }
 0x374   : > { %8152 = vmatpush.bf16.msrb.mxu2 %v9730_v52  ;;  %v12756_v52 = vld [vmem:[%s14380_s7 + $0x894] sm:$0xf0]  ;;  %v10417_v12 = vld [vmem:[%s14380_s7 + $0x968] sm:$0xf]  ;;  %v10290_v36 = vor.u32 %v12752_v8, %v10289_v41 }
 0x375   : > { %8165 = vmatpush.bf16.msrb.mxu3 %v9858_v60  ;;  %v12788_v60 = vld [vmem:[%s14380_s7 + $0x994] sm:$0xf0]  ;;  %v10306_v4 = vor.u32 %v12756_v52, %v10305_v43  ;;  %v10721_v20 = vld [vmem:[%s14380_s7 + $0xbc8] sm:$0xf] }
 0x376   : > { %8175 = vmatpush.bf16.msra.mxu0 %v10034_v61  ;;  %v10609_v61 = vld [vmem:[%s14380_s7 + $0xae8] sm:$0xf]  ;;  %v10434_v6 = vor.u32 %v12788_v60, %v10433_v54  ;;  %v12860_v33 = vld [vmem:[%s14380_s7 + $0xbd4] sm:$0xf0] }
 0x377   : > { %8188 = vmatpush.bf16.msra.mxu1 %v10162_v62  ;;  %8153 = vmatmul.bf16.vlgmr.msrb.gmra.mxu2 %v14529_v9  ;;  %v12832_v62 = vld [vmem:[%s14380_s7 + $0xaf4] sm:$0xf0]  ;;  %v10273_v40 = vld [vmem:[%s14380_s7 + $0x848] sm:$0xf] }
 0x378   : > { %8197 = vmatpush.bf16.msra.mxu2 %v10354_v63  ;;  %8166 = vmatmul.bf16.vlgmr.msrb.gmra.mxu3 %v14533_v11  ;;  %v7934_v63 = vadd.f32 %v7933_v59, %v15414_v34  ;;  %v10610_v7 = vor.u32 %v12832_v62, %v10609_v61  ;;  %v12784_v34 = vld [vmem:[%s14380_s7 + $0x974] sm:$0xf0]  ;;  %v10577_v48 = vld [vmem:[%s14380_s7 + $0xaa8] sm:$0xf] }
 0x379   : > { %8210 = vmatpush.bf16.msra.mxu3 %v10482_v2  ;;  %v10114_v2 = vor.u32 %v12708_v50, %v10113_v49  ;;  %v12748_v32 = vld [vmem:[%s14380_s7 + $0x854] sm:$0xf0]  ;;  %v10257_v61 = vld [vmem:[%s14380_s7 + $0x828] sm:$0xf] }
 0x37a   : > { %8176 = vmatpush.bf16.msra.mxu0 %v10018_v17  ;;  %v10738_v17 = vor.u32 %v12864_v1, %v10737_v53  ;;  %v7946_v38 = vpop.f32.mrf.mxu2  ;;  %v12824_v49 = vld [vmem:[%s14380_s7 + $0xab4] sm:$0xf0]  ;;  %v10274_v54 = vor.u32 %v12748_v32, %v10273_v40  ;;  %v10561_v1 = vld [vmem:[%s14380_s7 + $0xa88] sm:$0xf] }
 0x37b   : > { %8189 = vmatpush.bf16.msra.mxu1 %v10146_v19  ;;  %v10593_v19 = vld [vmem:[%s14380_s7 + $0xac8] sm:$0xf]  ;;  %v7959_v39 = vpop.f32.mrf.mxu3  ;;  %v7947_v45 = vadd.f32 %v7946_v38, %v7934_v63  ;;  %v7935_v50 = vpop.f32.mrf.mxu1  ;;  %v12856_v43 = vld [vmem:[%s14380_s7 + $0xbb4] sm:$0xf0]  ;;  %v10578_v60 = vor.u32 %v12824_v49, %v10577_v48 }
 0x37c   : > { %8198 = vmatpush.bf16.msra.mxu2 %v10338_v3  ;;  %v12828_v3 = vld [vmem:[%s14380_s7 + $0xad4] sm:$0xf0]  ;;  %v10385_v63 = vld [vmem:[%s14380_s7 + $0x928] sm:$0xf] }
 0x37d   : > { %8211 = vmatpush.bf16.msra.mxu3 %v10466_v37  ;;  %v10418_v37 = vor.u32 %v12784_v34, %v10417_v12  ;;  %v10594_v46 = vor.u32 %v12828_v3, %v10593_v19  ;;  %v7960_v52 = vadd.f32 %v7959_v39, %v7947_v45  ;;  %v12744_v62 = vld [vmem:[%s14380_s7 + $0x834] sm:$0xf0]  ;;  %v10241_v12 = vld [vmem:[%s14380_s7 + $0x808] sm:$0xf] }
 0x37e   : > { %8177 = vmatpush.bf16.msra.mxu0 %v10002_v44  ;;  %v10401_v44 = vld [vmem:[%s14380_s7 + $0x948] sm:$0xf]  ;;  %v12776_v53 = vld [vmem:[%s14380_s7 + $0x934] sm:$0xf0]  ;;  %v10258_v8 = vor.u32 %v12744_v62, %v10257_v61 }
 0x37f   : > { %8190 = vmatpush.bf16.msra.mxu1 %v10130_v42  ;;  %v10722_v42 = vor.u32 %v12860_v33, %v10721_v20  ;;  %v12740_v19 = vld [vmem:[%s14380_s7 + $0x814] sm:$0xf0]  ;;  %v10369_v3 = vld [vmem:[%s14380_s7 + $0x908] sm:$0xf] }
 0x380   : > { %8199 = vmatpush.bf16.msra.mxu2 %v10322_v47  ;;  %v12780_v47 = vld [vmem:[%s14380_s7 + $0x954] sm:$0xf0]  ;;  %v10545_v38 = vld [vmem:[%s14380_s7 + $0xa68] sm:$0xf]  ;;  %v10242_v45 = vor.u32 %v12740_v19, %v10241_v12 }
 0x381   : > { %8212 = vmatpush.bf16.msra.mxu3 %v10450_v51  ;;  %v10705_v51 = vld [vmem:[%s14380_s7 + $0xba8] sm:$0xf]  ;;  %v10402_v59 = vor.u32 %v12780_v47, %v10401_v44  ;;  %v12772_v20 = vld [vmem:[%s14380_s7 + $0x914] sm:$0xf0] }
 0x382   : > { %8178 = vmatpush.bf16.msra.mxu0 %v9986_v0  ;;  %v10706_v0 = vor.u32 %v12856_v43, %v10705_v51  ;;  %v7948_v33 = vpop.f32.mrf.mxu2  ;;  %v10673_v39 = vld [vmem:[%s14380_s7 + $0xb68] sm:$0xf]  ;;  %v12848_v40 = vld [vmem:[%s14380_s7 + $0xb74] sm:$0xf0]  ;;  %v10370_v48 = vor.u32 %v12772_v20, %v10369_v3 }
 0x383   : > { %8191 = vmatpush.bf16.msra.mxu1 %v10114_v2  ;;  %v12820_v2 = vld [vmem:[%s14380_s7 + $0xa94] sm:$0xf0]  ;;  %v10865_v32 = vld [vmem:[%s14380_s7 + $0xce8] sm:$0xf]  ;;  %v10674_v50 = vor.u32 %v12848_v40, %v10673_v39 }
 0x384   : > { %8200 = vmatpush.bf16.msra.mxu2 %v10306_v4  ;;  %v7972_v4 = vpop.f32.mrf.mxu0  ;;  %v10562_v34 = vor.u32 %v12820_v2, %v10561_v1  ;;  %v12896_v44 = vld [vmem:[%s14380_s7 + $0xcf4] sm:$0xf0]  ;;  %v10529_v43 = vld [vmem:[%s14380_s7 + $0xa48] sm:$0xf] }
 0x385   : > { %8213 = vmatpush.bf16.msra.mxu3 %v10434_v6  ;;  %8179 = vmatmul.bf16.vlgmr.msra.gmra.mxu0 %v14524_v5  ;;  %v10689_v6 = vld [vmem:[%s14380_s7 + $0xb88] sm:$0xf]  ;;  %v15485_v41 = vadd.f32 %v7972_v4, %v7960_v52  ;;  %v12928_v47 = vld [vmem:[%s14380_s7 + $0xdf4] sm:$0xf0]  ;;  %v10866_v51 = vor.u32 %v12896_v44, %v10865_v32 }
 0x386   : > { %8223 = vmatpush.bf16.msrb.mxu0 %v10610_v7  ;;  %8192 = vmatmul.bf16.vlgmr.msra.gmra.mxu1 %v14531_v10  ;;  %v12852_v7 = vld [vmem:[%s14380_s7 + $0xb94] sm:$0xf0]  ;;  %v10849_v61 = vld [vmem:[%s14380_s7 + $0xcc8] sm:$0xf] }
 0x387   : > { %8236 = vmatpush.bf16.msrb.mxu1 %v10738_v17  ;;  %v10386_v17 = vor.u32 %v12776_v53, %v10385_v63  ;;  %v12812_v52 = vld [vmem:[%s14380_s7 + $0xa54] sm:$0xf0]  ;;  %v10961_v3 = vld [vmem:[%s14380_s7 + $0xda8] sm:$0xf] }
 0x388   : > { %8201 = vmatpush.bf16.msra.mxu2 %v10290_v36  ;;  %v7961_v36 = vpop.f32.mrf.mxu3  ;;  %v12892_v62 = vld [vmem:[%s14380_s7 + $0xcd4] sm:$0xf0]  ;;  %v10530_v1 = vor.u32 %v12812_v52, %v10529_v43  ;;  %v10625_v39 = vld [vmem:[%s14380_s7 + $0xb08] sm:$0xf] }
 0x389   : > { %8214 = vmatpush.bf16.msra.mxu3 %v10418_v37  ;;  %v10690_v37 = vor.u32 %v12852_v7, %v10689_v6  ;;  %v12924_v53 = vld [vmem:[%s14380_s7 + $0xdd4] sm:$0xf0]  ;;  %v10850_v4 = vor.u32 %v12892_v62, %v10849_v61  ;;  %v10513_v6 = vld [vmem:[%s14380_s7 + $0xa28] sm:$0xf] }
 0x38a   : > { %8224 = vmatpush.bf16.msrb.mxu0 %v10594_v46  ;;  %v12816_v46 = vld [vmem:[%s14380_s7 + $0xa74] sm:$0xf0]  ;;  %v10497_v36 = vld [vmem:[%s14380_s7 + $0xa08] sm:$0xf] }
 0x38b   : > { %8237 = vmatpush.bf16.msrb.mxu1 %v10722_v42  ;;  %v10993_v42 = vld [vmem:[%s14380_s7 + $0xde8] sm:$0xf]  ;;  %v10546_v49 = vor.u32 %v12816_v46, %v10545_v38  ;;  %v12808_v7 = vld [vmem:[%s14380_s7 + $0xa34] sm:$0xf0] }
 0x38c   : > { %8202 = vmatpush.bf16.msra.mxu2 %v10274_v54  ;;  %v10657_v54 = vld [vmem:[%s14380_s7 + $0xb48] sm:$0xf]  ;;  %v7974_v63 = vpop.f32.mrf.mxu0  ;;  %v12888_v19 = vld [vmem:[%s14380_s7 + $0xcb4] sm:$0xf0]  ;;  %v10514_v33 = vor.u32 %v12808_v7, %v10513_v6 }
 0x38d   : > { %8215 = vmatpush.bf16.msra.mxu3 %v10402_v59  ;;  %v10994_v59 = vor.u32 %v12928_v47, %v10993_v42  ;;  %v12920_v20 = vld [vmem:[%s14380_s7 + $0xdb4] sm:$0xf0]  ;;  %v10817_v44 = vld [vmem:[%s14380_s7 + $0xc88] sm:$0xf] }
 0x38e   : > { %8225 = vmatpush.bf16.msrb.mxu0 %v10578_v60  ;;  %v12844_v60 = vld [vmem:[%s14380_s7 + $0xb54] sm:$0xf0]  ;;  %v10962_v32 = vor.u32 %v12920_v20, %v10961_v3  ;;  %v10945_v42 = vld [vmem:[%s14380_s7 + $0xd88] sm:$0xf] }
 0x38f   : > { %8238 = vmatpush.bf16.msrb.mxu1 %v10706_v0  ;;  %v10977_v0 = vld [vmem:[%s14380_s7 + $0xdc8] sm:$0xf]  ;;  %v10658_v2 = vor.u32 %v12844_v60, %v10657_v54  ;;  %v12804_v46 = vld [vmem:[%s14380_s7 + $0xa14] sm:$0xf0] }
 0x390   : > { %8203 = vmatpush.bf16.msra.mxu2 %v10258_v8  ;;  %v10641_v8 = vld [vmem:[%s14380_s7 + $0xb28] sm:$0xf]  ;;  %v10978_v12 = vor.u32 %v12924_v53, %v10977_v0  ;;  %v12836_v40 = vld [vmem:[%s14380_s7 + $0xb14] sm:$0xf0]  ;;  %v10498_v43 = vor.u32 %v12804_v46, %v10497_v36 }
 0x391   : > { %8216 = vmatpush.bf16.msra.mxu3 %v10386_v17  ;;  %v12840_v17 = vld [vmem:[%s14380_s7 + $0xb34] sm:$0xf0]  ;;  %v11249_v52 = vld [vmem:[%s14380_s7 + $0xfe8] sm:$0xf] }
 0x392   : > { %8226 = vmatpush.bf16.msrb.mxu0 %v10562_v34  ;;  %v10833_v34 = vld [vmem:[%s14380_s7 + $0xca8] sm:$0xf]  ;;  %v12992_v54 = vld [vmem:[%s14380_s7 + $0xff4] sm:$0xf0] }
 0x393   : > { %8239 = vmatpush.bf16.msrb.mxu1 %v10690_v37  ;;  %v10642_v37 = vor.u32 %v12840_v17, %v10641_v8  ;;  %v10834_v38 = vor.u32 %v12888_v19, %v10833_v34  ;;  %v7985_v47 = vpop.f32.mrf.mxu1  ;;  %v10801_v63 = vld [vmem:[%s14380_s7 + $0xc68] sm:$0xf]  ;;  %v12880_v0 = vld [vmem:[%s14380_s7 + $0xc74] sm:$0xf0] }
 0x394   : > { %8204 = vmatpush.bf16.msra.mxu2 %v10242_v45  ;;  %v12884_v45 = vld [vmem:[%s14380_s7 + $0xc94] sm:$0xf0]  ;;  %v10929_v53 = vld [vmem:[%s14380_s7 + $0xd68] sm:$0xf]  ;;  %v10802_v8 = vor.u32 %v12880_v0, %v10801_v63 }
 0x395   : > { %8217 = vmatpush.bf16.msra.mxu3 %v10370_v48  ;;  %v12916_v48 = vld [vmem:[%s14380_s7 + $0xd94] sm:$0xf0]  ;;  %v10818_v60 = vor.u32 %v12884_v45, %v10817_v44  ;;  %v11233_v6 = vld [vmem:[%s14380_s7 + $0xfc8] sm:$0xf] }
 0x396   : > { %8227 = vmatpush.bf16.msrb.mxu0 %v10546_v49  ;;  %v11121_v49 = vld [vmem:[%s14380_s7 + $0xee8] sm:$0xf]  ;;  %v10946_v61 = vor.u32 %v12916_v48, %v10945_v42  ;;  %v12988_v7 = vld [vmem:[%s14380_s7 + $0xfd4] sm:$0xf0] }
 0x397   : > { %8240 = vmatpush.bf16.msrb.mxu1 %v10674_v50  ;;  %8205 = vmatmul.bf16.vlgmr.msra.gmra.mxu2 %v14619_v21  ;;  %v12960_v50 = vld [vmem:[%s14380_s7 + $0xef4] sm:$0xf0]  ;;  %v10785_v3 = vld [vmem:[%s14380_s7 + $0xc48] sm:$0xf] }
 0x398   : > { %8249 = vmatpush.bf16.msrb.mxu2 %v10866_v51  ;;  %8218 = vmatmul.bf16.vlgmr.msra.gmra.mxu3 %v14625_v25  ;;  %v7986_v51 = vadd.f32 %v7985_v47, %v15485_v41  ;;  %v11122_v62 = vor.u32 %v12960_v50, %v11121_v49  ;;  %v12912_v41 = vld [vmem:[%s14380_s7 + $0xd74] sm:$0xf0]  ;;  %v11089_v46 = vld [vmem:[%s14380_s7 + $0xea8] sm:$0xf] }
 0x399   : > { %8262 = vmatpush.bf16.msrb.mxu3 %v10994_v59  ;;  %v10626_v59 = vor.u32 %v12836_v40, %v10625_v39  ;;  %v12876_v20 = vld [vmem:[%s14380_s7 + $0xc54] sm:$0xf0]  ;;  %v10769_v49 = vld [vmem:[%s14380_s7 + $0xc28] sm:$0xf] }
 0x39a   : > { %8228 = vmatpush.bf16.msrb.mxu0 %v10530_v1  ;;  %v11250_v1 = vor.u32 %v12992_v54, %v11249_v52  ;;  %v7998_v17 = vpop.f32.mrf.mxu2  ;;  %v12952_v39 = vld [vmem:[%s14380_s7 + $0xeb4] sm:$0xf0]  ;;  %v10786_v42 = vor.u32 %v12876_v20, %v10785_v3  ;;  %v11073_v54 = vld [vmem:[%s14380_s7 + $0xe88] sm:$0xf] }
 0x39b   : > { %8241 = vmatpush.bf16.msrb.mxu1 %v10658_v2  ;;  %v11105_v2 = vld [vmem:[%s14380_s7 + $0xec8] sm:$0xf]  ;;  %v8011_v19 = vpop.f32.mrf.mxu3  ;;  %v7999_v36 = vadd.f32 %v7998_v17, %v7986_v51  ;;  %v7987_v40 = vpop.f32.mrf.mxu1  ;;  %v12984_v44 = vld [vmem:[%s14380_s7 + $0xfb4] sm:$0xf0]  ;;  %v11090_v48 = vor.u32 %v12952_v39, %v11089_v46 }
 0x39c   : > { %8250 = vmatpush.bf16.msrb.mxu2 %v10850_v4  ;;  %v12956_v4 = vld [vmem:[%s14380_s7 + $0xed4] sm:$0xf0]  ;;  %v10897_v51 = vld [vmem:[%s14380_s7 + $0xd28] sm:$0xf] }
 0x39d   : > { %8263 = vmatpush.bf16.msrb.mxu3 %v10978_v12  ;;  %v10930_v12 = vor.u32 %v12912_v41, %v10929_v53  ;;  %v11106_v34 = vor.u32 %v12956_v4, %v11105_v2  ;;  %v8012_v45 = vadd.f32 %v8011_v19, %v7999_v36  ;;  %v12872_v50 = vld [vmem:[%s14380_s7 + $0xc34] sm:$0xf0]  ;;  %v10753_v53 = vld [vmem:[%s14380_s7 + $0xc08] sm:$0xf] }
 0x39e   : > { %8229 = vmatpush.bf16.msrb.mxu0 %v10514_v33  ;;  %v10913_v33 = vld [vmem:[%s14380_s7 + $0xd48] sm:$0xf]  ;;  %v12904_v52 = vld [vmem:[%s14380_s7 + $0xd34] sm:$0xf0]  ;;  %v10770_v0 = vor.u32 %v12872_v50, %v10769_v49 }
 0x39f   : > { %8242 = vmatpush.bf16.msrb.mxu1 %v10642_v37  ;;  %v11234_v37 = vor.u32 %v12988_v7, %v11233_v6  ;;  %v12868_v2 = vld [vmem:[%s14380_s7 + $0xc14] sm:$0xf0]  ;;  %v10881_v4 = vld [vmem:[%s14380_s7 + $0xd08] sm:$0xf] }
 0x3a0   : > { %8251 = vmatpush.bf16.msrb.mxu2 %v10834_v38  ;;  %v12908_v38 = vld [vmem:[%s14380_s7 + $0xd54] sm:$0xf0]  ;;  %v11057_v17 = vld [vmem:[%s14380_s7 + $0xe68] sm:$0xf]  ;;  %v10754_v36 = vor.u32 %v12868_v2, %v10753_v53 }
 0x3a1   : > { %8264 = vmatpush.bf16.msrb.mxu3 %v10962_v32  ;;  %v11217_v32 = vld [vmem:[%s14380_s7 + $0xfa8] sm:$0xf]  ;;  %v10914_v47 = vor.u32 %v12908_v38, %v10913_v33  ;;  %v12900_v6 = vld [vmem:[%s14380_s7 + $0xd14] sm:$0xf0] }
 0x3a2   : > { %8230 = vmatpush.bf16.msrb.mxu0 %v10498_v43  ;;  %v11218_v43 = vor.u32 %v12984_v44, %v11217_v32  ;;  %v8000_v7 = vpop.f32.mrf.mxu2  ;;  %v11185_v19 = vld [vmem:[%s14380_s7 + $0xf68] sm:$0xf]  ;;  %v12976_v3 = vld [vmem:[%s14380_s7 + $0xf74] sm:$0xf0]  ;;  %v10882_v46 = vor.u32 %v12900_v6, %v10881_v4 }
 0x3a3   : > { %8243 = vmatpush.bf16.msrb.mxu1 %v10626_v59  ;;  %v12948_v59 = vld [vmem:[%s14380_s7 + $0xe94] sm:$0xf0]  ;;  %v11377_v20 = vld [vmem:[%s14380_s7 + $0x10e8] sm:$0xf]  ;;  %v11186_v40 = vor.u32 %v12976_v3, %v11185_v19 }
 0x3a4   : > { %8252 = vmatpush.bf16.msrb.mxu2 %v10818_v60  ;;  %v8024_v60 = vpop.f32.mrf.mxu0  ;;  %v11074_v41 = vor.u32 %v12948_v59, %v11073_v54  ;;  %v13024_v33 = vld [vmem:[%s14380_s7 + $0x10f4] sm:$0xf0]  ;;  %v11041_v44 = vld [vmem:[%s14380_s7 + $0xe48] sm:$0xf] }
 0x3a5   : > { %8265 = vmatpush.bf16.msrb.mxu3 %v10946_v61  ;;  %8231 = vmatmul.bf16.vlgmr.msrb.gmra.mxu0 %v14623_v24  ;;  %v11201_v61 = vld [vmem:[%s14380_s7 + $0xf88] sm:$0xf]  ;;  %v15556_v63 = vadd.f32 %v8024_v60, %v8012_v45  ;;  %v13056_v38 = vld [vmem:[%s14380_s7 + $0x11f4] sm:$0xf0]  ;;  %v11378_v32 = vor.u32 %v13024_v33, %v11377_v20 }
 0x3a6   : > { %8275 = vmatpush.bf16.msra.mxu0 %v11122_v62  ;;  %8244 = vmatmul.bf16.vlgmr.msrb.gmra.mxu1 %v14627_v26  ;;  %v12980_v62 = vld [vmem:[%s14380_s7 + $0xf94] sm:$0xf0]  ;;  %v11361_v49 = vld [vmem:[%s14380_s7 + $0x10c8] sm:$0xf] }
 0x3a7   : > { %8288 = vmatpush.bf16.msra.mxu1 %v11250_v1  ;;  %v10898_v1 = vor.u32 %v12904_v52, %v10897_v51  ;;  %v12940_v45 = vld [vmem:[%s14380_s7 + $0xe54] sm:$0xf0]  ;;  %v11473_v4 = vld [vmem:[%s14380_s7 + $0x11a8] sm:$0xf] }
 0x3a8   : > { %8253 = vmatpush.bf16.msrb.mxu2 %v10802_v8  ;;  %v8013_v8 = vpop.f32.mrf.mxu3  ;;  %v13020_v50 = vld [vmem:[%s14380_s7 + $0x10d4] sm:$0xf0]  ;;  %v11042_v54 = vor.u32 %v12940_v45, %v11041_v44  ;;  %v11137_v19 = vld [vmem:[%s14380_s7 + $0xf08] sm:$0xf] }
 0x3a9   : > { %8266 = vmatpush.bf16.msrb.mxu3 %v10930_v12  ;;  %v11202_v12 = vor.u32 %v12980_v62, %v11201_v61  ;;  %v13052_v52 = vld [vmem:[%s14380_s7 + $0x11d4] sm:$0xf0]  ;;  %v11362_v60 = vor.u32 %v13020_v50, %v11361_v49  ;;  %v11025_v61 = vld [vmem:[%s14380_s7 + $0xe28] sm:$0xf] }
 0x3aa   : > { %8276 = vmatpush.bf16.msra.mxu0 %v11106_v34  ;;  %v12944_v34 = vld [vmem:[%s14380_s7 + $0xe74] sm:$0xf0]  ;;  %v11009_v8 = vld [vmem:[%s14380_s7 + $0xe08] sm:$0xf] }
 0x3ab   : > { %8289 = vmatpush.bf16.msra.mxu1 %v11234_v37  ;;  %v11505_v37 = vld [vmem:[%s14380_s7 + $0x11e8] sm:$0xf]  ;;  %v11058_v39 = vor.u32 %v12944_v34, %v11057_v17  ;;  %v12936_v62 = vld [vmem:[%s14380_s7 + $0xe34] sm:$0xf0] }
 0x3ac   : > { %8254 = vmatpush.bf16.msrb.mxu2 %v10786_v42  ;;  %v11169_v42 = vld [vmem:[%s14380_s7 + $0xf48] sm:$0xf]  ;;  %v8026_v51 = vpop.f32.mrf.mxu0  ;;  %v13016_v2 = vld [vmem:[%s14380_s7 + $0x10b4] sm:$0xf0]  ;;  %v11026_v7 = vor.u32 %v12936_v62, %v11025_v61 }
 0x3ad   : > { %8267 = vmatpush.bf16.msrb.mxu3 %v10914_v47  ;;  %v11506_v47 = vor.u32 %v13056_v38, %v11505_v37  ;;  %v13048_v6 = vld [vmem:[%s14380_s7 + $0x11b4] sm:$0xf0]  ;;  %v11329_v33 = vld [vmem:[%s14380_s7 + $0x1088] sm:$0xf] }
 0x3ae   : > { %8277 = vmatpush.bf16.msra.mxu0 %v11090_v48  ;;  %v12972_v48 = vld [vmem:[%s14380_s7 + $0xf54] sm:$0xf0]  ;;  %v11474_v20 = vor.u32 %v13048_v6, %v11473_v4  ;;  %v11457_v37 = vld [vmem:[%s14380_s7 + $0x1188] sm:$0xf] }
 0x3af   : > { %8290 = vmatpush.bf16.msra.mxu1 %v11218_v43  ;;  %v11489_v43 = vld [vmem:[%s14380_s7 + $0x11c8] sm:$0xf]  ;;  %v11170_v59 = vor.u32 %v12972_v48, %v11169_v42  ;;  %v12932_v34 = vld [vmem:[%s14380_s7 + $0xe14] sm:$0xf0] }
 0x3b0   : > { %8255 = vmatpush.bf16.msrb.mxu2 %v10770_v0  ;;  %v11153_v0 = vld [vmem:[%s14380_s7 + $0xf28] sm:$0xf]  ;;  %v11490_v53 = vor.u32 %v13052_v52, %v11489_v43  ;;  %v12964_v3 = vld [vmem:[%s14380_s7 + $0xf14] sm:$0xf0]  ;;  %v11010_v44 = vor.u32 %v12932_v34, %v11009_v8 }
 0x3b1   : > { %8268 = vmatpush.bf16.msrb.mxu3 %v10898_v1  ;;  %v12968_v1 = vld [vmem:[%s14380_s7 + $0xf34] sm:$0xf0]  ;;  %v11761_v45 = vld [vmem:[%s14380_s7 + $0x13e8] sm:$0xf] }
 0x3b2   : > { %8278 = vmatpush.bf16.msra.mxu0 %v11074_v41  ;;  %v11345_v41 = vld [vmem:[%s14380_s7 + $0x10a8] sm:$0xf]  ;;  %v13120_v42 = vld [vmem:[%s14380_s7 + $0x13f4] sm:$0xf0] }
 0x3b3   : > { %8291 = vmatpush.bf16.msra.mxu1 %v11202_v12  ;;  %v11154_v12 = vor.u32 %v12968_v1, %v11153_v0  ;;  %v11346_v17 = vor.u32 %v13016_v2, %v11345_v41  ;;  %v8037_v38 = vpop.f32.mrf.mxu1  ;;  %v11313_v51 = vld [vmem:[%s14380_s7 + $0x1068] sm:$0xf]  ;;  %v13008_v43 = vld [vmem:[%s14380_s7 + $0x1074] sm:$0xf0] }
 0x3b4   : > { %8256 = vmatpush.bf16.msrb.mxu2 %v10754_v36  ;;  %v13012_v36 = vld [vmem:[%s14380_s7 + $0x1094] sm:$0xf0]  ;;  %v11441_v52 = vld [vmem:[%s14380_s7 + $0x1168] sm:$0xf]  ;;  %v11314_v0 = vor.u32 %v13008_v43, %v11313_v51 }
 0x3b5   : > { %8269 = vmatpush.bf16.msrb.mxu3 %v10882_v46  ;;  %v13044_v46 = vld [vmem:[%s14380_s7 + $0x1194] sm:$0xf0]  ;;  %v11330_v48 = vor.u32 %v13012_v36, %v11329_v33  ;;  %v11745_v61 = vld [vmem:[%s14380_s7 + $0x13c8] sm:$0xf] }
 0x3b6   : > { %8279 = vmatpush.bf16.msra.mxu0 %v11058_v39  ;;  %v11633_v39 = vld [vmem:[%s14380_s7 + $0x12e8] sm:$0xf]  ;;  %v11458_v49 = vor.u32 %v13044_v46, %v11457_v37  ;;  %v13116_v62 = vld [vmem:[%s14380_s7 + $0x13d4] sm:$0xf0] }
 0x3b7   : > { %8292 = vmatpush.bf16.msra.mxu1 %v11186_v40  ;;  %8257 = vmatmul.bf16.vlgmr.msrb.gmra.mxu2 %v14685_v55  ;;  %v13088_v40 = vld [vmem:[%s14380_s7 + $0x12f4] sm:$0xf0]  ;;  %v11297_v4 = vld [vmem:[%s14380_s7 + $0x1048] sm:$0xf] }
 0x3b8   : > { %8301 = vmatpush.bf16.msra.mxu2 %v11378_v32  ;;  %8270 = vmatmul.bf16.vlgmr.msrb.gmra.mxu3 %v14689_v57  ;;  %v8038_v32 = vadd.f32 %v8037_v38, %v15556_v63  ;;  %v11634_v50 = vor.u32 %v13088_v40, %v11633_v39  ;;  %v13040_v63 = vld [vmem:[%s14380_s7 + $0x1174] sm:$0xf0]  ;;  %v11281_v39 = vld [vmem:[%s14380_s7 + $0x1028] sm:$0xf] }
 0x3b9   : > { %8314 = vmatpush.bf16.msra.mxu3 %v11506_v47  ;;  %v11138_v47 = vor.u32 %v12964_v3, %v11137_v19  ;;  %v13004_v6 = vld [vmem:[%s14380_s7 + $0x1054] sm:$0xf0]  ;;  %v11601_v19 = vld [vmem:[%s14380_s7 + $0x12a8] sm:$0xf] }
 0x3ba   : > { %8280 = vmatpush.bf16.msra.mxu0 %v11042_v54  ;;  %v11762_v54 = vor.u32 %v13120_v42, %v11761_v45  ;;  %v8050_v1 = vpop.f32.mrf.mxu2  ;;  %v13036_v34 = vld [vmem:[%s14380_s7 + $0x1154] sm:$0xf0]  ;;  %v11298_v37 = vor.u32 %v13004_v6, %v11297_v4  ;;  %v11585_v42 = vld [vmem:[%s14380_s7 + $0x1288] sm:$0xf] }
 0x3bb   : > { %8293 = vmatpush.bf16.msra.mxu1 %v11170_v59  ;;  %v11617_v59 = vld [vmem:[%s14380_s7 + $0x12c8] sm:$0xf]  ;;  %v8063_v2 = vpop.f32.mrf.mxu3  ;;  %v8051_v8 = vadd.f32 %v8050_v1, %v8038_v32  ;;  %v13080_v3 = vld [vmem:[%s14380_s7 + $0x12b4] sm:$0xf0] }
 0x3bc   : > { %8302 = vmatpush.bf16.msra.mxu2 %v11362_v60  ;;  %v13084_v60 = vld [vmem:[%s14380_s7 + $0x12d4] sm:$0xf0]  ;;  %v11602_v46 = vor.u32 %v13080_v3, %v11601_v19  ;;  %v11409_v32 = vld [vmem:[%s14380_s7 + $0x1128] sm:$0xf] }
 0x3bd   : > { %8315 = vmatpush.bf16.msra.mxu3 %v11490_v53  ;;  %v11442_v53 = vor.u32 %v13040_v63, %v11441_v52  ;;  %v11618_v41 = vor.u32 %v13084_v60, %v11617_v59  ;;  %v13112_v33 = vld [vmem:[%s14380_s7 + $0x13b4] sm:$0xf0]  ;;  %v8064_v36 = vadd.f32 %v8063_v2, %v8051_v8  ;;  %v11265_v52 = vld [vmem:[%s14380_s7 + $0x1008] sm:$0xf] }
 0x3be   : > { %8281 = vmatpush.bf16.msra.mxu0 %v11026_v7  ;;  %v11425_v7 = vld [vmem:[%s14380_s7 + $0x1148] sm:$0xf]  ;;  %v13000_v40 = vld [vmem:[%s14380_s7 + $0x1034] sm:$0xf0] }
 0x3bf   : > { %8294 = vmatpush.bf16.msra.mxu1 %v11154_v12  ;;  %v11746_v12 = vor.u32 %v13116_v62, %v11745_v61  ;;  %v11426_v38 = vor.u32 %v13036_v34, %v11425_v7  ;;  %v13032_v45 = vld [vmem:[%s14380_s7 + $0x1134] sm:$0xf0]  ;;  %v11282_v43 = vor.u32 %v13000_v40, %v11281_v39  ;;  %v11393_v60 = vld [vmem:[%s14380_s7 + $0x1108] sm:$0xf] }
 0x3c0   : > { %8303 = vmatpush.bf16.msra.mxu2 %v11346_v17  ;;  %v8039_v17 = vpop.f32.mrf.mxu1  ;;  %v12996_v59 = vld [vmem:[%s14380_s7 + $0x1014] sm:$0xf0]  ;;  %v11569_v1 = vld [vmem:[%s14380_s7 + $0x1268] sm:$0xf] }
 0x3c1   : > { %8316 = vmatpush.bf16.msra.mxu3 %v11474_v20  ;;  %v11729_v20 = vld [vmem:[%s14380_s7 + $0x13a8] sm:$0xf]  ;;  %v13028_v61 = vld [vmem:[%s14380_s7 + $0x1114] sm:$0xf0] }
 0x3c2   : > { %8282 = vmatpush.bf16.msra.mxu0 %v11010_v44  ;;  %v11730_v44 = vor.u32 %v13112_v33, %v11729_v20  ;;  %v11697_v2 = vld [vmem:[%s14380_s7 + $0x1368] sm:$0xf]  ;;  %v13104_v4 = vld [vmem:[%s14380_s7 + $0x1374] sm:$0xf0]  ;;  %v11394_v3 = vor.u32 %v13028_v61, %v11393_v60 }
 0x3c3   : > { %8295 = vmatpush.bf16.msra.mxu1 %v11138_v47  ;;  %v13076_v47 = vld [vmem:[%s14380_s7 + $0x1294] sm:$0xf0]  ;;  %v8065_v62 = vpop.f32.mrf.mxu3  ;;  %v11889_v6 = vld [vmem:[%s14380_s7 + $0x14e8] sm:$0xf]  ;;  %v11698_v33 = vor.u32 %v13104_v4, %v11697_v2 }
 0x3c4   : > { %8304 = vmatpush.bf16.msra.mxu2 %v11330_v48  ;;  %v8076_v48 = vpop.f32.mrf.mxu0  ;;  %v11586_v63 = vor.u32 %v13076_v47, %v11585_v42  ;;  %v13152_v7 = vld [vmem:[%s14380_s7 + $0x14f4] sm:$0xf0]  ;;  %v12017_v17 = vld [vmem:[%s14380_s7 + $0x15e8] sm:$0xf] }
 0x3c5   : > { %8317 = vmatpush.bf16.msra.mxu3 %v11458_v49  ;;  %8283 = vmatmul.bf16.vlgmr.msra.gmra.mxu0 %v14687_v56  ;;  %v11713_v49 = vld [vmem:[%s14380_s7 + $0x1388] sm:$0xf]  ;;  %v8077_v51 = vadd.f32 %v8076_v48, %v8064_v36  ;;  %v13184_v34 = vld [vmem:[%s14380_s7 + $0x15f4] sm:$0xf0]  ;;  %v11890_v36 = vor.u32 %v13152_v7, %v11889_v6 }
 0x3c6   : > { %8327 = vmatpush.bf16.msrb.mxu0 %v11634_v50  ;;  %8296 = vmatmul.bf16.vlgmr.msra.gmra.mxu1 %v14691_v58  ;;  %v13108_v50 = vld [vmem:[%s14380_s7 + $0x1394] sm:$0xf0]  ;;  %v12018_v39 = vor.u32 %v13184_v34, %v12017_v17  ;;  %v12001_v42 = vld [vmem:[%s14380_s7 + $0x15c8] sm:$0xf] }
 0x3c7   : > { %8340 = vmatpush.bf16.msrb.mxu1 %v11762_v54  ;;  %v11410_v54 = vor.u32 %v13032_v45, %v11409_v32  ;;  %v13100_v40 = vld [vmem:[%s14380_s7 + $0x1354] sm:$0xf0]  ;;  %v11873_v32 = vld [vmem:[%s14380_s7 + $0x14c8] sm:$0xf] }
 0x3c8   : > { %8305 = vmatpush.bf16.msra.mxu2 %v11314_v0  ;;  %v8052_v0 = vpop.f32.mrf.mxu2  ;;  %v8089_v8 = vpop.f32.mrf.mxu1  ;;  %v13180_v47 = vld [vmem:[%s14380_s7 + $0x15d4] sm:$0xf0]  ;;  %v11985_v61 = vld [vmem:[%s14380_s7 + $0x15a8] sm:$0xf] }
 0x3c9   : > { %8318 = vmatpush.bf16.msra.mxu3 %v11442_v53  ;;  %v11714_v53 = vor.u32 %v13108_v50, %v11713_v49  ;;  %v15639_v19 = vadd.f32 %v8089_v8, %v8077_v51  ;;  %v11537_v51 = vld [vmem:[%s14380_s7 + $0x1228] sm:$0xf]  ;;  %v13144_v60 = vld [vmem:[%s14380_s7 + $0x14b4] sm:$0xf0] }
 0x3ca   : > { %8328 = vmatpush.bf16.msrb.mxu0 %v11618_v41  ;;  %v13072_v41 = vld [vmem:[%s14380_s7 + $0x1274] sm:$0xf0]  ;;  %v11649_v6 = vld [vmem:[%s14380_s7 + $0x1308] sm:$0xf] }
 0x3cb   : > { %8341 = vmatpush.bf16.msrb.mxu1 %v11746_v12  ;;  %v11266_v12 = vor.u32 %v12996_v59, %v11265_v52  ;;  %v11570_v20 = vor.u32 %v13072_v41, %v11569_v1  ;;  %v11665_v52 = vld [vmem:[%s14380_s7 + $0x1328] sm:$0xf]  ;;  %v13176_v62 = vld [vmem:[%s14380_s7 + $0x15b4] sm:$0xf0] }
 0x3cc   : > { %8306 = vmatpush.bf16.msra.mxu2 %v11298_v37  ;;  %v11553_v37 = vld [vmem:[%s14380_s7 + $0x1248] sm:$0xf]  ;;  %v8078_v45 = vpop.f32.mrf.mxu0  ;;  %v13060_v4 = vld [vmem:[%s14380_s7 + $0x1214] sm:$0xf0]  ;;  %v11986_v8 = vor.u32 %v13176_v62, %v11985_v61 }
 0x3cd   : > { %8319 = vmatpush.bf16.msra.mxu3 %v11426_v38  ;;  %v13068_v38 = vld [vmem:[%s14380_s7 + $0x1254] sm:$0xf0]  ;;  %v11857_v59 = vld [vmem:[%s14380_s7 + $0x14a8] sm:$0xf] }
 0x3ce   : > { %8329 = vmatpush.bf16.msrb.mxu0 %v11602_v46  ;;  %v11681_v46 = vld [vmem:[%s14380_s7 + $0x1348] sm:$0xf]  ;;  %v11554_v48 = vor.u32 %v13068_v38, %v11553_v37  ;;  %v11858_v2 = vor.u32 %v13144_v60, %v11857_v59  ;;  %v13092_v7 = vld [vmem:[%s14380_s7 + $0x1314] sm:$0xf0] }
 0x3cf   : > { %8342 = vmatpush.bf16.msrb.mxu1 %v11730_v44  ;;  %v13148_v44 = vld [vmem:[%s14380_s7 + $0x14d4] sm:$0xf0]  ;;  %v11682_v49 = vor.u32 %v13100_v40, %v11681_v46  ;;  %v11521_v1 = vld [vmem:[%s14380_s7 + $0x1208] sm:$0xf]  ;;  %v11650_v46 = vor.u32 %v13092_v7, %v11649_v6 }
 0x3d0   : > { %8307 = vmatpush.bf16.msra.mxu2 %v11282_v43  ;;  %v11874_v50 = vor.u32 %v13148_v44, %v11873_v32  ;;  %v13064_v43 = vld [vmem:[%s14380_s7 + $0x1234] sm:$0xf0]  ;;  %v8091_v0 = vpop.f32.mrf.mxu1  ;;  %v11969_v34 = vld [vmem:[%s14380_s7 + $0x1588] sm:$0xf] }
 0x3d1   : > { %8320 = vmatpush.bf16.msra.mxu3 %v11410_v54  ;;  %v12002_v54 = vor.u32 %v13180_v47, %v12001_v42  ;;  %v13140_v17 = vld [vmem:[%s14380_s7 + $0x1494] sm:$0xf0]  ;;  %v12273_v37 = vld [vmem:[%s14380_s7 + $0x17e8] sm:$0xf] }
 0x3d2   : > { %8330 = vmatpush.bf16.msrb.mxu0 %v11586_v63  ;;  %v13096_v63 = vld [vmem:[%s14380_s7 + $0x1334] sm:$0xf0]  ;;  %v11825_v40 = vld [vmem:[%s14380_s7 + $0x1468] sm:$0xf] }
 0x3d3   : > { %8343 = vmatpush.bf16.msrb.mxu1 %v11714_v53  ;;  %v11538_v53 = vor.u32 %v13064_v43, %v11537_v51  ;;  %v11666_v41 = vor.u32 %v13096_v63, %v11665_v52  ;;  %v13248_v38 = vld [vmem:[%s14380_s7 + $0x17f4] sm:$0xf0]  ;;  %v11953_v42 = vld [vmem:[%s14380_s7 + $0x1568] sm:$0xf] }
 0x3d4   : > { %8308 = vmatpush.bf16.msra.mxu2 %v11266_v12  ;;  %v11841_v12 = vld [vmem:[%s14380_s7 + $0x1488] sm:$0xf]  ;;  %v13136_v45 = vld [vmem:[%s14380_s7 + $0x1474] sm:$0xf0] }
 0x3d5   : > { %8321 = vmatpush.bf16.msra.mxu3 %v11394_v3  ;;  %v13172_v3 = vld [vmem:[%s14380_s7 + $0x1594] sm:$0xf0]  ;;  %v12129_v51 = vld [vmem:[%s14380_s7 + $0x16c8] sm:$0xf]  ;;  %v11826_v63 = vor.u32 %v13136_v45, %v11825_v40 }
 0x3d6   : > { %8331 = vmatpush.bf16.msrb.mxu0 %v11570_v20  ;;  %v12145_v20 = vld [vmem:[%s14380_s7 + $0x16e8] sm:$0xf]  ;;  %v11970_v32 = vor.u32 %v13172_v3, %v11969_v34  ;;  %v13365_v47 = vld [vmem:[%s14373_s28] sm:$0xf] }
 0x3d7   : > { %8344 = vmatpush.bf16.msrb.mxu1 %v11698_v33  ;;  %8309 = vmatmul.bf16.vlgmr.msra.gmra.mxu2 %v14774_v18  ;;  %v13216_v33 = vld [vmem:[%s14380_s7 + $0x16f4] sm:$0xf0]  ;;  %v12257_v52 = vld [vmem:[%s14380_s7 + $0x17c8] sm:$0xf] }
 0x3d8   : > { %8353 = vmatpush.bf16.msrb.mxu2 %v11890_v36  ;;  %8322 = vmatmul.bf16.vlgmr.msra.gmra.mxu3 %v14780_v23  ;;  %v11522_v36 = vor.u32 %v13060_v4, %v11521_v1  ;;  %v12146_v44 = vor.u32 %v13216_v33, %v12145_v20  ;;  %v13212_v43 = vld [vmem:[%s14380_s7 + $0x16d4] sm:$0xf0]  ;;  %v11809_v62 = vld [vmem:[%s14380_s7 + $0x1448] sm:$0xf] }
 0x3d9   : > { %8366 = vmatpush.bf16.msrb.mxu3 %v12018_v39  ;;  %v11842_v39 = vor.u32 %v13140_v17, %v11841_v12  ;;  %v12130_v61 = vor.u32 %v13212_v43, %v12129_v51  ;;  %v13132_v0 = vld [vmem:[%s14380_s7 + $0x1454] sm:$0xf0]  ;;  %v12113_v6 = vld [vmem:[%s14380_s7 + $0x16a8] sm:$0xf] }
 0x3da   : > { %8332 = vmatpush.bf16.msrb.mxu0 %v11554_v48  ;;  %v3457_v48 = vperm.slane %v13365_v47, 2  ;;  %v8102_v59 = vpop.f32.mrf.mxu2  ;;  %v13164_v4 = vld [vmem:[%s14380_s7 + $0x1554] sm:$0xf0]  ;;  %v11810_v34 = vor.u32 %v13132_v0, %v11809_v62  ;;  %v11793_v33 = vld [vmem:[%s14380_s7 + $0x1428] sm:$0xf] }
 0x3db   : > { %8345 = vmatpush.bf16.msrb.mxu1 %v11682_v49  ;;  %v12274_v49 = vor.u32 %v13248_v38, %v12273_v37  ;;  %v13208_v7 = vld [vmem:[%s14380_s7 + $0x16b4] sm:$0xf0]  ;;  %v11921_v37 = vld [vmem:[%s14380_s7 + $0x1528] sm:$0xf] }
 0x3dc   : > { %8354 = vmatpush.bf16.msrb.mxu2 %v11874_v50  ;;  %v13168_v50 = vld [vmem:[%s14380_s7 + $0x1574] sm:$0xf0]  ;;  %v8103_v1 = vadd.f32 %v8102_v59, %v3457_v48  ;;  %v12114_v20 = vor.u32 %v13208_v7, %v12113_v6  ;;  %v11777_v47 = vld [vmem:[%s14380_s7 + $0x1408] sm:$0xf]  ;;  %v12510_v6 = vld [vmem:[%s14380_s7 + $0xec] sm:$0xf] }
 0x3dd   : > { %8367 = vmatpush.bf16.msrb.mxu3 %v12002_v54  ;;  %v13244_v54 = vld [vmem:[%s14380_s7 + $0x17d4] sm:$0xf0]  ;;  %v11954_v60 = vor.u32 %v13168_v50, %v11953_v42  ;;  %v12209_v0 = vld [vmem:[%s14380_s7 + $0x1768] sm:$0xf]  ;;  %v9331_v7 = vld [vmem:[%s14380_s7 + $0xf8] sm:$0xf0] }
 0x3de   : > { %8333 = vmatpush.bf16.msrb.mxu0 %v11538_v53  ;;  %v11937_v53 = vld [vmem:[%s14380_s7 + $0x1548] sm:$0xf]  ;;  %v13240_v12 = vld [vmem:[%s14380_s7 + $0x17b4] sm:$0xf0] }
 0x3df   : > { %8346 = vmatpush.bf16.msrb.mxu1 %v11666_v41  ;;  %v8115_v41 = vpop.f32.mrf.mxu3  ;;  %v11938_v3 = vor.u32 %v13164_v4, %v11937_v53  ;;  %v13204_v40 = vld [vmem:[%s14380_s7 + $0x1694] sm:$0xf0] }
 0x3e0   : > { %8355 = vmatpush.bf16.msrb.mxu2 %v11858_v2  ;;  %v12258_v2 = vor.u32 %v13244_v54, %v12257_v52  ;;  %v8116_v17 = vadd.f32 %v8115_v41, %v8103_v1  ;;  %v13124_v52 = vld [vmem:[%s14380_s7 + $0x1414] sm:$0xf0]  ;;  %v11905_v54 = vld [vmem:[%s14380_s7 + $0x1508] sm:$0xf] }
 0x3e1   : > { %8368 = vmatpush.bf16.msrb.mxu3 %v11986_v8  ;;  %v12241_v8 = vld [vmem:[%s14380_s7 + $0x17a8] sm:$0xf]  ;;  %v13200_v62 = vld [vmem:[%s14380_s7 + $0x1674] sm:$0xf0]  ;;  %v11778_v4 = vor.u32 %v13124_v52, %v11777_v47 }
 0x3e2   : > { %8334 = vmatpush.bf16.msrb.mxu0 %v11522_v36  ;;  %v13128_v36 = vld [vmem:[%s14380_s7 + $0x1434] sm:$0xf0]  ;;  %v12242_v38 = vor.u32 %v13240_v12, %v12241_v8  ;;  %v8128_v45 = vpop.f32.mrf.mxu0  ;;  %v8104_v50 = vpop.f32.mrf.mxu2  ;;  %v12337_v41 = vld [vmem:[%s14380_s7 + $0x1868] sm:$0xf] }
 0x3e3   : > { %8347 = vmatpush.bf16.msrb.mxu1 %v11650_v46  ;;  %v13160_v46 = vld [vmem:[%s14380_s7 + $0x1534] sm:$0xf0]  ;;  %v11794_v42 = vor.u32 %v13128_v36, %v11793_v33  ;;  %v8129_v48 = vadd.f32 %v8128_v45, %v8116_v17  ;;  %v12193_v33 = vld [vmem:[%s14380_s7 + $0x1748] sm:$0xf]  ;;  %v9334_v36 = vor.u32 %v12510_v6, %v9331_v7 }
 0x3e4   : > { %8356 = vmatpush.bf16.msrb.mxu2 %v11842_v39  ;;  %v12097_v39 = vld [vmem:[%s14380_s7 + $0x1688] sm:$0xf]  ;;  %v11922_v51 = vor.u32 %v13160_v46, %v11921_v37  ;;  %v13232_v1 = vld [vmem:[%s14380_s7 + $0x1774] sm:$0xf0] }
 0x3e5   : > { %8369 = vmatpush.bf16.msrb.mxu3 %v11970_v32  ;;  %8335 = vmatmul.bf16.vlgmr.msrb.gmra.mxu0 %v14778_v22  ;;  %v12225_v32 = vld [vmem:[%s14380_s7 + $0x1788] sm:$0xf]  ;;  %v12098_v43 = vor.u32 %v13204_v40, %v12097_v39  ;;  %v12210_v17 = vor.u32 %v13232_v1, %v12209_v0  ;;  %v13228_v37 = vld [vmem:[%s14380_s7 + $0x1754] sm:$0xf0]  ;;  %v12506_v40 = vld [vmem:[%s14380_s7 + $0xcc] sm:$0xf] }
 0x3e6   : > { %8379 = vmatpush.bf16.msra.mxu0 %v12146_v44  ;;  %8348 = vmatmul.bf16.vlgmr.msrb.gmra.mxu1 %v14782_v27  ;;  %v13236_v44 = vld [vmem:[%s14380_s7 + $0x1794] sm:$0xf0]  ;;  %v12177_v50 = vld [vmem:[%s14380_s7 + $0x1728] sm:$0xf] }
 0x3e7   : > { %8392 = vmatpush.bf16.msra.mxu1 %v12274_v49  ;;  %v8141_v49 = vpop.f32.mrf.mxu1  ;;  %v8117_v59 = vpop.f32.mrf.mxu3  ;;  %v13260_v46 = vld [vmem:[%s14380_s7 + $0x1854] sm:$0xf0]  ;;  %v12305_v52 = vld [vmem:[%s14380_s7 + $0x1828] sm:$0xf] }
 0x3e8   : > { %8357 = vmatpush.bf16.msrb.mxu2 %v11826_v63  ;;  %v13156_v63 = vld [vmem:[%s14380_s7 + $0x1514] sm:$0xf0]  ;;  %v15705_v53 = vadd.f32 %v8141_v49, %v8129_v48  ;;  %v12049_v48 = vld [vmem:[%s14380_s7 + $0x1628] sm:$0xf]  ;;  %v9299_v59 = vld [vmem:[%s14380_s7 + $0xb8] sm:$0xf0] }
 0x3e9   : > { %8370 = vmatpush.bf16.msrb.mxu3 %v11954_v60  ;;  %v12226_v60 = vor.u32 %v13236_v44, %v12225_v32  ;;  %v11906_v8 = vor.u32 %v13156_v63, %v11905_v54  ;;  %v9315_v32 = vld [vmem:[%s14380_s7 + $0xd8] sm:$0xf0]  ;;  %v13192_v49 = vld [vmem:[%s14380_s7 + $0x1634] sm:$0xf0]  ;;  %v12502_v63 = vld [vmem:[%s14380_s7 + $0xac] sm:$0xf] }
 0x3ea   : > { %8380 = vmatpush.bf16.msra.mxu0 %v12130_v61  ;;  %v12081_v61 = vld [vmem:[%s14380_s7 + $0x1668] sm:$0xf]  ;;  %v8130_v39 = vpop.f32.mrf.mxu0  ;;  %v13256_v54 = vld [vmem:[%s14380_s7 + $0x1834] sm:$0xf0]  ;;  %v9302_v6 = vor.u32 %v12502_v63, %v9299_v59  ;;  %v12490_v59 = vld [vmem:[%s14380_s7 + $0x4c] sm:$0xf] }
 0x3eb   : > { %8393 = vmatpush.bf16.msra.mxu1 %v12258_v2  ;;  %v13264_v2 = vld [vmem:[%s14380_s7 + $0x1874] sm:$0xf0]  ;;  %v12082_v12 = vor.u32 %v13200_v62, %v12081_v61  ;;  %v12033_v61 = vld [vmem:[%s14380_s7 + $0x1608] sm:$0xf]  ;;  %v12306_v1 = vor.u32 %v13256_v54, %v12305_v52 }
 0x3ec   : > { %8358 = vmatpush.bf16.msrb.mxu2 %v11810_v34  ;;  %v12338_v34 = vor.u32 %v13264_v2, %v12337_v41  ;;  %v13188_v62 = vld [vmem:[%s14380_s7 + $0x1614] sm:$0xf0]  ;;  %v12161_v41 = vld [vmem:[%s14380_s7 + $0x1708] sm:$0xf] }
 0x3ed   : > { %8371 = vmatpush.bf16.msrb.mxu3 %v11938_v3  ;;  %v12065_v3 = vld [vmem:[%s14380_s7 + $0x1648] sm:$0xf]  ;;  %v13220_v2 = vld [vmem:[%s14380_s7 + $0x1714] sm:$0xf0] }
 0x3ee   : > { %8381 = vmatpush.bf16.msra.mxu0 %v12114_v20  ;;  %v13196_v20 = vld [vmem:[%s14380_s7 + $0x1654] sm:$0xf0] }
 0x3ef   : > { %8394 = vmatpush.bf16.msra.mxu1 %v12242_v38  ;;  %v12321_v38 = vld [vmem:[%s14380_s7 + $0x1848] sm:$0xf]  ;;  %v8143_v44 = vpop.f32.mrf.mxu1  ;;  %v12066_v45 = vor.u32 %v13196_v20, %v12065_v3  ;;  %v13252_v7 = vld [vmem:[%s14380_s7 + $0x1814] sm:$0xf0]  ;;  %v12574_v3 = vld [vmem:[%s14380_s7 + $0x2ec] sm:$0xf]  ;;  %v12034_v20 = vor.u32 %v13188_v62, %v12033_v61 }
 0x3f0   : > { %8359 = vmatpush.bf16.msrb.mxu2 %v11794_v42  ;;  %v12194_v42 = vor.u32 %v13228_v37, %v12193_v33  ;;  %v12322_v47 = vor.u32 %v13260_v46, %v12321_v38  ;;  %v9587_v33 = vld [vmem:[%s14380_s7 + $0x2f8] sm:$0xf0]  ;;  %v12162_v38 = vor.u32 %v13220_v2, %v12161_v41  ;;  %v12534_v41 = vld [vmem:[%s14380_s7 + $0x1ac] sm:$0xf] }
 0x3f1   : > { %8372 = vmatpush.bf16.msrb.mxu3 %v11922_v51  ;;  %v9318_v51 = vor.u32 %v12506_v40, %v9315_v32  ;;  %v9715_v37 = vld [vmem:[%s14380_s7 + $0x3f8] sm:$0xf0]  ;;  %v12494_v32 = vld [vmem:[%s14380_s7 + $0x6c] sm:$0xf] }
 0x3f2   : > { %8382 = vmatpush.bf16.msra.mxu0 %v12098_v43  ;;  %v13224_v43 = vld [vmem:[%s14380_s7 + $0x1734] sm:$0xf0]  ;;  %v9267_v44 = vld [vmem:[%s14380_s7 + $0x78] sm:$0xf0] }
 0x3f3   : > { %8395 = vmatpush.bf16.msra.mxu1 %v12226_v60  ;;  %v12050_v60 = vor.u32 %v13192_v49, %v12049_v48  ;;  %v12178_v0 = vor.u32 %v13224_v43, %v12177_v50  ;;  %v9443_v48 = vld [vmem:[%s14380_s7 + $0x1d8] sm:$0xf0]  ;;  %v12570_v49 = vld [vmem:[%s14380_s7 + $0x2cc] sm:$0xf]  ;;  %v9270_v54 = vor.u32 %v12494_v32, %v9267_v44 }
 0x3f4   : > { %8360 = vmatpush.bf16.msrb.mxu2 %v11778_v4  ;;  %v12289_v4 = vld [vmem:[%s14380_s7 + $0x1808] sm:$0xf]  ;;  %v9571_v50 = vld [vmem:[%s14380_s7 + $0x2d8] sm:$0xf0]  ;;  %v12594_v32 = vld [vmem:[%s14380_s7 + $0x38c] sm:$0xf] }
 0x3f5   : > { %8373 = vmatpush.bf16.msrb.mxu3 %v11906_v8  ;;  %v12498_v8 = vld [vmem:[%s14380_s7 + $0x8c] sm:$0xf]  ;;  %v12290_v46 = vor.u32 %v13252_v7, %v12289_v4  ;;  %v9699_v43 = vld [vmem:[%s14380_s7 + $0x3d8] sm:$0xf0] }
 0x3f6   : > { %8383 = vmatpush.bf16.msra.mxu0 %v12082_v12  ;;  %v9283_v12 = vld [vmem:[%s14380_s7 + $0x98] sm:$0xf0]  ;;  %v12566_v4 = vld [vmem:[%s14380_s7 + $0x2ac] sm:$0xf] }
 0x3f7   : > { %8396 = vmatpush.bf16.msra.mxu1 %v12210_v17  ;;  %8361 = vmatmul.bf16.vlgmr.msrb.gmra.mxu2 %v14813_v13  ;;  %v12542_v17 = vld [vmem:[%s14380_s7 + $0x1ec] sm:$0xf]  ;;  %v9286_v39 = vor.u32 %v12498_v8, %v9283_v12  ;;  %v9427_v2 = vld [vmem:[%s14380_s7 + $0x1b8] sm:$0xf0] }
 0x3f8   : > { %8409 = vmatpush.bf16.msra.mxu2 %v12338_v34  ;;  %8374 = vmatmul.bf16.vlgmr.msrb.gmra.mxu3 %v14817_v15  ;;  %v9459_v34 = vld [vmem:[%s14380_s7 + $0x1f8] sm:$0xf0]  ;;  %v12598_v7 = vld [vmem:[%s14380_s7 + $0x3ac] sm:$0xf] }
 0x3f9   : > { %8418 = vmatpush.bf16.msra.mxu3 %v9334_v36  ;;  %v12606_v36 = vld [vmem:[%s14380_s7 + $0x3ec] sm:$0xf]  ;;  %v9462_v40 = vor.u32 %v12542_v17, %v9459_v34  ;;  %v9430_v17 = vor.u32 %v12534_v41, %v9427_v2  ;;  %v9667_v44 = vld [vmem:[%s14380_s7 + $0x398] sm:$0xf0] }
 0x3fa   : > { %8384 = vmatpush.bf16.msra.mxu0 %v12066_v45  ;;  %v9590_v45 = vor.u32 %v12574_v3, %v9587_v33  ;;  %v8154_v52 = vpop.f32.mrf.mxu2  ;;  %v12486_v34 = vld [vmem:[%s14380_s7 + $0x2c] sm:$0xf]  ;;  %v9235_v3 = vld [vmem:[%s14380_s7 + $0x38] sm:$0xf0] }
 0x3fb   : > { %8397 = vmatpush.bf16.msra.mxu1 %v12194_v42  ;;  %v9718_v42 = vor.u32 %v12606_v36, %v9715_v37  ;;  %v8155_v61 = vadd.f32 %v8154_v52, %v15705_v53  ;;  %v8167_v62 = vpop.f32.mrf.mxu3  ;;  %v9683_v53 = vld [vmem:[%s14380_s7 + $0x3b8] sm:$0xf0]  ;;  %v12530_v36 = vld [vmem:[%s14380_s7 + $0x18c] sm:$0xf] }
 0x3fc   : > { %8410 = vmatpush.bf16.msra.mxu2 %v12322_v47  ;;  %v12538_v47 = vld [vmem:[%s14380_s7 + $0x1cc] sm:$0xf]  ;;  %v9686_v33 = vor.u32 %v12598_v7, %v9683_v53  ;;  %v9411_v37 = vld [vmem:[%s14380_s7 + $0x198] sm:$0xf0] }
 0x3fd   : > { %8419 = vmatpush.bf16.msra.mxu3 %v9318_v51  ;;  %v12602_v51 = vld [vmem:[%s14380_s7 + $0x3cc] sm:$0xf]  ;;  %v9446_v63 = vor.u32 %v12538_v47, %v9443_v48  ;;  %v8168_v8 = vadd.f32 %v8167_v62, %v8155_v61  ;;  %v9238_v48 = vor.u32 %v12486_v34, %v9235_v3  ;;  %v9523_v62 = vld [vmem:[%s14380_s7 + $0x278] sm:$0xf0] }
 0x3fe   : > { %8385 = vmatpush.bf16.msra.mxu0 %v12050_v60  ;;  %v9251_v60 = vld [vmem:[%s14380_s7 + $0x58] sm:$0xf0]  ;;  %v12558_v61 = vld [vmem:[%s14380_s7 + $0x26c] sm:$0xf] }
 0x3ff   : > { %8398 = vmatpush.bf16.msra.mxu1 %v12178_v0  ;;  %v9574_v0 = vor.u32 %v12570_v49, %v9571_v50  ;;  %v9254_v12 = vor.u32 %v12490_v59, %v9251_v60  ;;  %v9414_v49 = vor.u32 %v12530_v36, %v9411_v37  ;;  %v12482_v50 = vld [vmem:[%s14380_s7 + $0xc] sm:$0xf]  ;;  %v9395_v60 = vld [vmem:[%s14380_s7 + $0x178] sm:$0xf0]  ;;  %v9526_v7 = vor.u32 %v12558_v61, %v9523_v62 }
 0x400   : > { %8411 = vmatpush.bf16.msra.mxu2 %v12306_v1  ;;  %v9702_v1 = vor.u32 %v12602_v51, %v9699_v43  ;;  %v9219_v51 = vld [vmem:[%s14380_s7 + $0x18] sm:$0xf0]  ;;  %v12526_v59 = vld [vmem:[%s14380_s7 + $0x16c] sm:$0xf] }
 0x401   : > { %8420 = vmatpush.bf16.msra.mxu3 %v9302_v6  ;;  %v9555_v6 = vld [vmem:[%s14380_s7 + $0x2b8] sm:$0xf0]  ;;  %v12638_v41 = vld [vmem:[%s14380_s7 + $0x4ec] sm:$0xf] }
 0x402   : > { %8386 = vmatpush.bf16.msra.mxu0 %v12034_v20  ;;  %v9558_v20 = vor.u32 %v12566_v4, %v9555_v6  ;;  %v8156_v47 = vpop.f32.mrf.mxu2  ;;  %v9843_v2 = vld [vmem:[%s14380_s7 + $0x4f8] sm:$0xf0]  ;;  %v9222_v4 = vor.u32 %v12482_v50, %v9219_v51  ;;  %v9398_v6 = vor.u32 %v12526_v59, %v9395_v60  ;;  %v12634_v37 = vld [vmem:[%s14380_s7 + $0x4cc] sm:$0xf] }
 0x403   : > { %8399 = vmatpush.bf16.msra.mxu1 %v12162_v38  ;;  %v12562_v38 = vld [vmem:[%s14380_s7 + $0x28c] sm:$0xf]  ;;  %v8169_v43 = vpop.f32.mrf.mxu3  ;;  %v9846_v34 = vor.u32 %v12638_v41, %v9843_v2  ;;  %v9507_v3 = vld [vmem:[%s14380_s7 + $0x258] sm:$0xf0] }
 0x404   : > { %8412 = vmatpush.bf16.msra.mxu2 %v12290_v46  ;;  %v13366_v46 = vld [vmem:[#allocation1] sm:$0xff]  ;;  %v12630_v51 = vld [vmem:[%s14380_s7 + $0x4ac] sm:$0xf] }
 0x405   : > { %8421 = vmatpush.bf16.msra.mxu3 %v9286_v39  ;;  %8387 = vmatmul.bf16.vlgmr.msra.gmra.mxu0 %v14815_v14  ;;  %v8180_v39 = vpop.f32.mrf.mxu0  ;;  %v9619_v50 = vld [vmem:[%s14380_s7 + $0x338] sm:$0xf0]  ;;  %v12546_v62 = vld [vmem:[%s14380_s7 + $0x20c] sm:$0xf] }
 0x406   : > { %8431 = vmatpush.bf16.msrb.mxu0 %v9462_v40  ;;  %8400 = vmatmul.bf16.vlgmr.msra.gmra.mxu1 %v14819_v16  ;;  %v9539_v40 = vld [vmem:[%s14380_s7 + $0x298] sm:$0xf0]  ;;  %v12626_v2 = vld [vmem:[%s14380_s7 + $0x48c] sm:$0xf] }
 0x407   : > { %8444 = vmatpush.bf16.msrb.mxu1 %v9590_v45  ;;  %12345 = vmatmul.msk.bf16.vlgmr.msra.gmra.mxu2 %vm7440_vm0, %v13366_v46  ;;  %v8181_v45 = vadd.f32 %v8180_v39, %v8168_v8  ;;  %v9542_v52 = vor.u32 %v12562_v38, %v9539_v40  ;;  %v12522_v8 = vld [vmem:[%s14380_s7 + $0x14c] sm:$0xf]  ;;  %v9827_v38 = vld [vmem:[%s14380_s7 + $0x4d8] sm:$0xf0] }
 0x408   : > { %8457 = vmatpush.bf16.msrb.mxu2 %v9718_v42  ;;  %v8193_v42 = vpop.f32.mrf.mxu1  ;;  %v9830_v47 = vor.u32 %v12634_v37, %v9827_v38  ;;  %v9811_v43 = vld [vmem:[%s14380_s7 + $0x4b8] sm:$0xf0]  ;;  %v12622_v37 = vld [vmem:[%s14380_s7 + $0x46c] sm:$0xf] }
 0x409   : > { %8422 = vmatpush.bf16.msra.mxu3 %v9270_v54  ;;  %v9670_v54 = vor.u32 %v12594_v32, %v9667_v44  ;;  %v12518_v44 = vld [vmem:[%s14380_s7 + $0x12c] sm:$0xf]  ;;  %v9347_v59 = vld [vmem:[%s14380_s7 + $0x118] sm:$0xf0] }
 0x40a   : > { %8432 = vmatpush.bf16.msrb.mxu0 %v9446_v63  ;;  %v15774_v63 = vadd.f32 %v8193_v42, %v8181_v45  ;;  %v9363_v45 = vld [vmem:[%s14380_s7 + $0x138] sm:$0xf0]  ;;  %v12550_v42 = vld [vmem:[%s14380_s7 + $0x22c] sm:$0xf] }
 0x40b   : > { %8445 = vmatpush.bf16.msrb.mxu1 %v9574_v0  ;;  %v12590_v0 = vld [vmem:[%s14380_s7 + $0x36c] sm:$0xf]  ;;  %v9603_v41 = vld [vmem:[%s14380_s7 + $0x318] sm:$0xf0] }
 0x40c   : > { %8458 = vmatpush.bf16.msrb.mxu2 %v9702_v1  ;;  %v9651_v1 = vld [vmem:[%s14380_s7 + $0x378] sm:$0xf0] }
 0x40d   : > { %8423 = vmatpush.bf16.msra.mxu3 %v9254_v12  ;;  %v9654_v53 = vor.u32 %v12590_v0, %v9651_v1  ;;  %v9379_v12 = vld [vmem:[%s14380_s7 + $0x158] sm:$0xf0]  ;;  %v8182_v36 = vpop.f32.mrf.mxu0  ;;  %v12578_v1 = vld [vmem:[%s14380_s7 + $0x30c] sm:$0xf] }
 0x40e   : > { %8433 = vmatpush.bf16.msrb.mxu0 %v9430_v17  ;;  %v12554_v17 = vld [vmem:[%s14380_s7 + $0x24c] sm:$0xf]  ;;  %v9382_v39 = vor.u32 %v12522_v8, %v9379_v12  ;;  %v9475_v0 = vld [vmem:[%s14380_s7 + $0x218] sm:$0xf0] }
 0x40f   : > { %8446 = vmatpush.bf16.msrb.mxu1 %v9558_v20  ;;  %v12586_v20 = vld [vmem:[%s14380_s7 + $0x34c] sm:$0xf]  ;;  %v9510_v40 = vor.u32 %v12554_v17, %v9507_v3  ;;  %v10099_v12 = vld [vmem:[%s14380_s7 + $0x6f8] sm:$0xf0]  ;;  %v9478_v3 = vor.u32 %v12546_v62, %v9475_v0 }
 0x410   : > { %8459 = vmatpush.bf16.msrb.mxu2 %v9686_v33  ;;  %v9635_v33 = vld [vmem:[%s14380_s7 + $0x358] sm:$0xf0]  ;;  %v8195_v46 = vpop.f32.mrf.mxu1  ;;  %v12734_v17 = vld [vmem:[%s14380_s7 + $0x7ec] sm:$0xf] }
 0x411   : > { %8424 = vmatpush.bf16.msra.mxu3 %v9238_v48  ;;  %v9638_v32 = vor.u32 %v12586_v20, %v9635_v33  ;;  %v9491_v48 = vld [vmem:[%s14380_s7 + $0x238] sm:$0xf0]  ;;  %v9606_v20 = vor.u32 %v12578_v1, %v9603_v41  ;;  %v12694_v0 = vld [vmem:[%s14380_s7 + $0x6ac] sm:$0xf] }
 0x412   : > { %8434 = vmatpush.bf16.msrb.mxu0 %v9414_v49  ;;  %v12582_v49 = vld [vmem:[%s14380_s7 + $0x32c] sm:$0xf]  ;;  %v9494_v60 = vor.u32 %v12550_v42, %v9491_v48  ;;  %v9779_v38 = vld [vmem:[%s14380_s7 + $0x478] sm:$0xf0] }
 0x413   : > { %8447 = vmatpush.bf16.msrb.mxu1 %v9542_v52  ;;  %v9366_v52 = vor.u32 %v12518_v44, %v9363_v45  ;;  %v9622_v61 = vor.u32 %v12582_v49, %v9619_v50  ;;  %v12698_v44 = vld [vmem:[%s14380_s7 + $0x6cc] sm:$0xf]  ;;  %v10083_v45 = vld [vmem:[%s14380_s7 + $0x6d8] sm:$0xf0]  ;;  %v9782_v49 = vor.u32 %v12622_v37, %v9779_v38 }
 0x414   : > { %8460 = vmatpush.bf16.msrb.mxu2 %v9670_v54  ;;  %v12514_v54 = vld [vmem:[%s14380_s7 + $0x10c] sm:$0xf]  ;;  %v9939_v62 = vld [vmem:[%s14380_s7 + $0x5b8] sm:$0xf0] }
 0x415   : > { %8425 = vmatpush.bf16.msra.mxu3 %v9222_v4  ;;  %v9795_v4 = vld [vmem:[%s14380_s7 + $0x498] sm:$0xf0]  ;;  %v9350_v8 = vor.u32 %v12514_v54, %v9347_v59  ;;  %v12730_v42 = vld [vmem:[%s14380_s7 + $0x7cc] sm:$0xf]  ;;  %v10086_v59 = vor.u32 %v12698_v44, %v10083_v45 }
 0x416   : > { %8435 = vmatpush.bf16.msrb.mxu0 %v9398_v6  ;;  %v12670_v6 = vld [vmem:[%s14380_s7 + $0x5ec] sm:$0xf]  ;;  %v9798_v33 = vor.u32 %v12626_v2, %v9795_v4  ;;  %v9763_v54 = vld [vmem:[%s14380_s7 + $0x458] sm:$0xf0] }
 0x417   : > { %8448 = vmatpush.bf16.msrb.mxu1 %v9526_v7  ;;  %v9971_v7 = vld [vmem:[%s14380_s7 + $0x5f8] sm:$0xf0]  ;;  %v12726_v41 = vld [vmem:[%s14380_s7 + $0x7ac] sm:$0xf] }
 0x418   : > { %8461 = vmatpush.bf16.msrb.mxu2 %v9654_v53  ;;  %8426 = vmatmul.bf16.vlgmr.msra.gmra.mxu3 %v14488_v30  ;;  %v9814_v30 = vor.u32 %v12630_v51, %v9811_v43  ;;  %v12702_v53 = vld [vmem:[%s14380_s7 + $0x6ec] sm:$0xf]  ;;  %v9974_v36 = vor.u32 %v12670_v6, %v9971_v7  ;;  %v10195_v2 = vld [vmem:[%s14380_s7 + $0x7b8] sm:$0xf0] }
 0x419   : > { %8470 = vmatpush.bf16.msrb.mxu3 %v9846_v34  ;;  %v10227_v34 = vld [vmem:[%s14380_s7 + $0x7f8] sm:$0xf0]  ;;  %v10102_v46 = vor.u32 %v12702_v53, %v10099_v12  ;;  %v12614_v6 = vld [vmem:[%s14380_s7 + $0x42c] sm:$0xf] }
 0x41a   : > { %8436 = vmatpush.bf16.msrb.mxu0 %v9382_v39  ;;  %v10230_v39 = vor.u32 %v12734_v17, %v10227_v34  ;;  %v8206_v48 = vpop.f32.mrf.mxu2  ;;  %v9747_v7 = vld [vmem:[%s14380_s7 + $0x438] sm:$0xf0] }
 0x41b   : > { %8449 = vmatpush.bf16.msrb.mxu1 %v9510_v40  ;;  %v12666_v40 = vld [vmem:[%s14380_s7 + $0x5cc] sm:$0xf]  ;;  %v8207_v50 = vadd.f32 %v8206_v48, %v15774_v63  ;;  %v8219_v43 = vpop.f32.mrf.mxu3  ;;  %v9923_v12 = vld [vmem:[%s14380_s7 + $0x598] sm:$0xf0]  ;;  %v9750_v37 = vor.u32 %v12614_v6, %v9747_v7 }
 0x41c   : > { %8462 = vmatpush.bf16.msrb.mxu2 %v9638_v32  ;;  %v9955_v32 = vld [vmem:[%s14380_s7 + $0x5d8] sm:$0xf0]  ;;  %v12686_v48 = vld [vmem:[%s14380_s7 + $0x66c] sm:$0xf] }
 0x41d   : > { %8471 = vmatpush.bf16.msrb.mxu3 %v9830_v47  ;;  %v10211_v47 = vld [vmem:[%s14380_s7 + $0x7d8] sm:$0xf0]  ;;  %v9958_v51 = vor.u32 %v12666_v40, %v9955_v32  ;;  %v8220_v1 = vadd.f32 %v8219_v43, %v8207_v50  ;;  %v12718_v50 = vld [vmem:[%s14380_s7 + $0x76c] sm:$0xf] }
 0x41e   : > { %8437 = vmatpush.bf16.msrb.mxu0 %v9366_v52  ;;  %v12618_v52 = vld [vmem:[%s14380_s7 + $0x44c] sm:$0xf]  ;;  %v10051_v34 = vld [vmem:[%s14380_s7 + $0x698] sm:$0xf0] }
 0x41f   : > { %8450 = vmatpush.bf16.msrb.mxu1 %v9494_v60  ;;  %v10214_v60 = vor.u32 %v12730_v42, %v10211_v47  ;;  %v9766_v63 = vor.u32 %v12618_v52, %v9763_v54  ;;  %v12654_v42 = vld [vmem:[%s14380_s7 + $0x56c] sm:$0xf]  ;;  %v9907_v47 = vld [vmem:[%s14380_s7 + $0x578] sm:$0xf0] }
 0x420   : > { %8463 = vmatpush.bf16.msrb.mxu2 %v9622_v61  ;;  %v12662_v61 = vld [vmem:[%s14380_s7 + $0x5ac] sm:$0xf]  ;;  %v10355_v52 = vld [vmem:[%s14380_s7 + $0x8f8] sm:$0xf0] }
 0x421   : > { %8472 = vmatpush.bf16.msrb.mxu3 %v9814_v30  ;;  %v10067_v30 = vld [vmem:[%s14380_s7 + $0x6b8] sm:$0xf0]  ;;  %v9942_v4 = vor.u32 %v12662_v61, %v9939_v62  ;;  %v12766_v43 = vld [vmem:[%s14380_s7 + $0x8ec] sm:$0xf] }
 0x422   : > { %8438 = vmatpush.bf16.msrb.mxu0 %v9350_v8  ;;  %v10070_v53 = vor.u32 %v12694_v0, %v10067_v30  ;;  %v10198_v8 = vor.u32 %v12726_v41, %v10195_v2  ;;  %v8232_v17 = vpop.f32.mrf.mxu0  ;;  %v12650_v62 = vld [vmem:[%s14380_s7 + $0x54c] sm:$0xf]  ;;  %v9891_v0 = vld [vmem:[%s14380_s7 + $0x558] sm:$0xf0]  ;;  %v10358_v30 = vor.u32 %v12766_v43, %v10355_v52 }
 0x423   : > { %8451 = vmatpush.bf16.msrb.mxu1 %v9478_v3  ;;  %v10179_v3 = vld [vmem:[%s14380_s7 + $0x798] sm:$0xf0]  ;;  %v8221_v40 = vpop.f32.mrf.mxu3  ;;  %v12714_v2 = vld [vmem:[%s14380_s7 + $0x74c] sm:$0xf] }
 0x424   : > { %8464 = vmatpush.bf16.msrb.mxu2 %v9606_v20  ;;  %v8233_v20 = vadd.f32 %v8232_v17, %v8220_v1  ;;  %v12682_v1 = vld [vmem:[%s14380_s7 + $0x64c] sm:$0xf]  ;;  %v10019_v41 = vld [vmem:[%s14380_s7 + $0x658] sm:$0xf0] }
 0x425   : > { %8473 = vmatpush.bf16.msrb.mxu3 %v9798_v33  ;;  %8439 = vmatmul.bf16.vlgmr.msrb.gmra.mxu0 %v14495_v35  ;;  %v12690_v35 = vld [vmem:[%s14380_s7 + $0x68c] sm:$0xf]  ;;  %v8245_v33 = vpop.f32.mrf.mxu1  ;;  %v10339_v7 = vld [vmem:[%s14380_s7 + $0x8d8] sm:$0xf0] }
 0x426   : > { %8483 = vmatpush.bf16.msra.mxu0 %v9974_v36  ;;  %8452 = vmatmul.bf16.vlgmr.msrb.gmra.mxu1 %v14486_v29  ;;  %v12722_v29 = vld [vmem:[%s14380_s7 + $0x78c] sm:$0xf]  ;;  %v8208_v36 = vpop.f32.mrf.mxu2  ;;  %v10054_v32 = vor.u32 %v12690_v35, %v10051_v34  ;;  %v15845_v45 = vadd.f32 %v8245_v33, %v8233_v20  ;;  %v9875_v17 = vld [vmem:[%s14380_s7 + $0x538] sm:$0xf0] }
 0x427   : > { %8496 = vmatpush.bf16.msra.mxu1 %v10102_v46  ;;  %8465 = vmatmul.bf16.vlgmr.msrb.gmra.mxu2 %v14490_v31  ;;  %v12658_v31 = vld [vmem:[%s14380_s7 + $0x58c] sm:$0xf]  ;;  %v10182_v44 = vor.u32 %v12722_v29, %v10179_v3  ;;  %v10003_v3 = vld [vmem:[%s14380_s7 + $0x638] sm:$0xf0] }
 0x428   : > { %8509 = vmatpush.bf16.msra.mxu2 %v10230_v39  ;;  %v9926_v38 = vor.u32 %v12658_v31, %v9923_v12  ;;  %v12610_v46 = vld [vmem:[%s14380_s7 + $0x40c] sm:$0xf]  ;;  %v9731_v39 = vld [vmem:[%s14380_s7 + $0x418] sm:$0xf0]  ;;  %v10022_v31 = vor.u32 %v12682_v1, %v10019_v41 }
 0x429   : > { %8474 = vmatpush.bf16.msrb.mxu3 %v9782_v49  ;;  %v10035_v49 = vld [vmem:[%s14380_s7 + $0x678] sm:$0xf0]  ;;  %v9734_v54 = vor.u32 %v12610_v46, %v9731_v39  ;;  %v12762_v6 = vld [vmem:[%s14380_s7 + $0x8cc] sm:$0xf] }
 0x42a   : > { %8484 = vmatpush.bf16.msra.mxu0 %v9958_v51  ;;  %v10163_v51 = vld [vmem:[%s14380_s7 + $0x778] sm:$0xf0]  ;;  %v12646_v35 = vld [vmem:[%s14380_s7 + $0x52c] sm:$0xf]  ;;  %v10342_v29 = vor.u32 %v12762_v6, %v10339_v7 }
 0x42b   : > { %8497 = vmatpush.bf16.msra.mxu1 %v10086_v59  ;;  %v9910_v59 = vor.u32 %v12654_v42, %v9907_v47  ;;  %v10166_v61 = vor.u32 %v12718_v50, %v10163_v51  ;;  %v12678_v34 = vld [vmem:[%s14380_s7 + $0x62c] sm:$0xf]  ;;  %v10131_v33 = vld [vmem:[%s14380_s7 + $0x738] sm:$0xf0] }
 0x42c   : > { %8510 = vmatpush.bf16.msra.mxu2 %v10214_v60  ;;  %v10038_v60 = vor.u32 %v12686_v48, %v10035_v49  ;;  %v12710_v20 = vld [vmem:[%s14380_s7 + $0x72c] sm:$0xf]  ;;  %v9859_v39 = vld [vmem:[%s14380_s7 + $0x518] sm:$0xf0]  ;;  %v10006_v40 = vor.u32 %v12678_v34, %v10003_v3 }
 0x42d   : > { %8475 = vmatpush.bf16.msrb.mxu3 %v9766_v63  ;;  %v10147_v63 = vld [vmem:[%s14380_s7 + $0x758] sm:$0xf0]  ;;  %v12758_v36 = vld [vmem:[%s14380_s7 + $0x8ac] sm:$0xf] }
 0x42e   : > { %8485 = vmatpush.bf16.msra.mxu0 %v9942_v4  ;;  %v8234_v4 = vpop.f32.mrf.mxu0  ;;  %v10150_v12 = vor.u32 %v12714_v2, %v10147_v63  ;;  %v12642_v46 = vld [vmem:[%s14380_s7 + $0x50c] sm:$0xf]  ;;  %v10115_v48 = vld [vmem:[%s14380_s7 + $0x718] sm:$0xf0] }
 0x42f   : > { %8498 = vmatpush.bf16.msra.mxu1 %v10070_v53  ;;  %v8247_v53 = vpop.f32.mrf.mxu1  ;;  %v12706_v42 = vld [vmem:[%s14380_s7 + $0x70c] sm:$0xf]  ;;  %v10307_v50 = vld [vmem:[%s14380_s7 + $0x898] sm:$0xf0] }
 0x430   : > { %8511 = vmatpush.bf16.msra.mxu2 %v10198_v8  ;;  %v9894_v8 = vor.u32 %v12650_v62, %v9891_v0  ;;  %v12754_v49 = vld [vmem:[%s14380_s7 + $0x88c] sm:$0xf]  ;;  %v10483_v43 = vld [vmem:[%s14380_s7 + $0x9f8] sm:$0xf0]  ;;  %v10118_v0 = vor.u32 %v12706_v42, %v10115_v48 }
 0x431   : > { %8476 = vmatpush.bf16.msrb.mxu3 %v9750_v37  ;;  %v10323_v37 = vld [vmem:[%s14380_s7 + $0x8b8] sm:$0xf0]  ;;  %v12798_v51 = vld [vmem:[%s14380_s7 + $0x9ec] sm:$0xf]  ;;  %v10310_v1 = vor.u32 %v12754_v49, %v10307_v50 }
 0x432   : > { %8486 = vmatpush.bf16.msra.mxu0 %v9926_v38  ;;  %v9878_v38 = vor.u32 %v12646_v35, %v9875_v17  ;;  %v10326_v47 = vor.u32 %v12758_v36, %v10323_v37  ;;  %v12830_v52 = vld [vmem:[%s14380_s7 + $0xaec] sm:$0xf]  ;;  %v10291_v2 = vld [vmem:[%s14380_s7 + $0x878] sm:$0xf0] }
 0x433   : > { %8499 = vmatpush.bf16.msra.mxu1 %v10054_v32  ;;  %v10134_v32 = vor.u32 %v12710_v20, %v10131_v33  ;;  %v12750_v41 = vld [vmem:[%s14380_s7 + $0x86c] sm:$0xf]  ;;  %v10467_v7 = vld [vmem:[%s14380_s7 + $0x9d8] sm:$0xf0] }
 0x434   : > { %8512 = vmatpush.bf16.msra.mxu2 %v10182_v44  ;;  %v9987_v44 = vld [vmem:[%s14380_s7 + $0x618] sm:$0xf0]  ;;  %v12794_v6 = vld [vmem:[%s14380_s7 + $0x9cc] sm:$0xf]  ;;  %v10294_v17 = vor.u32 %v12750_v41, %v10291_v2 }
 0x435   : > { %8477 = vmatpush.bf16.msrb.mxu3 %v9734_v54  ;;  %v9862_v54 = vor.u32 %v12642_v46, %v9859_v39  ;;  %v12826_v53 = vld [vmem:[%s14380_s7 + $0xacc] sm:$0xf]  ;;  %v10275_v33 = vld [vmem:[%s14380_s7 + $0x858] sm:$0xf0] }
 0x436   : > { %8487 = vmatpush.bf16.msra.mxu0 %v9910_v59  ;;  %v10611_v59 = vld [vmem:[%s14380_s7 + $0xaf8] sm:$0xf0]  ;;  %v12746_v20 = vld [vmem:[%s14380_s7 + $0x84c] sm:$0xf] }
 0x437   : > { %8500 = vmatpush.bf16.msra.mxu1 %v10038_v60  ;;  %v12862_v60 = vld [vmem:[%s14380_s7 + $0xbec] sm:$0xf]  ;;  %v10614_v63 = vor.u32 %v12830_v52, %v10611_v59  ;;  %v10451_v46 = vld [vmem:[%s14380_s7 + $0x9b8] sm:$0xf0] }
 0x438   : > { %8513 = vmatpush.bf16.msra.mxu2 %v10166_v61  ;;  %8478 = vmatmul.bf16.vlgmr.msrb.gmra.mxu3 %v14529_v9  ;;  %v12674_v9 = vld [vmem:[%s14380_s7 + $0x60c] sm:$0xf]  ;;  %v10739_v61 = vld [vmem:[%s14380_s7 + $0xbf8] sm:$0xf0] }
 0x439   : > { %8522 = vmatpush.bf16.msra.mxu3 %v10358_v30  ;;  %v9990_v62 = vor.u32 %v12674_v9, %v9987_v44  ;;  %v10486_v30 = vor.u32 %v12798_v51, %v10483_v43  ;;  %v10742_v4 = vor.u32 %v12862_v60, %v10739_v61  ;;  %v12822_v39 = vld [vmem:[%s14380_s7 + $0xaac] sm:$0xf]  ;;  %v10707_v9 = vld [vmem:[%s14380_s7 + $0xbb8] sm:$0xf0]  ;;  %v10278_v44 = vor.u32 %v12746_v20, %v10275_v33 }
 0x43a   : > { %8488 = vmatpush.bf16.msra.mxu0 %v9894_v8  ;;  %v10595_v8 = vld [vmem:[%s14380_s7 + $0xad8] sm:$0xf0]  ;;  %v8258_v35 = vpop.f32.mrf.mxu2  ;;  %v12786_v49 = vld [vmem:[%s14380_s7 + $0x98c] sm:$0xf] }
 0x43b   : > { %8501 = vmatpush.bf16.msra.mxu1 %v10022_v31  ;;  %v12858_v31 = vld [vmem:[%s14380_s7 + $0xbcc] sm:$0xf]  ;;  %v8259_v34 = vadd.f32 %v8258_v35, %v15845_v45  ;;  %v8271_v3 = vpop.f32.mrf.mxu3  ;;  %v10598_v36 = vor.u32 %v12826_v53, %v10595_v8  ;;  %v10435_v50 = vld [vmem:[%s14380_s7 + $0x998] sm:$0xf0] }
 0x43c   : > { %8514 = vmatpush.bf16.msra.mxu2 %v10150_v12  ;;  %v10723_v12 = vld [vmem:[%s14380_s7 + $0xbd8] sm:$0xf0]  ;;  %v12818_v51 = vld [vmem:[%s14380_s7 + $0xa8c] sm:$0xf] }
 0x43d   : > { %8523 = vmatpush.bf16.msra.mxu3 %v10342_v29  ;;  %v10470_v29 = vor.u32 %v12794_v6, %v10467_v7  ;;  %v10726_v37 = vor.u32 %v12858_v31, %v10723_v12  ;;  %v8272_v45 = vadd.f32 %v8271_v3, %v8259_v34  ;;  %v10563_v52 = vld [vmem:[%s14380_s7 + $0xa98] sm:$0xf0]  ;;  %v12782_v6 = vld [vmem:[%s14380_s7 + $0x96c] sm:$0xf] }
 0x43e   : > { %8489 = vmatpush.bf16.msra.mxu0 %v9878_v38  ;;  %v12790_v38 = vld [vmem:[%s14380_s7 + $0x9ac] sm:$0xf]  ;;  %v10566_v2 = vor.u32 %v12818_v51, %v10563_v52  ;;  %v10419_v7 = vld [vmem:[%s14380_s7 + $0x978] sm:$0xf0] }
 0x43f   : > { %8502 = vmatpush.bf16.msra.mxu1 %v10006_v40  ;;  %v10579_v40 = vld [vmem:[%s14380_s7 + $0xab8] sm:$0xf0]  ;;  %v10454_v42 = vor.u32 %v12790_v38, %v10451_v46  ;;  %v12814_v53 = vld [vmem:[%s14380_s7 + $0xa6c] sm:$0xf] }
 0x440   : > { %8515 = vmatpush.bf16.msra.mxu2 %v10134_v32  ;;  %v12854_v32 = vld [vmem:[%s14380_s7 + $0xbac] sm:$0xf]  ;;  %v10547_v8 = vld [vmem:[%s14380_s7 + $0xa78] sm:$0xf0] }
 0x441   : > { %8524 = vmatpush.bf16.msra.mxu3 %v10326_v47  ;;  %v12742_v47 = vld [vmem:[%s14380_s7 + $0x82c] sm:$0xf]  ;;  %v10710_v48 = vor.u32 %v12854_v32, %v10707_v9  ;;  %v10675_v12 = vld [vmem:[%s14380_s7 + $0xb78] sm:$0xf0]  ;;  %v10550_v3 = vor.u32 %v12814_v53, %v10547_v8 }
 0x442   : > { %8490 = vmatpush.bf16.msra.mxu0 %v9862_v54  ;;  %v8284_v43 = vpop.f32.mrf.mxu0  ;;  %v10691_v54 = vld [vmem:[%s14380_s7 + $0xb98] sm:$0xf0]  ;;  %v8260_v61 = vpop.f32.mrf.mxu2  ;;  %v12846_v31 = vld [vmem:[%s14380_s7 + $0xb6c] sm:$0xf] }
 0x443   : > { %8503 = vmatpush.bf16.msra.mxu1 %v9990_v62  ;;  %v8285_v59 = vadd.f32 %v8284_v43, %v8272_v45  ;;  %v8297_v60 = vpop.f32.mrf.mxu1  ;;  %v8273_v41 = vpop.f32.mrf.mxu3  ;;  %v12894_v35 = vld [vmem:[%s14380_s7 + $0xcec] sm:$0xf]  ;;  %v10678_v20 = vor.u32 %v12846_v31, %v10675_v12  ;;  %v10531_v46 = vld [vmem:[%s14380_s7 + $0xa58] sm:$0xf0] }
 0x444   : > { %8516 = vmatpush.bf16.msra.mxu2 %v10118_v0  ;;  %v10438_v0 = vor.u32 %v12786_v49, %v10435_v50  ;;  %v12778_v33 = vld [vmem:[%s14380_s7 + $0x94c] sm:$0xf]  ;;  %v10659_v45 = vld [vmem:[%s14380_s7 + $0xb58] sm:$0xf0] }
 0x445   : > { %8525 = vmatpush.bf16.msra.mxu3 %v10310_v1  ;;  %8491 = vmatmul.bf16.vlgmr.msra.gmra.mxu0 %v14533_v11  ;;  %v10582_v11 = vor.u32 %v12822_v39, %v10579_v40  ;;  %v12738_v1 = vld [vmem:[%s14380_s7 + $0x80c] sm:$0xf]  ;;  %v10851_v9 = vld [vmem:[%s14380_s7 + $0xcd8] sm:$0xf0] }
 0x446   : > { %8535 = vmatpush.bf16.msrb.mxu0 %v10486_v30  ;;  %8504 = vmatmul.bf16.vlgmr.msra.gmra.mxu1 %v14524_v5  ;;  %v12850_v5 = vld [vmem:[%s14380_s7 + $0xb8c] sm:$0xf]  ;;  %v10243_v30 = vld [vmem:[%s14380_s7 + $0x818] sm:$0xf0] }
 0x447   : > { %8548 = vmatpush.bf16.msrb.mxu1 %v10614_v63  ;;  %8517 = vmatmul.bf16.vlgmr.msra.gmra.mxu2 %v14531_v10  ;;  %v10259_v10 = vld [vmem:[%s14380_s7 + $0x838] sm:$0xf0]  ;;  %v10694_v63 = vor.u32 %v12850_v5, %v10691_v54  ;;  %v10246_v34 = vor.u32 %v12738_v1, %v10243_v30  ;;  %v12842_v39 = vld [vmem:[%s14380_s7 + $0xb4c] sm:$0xf] }
 0x448   : > { %8561 = vmatpush.bf16.msrb.mxu2 %v10742_v4  ;;  %v10262_v62 = vor.u32 %v12742_v47, %v10259_v10  ;;  %v15916_v4 = vadd.f32 %v8297_v60, %v8285_v59  ;;  %v12890_v32 = vld [vmem:[%s14380_s7 + $0xccc] sm:$0xf]  ;;  %v10662_v10 = vor.u32 %v12842_v39, %v10659_v45  ;;  %v10515_v51 = vld [vmem:[%s14380_s7 + $0xa38] sm:$0xf0] }
 0x449   : > { %8526 = vmatpush.bf16.msra.mxu3 %v10294_v17  ;;  %v10867_v17 = vld [vmem:[%s14380_s7 + $0xcf8] sm:$0xf0]  ;;  %v12806_v49 = vld [vmem:[%s14380_s7 + $0xa2c] sm:$0xf]  ;;  %v10854_v50 = vor.u32 %v12890_v32, %v10851_v9 }
 0x44a   : > { %8536 = vmatpush.bf16.msrb.mxu0 %v10470_v29  ;;  %v10422_v29 = vor.u32 %v12782_v6, %v10419_v7  ;;  %v10870_v38 = vor.u32 %v12894_v35, %v10867_v17  ;;  %v8286_v40 = vpop.f32.mrf.mxu0  ;;  %v12838_v43 = vld [vmem:[%s14380_s7 + $0xb2c] sm:$0xf]  ;;  %v10643_v52 = vld [vmem:[%s14380_s7 + $0xb38] sm:$0xf0] }
 0x44b   : > { %8549 = vmatpush.bf16.msrb.mxu1 %v10598_v36  ;;  %v10403_v36 = vld [vmem:[%s14380_s7 + $0x958] sm:$0xf0]  ;;  %v12886_v5 = vld [vmem:[%s14380_s7 + $0xcac] sm:$0xf] }
 0x44c   : > { %8562 = vmatpush.bf16.msrb.mxu2 %v10726_v37  ;;  %v12810_v37 = vld [vmem:[%s14380_s7 + $0xa4c] sm:$0xf]  ;;  %v10835_v54 = vld [vmem:[%s14380_s7 + $0xcb8] sm:$0xf0] }
 0x44d   : > { %8527 = vmatpush.bf16.msra.mxu3 %v10278_v44  ;;  %v8299_v44 = vpop.f32.mrf.mxu1  ;;  %v10534_v47 = vor.u32 %v12810_v37, %v10531_v46  ;;  %v12770_v60 = vld [vmem:[%s14380_s7 + $0x90c] sm:$0xf]  ;;  %v10371_v61 = vld [vmem:[%s14380_s7 + $0x918] sm:$0xf0]  ;;  %v10838_v41 = vor.u32 %v12886_v5, %v10835_v54 }
 0x44e   : > { %8537 = vmatpush.bf16.msrb.mxu0 %v10454_v42  ;;  %v10406_v42 = vor.u32 %v12778_v33, %v10403_v36  ;;  %v10499_v1 = vld [vmem:[%s14380_s7 + $0xa18] sm:$0xf0]  ;;  %v12834_v30 = vld [vmem:[%s14380_s7 + $0xb0c] sm:$0xf]  ;;  %v10374_v31 = vor.u32 %v12770_v60, %v10371_v61 }
 0x44f   : > { %8550 = vmatpush.bf16.msrb.mxu1 %v10582_v11  ;;  %v12774_v11 = vld [vmem:[%s14380_s7 + $0x92c] sm:$0xf]  ;;  %v10819_v6 = vld [vmem:[%s14380_s7 + $0xc98] sm:$0xf0] }
 0x450   : > { %8563 = vmatpush.bf16.msrb.mxu2 %v10710_v48  ;;  %v10387_v48 = vld [vmem:[%s14380_s7 + $0x938] sm:$0xf0]  ;;  %v12926_v7 = vld [vmem:[%s14380_s7 + $0xdec] sm:$0xf] }
 0x451   : > { %8528 = vmatpush.bf16.msra.mxu3 %v10262_v62  ;;  %v10390_v59 = vor.u32 %v12774_v11, %v10387_v48  ;;  %v10518_v62 = vor.u32 %v12806_v49, %v10515_v51  ;;  %v10995_v53 = vld [vmem:[%s14380_s7 + $0xdf8] sm:$0xf0]  ;;  %v12958_v8 = vld [vmem:[%s14380_s7 + $0xeec] sm:$0xf] }
 0x452   : > { %8538 = vmatpush.bf16.msrb.mxu0 %v10438_v0  ;;  %v10646_v0 = vor.u32 %v12838_v43, %v10643_v52  ;;  %v11123_v12 = vld [vmem:[%s14380_s7 + $0xef8] sm:$0xf0]  ;;  %v12990_v35 = vld [vmem:[%s14380_s7 + $0xfec] sm:$0xf] }
 0x453   : > { %8551 = vmatpush.bf16.msrb.mxu1 %v10566_v2  ;;  %v10627_v2 = vld [vmem:[%s14380_s7 + $0xb18] sm:$0xf0]  ;;  %v12878_v33 = vld [vmem:[%s14380_s7 + $0xc6c] sm:$0xf]  ;;  %v11126_v37 = vor.u32 %v12958_v8, %v11123_v12 }
 0x454   : > { %8564 = vmatpush.bf16.msrb.mxu2 %v10694_v63  ;;  %v12882_v63 = vld [vmem:[%s14380_s7 + $0xc8c] sm:$0xf]  ;;  %v11251_v17 = vld [vmem:[%s14380_s7 + $0xff8] sm:$0xf0] }
 0x455   : > { %8529 = vmatpush.bf16.msra.mxu3 %v10246_v34  ;;  %v10803_v36 = vld [vmem:[%s14380_s7 + $0xc78] sm:$0xf0]  ;;  %v12922_v46 = vld [vmem:[%s14380_s7 + $0xdcc] sm:$0xf] }
 0x456   : > { %8539 = vmatpush.bf16.msrb.mxu0 %v10422_v29  ;;  %v10630_v29 = vor.u32 %v12834_v30, %v10627_v2  ;;  %v10979_v39 = vld [vmem:[%s14380_s7 + $0xdd8] sm:$0xf0]  ;;  %v12954_v45 = vld [vmem:[%s14380_s7 + $0xecc] sm:$0xf] }
 0x457   : > { %8552 = vmatpush.bf16.msrb.mxu1 %v10550_v3  ;;  %v10822_v3 = vor.u32 %v12882_v63, %v10819_v6  ;;  %v11107_v40 = vld [vmem:[%s14380_s7 + $0xed8] sm:$0xf0]  ;;  %v12986_v32 = vld [vmem:[%s14380_s7 + $0xfcc] sm:$0xf] }
 0x458   : > { %8565 = vmatpush.bf16.msrb.mxu2 %v10678_v20  ;;  %8530 = vmatmul.bf16.vlgmr.msra.gmra.mxu3 %v14619_v21  ;;  %v12802_v21 = vld [vmem:[%s14380_s7 + $0xa0c] sm:$0xf]  ;;  %v10998_v20 = vor.u32 %v12926_v7, %v10995_v53  ;;  %v11235_v9 = vld [vmem:[%s14380_s7 + $0xfd8] sm:$0xf0] }
 0x459   : > { %8574 = vmatpush.bf16.msrb.mxu3 %v10870_v38  ;;  %v10502_v34 = vor.u32 %v12802_v21, %v10499_v1  ;;  %v11254_v38 = vor.u32 %v12990_v35, %v11251_v17  ;;  %v12874_v48 = vld [vmem:[%s14380_s7 + $0xc4c] sm:$0xf]  ;;  %v10787_v49 = vld [vmem:[%s14380_s7 + $0xc58] sm:$0xf0]  ;;  %v11238_v51 = vor.u32 %v12986_v32, %v11235_v9 }
 0x45a   : > { %8540 = vmatpush.bf16.msrb.mxu0 %v10406_v42  ;;  %v8310_v44 = vpop.f32.mrf.mxu2  ;;  %v10806_v42 = vor.u32 %v12878_v33, %v10803_v36  ;;  %v12918_v43 = vld [vmem:[%s14380_s7 + $0xdac] sm:$0xf]  ;;  %v10963_v52 = vld [vmem:[%s14380_s7 + $0xdb8] sm:$0xf0]  ;;  %v10790_v61 = vor.u32 %v12874_v48, %v10787_v49 }
 0x45b   : > { %8553 = vmatpush.bf16.msrb.mxu1 %v10534_v47  ;;  %v8311_v47 = vadd.f32 %v8310_v44, %v15916_v4  ;;  %v8323_v11 = vpop.f32.mrf.mxu3  ;;  %v12950_v5 = vld [vmem:[%s14380_s7 + $0xeac] sm:$0xf]  ;;  %v11091_v54 = vld [vmem:[%s14380_s7 + $0xeb8] sm:$0xf0] }
 0x45c   : > { %8566 = vmatpush.bf16.msrb.mxu2 %v10662_v10  ;;  %v10982_v10 = vor.u32 %v12922_v46, %v10979_v39  ;;  %v11219_v60 = vld [vmem:[%s14380_s7 + $0xfb8] sm:$0xf0]  ;;  %v12914_v1 = vld [vmem:[%s14380_s7 + $0xd8c] sm:$0xf] }
 0x45d   : > { %8575 = vmatpush.bf16.msrb.mxu3 %v10854_v50  ;;  %v11110_v50 = vor.u32 %v12954_v45, %v11107_v40  ;;  %v8324_v4 = vadd.f32 %v8323_v11, %v8311_v47  ;;  %v10947_v30 = vld [vmem:[%s14380_s7 + $0xd98] sm:$0xf0]  ;;  %v12866_v35 = vld [vmem:[%s14380_s7 + $0xc0c] sm:$0xf] }
 0x45e   : > { %8541 = vmatpush.bf16.msrb.mxu0 %v10390_v59  ;;  %v12982_v59 = vld [vmem:[%s14380_s7 + $0xfac] sm:$0xf]  ;;  %v11075_v63 = vld [vmem:[%s14380_s7 + $0xe98] sm:$0xf0]  ;;  %v10950_v12 = vor.u32 %v12914_v1, %v10947_v30 }
 0x45f   : > { %8554 = vmatpush.bf16.msrb.mxu1 %v10518_v62  ;;  %v10966_v62 = vor.u32 %v12918_v43, %v10963_v52  ;;  %v11222_v21 = vor.u32 %v12982_v59, %v11219_v60  ;;  %v11203_v6 = vld [vmem:[%s14380_s7 + $0xf98] sm:$0xf0]  ;;  %v12910_v33 = vld [vmem:[%s14380_s7 + $0xd6c] sm:$0xf] }
 0x460   : > { %8567 = vmatpush.bf16.msrb.mxu2 %v10646_v0  ;;  %v12870_v0 = vld [vmem:[%s14380_s7 + $0xc2c] sm:$0xf]  ;;  %v10755_v17 = vld [vmem:[%s14380_s7 + $0xc18] sm:$0xf0] }
 0x461   : > { %8576 = vmatpush.bf16.msrb.mxu3 %v10838_v41  ;;  %v12946_v41 = vld [vmem:[%s14380_s7 + $0xe8c] sm:$0xf]  ;;  %v10931_v36 = vld [vmem:[%s14380_s7 + $0xd78] sm:$0xf0]  ;;  %v10758_v32 = vor.u32 %v12866_v35, %v10755_v17 }
 0x462   : > { %8542 = vmatpush.bf16.msrb.mxu0 %v10374_v31  ;;  %v8336_v2 = vpop.f32.mrf.mxu0  ;;  %v8312_v8 = vpop.f32.mrf.mxu2  ;;  %v12974_v46 = vld [vmem:[%s14380_s7 + $0xf6c] sm:$0xf]  ;;  %v11187_v39 = vld [vmem:[%s14380_s7 + $0xf78] sm:$0xf0]  ;;  %v10934_v9 = vor.u32 %v12910_v33, %v10931_v36 }
 0x463   : > { %8555 = vmatpush.bf16.msrb.mxu1 %v10502_v34  ;;  %v8337_v7 = vadd.f32 %v8336_v2, %v8324_v4  ;;  %v8349_v53 = vpop.f32.mrf.mxu1  ;;  %v8325_v34 = vpop.f32.mrf.mxu3  ;;  %v13022_v45 = vld [vmem:[%s14380_s7 + $0x10ec] sm:$0xf]  ;;  %v11379_v40 = vld [vmem:[%s14380_s7 + $0x10f8] sm:$0xf0] }
 0x464   : > { %8568 = vmatpush.bf16.msrb.mxu2 %v10630_v29  ;;  %v11078_v29 = vor.u32 %v12946_v41, %v11075_v63  ;;  %v12906_v47 = vld [vmem:[%s14380_s7 + $0xd4c] sm:$0xf]  ;;  %v11382_v48 = vor.u32 %v13022_v45, %v11379_v40  ;;  %v11043_v49 = vld [vmem:[%s14380_s7 + $0xe58] sm:$0xf0] }
 0x465   : > { %8577 = vmatpush.bf16.msrb.mxu3 %v10822_v3  ;;  %8543 = vmatmul.bf16.vlgmr.msrb.gmra.mxu0 %v14625_v25  ;;  %v10771_v25 = vld [vmem:[%s14380_s7 + $0xc38] sm:$0xf0]  ;;  %v12938_v11 = vld [vmem:[%s14380_s7 + $0xe4c] sm:$0xf] }
 0x466   : > { %8587 = vmatpush.bf16.msra.mxu0 %v10998_v20  ;;  %8556 = vmatmul.bf16.vlgmr.msrb.gmra.mxu1 %v14623_v24  ;;  %v12978_v24 = vld [vmem:[%s14380_s7 + $0xf8c] sm:$0xf]  ;;  %v10774_v31 = vor.u32 %v12870_v0, %v10771_v25  ;;  %v15987_v20 = vadd.f32 %v8349_v53, %v8337_v7  ;;  %v11046_v59 = vor.u32 %v12938_v11, %v11043_v49  ;;  %v11155_v1 = vld [vmem:[%s14380_s7 + $0xf38] sm:$0xf0] }
 0x467   : > { %8600 = vmatpush.bf16.msra.mxu1 %v11126_v37  ;;  %8569 = vmatmul.bf16.vlgmr.msrb.gmra.mxu2 %v14627_v26  ;;  %v11094_v26 = vor.u32 %v12950_v5, %v11091_v54  ;;  %v11206_v3 = vor.u32 %v12978_v24, %v11203_v6  ;;  %v12942_v37 = vld [vmem:[%s14380_s7 + $0xe6c] sm:$0xf]  ;;  %v11363_v5 = vld [vmem:[%s14380_s7 + $0x10d8] sm:$0xf0] }
 0x468   : > { %8613 = vmatpush.bf16.msra.mxu2 %v11254_v38  ;;  %v11059_v38 = vld [vmem:[%s14380_s7 + $0xe78] sm:$0xf0]  ;;  %v13018_v52 = vld [vmem:[%s14380_s7 + $0x10cc] sm:$0xf] }
 0x469   : > { %8578 = vmatpush.bf16.msrb.mxu3 %v10806_v42  ;;  %v11062_v44 = vor.u32 %v12942_v37, %v11059_v38  ;;  %v11190_v42 = vor.u32 %v12974_v46, %v11187_v39  ;;  %v12934_v0 = vld [vmem:[%s14380_s7 + $0xe2c] sm:$0xf]  ;;  %v11366_v25 = vor.u32 %v13018_v52, %v11363_v5  ;;  %v11347_v41 = vld [vmem:[%s14380_s7 + $0x10b8] sm:$0xf0] }
 0x46a   : > { %8588 = vmatpush.bf16.msra.mxu0 %v10982_v10  ;;  %v10915_v10 = vld [vmem:[%s14380_s7 + $0xd58] sm:$0xf0]  ;;  %v8338_v43 = vpop.f32.mrf.mxu0  ;;  %v13014_v30 = vld [vmem:[%s14380_s7 + $0x10ac] sm:$0xf] }
 0x46b   : > { %8601 = vmatpush.bf16.msra.mxu1 %v11110_v50  ;;  %v12970_v50 = vld [vmem:[%s14380_s7 + $0xf4c] sm:$0xf]  ;;  %v8351_v4 = vpop.f32.mrf.mxu1  ;;  %v10918_v54 = vor.u32 %v12906_v47, %v10915_v10  ;;  %v10883_v24 = vld [vmem:[%s14380_s7 + $0xd18] sm:$0xf0] }
 0x46c   : > { %8614 = vmatpush.bf16.msra.mxu2 %v11238_v51  ;;  %v11171_v51 = vld [vmem:[%s14380_s7 + $0xf58] sm:$0xf0]  ;;  %v12898_v63 = vld [vmem:[%s14380_s7 + $0xd0c] sm:$0xf] }
 0x46d   : > { %8579 = vmatpush.bf16.msrb.mxu3 %v10790_v61  ;;  %v11174_v60 = vor.u32 %v12970_v50, %v11171_v51  ;;  %v12902_v61 = vld [vmem:[%s14380_s7 + $0xd2c] sm:$0xf]  ;;  %v11011_v53 = vld [vmem:[%s14380_s7 + $0xe18] sm:$0xf0]  ;;  %v10886_v33 = vor.u32 %v12898_v63, %v10883_v24 }
 0x46e   : > { %8589 = vmatpush.bf16.msra.mxu0 %v10966_v62  ;;  %v10899_v62 = vld [vmem:[%s14380_s7 + $0xd38] sm:$0xf0]  ;;  %v12962_v8 = vld [vmem:[%s14380_s7 + $0xf0c] sm:$0xf] }
 0x46f   : > { %8602 = vmatpush.bf16.msra.mxu1 %v11094_v26  ;;  %v11027_v26 = vld [vmem:[%s14380_s7 + $0xe38] sm:$0xf0]  ;;  %v10902_v2 = vor.u32 %v12902_v61, %v10899_v62  ;;  %v13010_v35 = vld [vmem:[%s14380_s7 + $0x108c] sm:$0xf] }
 0x470   : > { %8615 = vmatpush.bf16.msra.mxu2 %v11222_v21  ;;  %v12966_v21 = vld [vmem:[%s14380_s7 + $0xf2c] sm:$0xf]  ;;  %v11030_v6 = vor.u32 %v12934_v0, %v11027_v26  ;;  %v11331_v17 = vld [vmem:[%s14380_s7 + $0x1098] sm:$0xf0] }
 0x471   : > { %8580 = vmatpush.bf16.msrb.mxu3 %v10774_v31  ;;  %v11158_v7 = vor.u32 %v12966_v21, %v11155_v1  ;;  %v11350_v31 = vor.u32 %v13014_v30, %v11347_v41  ;;  %v13054_v34 = vld [vmem:[%s14380_s7 + $0x11ec] sm:$0xf]  ;;  %v11635_v36 = vld [vmem:[%s14380_s7 + $0x12f8] sm:$0xf0]  ;;  %v11334_v45 = vor.u32 %v13010_v35, %v11331_v17 }
 0x472   : > { %8590 = vmatpush.bf16.msra.mxu0 %v10950_v12  ;;  %v11139_v12 = vld [vmem:[%s14380_s7 + $0xf18] sm:$0xf0]  ;;  %v13118_v37 = vld [vmem:[%s14380_s7 + $0x13ec] sm:$0xf] }
 0x473   : > { %8603 = vmatpush.bf16.msra.mxu1 %v11078_v29  ;;  %v11507_v29 = vld [vmem:[%s14380_s7 + $0x11f8] sm:$0xf0]  ;;  %v11142_v39 = vor.u32 %v12962_v8, %v11139_v12  ;;  %v13050_v47 = vld [vmem:[%s14380_s7 + $0x11cc] sm:$0xf] }
 0x474   : > { %8616 = vmatpush.bf16.msra.mxu2 %v11206_v3  ;;  %v13086_v3 = vld [vmem:[%s14380_s7 + $0x12ec] sm:$0xf]  ;;  %v11763_v38 = vld [vmem:[%s14380_s7 + $0x13f8] sm:$0xf0]  ;;  %v11510_v40 = vor.u32 %v13054_v34, %v11507_v29 }
 0x475   : > { %8581 = vmatpush.bf16.msrb.mxu3 %v10758_v32  ;;  %v13006_v32 = vld [vmem:[%s14380_s7 + $0x106c] sm:$0xf]  ;;  %v11491_v10 = vld [vmem:[%s14380_s7 + $0x11d8] sm:$0xf0] }
 0x476   : > { %8591 = vmatpush.bf16.msra.mxu0 %v10934_v9  ;;  %v11315_v9 = vld [vmem:[%s14380_s7 + $0x1078] sm:$0xf0]  ;;  %v13082_v11 = vld [vmem:[%s14380_s7 + $0x12cc] sm:$0xf]  ;;  %v11494_v5 = vor.u32 %v13050_v47, %v11491_v10 }
 0x477   : > { %8604 = vmatpush.bf16.msra.mxu1 %v11062_v44  ;;  %v11638_v44 = vor.u32 %v13086_v3, %v11635_v36  ;;  %v13114_v49 = vld [vmem:[%s14380_s7 + $0x13cc] sm:$0xf]  ;;  %v11747_v50 = vld [vmem:[%s14380_s7 + $0x13d8] sm:$0xf0]  ;;  %v11318_v43 = vor.u32 %v13006_v32, %v11315_v9 }
 0x478   : > { %8617 = vmatpush.bf16.msra.mxu2 %v11190_v42  ;;  %8582 = vmatmul.bf16.vlgmr.msrb.gmra.mxu3 %v14685_v55  ;;  %v12930_v55 = vld [vmem:[%s14380_s7 + $0xe0c] sm:$0xf]  ;;  %v11766_v42 = vor.u32 %v13118_v37, %v11763_v38  ;;  %v11750_v61 = vor.u32 %v13114_v49, %v11747_v50  ;;  %v11475_v0 = vld [vmem:[%s14380_s7 + $0x11b8] sm:$0xf0] }
 0x479   : > { %8626 = vmatpush.bf16.msra.mxu3 %v11382_v48  ;;  %v11014_v46 = vor.u32 %v12930_v55, %v11011_v53  ;;  %v11619_v48 = vld [vmem:[%s14380_s7 + $0x12d8] sm:$0xf0]  ;;  %v13046_v62 = vld [vmem:[%s14380_s7 + $0x11ac] sm:$0xf] }
 0x47a   : > { %8592 = vmatpush.bf16.msra.mxu0 %v10918_v54  ;;  %v8362_v51 = vpop.f32.mrf.mxu2  ;;  %v13002_v54 = vld [vmem:[%s14380_s7 + $0x104c] sm:$0xf]  ;;  %v11603_v26 = vld [vmem:[%s14380_s7 + $0x12b8] sm:$0xf0]  ;;  %v11478_v41 = vor.u32 %v13046_v62, %v11475_v0 }
 0x47b   : > { %8605 = vmatpush.bf16.msra.mxu1 %v11046_v59  ;;  %v8363_v52 = vadd.f32 %v8362_v51, %v15987_v20  ;;  %v8375_v4 = vpop.f32.mrf.mxu3  ;;  %v11299_v59 = vld [vmem:[%s14380_s7 + $0x1058] sm:$0xf0]  ;;  %v13110_v21 = vld [vmem:[%s14380_s7 + $0x13ac] sm:$0xf] }
 0x47c   : > { %8618 = vmatpush.bf16.msra.mxu2 %v11174_v60  ;;  %v11622_v60 = vor.u32 %v13082_v11, %v11619_v48  ;;  %v11731_v1 = vld [vmem:[%s14380_s7 + $0x13b8] sm:$0xf0]  ;;  %v11302_v30 = vor.u32 %v13002_v54, %v11299_v59  ;;  %v13042_v24 = vld [vmem:[%s14380_s7 + $0x118c] sm:$0xf] }
 0x47d   : > { %8627 = vmatpush.bf16.msra.mxu3 %v11366_v25  ;;  %v13078_v25 = vld [vmem:[%s14380_s7 + $0x12ac] sm:$0xf]  ;;  %v8376_v20 = vadd.f32 %v8375_v4, %v8363_v52  ;;  %v11734_v63 = vor.u32 %v13110_v21, %v11731_v1  ;;  %v11587_v55 = vld [vmem:[%s14380_s7 + $0x1298] sm:$0xf0] }
 0x47e   : > { %8593 = vmatpush.bf16.msra.mxu0 %v10902_v2  ;;  %v12998_v2 = vld [vmem:[%s14380_s7 + $0x102c] sm:$0xf]  ;;  %v11715_v8 = vld [vmem:[%s14380_s7 + $0x1398] sm:$0xf0] }
 0x47f   : > { %8606 = vmatpush.bf16.msra.mxu1 %v11030_v6  ;;  %v11459_v6 = vld [vmem:[%s14380_s7 + $0x1198] sm:$0xf0]  ;;  %v13106_v53 = vld [vmem:[%s14380_s7 + $0x138c] sm:$0xf] }
 0x480   : > { %8619 = vmatpush.bf16.msra.mxu2 %v11158_v7  ;;  %v13074_v7 = vld [vmem:[%s14380_s7 + $0x128c] sm:$0xf]  ;;  %v11462_v17 = vor.u32 %v13042_v24, %v11459_v6  ;;  %v11267_v3 = vld [vmem:[%s14380_s7 + $0x1018] sm:$0xf0]  ;;  %v11718_v37 = vor.u32 %v13106_v53, %v11715_v8 }
 0x481   : > { %8628 = vmatpush.bf16.msra.mxu3 %v11350_v31  ;;  %v12994_v29 = vld [vmem:[%s14380_s7 + $0x100c] sm:$0xf]  ;;  %v11590_v36 = vor.u32 %v13074_v7, %v11587_v55  ;;  %v11699_v9 = vld [vmem:[%s14380_s7 + $0x1378] sm:$0xf0] }
 0x482   : > { %8594 = vmatpush.bf16.msra.mxu0 %v10886_v33  ;;  %v8364_v31 = vpop.f32.mrf.mxu2  ;;  %v13038_v38 = vld [vmem:[%s14380_s7 + $0x116c] sm:$0xf]  ;;  %v11270_v47 = vor.u32 %v12994_v29, %v11267_v3  ;;  %v11427_v50 = vld [vmem:[%s14380_s7 + $0x1158] sm:$0xf0] }
 0x483   : > { %8607 = vmatpush.bf16.msra.mxu1 %v11014_v46  ;;  %v8401_v34 = vpop.f32.mrf.mxu1  ;;  %v8377_v33 = vpop.f32.mrf.mxu3  ;;  %v11443_v46 = vld [vmem:[%s14380_s7 + $0x1178] sm:$0xf0]  ;;  %v13102_v32 = vld [vmem:[%s14380_s7 + $0x136c] sm:$0xf] }
 0x484   : > { %8620 = vmatpush.bf16.msra.mxu2 %v11142_v39  ;;  %v13070_v39 = vld [vmem:[%s14380_s7 + $0x126c] sm:$0xf]  ;;  %v11446_v10 = vor.u32 %v13038_v38, %v11443_v46  ;;  %v11702_v48 = vor.u32 %v13102_v32, %v11699_v9  ;;  %v11555_v52 = vld [vmem:[%s14380_s7 + $0x1258] sm:$0xf0] }
 0x485   : > { %8629 = vmatpush.bf16.msra.mxu3 %v11334_v45  ;;  %8595 = vmatmul.bf16.vlgmr.msra.gmra.mxu0 %v14689_v57  ;;  %v11283_v57 = vld [vmem:[%s14380_s7 + $0x1038] sm:$0xf0]  ;;  %v13034_v49 = vld [vmem:[%s14380_s7 + $0x114c] sm:$0xf] }
 0x486   : > { %8639 = vmatpush.bf16.msrb.mxu0 %v11510_v40  ;;  %8608 = vmatmul.bf16.vlgmr.msra.gmra.mxu1 %v14687_v56  ;;  %v8388_v56 = vpop.f32.mrf.mxu0  ;;  %v11286_v35 = vor.u32 %v12998_v2, %v11283_v57  ;;  %v11571_v40 = vld [vmem:[%s14380_s7 + $0x1278] sm:$0xf0]  ;;  %v13066_v51 = vld [vmem:[%s14380_s7 + $0x124c] sm:$0xf] }
 0x487   : > { %8652 = vmatpush.bf16.msrb.mxu1 %v11638_v44  ;;  %8621 = vmatmul.bf16.vlgmr.msra.gmra.mxu2 %v14691_v58  ;;  %v11606_v58 = vor.u32 %v13078_v25, %v11603_v26  ;;  %v8389_v12 = vadd.f32 %v8388_v56, %v8376_v20  ;;  %v13150_v44 = vld [vmem:[%s14380_s7 + $0x14ec] sm:$0xf]  ;;  %v11574_v11 = vor.u32 %v13070_v39, %v11571_v40  ;;  %v11683_v4 = vld [vmem:[%s14380_s7 + $0x1358] sm:$0xf0] }
 0x488   : > { %8665 = vmatpush.bf16.msrb.mxu2 %v11766_v42  ;;  %v11891_v42 = vld [vmem:[%s14380_s7 + $0x14f8] sm:$0xf0]  ;;  %v13146_v54 = vld [vmem:[%s14380_s7 + $0x14cc] sm:$0xf]  ;;  %v11558_v25 = vor.u32 %v13066_v51, %v11555_v52 }
 0x489   : > { %8630 = vmatpush.bf16.msra.mxu3 %v11318_v43  ;;  %v8402_v45 = vadd.f32 %v8401_v34, %v8389_v12  ;;  %v11894_v43 = vor.u32 %v13150_v44, %v11891_v42  ;;  %v11875_v59 = vld [vmem:[%s14380_s7 + $0x14d8] sm:$0xf0]  ;;  %v13030_v26 = vld [vmem:[%s14380_s7 + $0x112c] sm:$0xf] }
 0x48a   : > { %8640 = vmatpush.bf16.msrb.mxu0 %v11494_v5  ;;  %v13098_v5 = vld [vmem:[%s14380_s7 + $0x134c] sm:$0xf]  ;;  %v8414_v0 = vpop.f32.mrf.mxu2  ;;  %v11411_v21 = vld [vmem:[%s14380_s7 + $0x1138] sm:$0xf0] }
 0x48b   : > { %8653 = vmatpush.bf16.msrb.mxu1 %v11622_v60  ;;  %v8403_v62 = vpop.f32.mrf.mxu1  ;;  %v11686_v20 = vor.u32 %v13098_v5, %v11683_v4  ;;  %v13062_v1 = vld [vmem:[%s14380_s7 + $0x122c] sm:$0xf]  ;;  %v11539_v2 = vld [vmem:[%s14380_s7 + $0x1238] sm:$0xf0]  ;;  %v11414_v6 = vor.u32 %v13030_v26, %v11411_v21 }
 0x48c   : > { %8666 = vmatpush.bf16.msrb.mxu2 %v11750_v61  ;;  %v11430_v61 = vor.u32 %v13034_v49, %v11427_v50  ;;  %v13094_v57 = vld [vmem:[%s14380_s7 + $0x132c] sm:$0xf]  ;;  %v11859_v24 = vld [vmem:[%s14380_s7 + $0x14b8] sm:$0xf0]  ;;  %v11542_v53 = vor.u32 %v13062_v1, %v11539_v2 }
 0x48d   : > { %8631 = vmatpush.bf16.msra.mxu3 %v11302_v30  ;;  %v16077_v30 = vadd.f32 %v8414_v0, %v8402_v45  ;;  %v13026_v7 = vld [vmem:[%s14380_s7 + $0x110c] sm:$0xf]  ;;  %v11395_v55 = vld [vmem:[%s14380_s7 + $0x1118] sm:$0xf0] }
 0x48e   : > { %8641 = vmatpush.bf16.msrb.mxu0 %v11478_v41  ;;  %v8390_v60 = vpop.f32.mrf.mxu0  ;;  %v11878_v41 = vor.u32 %v13146_v54, %v11875_v59  ;;  %v11523_v56 = vld [vmem:[%s14380_s7 + $0x1218] sm:$0xf0]  ;;  %v13090_v31 = vld [vmem:[%s14380_s7 + $0x130c] sm:$0xf]  ;;  %v13367_v59 = vld [vmem:[%s14373_s28] sm:$0xf] }
 0x48f   : > { %8654 = vmatpush.bf16.msrb.mxu1 %v11606_v58  ;;  %v11667_v58 = vld [vmem:[%s14380_s7 + $0x1338] sm:$0xf0]  ;;  %v13182_v29 = vld [vmem:[%s14380_s7 + $0x15ec] sm:$0xf]  ;;  %v3458_v60 = vperm.slane %v13367_v59, 3 }
 0x490   : > { %8667 = vmatpush.bf16.msrb.mxu2 %v11734_v63  ;;  %v13142_v63 = vld [vmem:[%s14380_s7 + $0x14ac] sm:$0xf]  ;;  %v11670_v8 = vor.u32 %v13094_v57, %v11667_v58  ;;  %v11843_v34 = vld [vmem:[%s14380_s7 + $0x1498] sm:$0xf0] }
 0x491   : > { %8632 = vmatpush.bf16.msra.mxu3 %v11286_v35  ;;  %v11862_v12 = vor.u32 %v13142_v63, %v11859_v24  ;;  %v11651_v35 = vld [vmem:[%s14380_s7 + $0x1318] sm:$0xf0]  ;;  %v13214_v33 = vld [vmem:[%s14380_s7 + $0x16ec] sm:$0xf] }
 0x492   : > { %8642 = vmatpush.bf16.msrb.mxu0 %v11462_v17  ;;  %v13138_v17 = vld [vmem:[%s14380_s7 + $0x148c] sm:$0xf]  ;;  %v12019_v3 = vld [vmem:[%s14380_s7 + $0x15f8] sm:$0xf0]  ;;  %v11654_v45 = vor.u32 %v13090_v31, %v11651_v35  ;;  %v8416_v40 = vpop.f32.mrf.mxu2 }
 0x493   : > { %8655 = vmatpush.bf16.msrb.mxu1 %v11590_v36  ;;  %v11398_v36 = vor.u32 %v13026_v7, %v11395_v55  ;;  %v13246_v38 = vld [vmem:[%s14380_s7 + $0x17ec] sm:$0xf]  ;;  %v12275_v46 = vld [vmem:[%s14380_s7 + $0x17f8] sm:$0xf0]  ;;  %v11846_v32 = vor.u32 %v13138_v17, %v11843_v34  ;;  %v12022_v9 = vor.u32 %v13182_v29, %v12019_v3 }
 0x494   : > { %8668 = vmatpush.bf16.msrb.mxu2 %v11718_v37  ;;  %v12147_v37 = vld [vmem:[%s14380_s7 + $0x16f8] sm:$0xf0]  ;;  %v13134_v44 = vld [vmem:[%s14380_s7 + $0x146c] sm:$0xf] }
 0x495   : > { %8633 = vmatpush.bf16.msra.mxu3 %v11270_v47  ;;  %v11827_v42 = vld [vmem:[%s14380_s7 + $0x1478] sm:$0xf0]  ;;  %v12150_v47 = vor.u32 %v13214_v33, %v12147_v37  ;;  %v13210_v49 = vld [vmem:[%s14380_s7 + $0x16cc] sm:$0xf] }
 0x496   : > { %8643 = vmatpush.bf16.msrb.mxu0 %v11446_v10  ;;  %v12278_v10 = vor.u32 %v13246_v38, %v12275_v46  ;;  %v12131_v50 = vld [vmem:[%s14380_s7 + $0x16d8] sm:$0xf0]  ;;  %v13242_v51 = vld [vmem:[%s14380_s7 + $0x17cc] sm:$0xf]  ;;  %v11830_v52 = vor.u32 %v13134_v44, %v11827_v42 }
 0x497   : > { %8656 = vmatpush.bf16.msrb.mxu1 %v11574_v11  ;;  %v13178_v11 = vld [vmem:[%s14380_s7 + $0x15cc] sm:$0xf]  ;;  %v11811_v54 = vld [vmem:[%s14380_s7 + $0x1458] sm:$0xf0]  ;;  %v12134_v62 = vor.u32 %v13210_v49, %v12131_v50 }
 0x498   : > { %8669 = vmatpush.bf16.msrb.mxu2 %v11702_v48  ;;  %8634 = vmatmul.bf16.vlgmr.msra.gmra.mxu3 %v14774_v18  ;;  %v13058_v18 = vld [vmem:[%s14380_s7 + $0x120c] sm:$0xf]  ;;  %v12003_v48 = vld [vmem:[%s14380_s7 + $0x15d8] sm:$0xf0] }
 0x499   : > { %8678 = vmatpush.bf16.msrb.mxu3 %v11894_v43  ;;  %v11526_v39 = vor.u32 %v13058_v18, %v11523_v56  ;;  %v12259_v43 = vld [vmem:[%s14380_s7 + $0x17d8] sm:$0xf0]  ;;  %v12006_v5 = vor.u32 %v13178_v11, %v12003_v48  ;;  %v13130_v4 = vld [vmem:[%s14380_s7 + $0x144c] sm:$0xf] }
 0x49a   : > { %8644 = vmatpush.bf16.msrb.mxu0 %v11430_v61  ;;  %v12262_v0 = vor.u32 %v13242_v51, %v12259_v43  ;;  %v13206_v26 = vld [vmem:[%s14380_s7 + $0x16ac] sm:$0xf]  ;;  %v12115_v21 = vld [vmem:[%s14380_s7 + $0x16b8] sm:$0xf0]  ;;  %v11814_v2 = vor.u32 %v13130_v4, %v11811_v54 }
 0x49b   : > { %8657 = vmatpush.bf16.msrb.mxu1 %v11558_v25  ;;  %v8427_v61 = vpop.f32.mrf.mxu3  ;;  %v13174_v25 = vld [vmem:[%s14380_s7 + $0x15ac] sm:$0xf]  ;;  %v11795_v63 = vld [vmem:[%s14380_s7 + $0x1438] sm:$0xf0] }
 0x49c   : > { %8670 = vmatpush.bf16.msrb.mxu2 %v11686_v20  ;;  %v11987_v20 = vld [vmem:[%s14380_s7 + $0x15b8] sm:$0xf0]  ;;  %v13238_v1 = vld [vmem:[%s14380_s7 + $0x17ac] sm:$0xf] }
 0x49d   : > { %8679 = vmatpush.bf16.msrb.mxu3 %v11878_v41  ;;  %v12243_v41 = vld [vmem:[%s14380_s7 + $0x17b8] sm:$0xf0]  ;;  %v11990_v57 = vor.u32 %v13174_v25, %v11987_v20  ;;  %v13126_v58 = vld [vmem:[%s14380_s7 + $0x142c] sm:$0xf] }
 0x49e   : > { %8645 = vmatpush.bf16.msrb.mxu0 %v11414_v6  ;;  %v12246_v24 = vor.u32 %v13238_v1, %v12243_v41  ;;  %v13170_v6 = vld [vmem:[%s14380_s7 + $0x158c] sm:$0xf]  ;;  %v11971_v7 = vld [vmem:[%s14380_s7 + $0x1598] sm:$0xf0]  ;;  %v11798_v56 = vor.u32 %v13126_v58, %v11795_v63 }
 0x49f   : > { %8658 = vmatpush.bf16.msrb.mxu1 %v11542_v53  ;;  %v13202_v55 = vld [vmem:[%s14380_s7 + $0x168c] sm:$0xf]  ;;  %v12099_v53 = vld [vmem:[%s14380_s7 + $0x1698] sm:$0xf0]  ;;  %v11974_v31 = vor.u32 %v13170_v6, %v11971_v7 }
 0x4a0   : > { %8671 = vmatpush.bf16.msrb.mxu2 %v11670_v8  ;;  %v12227_v8 = vld [vmem:[%s14380_s7 + $0x1798] sm:$0xf0]  ;;  %v12102_v3 = vor.u32 %v13202_v55, %v12099_v53  ;;  %v13198_v38 = vld [vmem:[%s14380_s7 + $0x166c] sm:$0xf] }
 0x4a1   : > { %8680 = vmatpush.bf16.msrb.mxu3 %v11862_v12  ;;  %v13122_v12 = vld [vmem:[%s14380_s7 + $0x140c] sm:$0xf]  ;;  %v11779_v35 = vld [vmem:[%s14380_s7 + $0x1418] sm:$0xf0] }
 0x4a2   : > { %8646 = vmatpush.bf16.msrb.mxu0 %v11398_v36  ;;  %v8440_v18 = vpop.f32.mrf.mxu0  ;;  %v13166_v36 = vld [vmem:[%s14380_s7 + $0x156c] sm:$0xf]  ;;  %v11955_v37 = vld [vmem:[%s14380_s7 + $0x1578] sm:$0xf0]  ;;  %v11782_v44 = vor.u32 %v13122_v12, %v11779_v35 }
 0x4a3   : > { %8659 = vmatpush.bf16.msrb.mxu1 %v11526_v39  ;;  %v8453_v34 = vpop.f32.mrf.mxu1  ;;  %v8429_v29 = vpop.f32.mrf.mxu3  ;;  %v12083_v46 = vld [vmem:[%s14380_s7 + $0x1678] sm:$0xf0]  ;;  %v13230_v39 = vld [vmem:[%s14380_s7 + $0x176c] sm:$0xf]  ;;  %v11958_v42 = vor.u32 %v13166_v36, %v11955_v37 }
 0x4a4   : > { %8672 = vmatpush.bf16.msrb.mxu2 %v11654_v45  ;;  %v12211_v45 = vld [vmem:[%s14380_s7 + $0x1778] sm:$0xf0]  ;;  %v13162_v11 = vld [vmem:[%s14380_s7 + $0x154c] sm:$0xf] }
 0x4a5   : > { %8681 = vmatpush.bf16.msrb.mxu3 %v11846_v32  ;;  %8647 = vmatmul.bf16.vlgmr.msrb.gmra.mxu0 %v14780_v23  ;;  %v8428_v23 = vadd.f32 %v8427_v61, %v3458_v60  ;;  %v13262_v32 = vld [vmem:[%s14380_s7 + $0x186c] sm:$0xf]  ;;  %v11939_v48 = vld [vmem:[%s14380_s7 + $0x1558] sm:$0xf0] }
 0x4a6   : > { %8691 = vmatpush.bf16.msra.mxu0 %v12022_v9  ;;  %8660 = vmatmul.bf16.vlgmr.msrb.gmra.mxu1 %v14778_v22  ;;  %v13234_v22 = vld [vmem:[%s14380_s7 + $0x178c] sm:$0xf]  ;;  %v12339_v9 = vld [vmem:[%s14380_s7 + $0x1878] sm:$0xf0]  ;;  %v11942_v61 = vor.u32 %v13162_v11, %v11939_v48 }
 0x4a7   : > { %8704 = vmatpush.bf16.msra.mxu1 %v12150_v47  ;;  %8673 = vmatmul.bf16.vlgmr.msrb.gmra.mxu2 %v14782_v27  ;;  %v12118_v27 = vor.u32 %v13206_v26, %v12115_v21  ;;  %v8441_v17 = vadd.f32 %v8440_v18, %v8428_v23  ;;  %v12230_v33 = vor.u32 %v13234_v22, %v12227_v8  ;;  %v13194_v49 = vld [vmem:[%s14380_s7 + $0x164c] sm:$0xf]  ;;  %v12067_v43 = vld [vmem:[%s14380_s7 + $0x1658] sm:$0xf0] }
 0x4a8   : > { %8717 = vmatpush.bf16.msra.mxu2 %v12278_v10  ;;  %v12086_v47 = vor.u32 %v13198_v38, %v12083_v46  ;;  %v12214_v10 = vor.u32 %v13230_v39, %v12211_v45  ;;  %v12342_v51 = vor.u32 %v13262_v32, %v12339_v9  ;;  %v13258_v54 = vld [vmem:[%s14380_s7 + $0x184c] sm:$0xf]  ;;  %v12323_v59 = vld [vmem:[%s14380_s7 + $0x1858] sm:$0xf0] }
 0x4a9   : > { %8682 = vmatpush.bf16.msrb.mxu3 %v11830_v52  ;;  %v8454_v40 = vadd.f32 %v8453_v34, %v8441_v17  ;;  %v13226_v52 = vld [vmem:[%s14380_s7 + $0x174c] sm:$0xf]  ;;  %v11923_v26 = vld [vmem:[%s14380_s7 + $0x1538] sm:$0xf0]  ;;  %v12326_v1 = vor.u32 %v13258_v54, %v12323_v59 }
 0x4aa   : > { %8692 = vmatpush.bf16.msra.mxu0 %v12006_v5  ;;  %v8466_v50 = vpop.f32.mrf.mxu2  ;;  %v12195_v5 = vld [vmem:[%s14380_s7 + $0x1758] sm:$0xf0]  ;;  %v8442_v60 = vpop.f32.mrf.mxu0  ;;  %v13158_v20 = vld [vmem:[%s14380_s7 + $0x152c] sm:$0xf] }
 0x4ab   : > { %8705 = vmatpush.bf16.msra.mxu1 %v12134_v62  ;;  %v8467_v4 = vadd.f32 %v8466_v50, %v8454_v40  ;;  %v8455_v62 = vpop.f32.mrf.mxu1  ;;  %v12198_v25 = vor.u32 %v13226_v52, %v12195_v5  ;;  %v13190_v21 = vld [vmem:[%s14380_s7 + $0x162c] sm:$0xf]  ;;  %v12051_v41 = vld [vmem:[%s14380_s7 + $0x1638] sm:$0xf0]  ;;  %v11926_v23 = vor.u32 %v13158_v20, %v11923_v26  ;;  %v8743_v26 = vmax.f32 %v15210_v28, 0.0 }
 0x4ac   : > { %8718 = vmatpush.bf16.msra.mxu2 %v12262_v0  ;;  %v12070_v0 = vor.u32 %v13194_v49, %v12067_v43  ;;  %v13254_v58 = vld [vmem:[%s14380_s7 + $0x182c] sm:$0xf]  ;;  %v12307_v63 = vld [vmem:[%s14380_s7 + $0x1838] sm:$0xf0] }
 0x4ad   : > { %8683 = vmatpush.bf16.msrb.mxu3 %v11814_v2  ;;  %v13222_v2 = vld [vmem:[%s14380_s7 + $0x172c] sm:$0xf]  ;;  %v11907_v7 = vld [vmem:[%s14380_s7 + $0x1518] sm:$0xf0] }
 0x4ae   : > { %8693 = vmatpush.bf16.msra.mxu0 %v11990_v57  ;;  %v12179_v57 = vld [vmem:[%s14380_s7 + $0x1738] sm:$0xf0]  ;;  %v13154_v6 = vld [vmem:[%s14380_s7 + $0x150c] sm:$0xf] }
 0x4af   : > { %8706 = vmatpush.bf16.msra.mxu1 %v12118_v27  ;;  %v12054_v27 = vor.u32 %v13190_v21, %v12051_v41  ;;  %v13186_v55 = vld [vmem:[%s14380_s7 + $0x160c] sm:$0xf]  ;;  %v12035_v22 = vld [vmem:[%s14380_s7 + $0x1618] sm:$0xf0]  ;;  %v8744_v21 = vmax.f32 %v15639_v19, 0.0  ;;  %v8745_v41 = vmax.f32 %v16077_v30, 0.0 }
 0x4b0   : > { %8719 = vmatpush.bf16.msra.mxu2 %v12246_v24  ;;  %v12182_v24 = vor.u32 %v13222_v2, %v12179_v57  ;;  %v13218_v8 = vld [vmem:[%s14380_s7 + $0x170c] sm:$0xf]  ;;  %v12163_v18 = vld [vmem:[%s14380_s7 + $0x1718] sm:$0xf0]  ;;  %v12038_v35 = vor.u32 %v13186_v55, %v12035_v22  ;;  %v8747_v2 = vpack.c.bf16 %v8743_v26, %v8743_v26 }
 0x4b1   : > { %8684 = vmatpush.bf16.msrb.mxu3 %v11798_v56  ;;  %v11910_v56 = vor.u32 %v13154_v6, %v11907_v7  ;;  %v12291_v12 = vld [vmem:[%s14380_s7 + $0x1818] sm:$0xf0]  ;;  %v12166_v17 = vor.u32 %v13218_v8, %v12163_v18  ;;  %v13272_v34 = vld [vmem:[%s14378_s6 + $0x38] sm:$0xff]  ;;  %v13271_v36 = vld [vmem:[%s14378_s6 + $0x30] sm:$0xff]  ;;  %v8748_v57 = vpack.c.bf16 %v8744_v21, %v8744_v21 }
 0x4b2   : > { %8694 = vmatpush.bf16.msra.mxu0 %v11974_v31  ;;  %v8468_v53 = vpop.f32.mrf.mxu2  ;;  %v13250_v31 = vld [vmem:[%s14380_s7 + $0x180c] sm:$0xf]  ;;  %v13270_v45 = vld [vmem:[%s14378_s6 + $0x28] sm:$0xff]  ;;  %v13368_v32 = vld [vmem:[#allocation1] sm:$0xff] }
 0x4b3   : > { %8707 = vmatpush.bf16.msra.mxu1 %v12102_v3  ;;  %v13280_v29 = vld [vmem:[%s14378_s6 + $0x78] sm:$0xff]  ;;  %v13279_v37 = vld [vmem:[%s14378_s6 + $0x70] sm:$0xff]  ;;  %v13278_v40 = vld [vmem:[%s14378_s6 + $0x68] sm:$0xff] }
 0x4b4   : > { %8720 = vmatpush.bf16.msra.mxu2 %v12230_v33  ;;  %v13288_v3 = vld [vmem:[%s14378_s6 + $0xb8] sm:$0xff]  ;;  %v12294_v33 = vor.u32 %v13250_v31, %v12291_v12  ;;  %v13287_v46 = vld [vmem:[%s14378_s6 + $0xb0] sm:$0xff]  ;;  %v13286_v9 = vld [vmem:[%s14378_s6 + $0xa8] sm:$0xff] }
 0x4b5   : > { %8685 = vmatpush.bf16.msrb.mxu3 %v11782_v44  ;;  %v13268_v48 = vld [vmem:[%s14378_s6 + $0x18] sm:$0xff]  ;;  %v13267_v5 = vld [vmem:[%s14378_s6 + $0x10] sm:$0xff]  ;;  %v13266_v60 = vld [vmem:[%s14378_s6 + $0x8] sm:$0xff] }
 0x4b6   : > { %8695 = vmatpush.bf16.msra.mxu0 %v11958_v42  ;;  %v13277_v42 = vld [vmem:[%s14378_s6 + $0x60] sm:$0xff]  ;;  %v13276_v49 = vld [vmem:[%s14378_s6 + $0x58] sm:$0xff]  ;;  %v13283_v59 = vld [vmem:[%s14378_s6 + $0x90] sm:$0xff] }
 0x4b7   : > { %8708 = vmatpush.bf16.msra.mxu1 %v12086_v47  ;;  %v13284_v50 = vld [vmem:[%s14378_s6 + $0x98] sm:$0xff]  ;;  %v13282_v62 = vld [vmem:[%s14378_s6 + $0x88] sm:$0xff]  ;;  %v13273_v20 = vld [vmem:[%s14378_s6 + $0x40] sm:$0xff] }
 0x4b8   : > { %8721 = vmatpush.bf16.msra.mxu2 %v12214_v10  ;;  %8686 = vmatmul.bf16.vlgmr.msrb.gmra.mxu3 %v14813_v13  ;;  %v12310_v13 = vor.u32 %v13254_v58, %v12307_v63  ;;  %v13285_v10 = vld [vmem:[%s14378_s6 + $0xa0] sm:$0xff]  ;;  %v8749_v58 = vpack.c.bf16 %v8745_v41, %v8745_v41  ;;  %v13296_v31 = vld [vmem:[%s14378_s6 + $0xf8] sm:$0xff] }
 0x4b9   : > { %8734 = vmatpush.bf16.msra.mxu3 %v12342_v51 }
 0x4ba   : > { %8696 = vmatpush.bf16.msra.mxu0 %v11942_v61  ;;  %v13274_v61 = vld [vmem:[%s14378_s6 + $0x48] sm:$0xff] }
 0x4bb   : > { %8709 = vmatpush.bf16.msra.mxu1 %v12070_v0  ;;  %v8479_v38 = vpop.f32.mrf.mxu3 }
 0x4bc   : > { %8722 = vmatpush.bf16.msra.mxu2 %v12198_v25  ;;  %v8480_v39 = vadd.f32 %v8479_v38, %v8467_v4  ;;  %v13275_v4 = vld [vmem:[%s14378_s6 + $0x50] sm:$0xff]  ;;  %v13265_v25 = vld [vmem:[%s14378_s6] sm:$0xff] }
 0x4bd   : > { %8735 = vmatpush.bf16.msra.mxu3 %v12326_v1  ;;  %v13281_v1 = vld [vmem:[%s14378_s6 + $0x80] sm:$0xff] }
 0x4be   : > { %8697 = vmatpush.bf16.msra.mxu0 %v11926_v23 }
 0x4bf   : > { %8710 = vmatpush.bf16.msra.mxu1 %v12054_v27 }
 0x4c0   : > { %8723 = vmatpush.bf16.msra.mxu2 %v12182_v24 }
 0x4c1   : > { %8736 = vmatpush.bf16.msra.mxu3 %v12310_v13 }
 0x4c2   : > { %8698 = vmatpush.bf16.msra.mxu0 %v11910_v56  ;;  %v8492_v44 = vpop.f32.mrf.mxu0 }
 0x4c3   : > { %8711 = vmatpush.bf16.msra.mxu1 %v12038_v35  ;;  %v8481_v47 = vpop.f32.mrf.mxu3  ;;  %v13295_v35 = vld [vmem:[%s14378_s6 + $0xf0] sm:$0xff] }
 0x4c4   : > { %8724 = vmatpush.bf16.msra.mxu2 %v12166_v17 }
 0x4c5   : > { %8737 = vmatpush.bf16.msra.mxu3 %v12294_v33  ;;  %8699 = vmatmul.bf16.vlgmr.msra.gmra.mxu0 %v14817_v15  ;;  %v8493_v15 = vadd.f32 %v8492_v44, %v8480_v39  ;;  %v13293_v33 = vld [vmem:[%s14378_s6 + $0xe0] sm:$0xff] }
 0x4c6   : > { %9008 = vmatpush.bf16.msrb.mxu0 %v13272_v34  ;;  %8712 = vmatmul.bf16.vlgmr.msra.gmra.mxu1 %v14815_v14  ;;  %v13269_v14 = vld [vmem:[%s14378_s6 + $0x20] sm:$0xff] }
 0x4c7   : > { %9021 = vmatpush.bf16.msrb.mxu1 %v13280_v29  ;;  %8725 = vmatmul.bf16.vlgmr.msra.gmra.mxu2 %v14819_v16  ;;  %v8505_v16 = vpop.f32.mrf.mxu1 }
 0x4c8   : > { %9034 = vmatpush.bf16.msrb.mxu2 %v13288_v3  ;;  %12346 = vmatmul.msk.bf16.vlgmr.msra.gmra.mxu3 %vm7440_vm0, %v13368_v32  ;;  %v8506_v11 = vadd.f32 %v8505_v16, %v8493_v15  ;;  %v13294_v3 = vld [vmem:[%s14378_s6 + $0xe8] sm:$0xff] }
 0x4c9   : > { %9047 = vmatpush.bf16.msrb.mxu3 %v13296_v31  ;;  %v13290_v32 = vld [vmem:[%s14378_s6 + $0xc8] sm:$0xff] }
 0x4ca   : > { %9009 = vmatpush.bf16.msrb.mxu0 %v13271_v36  ;;  %v8518_v51 = vpop.f32.mrf.mxu2  ;;  %v8494_v52 = vpop.f32.mrf.mxu0 }
 0x4cb   : > { %9022 = vmatpush.bf16.msrb.mxu1 %v13279_v37  ;;  %v8519_v43 = vadd.f32 %v8518_v51, %v8506_v11  ;;  %v13292_v37 = vld [vmem:[%s14378_s6 + $0xd8] sm:$0xff] }
 0x4cc   : > { %9035 = vmatpush.bf16.msrb.mxu2 %v13287_v46 }
 0x4cd   : > { %9048 = vmatpush.bf16.msrb.mxu3 %v13295_v35 }
 0x4ce   : > { %9010 = vmatpush.bf16.msrb.mxu0 %v13270_v45  ;;  %v13291_v45 = vld [vmem:[%s14378_s6 + $0xd0] sm:$0xff] }
 0x4cf   : > { %9023 = vmatpush.bf16.msrb.mxu1 %v13278_v40  ;;  %v8507_v54 = vpop.f32.mrf.mxu1 }
 0x4d0   : > { %9036 = vmatpush.bf16.msrb.mxu2 %v13286_v9 }
 0x4d1   : > { %9049 = vmatpush.bf16.msrb.mxu3 %v13294_v3 }
 0x4d2   : > { %9011 = vmatpush.bf16.msrb.mxu0 %v13269_v14  ;;  %v8520_v0 = vpop.f32.mrf.mxu2  ;;  %v13289_v14 = vld [vmem:[%s14378_s6 + $0xc0] sm:$0xff] }
 0x4d3   : > { %9024 = vmatpush.bf16.msrb.mxu1 %v13277_v42 }
 0x4d4   : > { %9037 = vmatpush.bf16.msrb.mxu2 %v13285_v10 }
 0x4d5   : > { %9050 = vmatpush.bf16.msrb.mxu3 %v13293_v33 }
 0x4d6   : > { %9012 = vmatpush.bf16.msrb.mxu0 %v13268_v48 }
 0x4d7   : > { %9025 = vmatpush.bf16.msrb.mxu1 %v13276_v49 }
 0x4d8   : > { %9038 = vmatpush.bf16.msrb.mxu2 %v13284_v50 }
 0x4d9   : > { %9051 = vmatpush.bf16.msrb.mxu3 %v13292_v37 }
 0x4da   : > { %9013 = vmatpush.bf16.msrb.mxu0 %v13267_v5 }
 0x4db   : > { %9026 = vmatpush.bf16.msrb.mxu1 %v13275_v4  ;;  %v8531_v63 = vpop.f32.mrf.mxu3 }
 0x4dc   : > { %9039 = vmatpush.bf16.msrb.mxu2 %v13283_v59  ;;  %v8532_v23 = vadd.f32 %v8531_v63, %v8519_v43 }
 0x4dd   : > { %9052 = vmatpush.bf16.msrb.mxu3 %v13291_v45 }
 0x4de   : > { %9014 = vmatpush.bf16.msrb.mxu0 %v13266_v60 }
 0x4df   : > { %9027 = vmatpush.bf16.msrb.mxu1 %v13274_v61 }
 0x4e0   : > { %9040 = vmatpush.bf16.msrb.mxu2 %v13282_v62 }
 0x4e1   : > { %9053 = vmatpush.bf16.msrb.mxu3 %v13290_v32 }
 0x4e2   : > { %9015 = vmatpush.bf16.msrb.mxu0 %v13265_v25  ;;  %v8544_v27 = vpop.f32.mrf.mxu0 }
 0x4e3   : > { %9028 = vmatpush.bf16.msrb.mxu1 %v13273_v20  ;;  %v8545_v28 = vadd.f32 %v8544_v27, %v8532_v23  ;;  %v8557_v19 = vpop.f32.mrf.mxu1  ;;  %v8533_v24 = vpop.f32.mrf.mxu3 }
 0x4e4   : > { %9041 = vmatpush.bf16.msrb.mxu2 %v13281_v1  ;;  %v8751_v24 = vld [vmem:[#allocation2] sm:$0x3] }
 0x4e5   : > { %9016 = vmatmul.bf16.vlgmr.msrb.gmra.mxu0 %v8747_v2  ;;  %v8558_v6 = vadd.f32 %v8557_v19, %v8545_v28  ;;  %9054 = vmatpush.bf16.msrb.mxu3 %v13289_v14 }
 0x4e6   : > { %9029 = vmatmul.bf16.vlgmr.msrb.gmra.mxu1 %v8748_v57 }
 0x4e7   : > { %9042 = vmatmul.bf16.vlgmr.msrb.gmra.mxu2 %v8749_v58 }
 0x4ea   : > { %v8570_v7 = vpop.f32.mrf.mxu2  ;;  %v8546_v55 = vpop.f32.mrf.mxu0 }
 0x4eb   : > { %v8571_v30 = vadd.f32 %v8570_v7, %v8558_v6  ;;  %v8559_v53 = vpop.f32.mrf.mxu1 }
 0x4f2   : > { %v8572_v13 = vpop.f32.mrf.mxu2 }
 0x4fb   : > { %v8583_v22 = vpop.f32.mrf.mxu3 }
 0x4fc   : > { %v8584_v15 = vadd.f32 %v8583_v22, %v8571_v30 }
 0x502   : > { %v8596_v8 = vpop.f32.mrf.mxu0 }
 0x503   : > { %v8609_v18 = vpop.f32.mrf.mxu1  ;;  %v8585_v56 = vpop.f32.mrf.mxu3  ;;  %v8597_v42 = vadd.f32 %v8596_v8, %v8584_v15 }
 0x505   : > { %v8610_v47 = vadd.f32 %v8609_v18, %v8597_v42 }
 0x50a   : > { %v8622_v12 = vpop.f32.mrf.mxu2  ;;  %v8598_v17 = vpop.f32.mrf.mxu0 }
 0x50b   : > { %v8611_v34 = vpop.f32.mrf.mxu1  ;;  %v8623_v10 = vadd.f32 %v8622_v12, %v8610_v47 }
 0x512   : > { %v8624_v29 = vpop.f32.mrf.mxu2 }
 0x51b   : > { %v8635_v36 = vpop.f32.mrf.mxu3 }
 0x51c   : > { %v8636_v11 = vadd.f32 %v8635_v36, %v8623_v10 }
 0x522   : > { %v8648_v38 = vpop.f32.mrf.mxu0 }
 0x523   : > { %v8661_v46 = vpop.f32.mrf.mxu1  ;;  %v8637_v39 = vpop.f32.mrf.mxu3  ;;  %v8649_v48 = vadd.f32 %v8648_v38, %v8636_v11 }
 0x525   : > { %v8662_v50 = vadd.f32 %v8661_v46, %v8649_v48 }
 0x52a   : > { %v8674_v40 = vpop.f32.mrf.mxu2  ;;  %v8650_v9 = vpop.f32.mrf.mxu0 }
 0x52b   : > { %v8663_v44 = vpop.f32.mrf.mxu1  ;;  %v8675_v51 = vadd.f32 %v8674_v40, %v8662_v50 }
 0x532   : > { %v8676_v16 = vpop.f32.mrf.mxu2 }
 0x53b   : > { %v8687_v49 = vpop.f32.mrf.mxu3 }
 0x53c   : > { %v8688_v43 = vadd.f32 %v8687_v49, %v8675_v51 }
 0x542   : > { %v8700_v52 = vpop.f32.mrf.mxu0 }
 0x543   : > { %v8713_v5 = vpop.f32.mrf.mxu1  ;;  %v8689_v4 = vpop.f32.mrf.mxu3  ;;  %v8701_v54 = vadd.f32 %v8700_v52, %v8688_v43 }
 0x545   : > { %v8714_v59 = vadd.f32 %v8713_v5, %v8701_v54 }
 0x54a   : > { %v8726_v60 = vpop.f32.mrf.mxu2  ;;  %v8702_v62 = vpop.f32.mrf.mxu0 }
 0x54b   : > { %v8727_v61 = vadd.f32 %v8726_v60, %v8714_v59  ;;  %v8715_v0 = vpop.f32.mrf.mxu1  ;;  %v8739_v25 = vpop.f32.mrf.mxu3 }
 0x54d   : > { %v8740_v20 = vadd.f32 %v8739_v25, %v8727_v61 }
 0x54f   : > { %v8746_v26 = vmax.f32 %v8740_v20, 0.0 }
 0x551   : > { %v8750_v21 = vpack.c.bf16 %v8746_v26, %v8746_v26 }
 0x552   : > { %v8728_v1 = vpop.f32.mrf.mxu2 }
 0x553   : > { %9055 = vmatmul.bf16.vlgmr.msrb.gmra.mxu3 %v8750_v21  ;;  %v8741_v41 = vpop.f32.mrf.mxu3 }
 0x562   : > { %v9017_v2 = vpop.f32.mrf.mxu0 }
 0x563   : > { %v9030_v57 = vpop.f32.mrf.mxu1 }
 0x564   : > { %v9031_v58 = vadd.f32 %v9030_v57, %v9017_v2 }
 0x56a   : > { %v9043_v63 = vpop.f32.mrf.mxu2  ;;  %v9019_v27 = vpop.f32.mrf.mxu0 }
 0x56b   : > { %v9044_v23 = vadd.f32 %v9043_v63, %v9031_v58  ;;  %v9032_v28 = vpop.f32.mrf.mxu1 }
 0x572   : > { %v9045_v19 = vpop.f32.mrf.mxu2 }
 0x5d6   : > { %v9056_v6 = vpop.f32.mrf.mxu3 }
 0x5d7   : > { %v9057_v7 = vadd.f32 %v9056_v6, %v9044_v23 }
 0x5d9   : > { %v9060_v30 = vadd.f32 %v9057_v7, %v8751_v24 }
 0x5da   : > { %9065 = sbr.rel (%p12475_p13) target bundleno = 1775 (0x6ef), region = 85 }
 0x5db   : > { %9061 = vst [vmem:[#allocation2] sm:$0x3] %v9060_v30 }
 0x5de   : > { %v9058_v55 = vpop.f32.mrf.mxu3 }
 0x5df   : > { %v13369_v13 = vld [vmem:[%s16223_s4] ss:$0 sm:$0xff]  ;;  %v9072_v22 = vlaneseq  ;;  %vm9076_vm1 = vcmask 1041408  }
 0x5e1   : > { %v9073_v18 = vand.u32 127, %v9072_v22 }
 0x5e2   : > { %v9066_v53 = vld [vmem:[#allocation2] sm:$0x3] }
 0x5e3   : > { %v9071_v8 = vadd.f32 %v13369_v13, %v9066_v53  ;;  %vm9074_vm2 = vcmp.lt.s32.totalorder %v9073_v18, 10 }
 0x5e5   : > { %v9075_v56 = vsel %vm9074_vm2, %v9071_v8, -inf }
 0x5e6   : > { %v9077_v31 = vsel %vm9076_vm1, %v9075_v56, -inf }
 0x5e7   : > { %9078 = vmax.xlane.f32.xlu0 %v9077_v31 }
 0x65a   : > { %v9079_v12 = vpop.xlane.xlu0 %9078 }
 0x65b   : > { %v9080_v35 = vsub.f32 %v9075_v56, %v9079_v12 }
 0x65d   : > { %v9081_v17 = vmul.f32 1.442695, %v9080_v35 }
 0x65f   : > { %13370 = vpow2.f32 %v9081_v17 }
 0x665   : > { %v13371_v34 = vpop.eup %13370 }
 0x666   : > { %v9083_v29 = vsel %vm9076_vm1, %v13371_v34, 0.0 }
 0x667   : > { %9084 = vadd.xlane.f32.xlu0 %v9083_v29 }
 0x6da   : > { %v9085_v3 = vpop.xlane.xlu0 %9084 }
 0x6db   : > { %13372 = vrcp.f32 %v9085_v3  ;;  %v9097_v38 = vand.u32 2147483648, %v9085_v3  ;;  %v9095_v39 = vand.u32 2147483647, %v9085_v3  ;;  %vm9091_vm4 = vweird.f32 %v9085_v3 }
 0x6dd   : > { %v9098_v40 = vor.u32 1.1754944e-38, %v9097_v38  ;;  %vm9096_vm6 = vcmp.eq.f32.partialorder %v9095_v39, 8.507059e+37 }
 0x6e1   : > { %v13373_v33 = vpop.eup %13372 }
 0x6e2   : > { %v9087_v36 = vmul.f32 %v13373_v33, %v9085_v3  ;;  %vm9092_vm3 = vweird.f32 %v13373_v33 }
 0x6e3   : > { %vm9093_vm5 = vmor %vm9091_vm4, %vm9092_vm3 }
 0x6e4   : > { %v9088_v37 = vsub.f32 1.0, %v9087_v36 }
 0x6e6   : > { %v9089_v46 = vmul.f32 %v13373_v33, %v9088_v37 }
 0x6e8   : > { %v9090_v45 = vadd.f32 %v13373_v33, %v9089_v46 }
 0x6ea   : > { %v9094_v32 = vsel %vm9093_vm5, %v13373_v33, %v9090_v45 }
 0x6eb   : > { %v9099_v9 = vsel %vm9096_vm6, %v9098_v40, %v9094_v32 }
 0x6ec   : > { %v9100_v44 = vmul.f32 %v13371_v34, %v9099_v9 }
 0x6ee   : > { %9101 = vst [vmem:[#allocation4] sm:$0x3] %v9100_v44 }
 0x6ef PF: > { %p13303_p0 = scmp.eq.s32.totalorder %s13510_s21, 1  ;;  %s13463_s17 = smov [#allocation4]  }
 0x6f0   : > { %s9108_s23 = sshll.u32 %s13463_s17, 4  ;;  %s9110_s27 = sshll.u32 %s16224_s5, 4  ;;  %s9109_s23 = int_to_ptr.vmem [resolvable:$true] %s9108_s23  ;;  %s9111_s27 = int_to_ptr.hbm [resolvable:$true] %s9110_s27 }
 0x6f1   : > { %13300 = dma.vmem_to_hbm [thread:$0]  (%p13303_p0), %s9109_s23, 32, %s9111_s27, [#allocation5]  }
 0x6f2   : > { %13431 = dma.done.wait (%p13303_p0), [#allocation5], 32  }
 0x6f3   : > { %13433 = vsyncadd (%p13303_p0), [#allocation5], 4294967264 }
 0x6f4 PF: > { %p13_p1 = scmp.ge.s32.totalorder %s13513_s22, 4   ;;  %s16230_s18 = smov %s13440_s19 }
 0x6f5   : > { %s16231_s19 = smov %s13522_s25  ;;  %s16232_s20 = smov %s13513_s22 }
 0x6f6   :  { %15 = sbr.rel (!%p13_p1) target bundleno = 2 (0x2), region = 136 }
 0x6fb   :  { %9124 = vsyncpa [#allocation5], 1 }
 0x6fc   :  { %9126 = vsyncpa [#allocation5 + $0x1], 1 }

</bundles_post_ra>
